<compile_context>
chip_gen: v5e
topology: v5e:2x2
jax: 0.10.0
libtpu: 0.0.40
codegen_flags: <defaults>
</compile_context>

<pallas_src>
import functools
import math

import jax
import jax.numpy as jnp
from jax.experimental import pallas as pl
from jax.experimental.pallas import tpu as pltpu

EPS = 1e-5


# --------------------------------------------------------------------------
# small helpers
# --------------------------------------------------------------------------

def _vmem_limit_bytes():
    # generation-aware scoped-VMEM budget (~96 MiB on v5e/v6e, ~48 MiB on v7x)
    try:
        cap = pltpu.get_tpu_info().vmem_capacity_bytes
        return int(min(96 * 2 ** 20, (cap * 3) // 4))
    except Exception:
        return 48 * 2 ** 20


def _row_tile(m, pref=256):
    for t in (pref, 512, 256, 128, 64, 32, 16, 8):
        if t <= m and m % t == 0:
            return t
    return m


def _gconv_chunk(g, d):
    # smallest multiple of the group width D that divides G and is >= 128
    for c in range(d, g + 1, d):
        if g % c == 0 and c >= 128:
            return c
    return g


def _fold_bn(s, q, count, gamma, beta):
    # fold training-mode BN (batch statistics) into per-channel scale / bias
    mean = s / count
    var = jnp.maximum(q / count - mean * mean, 0.0)
    a = gamma * jax.lax.rsqrt(var + EPS)
    b = beta - mean * a
    return a, b


# --------------------------------------------------------------------------
# kernels
# --------------------------------------------------------------------------

def conv1x1_stats_kernel(x_ref, w_ref, y_ref, sum_ref, sq_ref):
    """y = x @ w (pre-BN) for one row tile; accumulate per-channel sum/sumsq."""
    @pl.when(pl.program_id(0) == 0)
    def _init():
        sum_ref[...] = jnp.zeros_like(sum_ref)
        sq_ref[...] = jnp.zeros_like(sq_ref)

    w = w_ref[...]
    y = jnp.dot(x_ref[...].astype(w.dtype), w, preferred_element_type=jnp.float32)
    y_ref[...] = y
    sum_ref[...] += jnp.sum(y, axis=0, keepdims=True)
    sq_ref[...] += jnp.sum(y * y, axis=0, keepdims=True)


def gconv3x3_stats_kernel(x_ref, a_ref, b_ref, w_ref, o_ref, sum_ref, sq_ref,
                          pad_ref, *, stride, hout, wout):
    """One (image, channel-chunk) tile of the grouped 3x3 conv.

    Prologue folds BN1 (per-channel scale/bias) + ReLU into the loaded tile,
    padding happens in a VMEM scratch, the 9 taps are block-diagonal channel
    matmuls, and per-channel sum/sumsq of the pre-BN output are accumulated
    across the image grid axis for BN2.
    """
    n = pl.program_id(1)

    @pl.when(n == 0)
    def _init():
        sum_ref[...] = jnp.zeros_like(sum_ref)
        sq_ref[...] = jnp.zeros_like(sq_ref)

    _, h_in, w_in, ch = x_ref.shape
    x = jnp.maximum(x_ref[0] * a_ref[...] + b_ref[...], 0.0)

    # zero-pad into VMEM scratch (no wrapper-side jnp.pad HBM round trip)
    pad_ref[...] = jnp.zeros_like(pad_ref)
    pad_ref[1:h_in + 1, 1:w_in + 1, :] = x
    xp = pad_ref[...]

    acc = jnp.zeros((hout * wout, ch), jnp.float32)
    for ky in range(3):
        for kx in range(3):
            if stride == 1:
                patch = xp[ky:ky + hout, kx:kx + wout, :]
            else:
                # TODO(synk): strided-window path is not exercised by the test
                # below; a pltpu.roll-based formulation would avoid relayouts.
                patch = pad_ref[pl.ds(ky, hout, stride),
                                pl.ds(kx, wout, stride), :]
            wt = w_ref[0, ky * 3 + kx]
            acc = acc + jnp.dot(patch.reshape(hout * wout, ch).astype(wt.dtype),
                                wt, preferred_element_type=jnp.float32)

    o_ref[0] = acc.reshape(hout, wout, ch)
    sum_ref[...] += jnp.sum(acc, axis=0, keepdims=True)
    sq_ref[...] += jnp.sum(acc * acc, axis=0, keepdims=True)


def conv1x1_pair_stats_kernel(h_ref, a_ref, b_ref, w_ref, xs_ref, ws_ref,
                              y_ref, s_ref, ysum_ref, ysq_ref, ssum_ref, ssq_ref):
    """Fold BN2 + ReLU, then y = h @ w3 and projection shortcut s = xs @ ws
    (both pre-BN) plus their per-channel statistics."""
    @pl.when(pl.program_id(0) == 0)
    def _init():
        ysum_ref[...] = jnp.zeros_like(ysum_ref)
        ysq_ref[...] = jnp.zeros_like(ysq_ref)
        ssum_ref[...] = jnp.zeros_like(ssum_ref)
        ssq_ref[...] = jnp.zeros_like(ssq_ref)

    w = w_ref[...]
    h = jnp.maximum(h_ref[...] * a_ref[...] + b_ref[...], 0.0)
    y = jnp.dot(h.astype(w.dtype), w, preferred_element_type=jnp.float32)
    y_ref[...] = y
    ysum_ref[...] += jnp.sum(y, axis=0, keepdims=True)
    ysq_ref[...] += jnp.sum(y * y, axis=0, keepdims=True)

    ws = ws_ref[...]
    s = jnp.dot(xs_ref[...].astype(ws.dtype), ws, preferred_element_type=jnp.float32)
    s_ref[...] = s
    ssum_ref[...] += jnp.sum(s, axis=0, keepdims=True)
    ssq_ref[...] += jnp.sum(s * s, axis=0, keepdims=True)


def conv1x1_single_stats_kernel(h_ref, a_ref, b_ref, w_ref,
                                y_ref, ysum_ref, ysq_ref):
    """Same as above but the shortcut is the identity (handled in stage 4)."""
    @pl.when(pl.program_id(0) == 0)
    def _init():
        ysum_ref[...] = jnp.zeros_like(ysum_ref)
        ysq_ref[...] = jnp.zeros_like(ysq_ref)

    w = w_ref[...]
    h = jnp.maximum(h_ref[...] * a_ref[...] + b_ref[...], 0.0)
    y = jnp.dot(h.astype(w.dtype), w, preferred_element_type=jnp.float32)
    y_ref[...] = y
    ysum_ref[...] += jnp.sum(y, axis=0, keepdims=True)
    ysq_ref[...] += jnp.sum(y * y, axis=0, keepdims=True)


def bn_add_relu_proj_kernel(y_ref, s_ref, ay_ref, by_ref, as_ref, bs_ref, o_ref):
    o_ref[...] = jnp.maximum(
        y_ref[...] * ay_ref[...] + by_ref[...]
        + s_ref[...] * as_ref[...] + bs_ref[...], 0.0)


def bn_add_relu_id_kernel(y_ref, s_ref, ay_ref, by_ref, o_ref):
    o_ref[...] = jnp.maximum(
        y_ref[...] * ay_ref[...] + by_ref[...] + s_ref[...], 0.0)


# --------------------------------------------------------------------------
# forward pass
# --------------------------------------------------------------------------

def resnext_block_forward(x, p, *, stride, mm_dtype=jnp.float32):
    """x: (N, H, W, Cin) float32 NHWC. Returns (N, Hout, Wout, 4*planes)."""
    f32 = jnp.float32
    N, H, W, Cin = x.shape
    G = p["w1"].shape[1]
    outC = p["w3"].shape[1]
    NC, _, CH, _ = p["w2_chunks"].shape
    M = N * H * W
    Hout = (H - 1) // stride + 1
    Wout = (W - 1) // stride + 1
    M2 = N * Hout * Wout
    vmem = _vmem_limit_bytes()

    x = x.astype(f32)
    # weights are cast once here; kernels cast activations to the weight dtype
    # (mm_dtype=jnp.bfloat16 enables the fast bf16 MXU path on v6e/v7x).
    w1 = p["w1"].astype(mm_dtype)
    w2c = p["w2_chunks"].astype(mm_dtype)
    w3 = p["w3"].astype(mm_dtype)

    # ---- stage 1: conv1 (1x1) -> pre-BN output + BN1 batch statistics ------
    TM = _row_tile(M)
    y1, s1, q1 = pl.pallas_call(
        conv1x1_stats_kernel,
        out_shape=[jax.ShapeDtypeStruct((M, G), f32),
                   jax.ShapeDtypeStruct((1, G), f32),
                   jax.ShapeDtypeStruct((1, G), f32)],
        grid_spec=pltpu.PrefetchScalarGridSpec(
            num_scalar_prefetch=0,
            grid=(M // TM,),
            in_specs=[pl.BlockSpec((TM, Cin), lambda i: (i, 0)),
                      pl.BlockSpec((Cin, G), lambda i: (0, 0))],
            out_specs=[pl.BlockSpec((TM, G), lambda i: (i, 0)),
                       pl.BlockSpec((1, G), lambda i: (0, 0)),
                       pl.BlockSpec((1, G), lambda i: (0, 0))]),
        compiler_params=pltpu.CompilerParams(
            dimension_semantics=("arbitrary",), vmem_limit_bytes=vmem),
    )(x.reshape(M, Cin), w1)
    a1, b1 = _fold_bn(s1, q1, M, p["g1"], p["b1"])

    # ---- stage 2: fold BN1 + ReLU, grouped 3x3 conv (stride, pad=1) --------
    k2 = functools.partial(gconv3x3_stats_kernel,
                           stride=stride, hout=Hout, wout=Wout)
    h2, s2, q2 = pl.pallas_call(
        k2,
        out_shape=[jax.ShapeDtypeStruct((N, Hout, Wout, G), f32),
                   jax.ShapeDtypeStruct((1, G), f32),
                   jax.ShapeDtypeStruct((1, G), f32)],
        grid_spec=pltpu.PrefetchScalarGridSpec(
            num_scalar_prefetch=0,
            grid=(NC, N),                       # (channel chunks, images)
            in_specs=[pl.BlockSpec((1, H, W, CH), lambda c, n: (n, 0, 0, c)),
                      pl.BlockSpec((1, CH), lambda c, n: (0, c)),
                      pl.BlockSpec((1, CH), lambda c, n: (0, c)),
                      pl.BlockSpec((1, 9, CH, CH), lambda c, n: (c, 0, 0, 0))],
            out_specs=[pl.BlockSpec((1, Hout, Wout, CH),
                                    lambda c, n: (n, 0, 0, c)),
                       pl.BlockSpec((1, CH), lambda c, n: (0, c)),
                       pl.BlockSpec((1, CH), lambda c, n: (0, c))],
            scratch_shapes=[pltpu.VMEM((H + 2, W + 2, CH), f32)]),
        compiler_params=pltpu.CompilerParams(
            dimension_semantics=("parallel", "arbitrary"),
            vmem_limit_bytes=vmem),
    )(y1.reshape(N, H, W, G), a1, b1, w2c)
    a2, b2 = _fold_bn(s2, q2, M2, p["g2"], p["b2"])

    # ---- stage 3: fold BN2 + ReLU, conv3 (1x1) [+ projection shortcut] -----
    TM2 = _row_tile(M2)
    h2_2d = h2.reshape(M2, G)
    has_proj = (stride != 1) or (Cin != outC)
    row = lambda i: (i, 0)
    vec = lambda i: (0, 0)
    sem_red = pltpu.CompilerParams(dimension_semantics=("arbitrary",),
                                   vmem_limit_bytes=vmem)
    sem_par = pltpu.CompilerParams(dimension_semantics=("parallel",),
                                   vmem_limit_bytes=vmem)

    if has_proj:
        ws = p["ws"].astype(mm_dtype)
        # TODO(synk): for stride > 1 the shortcut subsample is still a wrapper
        # strided slice; it could be moved into the BlockSpec index_map.
        xs = x if stride == 1 else x[:, ::stride, ::stride, :]
        y3, s3, ysum, ysq, ssum, ssq = pl.pallas_call(
            conv1x1_pair_stats_kernel,
            out_shape=[jax.ShapeDtypeStruct((M2, outC), f32),
                       jax.ShapeDtypeStruct((M2, outC), f32),
                       jax.ShapeDtypeStruct((1, outC), f32),
                       jax.ShapeDtypeStruct((1, outC), f32),
                       jax.ShapeDtypeStruct((1, outC), f32),
                       jax.ShapeDtypeStruct((1, outC), f32)],
            grid_spec=pltpu.PrefetchScalarGridSpec(
                num_scalar_prefetch=0,
                grid=(M2 // TM2,),
                in_specs=[pl.BlockSpec((TM2, G), row),
                          pl.BlockSpec((1, G), vec),
                          pl.BlockSpec((1, G), vec),
                          pl.BlockSpec((G, outC), vec),
                          pl.BlockSpec((TM2, Cin), row),
                          pl.BlockSpec((Cin, outC), vec)],
                out_specs=[pl.BlockSpec((TM2, outC), row),
                           pl.BlockSpec((TM2, outC), row),
                           pl.BlockSpec((1, outC), vec),
                           pl.BlockSpec((1, outC), vec),
                           pl.BlockSpec((1, outC), vec),
                           pl.BlockSpec((1, outC), vec)]),
            compiler_params=sem_red,
        )(h2_2d, a2, b2, w3, xs.reshape(M2, Cin), ws)
        a3, b3 = _fold_bn(ysum, ysq, M2, p["g3"], p["b3"])
        as_, bs_ = _fold_bn(ssum, ssq, M2, p["gs"], p["bs"])

        # ---- stage 4: fold BN3 / BN_shortcut, add, ReLU ---------------------
        out2d = pl.pallas_call(
            bn_add_relu_proj_kernel,
            out_shape=jax.ShapeDtypeStruct((M2, outC), f32),
            grid_spec=pltpu.PrefetchScalarGridSpec(
                num_scalar_prefetch=0,
                grid=(M2 // TM2,),
                in_specs=[pl.BlockSpec((TM2, outC), row),
                          pl.BlockSpec((TM2, outC), row),
                          pl.BlockSpec((1, outC), vec),
                          pl.BlockSpec((1, outC), vec),
                          pl.BlockSpec((1, outC), vec),
                          pl.BlockSpec((1, outC), vec)],
                out_specs=pl.BlockSpec((TM2, outC), row)),
            compiler_params=sem_par,
        )(y3, s3, a3, b3, as_, bs_)
    else:
        y3, ysum, ysq = pl.pallas_call(
            conv1x1_single_stats_kernel,
            out_shape=[jax.ShapeDtypeStruct((M2, outC), f32),
                       jax.ShapeDtypeStruct((1, outC), f32),
                       jax.ShapeDtypeStruct((1, outC), f32)],
            grid_spec=pltpu.PrefetchScalarGridSpec(
                num_scalar_prefetch=0,
                grid=(M2 // TM2,),
                in_specs=[pl.BlockSpec((TM2, G), row),
                          pl.BlockSpec((1, G), vec),
                          pl.BlockSpec((1, G), vec),
                          pl.BlockSpec((G, outC), vec)],
                out_specs=[pl.BlockSpec((TM2, outC), row),
                           pl.BlockSpec((1, outC), vec),
                           pl.BlockSpec((1, outC), vec)]),
            compiler_params=sem_red,
        )(h2_2d, a2, b2, w3)
        a3, b3 = _fold_bn(ysum, ysq, M2, p["g3"], p["b3"])

        out2d = pl.pallas_call(
            bn_add_relu_id_kernel,
            out_shape=jax.ShapeDtypeStruct((M2, outC), f32),
            grid_spec=pltpu.PrefetchScalarGridSpec(
                num_scalar_prefetch=0,
                grid=(M2 // TM2,),
                in_specs=[pl.BlockSpec((TM2, outC), row),
                          pl.BlockSpec((TM2, outC), row),
                          pl.BlockSpec((1, outC), vec),
                          pl.BlockSpec((1, outC), vec)],
                out_specs=pl.BlockSpec((TM2, outC), row)),
            compiler_params=sem_par,
        )(y3, x.reshape(M2, outC), a3, b3)

    return out2d.reshape(N, Hout, Wout, outC)


# --------------------------------------------------------------------------
# parameters + pure-JAX reference
# --------------------------------------------------------------------------

def init_params(key, in_planes, planes, cardinality, width):
    D = int(math.floor(planes * (width / 64.0)))
    C = cardinality
    G = D * C
    outC = planes * 4
    ks = jax.random.split(key, 12)

    def w(k, shape, fan_in):
        return jax.random.normal(k, shape, jnp.float32) / math.sqrt(fan_in)

    p = {}
    p["w1"] = w(ks[0], (in_planes, G), in_planes)
    p["g1"] = jax.random.uniform(ks[1], (1, G), jnp.float32, 0.5, 1.5)
    p["b1"] = 0.1 * jax.random.normal(ks[2], (1, G), jnp.float32)

    # grouped 3x3 weights (3,3,C,D_in,D_out) + per-chunk block-diagonal form
    wg = w(ks[3], (3, 3, C, D, D), 9 * D)
    p["wg"] = wg
    CH = _gconv_chunk(G, D)
    NC = G // CH
    gpc = CH // D
    wg9 = wg.reshape(9, C, D, D)
    w2c = jnp.zeros((NC, 9, CH, CH), jnp.float32)
    for q in range(NC):
        for j in range(gpc):
            c = q * gpc + j
            w2c = w2c.at[q, :, j * D:(j + 1) * D, j * D:(j + 1) * D].set(wg9[:, c])
    p["w2_chunks"] = w2c
    p["g2"] = jax.random.uniform(ks[4], (1, G), jnp.float32, 0.5, 1.5)
    p["b2"] = 0.1 * jax.random.normal(ks[5], (1, G), jnp.float32)

    p["w3"] = w(ks[6], (G, outC), G)
    p["g3"] = jax.random.uniform(ks[7], (1, outC), jnp.float32, 0.5, 1.5)
    p["b3"] = 0.1 * jax.random.normal(ks[8], (1, outC), jnp.float32)

    p["ws"] = w(ks[9], (in_planes, outC), in_planes)
    p["gs"] = jax.random.uniform(ks[10], (1, outC), jnp.float32, 0.5, 1.5)
    p["bs"] = 0.1 * jax.random.normal(ks[11], (1, outC), jnp.float32)
    return p


def reference_forward(x, p, *, stride, cardinality):
    """Pure-JAX reference mirroring the PyTorch module (training-mode BN)."""
    N, H, W, Cin = x.shape
    G = p["w1"].shape[1]
    outC = p["w3"].shape[1]
    D = p["wg"].shape[3]

    def bn(y, g, b):
        m = jnp.mean(y, axis=(0, 1, 2), keepdims=True)
        v = jnp.mean((y - m) ** 2, axis=(0, 1, 2), keepdims=True)
        return ((y - m) * jax.lax.rsqrt(v + EPS) * g.reshape(1, 1, 1, -1)
                + b.reshape(1, 1, 1, -1))

    o = jnp.einsum("nhwc,cd->nhwd", x, p["w1"])
    o = jax.nn.relu(bn(o, p["g1"], p["b1"]))
    rhs = p["wg"].transpose(0, 1, 3, 2, 4).reshape(3, 3, D, G)  # HWIO
    o = jax.lax.conv_general_dilated(
        o, rhs, (stride, stride), ((1, 1), (1, 1)),
        dimension_numbers=("NHWC", "HWIO", "NHWC"),
        feature_group_count=cardinality)
    o = jax.nn.relu(bn(o, p["g2"], p["b2"]))
    o = jnp.einsum("nhwc,cd->nhwd", o, p["w3"])
    o = bn(o, p["g3"], p["b3"])
    if stride != 1 or Cin != outC:
        s = jnp.einsum("nhwc,cd->nhwd", x[:, ::stride, ::stride, :], p["ws"])
        s = bn(s, p["gs"], p["bs"])
    else:
        s = x
    return jax.nn.relu(o + s)


# --------------------------------------------------------------------------
# test
# --------------------------------------------------------------------------

if __name__ == "__main__":
    key = jax.random.PRNGKey(0)
    configs = [
        # projection shortcut (Cin != 4*planes), stride 1:
        #   D=32, C=8 -> G=256 (2 channel chunks of 128), outC=256
        dict(N=2, H=16, W=16, in_planes=128, planes=64,
             cardinality=8, width=32, stride=1),
        # identity shortcut (Cin == 4*planes), stride 1
        dict(N=2, H=8, W=8, in_planes=256, planes=64,
             cardinality=8, width=32, stride=1),
    ]
    for cfg in configs:
        key, kx, kp = jax.random.split(key, 3)
        x = jax.random.normal(
            kx, (cfg["N"], cfg["H"], cfg["W"], cfg["in_planes"]), jnp.float32)
        p = init_params(kp, cfg["in_planes"], cfg["planes"],
                        cfg["cardinality"], cfg["width"])

        fwd = jax.jit(functools.partial(resnext_block_forward,
                                        stride=cfg["stride"]))
        out = jax.block_until_ready(fwd(x, p))
        ref = jax.block_until_ready(
            reference_forward(x, p, stride=cfg["stride"],
                              cardinality=cfg["cardinality"]))

        assert out.shape == ref.shape, (out.shape, ref.shape)
        err = float(jnp.max(jnp.abs(out - ref)))
        assert jnp.allclose(out, ref, atol=1e-2, rtol=1e-2), err

    print("KERNEL_OK")
</pallas_src>

<mosaic_0001>
module attributes {stable_mosaic.version = 11 : i64} {
  func.func @gconv3x3_stats_kernel(%arg0: i32, %arg1: i32, %arg2: memref<1x16x16x128xf32, #tpu.memory_space<vmem>>, %arg3: memref<1x128xf32, #tpu.memory_space<vmem>>, %arg4: memref<1x128xf32, #tpu.memory_space<vmem>>, %arg5: memref<1x9x128x128xf32, #tpu.memory_space<vmem>>, %arg6: memref<1x16x16x128xf32, #tpu.memory_space<vmem>>, %arg7: memref<1x128xf32, #tpu.memory_space<vmem>>, %arg8: memref<1x128xf32, #tpu.memory_space<vmem>>, %arg9: memref<18x18x128xf32, #tpu.memory_space<vmem>>) attributes {dimension_semantics = [#tpu.dimension_semantics<parallel>, #tpu.dimension_semantics<arbitrary>], iteration_bounds = array<i64: 2, 2>, scalar_prefetch = 0 : i64, scratch_operands = 1 : i64, tpu.core_type = #tpu.core_type<tc>, window_params = [{transform_indices = @transform_0, window_bounds = array<i64: 1, 16, 16, 128>}, {transform_indices = @transform_1, window_bounds = array<i64: 1, 128>}, {transform_indices = @transform_2, window_bounds = array<i64: 1, 128>}, {transform_indices = @transform_3, window_bounds = array<i64: 1, 9, 128, 128>}, {transform_indices = @transform_4, window_bounds = array<i64: 1, 16, 16, 128>}, {transform_indices = @transform_5, window_bounds = array<i64: 1, 128>}, {transform_indices = @transform_6, window_bounds = array<i64: 1, 128>}]} {
    %c0_i32 = arith.constant 0 : i32
    %0 = arith.cmpi eq, %arg1, %c0_i32 : i32
    %1 = arith.extui %0 : i1 to i32
    %c0_i32_0 = arith.constant 0 : i32
    %2 = arith.cmpi ne, %1, %c0_i32_0 : i32
    scf.if %2 {
      %cst_70 = arith.constant 0.000000e+00 : f32
      %89 = vector.broadcast %cst_70 : f32 to vector<1x128xf32>
      %c0_71 = arith.constant 0 : index
      %c0_72 = arith.constant 0 : index
      %90 = vector.load %arg7[%c0_71, %c0_72] : memref<1x128xf32, #tpu.memory_space<vmem>>, vector<1x128xf32>
      tpu.vector_store %arg7[%c0_71, %c0_72], %89 {strides = array<i32>} : memref<1x128xf32, #tpu.memory_space<vmem>>, vector<1x128xf32>,
      %cst_73 = arith.constant 0.000000e+00 : f32
      %91 = vector.broadcast %cst_73 : f32 to vector<1x128xf32>
      %c0_74 = arith.constant 0 : index
      %c0_75 = arith.constant 0 : index
      %92 = vector.load %arg8[%c0_74, %c0_75] : memref<1x128xf32, #tpu.memory_space<vmem>>, vector<1x128xf32>
      tpu.vector_store %arg8[%c0_74, %c0_75], %91 {strides = array<i32>} : memref<1x128xf32, #tpu.memory_space<vmem>>, vector<1x128xf32>,
    } else {
    }
    %c0 = arith.constant 0 : index
    %c0_1 = arith.constant 0 : index
    %c0_2 = arith.constant 0 : index
    %c0_3 = arith.constant 0 : index
    %3 = vector.load %arg2[%c0, %c0_1, %c0_2, %c0_3] : memref<1x16x16x128xf32, #tpu.memory_space<vmem>>, vector<1x16x16x128xf32>
    %4 = vector.shape_cast %3 : vector<1x16x16x128xf32> to vector<16x16x128xf32>
    %c0_4 = arith.constant 0 : index
    %c0_5 = arith.constant 0 : index
    %5 = vector.load %arg3[%c0_4, %c0_5] : memref<1x128xf32, #tpu.memory_space<vmem>>, vector<1x128xf32>
    %6 = vector.shape_cast %5 : vector<1x128xf32> to vector<1x1x128xf32>
    %7 = vector.broadcast %6 : vector<1x1x128xf32> to vector<16x16x128xf32>
    %8 = arith.mulf %4, %7 : vector<16x16x128xf32>
    %c0_6 = arith.constant 0 : index
    %c0_7 = arith.constant 0 : index
    %9 = vector.load %arg4[%c0_6, %c0_7] : memref<1x128xf32, #tpu.memory_space<vmem>>, vector<1x128xf32>
    %10 = vector.shape_cast %9 : vector<1x128xf32> to vector<1x1x128xf32>
    %11 = vector.broadcast %10 : vector<1x1x128xf32> to vector<16x16x128xf32>
    %12 = arith.addf %8, %11 : vector<16x16x128xf32>
    %cst = arith.constant 0.000000e+00 : f32
    %13 = vector.broadcast %cst : f32 to vector<16x16x128xf32>
    %14 = arith.maximumf %12, %13 : vector<16x16x128xf32>
    %cst_8 = arith.constant 0.000000e+00 : f32
    %15 = vector.broadcast %cst_8 : f32 to vector<18x18x128xf32>
    %c0_9 = arith.constant 0 : index
    %c0_10 = arith.constant 0 : index
    %c0_11 = arith.constant 0 : index
    %16 = vector.load %arg9[%c0_9, %c0_10, %c0_11] : memref<18x18x128xf32, #tpu.memory_space<vmem>>, vector<18x18x128xf32>
    tpu.vector_store %arg9[%c0_9, %c0_10, %c0_11], %15 {strides = array<i32>} : memref<18x18x128xf32, #tpu.memory_space<vmem>>, vector<18x18x128xf32>,
    %c1 = arith.constant 1 : index
    %c1_12 = arith.constant 1 : index
    %c0_13 = arith.constant 0 : index
    %17 = vector.load %arg9[%c1, %c1_12, %c0_13] : memref<18x18x128xf32, #tpu.memory_space<vmem>>, vector<16x16x128xf32>
    tpu.vector_store %arg9[%c1, %c1_12, %c0_13], %14 {strides = array<i32>} : memref<18x18x128xf32, #tpu.memory_space<vmem>>, vector<16x16x128xf32>,
    %c0_14 = arith.constant 0 : index
    %c0_15 = arith.constant 0 : index
    %c0_16 = arith.constant 0 : index
    %18 = vector.load %arg9[%c0_14, %c0_15, %c0_16] : memref<18x18x128xf32, #tpu.memory_space<vmem>>, vector<18x18x128xf32>
    %cst_17 = arith.constant 0.000000e+00 : f32
    %19 = vector.broadcast %cst_17 : f32 to vector<256x128xf32>
    %20 = vector.extract_strided_slice %18 {offsets = [0, 0, 0], sizes = [16, 16, 128], strides = [1, 1, 1]} : vector<18x18x128xf32> to vector<16x16x128xf32>
    %c0_18 = arith.constant 0 : index
    %c0_19 = arith.constant 0 : index
    %c0_20 = arith.constant 0 : index
    %c0_21 = arith.constant 0 : index
    %21 = vector.load %arg5[%c0_18, %c0_19, %c0_20, %c0_21] : memref<1x9x128x128xf32, #tpu.memory_space<vmem>>, vector<1x1x128x128xf32>
    %22 = vector.shape_cast %21 : vector<1x1x128x128xf32> to vector<128x128xf32>
    %23 = vector.shape_cast %20 : vector<16x16x128xf32> to vector<256x128xf32>
    %cst_22 = arith.constant dense<0.000000e+00> : vector<256x128xf32>
    %24 = tpu.matmul %23, %22, %cst_22 {dimension_numbers = #tpu.dot_dimension_numbers<[1], [0], [0], [1], [0, 0, 1, 1], [], []>} : vector<256x128xf32>, vector<128x128xf32>, vector<256x128xf32> -> vector<256x128xf32>
    %25 = arith.addf %19, %24 : vector<256x128xf32>
    %26 = vector.extract_strided_slice %18 {offsets = [0, 1, 0], sizes = [16, 16, 128], strides = [1, 1, 1]} : vector<18x18x128xf32> to vector<16x16x128xf32>
    %c0_23 = arith.constant 0 : index
    %c1_24 = arith.constant 1 : index
    %c0_25 = arith.constant 0 : index
    %c0_26 = arith.constant 0 : index
    %27 = vector.load %arg5[%c0_23, %c1_24, %c0_25, %c0_26] : memref<1x9x128x128xf32, #tpu.memory_space<vmem>>, vector<1x1x128x128xf32>
    %28 = vector.shape_cast %27 : vector<1x1x128x128xf32> to vector<128x128xf32>
    %29 = vector.shape_cast %26 : vector<16x16x128xf32> to vector<256x128xf32>
    %cst_27 = arith.constant dense<0.000000e+00> : vector<256x128xf32>
    %30 = tpu.matmul %29, %28, %cst_27 {dimension_numbers = #tpu.dot_dimension_numbers<[1], [0], [0], [1], [0, 0, 1, 1], [], []>} : vector<256x128xf32>, vector<128x128xf32>, vector<256x128xf32> -> vector<256x128xf32>
    %31 = arith.addf %25, %30 : vector<256x128xf32>
    %32 = vector.extract_strided_slice %18 {offsets = [0, 2, 0], sizes = [16, 16, 128], strides = [1, 1, 1]} : vector<18x18x128xf32> to vector<16x16x128xf32>
    %c0_28 = arith.constant 0 : index
    %c2 = arith.constant 2 : index
    %c0_29 = arith.constant 0 : index
    %c0_30 = arith.constant 0 : index
    %33 = vector.load %arg5[%c0_28, %c2, %c0_29, %c0_30] : memref<1x9x128x128xf32, #tpu.memory_space<vmem>>, vector<1x1x128x128xf32>
    %34 = vector.shape_cast %33 : vector<1x1x128x128xf32> to vector<128x128xf32>
    %35 = vector.shape_cast %32 : vector<16x16x128xf32> to vector<256x128xf32>
    %cst_31 = arith.constant dense<0.000000e+00> : vector<256x128xf32>
    %36 = tpu.matmul %35, %34, %cst_31 {dimension_numbers = #tpu.dot_dimension_numbers<[1], [0], [0], [1], [0, 0, 1, 1], [], []>} : vector<256x128xf32>, vector<128x128xf32>, vector<256x128xf32> -> vector<256x128xf32>
    %37 = arith.addf %31, %36 : vector<256x128xf32>
    %38 = vector.extract_strided_slice %18 {offsets = [1, 0, 0], sizes = [16, 16, 128], strides = [1, 1, 1]} : vector<18x18x128xf32> to vector<16x16x128xf32>
    %c0_32 = arith.constant 0 : index
    %c3 = arith.constant 3 : index
    %c0_33 = arith.constant 0 : index
    %c0_34 = arith.constant 0 : index
    %39 = vector.load %arg5[%c0_32, %c3, %c0_33, %c0_34] : memref<1x9x128x128xf32, #tpu.memory_space<vmem>>, vector<1x1x128x128xf32>
    %40 = vector.shape_cast %39 : vector<1x1x128x128xf32> to vector<128x128xf32>
    %41 = vector.shape_cast %38 : vector<16x16x128xf32> to vector<256x128xf32>
    %cst_35 = arith.constant dense<0.000000e+00> : vector<256x128xf32>
    %42 = tpu.matmul %41, %40, %cst_35 {dimension_numbers = #tpu.dot_dimension_numbers<[1], [0], [0], [1], [0, 0, 1, 1], [], []>} : vector<256x128xf32>, vector<128x128xf32>, vector<256x128xf32> -> vector<256x128xf32>
    %43 = arith.addf %37, %42 : vector<256x128xf32>
    %44 = vector.extract_strided_slice %18 {offsets = [1, 1, 0], sizes = [16, 16, 128], strides = [1, 1, 1]} : vector<18x18x128xf32> to vector<16x16x128xf32>
    %c0_36 = arith.constant 0 : index
    %c4 = arith.constant 4 : index
    %c0_37 = arith.constant 0 : index
    %c0_38 = arith.constant 0 : index
    %45 = vector.load %arg5[%c0_36, %c4, %c0_37, %c0_38] : memref<1x9x128x128xf32, #tpu.memory_space<vmem>>, vector<1x1x128x128xf32>
    %46 = vector.shape_cast %45 : vector<1x1x128x128xf32> to vector<128x128xf32>
    %47 = vector.shape_cast %44 : vector<16x16x128xf32> to vector<256x128xf32>
    %cst_39 = arith.constant dense<0.000000e+00> : vector<256x128xf32>
    %48 = tpu.matmul %47, %46, %cst_39 {dimension_numbers = #tpu.dot_dimension_numbers<[1], [0], [0], [1], [0, 0, 1, 1], [], []>} : vector<256x128xf32>, vector<128x128xf32>, vector<256x128xf32> -> vector<256x128xf32>
    %49 = arith.addf %43, %48 : vector<256x128xf32>
    %50 = vector.extract_strided_slice %18 {offsets = [1, 2, 0], sizes = [16, 16, 128], strides = [1, 1, 1]} : vector<18x18x128xf32> to vector<16x16x128xf32>
    %c0_40 = arith.constant 0 : index
    %c5 = arith.constant 5 : index
    %c0_41 = arith.constant 0 : index
    %c0_42 = arith.constant 0 : index
    %51 = vector.load %arg5[%c0_40, %c5, %c0_41, %c0_42] : memref<1x9x128x128xf32, #tpu.memory_space<vmem>>, vector<1x1x128x128xf32>
    %52 = vector.shape_cast %51 : vector<1x1x128x128xf32> to vector<128x128xf32>
    %53 = vector.shape_cast %50 : vector<16x16x128xf32> to vector<256x128xf32>
    %cst_43 = arith.constant dense<0.000000e+00> : vector<256x128xf32>
    %54 = tpu.matmul %53, %52, %cst_43 {dimension_numbers = #tpu.dot_dimension_numbers<[1], [0], [0], [1], [0, 0, 1, 1], [], []>} : vector<256x128xf32>, vector<128x128xf32>, vector<256x128xf32> -> vector<256x128xf32>
    %55 = arith.addf %49, %54 : vector<256x128xf32>
    %56 = vector.extract_strided_slice %18 {offsets = [2, 0, 0], sizes = [16, 16, 128], strides = [1, 1, 1]} : vector<18x18x128xf32> to vector<16x16x128xf32>
    %c0_44 = arith.constant 0 : index
    %c6 = arith.constant 6 : index
    %c0_45 = arith.constant 0 : index
    %c0_46 = arith.constant 0 : index
    %57 = vector.load %arg5[%c0_44, %c6, %c0_45, %c0_46] : memref<1x9x128x128xf32, #tpu.memory_space<vmem>>, vector<1x1x128x128xf32>
    %58 = vector.shape_cast %57 : vector<1x1x128x128xf32> to vector<128x128xf32>
    %59 = vector.shape_cast %56 : vector<16x16x128xf32> to vector<256x128xf32>
    %cst_47 = arith.constant dense<0.000000e+00> : vector<256x128xf32>
    %60 = tpu.matmul %59, %58, %cst_47 {dimension_numbers = #tpu.dot_dimension_numbers<[1], [0], [0], [1], [0, 0, 1, 1], [], []>} : vector<256x128xf32>, vector<128x128xf32>, vector<256x128xf32> -> vector<256x128xf32>
    %61 = arith.addf %55, %60 : vector<256x128xf32>
    %62 = vector.extract_strided_slice %18 {offsets = [2, 1, 0], sizes = [16, 16, 128], strides = [1, 1, 1]} : vector<18x18x128xf32> to vector<16x16x128xf32>
    %c0_48 = arith.constant 0 : index
    %c7 = arith.constant 7 : index
    %c0_49 = arith.constant 0 : index
    %c0_50 = arith.constant 0 : index
    %63 = vector.load %arg5[%c0_48, %c7, %c0_49, %c0_50] : memref<1x9x128x128xf32, #tpu.memory_space<vmem>>, vector<1x1x128x128xf32>
    %64 = vector.shape_cast %63 : vector<1x1x128x128xf32> to vector<128x128xf32>
    %65 = vector.shape_cast %62 : vector<16x16x128xf32> to vector<256x128xf32>
    %cst_51 = arith.constant dense<0.000000e+00> : vector<256x128xf32>
    %66 = tpu.matmul %65, %64, %cst_51 {dimension_numbers = #tpu.dot_dimension_numbers<[1], [0], [0], [1], [0, 0, 1, 1], [], []>} : vector<256x128xf32>, vector<128x128xf32>, vector<256x128xf32> -> vector<256x128xf32>
    %67 = arith.addf %61, %66 : vector<256x128xf32>
    %68 = vector.extract_strided_slice %18 {offsets = [2, 2, 0], sizes = [16, 16, 128], strides = [1, 1, 1]} : vector<18x18x128xf32> to vector<16x16x128xf32>
    %c0_52 = arith.constant 0 : index
    %c8 = arith.constant 8 : index
    %c0_53 = arith.constant 0 : index
    %c0_54 = arith.constant 0 : index
    %69 = vector.load %arg5[%c0_52, %c8, %c0_53, %c0_54] : memref<1x9x128x128xf32, #tpu.memory_space<vmem>>, vector<1x1x128x128xf32>
    %70 = vector.shape_cast %69 : vector<1x1x128x128xf32> to vector<128x128xf32>
    %71 = vector.shape_cast %68 : vector<16x16x128xf32> to vector<256x128xf32>
    %cst_55 = arith.constant dense<0.000000e+00> : vector<256x128xf32>
    %72 = tpu.matmul %71, %70, %cst_55 {dimension_numbers = #tpu.dot_dimension_numbers<[1], [0], [0], [1], [0, 0, 1, 1], [], []>} : vector<256x128xf32>, vector<128x128xf32>, vector<256x128xf32> -> vector<256x128xf32>
    %73 = arith.addf %67, %72 : vector<256x128xf32>
    %74 = vector.shape_cast %73 : vector<256x128xf32> to vector<16x16x128xf32>
    %c0_56 = arith.constant 0 : index
    %c0_57 = arith.constant 0 : index
    %c0_58 = arith.constant 0 : index
    %c0_59 = arith.constant 0 : index
    %75 = vector.load %arg6[%c0_56, %c0_57, %c0_58, %c0_59] : memref<1x16x16x128xf32, #tpu.memory_space<vmem>>, vector<1x16x16x128xf32>
    %76 = vector.shape_cast %75 : vector<1x16x16x128xf32> to vector<16x16x128xf32>
    %77 = vector.shape_cast %74 : vector<16x16x128xf32> to vector<1x16x16x128xf32>
    tpu.vector_store %arg6[%c0_56, %c0_57, %c0_58, %c0_59], %77 {strides = array<i32>} : memref<1x16x16x128xf32, #tpu.memory_space<vmem>>, vector<1x16x16x128xf32>,
    %c0_60 = arith.constant 0 : index
    %c0_61 = arith.constant 0 : index
    %78 = vector.load %arg7[%c0_60, %c0_61] : memref<1x128xf32, #tpu.memory_space<vmem>>, vector<1x128xf32>
    %cst_62 = arith.constant dense<0.000000e+00> : vector<128xf32>
    %79 = vector.multi_reduction <add>, %73, %cst_62 [0] : vector<256x128xf32> to vector<128xf32>
    %80 = vector.shape_cast %79 : vector<128xf32> to vector<1x128xf32>
    %81 = arith.addf %78, %80 : vector<1x128xf32>
    %c0_63 = arith.constant 0 : index
    %c0_64 = arith.constant 0 : index
    %82 = vector.load %arg7[%c0_63, %c0_64] : memref<1x128xf32, #tpu.memory_space<vmem>>, vector<1x128xf32>
    tpu.vector_store %arg7[%c0_63, %c0_64], %81 {strides = array<i32>} : memref<1x128xf32, #tpu.memory_space<vmem>>, vector<1x128xf32>,
    %c0_65 = arith.constant 0 : index
    %c0_66 = arith.constant 0 : index
    %83 = vector.load %arg8[%c0_65, %c0_66] : memref<1x128xf32, #tpu.memory_space<vmem>>, vector<1x128xf32>
    %84 = arith.mulf %73, %73 : vector<256x128xf32>
    %cst_67 = arith.constant dense<0.000000e+00> : vector<128xf32>
    %85 = vector.multi_reduction <add>, %84, %cst_67 [0] : vector<256x128xf32> to vector<128xf32>
    %86 = vector.shape_cast %85 : vector<128xf32> to vector<1x128xf32>
    %87 = arith.addf %83, %86 : vector<1x128xf32>
    %c0_68 = arith.constant 0 : index
    %c0_69 = arith.constant 0 : index
    %88 = vector.load %arg8[%c0_68, %c0_69] : memref<1x128xf32, #tpu.memory_space<vmem>>, vector<1x128xf32>
    tpu.vector_store %arg8[%c0_68, %c0_69], %87 {strides = array<i32>} : memref<1x128xf32, #tpu.memory_space<vmem>>, vector<1x128xf32>,
    return
  }
  func.func @transform_0(%arg0: i32, %arg1: i32) -> (i32, i32, i32, i32) {
    %c0_i32 = arith.constant 0 : i32
    %c0_i32_0 = arith.constant 0 : i32
    %c0_i32_1 = arith.constant 0 : i32
    return %arg1, %c0_i32, %c0_i32_0, %arg0 : i32, i32, i32, i32
  }
  func.func @transform_1(%arg0: i32, %arg1: i32) -> (i32, i32) {
    %c0_i32 = arith.constant 0 : i32
    %c0_i32_0 = arith.constant 0 : i32
    return %c0_i32, %arg0 : i32, i32
  }
  func.func @transform_2(%arg0: i32, %arg1: i32) -> (i32, i32) {
    %c0_i32 = arith.constant 0 : i32
    %c0_i32_0 = arith.constant 0 : i32
    return %c0_i32, %arg0 : i32, i32
  }
  func.func @transform_3(%arg0: i32, %arg1: i32) -> (i32, i32, i32, i32) {
    %c0_i32 = arith.constant 0 : i32
    %c0_i32_0 = arith.constant 0 : i32
    %c0_i32_1 = arith.constant 0 : i32
    %c0_i32_2 = arith.constant 0 : i32
    return %arg0, %c0_i32, %c0_i32_0, %c0_i32_1 : i32, i32, i32, i32
  }
  func.func @transform_4(%arg0: i32, %arg1: i32) -> (i32, i32, i32, i32) {
    %c0_i32 = arith.constant 0 : i32
    %c0_i32_0 = arith.constant 0 : i32
    %c0_i32_1 = arith.constant 0 : i32
    return %arg1, %c0_i32, %c0_i32_0, %arg0 : i32, i32, i32, i32
  }
  func.func @transform_5(%arg0: i32, %arg1: i32) -> (i32, i32) {
    %c0_i32 = arith.constant 0 : i32
    %c0_i32_0 = arith.constant 0 : i32
    return %c0_i32, %arg0 : i32, i32
  }
  func.func @transform_6(%arg0: i32, %arg1: i32) -> (i32, i32) {
    %c0_i32 = arith.constant 0 : i32
    %c0_i32_0 = arith.constant 0 : i32
    return %c0_i32, %arg0 : i32, i32
  }
}

module attributes {stable_mosaic.version = 11 : i64} {
  func.func @conv1x1_stats_kernel(%arg0: i32, %arg1: memref<256x128xf32, #tpu.memory_space<vmem>>, %arg2: memref<128x256xf32, #tpu.memory_space<vmem>>, %arg3: memref<256x256xf32, #tpu.memory_space<vmem>>, %arg4: memref<1x256xf32, #tpu.memory_space<vmem>>, %arg5: memref<1x256xf32, #tpu.memory_space<vmem>>) attributes {dimension_semantics = [#tpu.dimension_semantics<arbitrary>], iteration_bounds = array<i64: 2>, scalar_prefetch = 0 : i64, scratch_operands = 0 : i64, tpu.core_type = #tpu.core_type<tc>, window_params = [{transform_indices = @transform_0, window_bounds = array<i64: 256, 128>}, {pipeline_mode = #tpu.pipeline_mode<synchronous>, transform_indices = @transform_1, window_bounds = array<i64: 128, 256>}, {transform_indices = @transform_2, window_bounds = array<i64: 256, 256>}, {pipeline_mode = #tpu.pipeline_mode<synchronous>, transform_indices = @transform_3, window_bounds = array<i64: 1, 256>}, {pipeline_mode = #tpu.pipeline_mode<synchronous>, transform_indices = @transform_4, window_bounds = array<i64: 1, 256>}]} {
    %c0_i32 = arith.constant 0 : i32
    %0 = arith.cmpi eq, %arg0, %c0_i32 : i32
    %1 = arith.extui %0 : i1 to i32
    %c0_i32_0 = arith.constant 0 : i32
    %2 = arith.cmpi ne, %1, %c0_i32_0 : i32
    scf.if %2 {
      %cst_16 = arith.constant 0.000000e+00 : f32
      %18 = vector.broadcast %cst_16 : f32 to vector<1x256xf32>
      %c0_17 = arith.constant 0 : index
      %c0_18 = arith.constant 0 : index
      %19 = vector.load %arg4[%c0_17, %c0_18] : memref<1x256xf32, #tpu.memory_space<vmem>>, vector<1x256xf32>
      tpu.vector_store %arg4[%c0_17, %c0_18], %18 {strides = array<i32>} : memref<1x256xf32, #tpu.memory_space<vmem>>, vector<1x256xf32>,
      %cst_19 = arith.constant 0.000000e+00 : f32
      %20 = vector.broadcast %cst_19 : f32 to vector<1x256xf32>
      %c0_20 = arith.constant 0 : index
      %c0_21 = arith.constant 0 : index
      %21 = vector.load %arg5[%c0_20, %c0_21] : memref<1x256xf32, #tpu.memory_space<vmem>>, vector<1x256xf32>
      tpu.vector_store %arg5[%c0_20, %c0_21], %20 {strides = array<i32>} : memref<1x256xf32, #tpu.memory_space<vmem>>, vector<1x256xf32>,
    } else {
    }
    %c0 = arith.constant 0 : index
    %c0_1 = arith.constant 0 : index
    %3 = vector.load %arg2[%c0, %c0_1] : memref<128x256xf32, #tpu.memory_space<vmem>>, vector<128x256xf32>
    %c0_2 = arith.constant 0 : index
    %c0_3 = arith.constant 0 : index
    %4 = vector.load %arg1[%c0_2, %c0_3] : memref<256x128xf32, #tpu.memory_space<vmem>>, vector<256x128xf32>
    %cst = arith.constant dense<0.000000e+00> : vector<256x256xf32>
    %5 = tpu.matmul %4, %3, %cst {dimension_numbers = #tpu.dot_dimension_numbers<[1], [0], [0], [1], [0, 0, 1, 1], [], []>} : vector<256x128xf32>, vector<128x256xf32>, vector<256x256xf32> -> vector<256x256xf32>
    %c0_4 = arith.constant 0 : index
    %c0_5 = arith.constant 0 : index
    %6 = vector.load %arg3[%c0_4, %c0_5] : memref<256x256xf32, #tpu.memory_space<vmem>>, vector<256x256xf32>
    tpu.vector_store %arg3[%c0_4, %c0_5], %5 {strides = array<i32>} : memref<256x256xf32, #tpu.memory_space<vmem>>, vector<256x256xf32>,
    %c0_6 = arith.constant 0 : index
    %c0_7 = arith.constant 0 : index
    %7 = vector.load %arg4[%c0_6, %c0_7] : memref<1x256xf32, #tpu.memory_space<vmem>>, vector<1x256xf32>
    %cst_8 = arith.constant dense<0.000000e+00> : vector<256xf32>
    %8 = vector.multi_reduction <add>, %5, %cst_8 [0] : vector<256x256xf32> to vector<256xf32>
    %9 = vector.shape_cast %8 : vector<256xf32> to vector<1x256xf32>
    %10 = arith.addf %7, %9 : vector<1x256xf32>
    %c0_9 = arith.constant 0 : index
    %c0_10 = arith.constant 0 : index
    %11 = vector.load %arg4[%c0_9, %c0_10] : memref<1x256xf32, #tpu.memory_space<vmem>>, vector<1x256xf32>
    tpu.vector_store %arg4[%c0_9, %c0_10], %10 {strides = array<i32>} : memref<1x256xf32, #tpu.memory_space<vmem>>, vector<1x256xf32>,
    %c0_11 = arith.constant 0 : index
    %c0_12 = arith.constant 0 : index
    %12 = vector.load %arg5[%c0_11, %c0_12] : memref<1x256xf32, #tpu.memory_space<vmem>>, vector<1x256xf32>
    %13 = arith.mulf %5, %5 : vector<256x256xf32>
    %cst_13 = arith.constant dense<0.000000e+00> : vector<256xf32>
    %14 = vector.multi_reduction <add>, %13, %cst_13 [0] : vector<256x256xf32> to vector<256xf32>
    %15 = vector.shape_cast %14 : vector<256xf32> to vector<1x256xf32>
    %16 = arith.addf %12, %15 : vector<1x256xf32>
    %c0_14 = arith.constant 0 : index
    %c0_15 = arith.constant 0 : index
    %17 = vector.load %arg5[%c0_14, %c0_15] : memref<1x256xf32, #tpu.memory_space<vmem>>, vector<1x256xf32>
    tpu.vector_store %arg5[%c0_14, %c0_15], %16 {strides = array<i32>} : memref<1x256xf32, #tpu.memory_space<vmem>>, vector<1x256xf32>,
    return
  }
  func.func @transform_0(%arg0: i32) -> (i32, i32) {
    %c0_i32 = arith.constant 0 : i32
    %c0_i32_0 = arith.constant 0 : i32
    return %arg0, %c0_i32 : i32, i32
  }
  func.func @transform_1(%arg0: i32) -> (i32, i32) {
    %c0_i32 = arith.constant 0 : i32
    %c0_i32_0 = arith.constant 0 : i32
    %c0_i32_1 = arith.constant 0 : i32
    return %c0_i32, %c0_i32_0 : i32, i32
  }
  func.func @transform_2(%arg0: i32) -> (i32, i32) {
    %c0_i32 = arith.constant 0 : i32
    %c0_i32_0 = arith.constant 0 : i32
    return %arg0, %c0_i32 : i32, i32
  }
  func.func @transform_3(%arg0: i32) -> (i32, i32) {
    %c0_i32 = arith.constant 0 : i32
    %c0_i32_0 = arith.constant 0 : i32
    %c0_i32_1 = arith.constant 0 : i32
    return %c0_i32, %c0_i32_0 : i32, i32
  }
  func.func @transform_4(%arg0: i32) -> (i32, i32) {
    %c0_i32 = arith.constant 0 : i32
    %c0_i32_0 = arith.constant 0 : i32
    %c0_i32_1 = arith.constant 0 : i32
    return %c0_i32, %c0_i32_0 : i32, i32
  }
}

module attributes {stable_mosaic.version = 11 : i64} {
  func.func @conv1x1_pair_stats_kernel(%arg0: i32, %arg1: memref<256x256xf32, #tpu.memory_space<vmem>>, %arg2: memref<1x256xf32, #tpu.memory_space<vmem>>, %arg3: memref<1x256xf32, #tpu.memory_space<vmem>>, %arg4: memref<256x256xf32, #tpu.memory_space<vmem>>, %arg5: memref<256x128xf32, #tpu.memory_space<vmem>>, %arg6: memref<128x256xf32, #tpu.memory_space<vmem>>, %arg7: memref<256x256xf32, #tpu.memory_space<vmem>>, %arg8: memref<256x256xf32, #tpu.memory_space<vmem>>, %arg9: memref<1x256xf32, #tpu.memory_space<vmem>>, %arg10: memref<1x256xf32, #tpu.memory_space<vmem>>, %arg11: memref<1x256xf32, #tpu.memory_space<vmem>>, %arg12: memref<1x256xf32, #tpu.memory_space<vmem>>) attributes {dimension_semantics = [#tpu.dimension_semantics<arbitrary>], iteration_bounds = array<i64: 2>, scalar_prefetch = 0 : i64, scratch_operands = 0 : i64, tpu.core_type = #tpu.core_type<tc>, window_params = [{transform_indices = @transform_0, window_bounds = array<i64: 256, 256>}, {pipeline_mode = #tpu.pipeline_mode<synchronous>, transform_indices = @transform_1, window_bounds = array<i64: 1, 256>}, {pipeline_mode = #tpu.pipeline_mode<synchronous>, transform_indices = @transform_2, window_bounds = array<i64: 1, 256>}, {pipeline_mode = #tpu.pipeline_mode<synchronous>, transform_indices = @transform_3, window_bounds = array<i64: 256, 256>}, {transform_indices = @transform_4, window_bounds = array<i64: 256, 128>}, {pipeline_mode = #tpu.pipeline_mode<synchronous>, transform_indices = @transform_5, window_bounds = array<i64: 128, 256>}, {transform_indices = @transform_6, window_bounds = array<i64: 256, 256>}, {transform_indices = @transform_7, window_bounds = array<i64: 256, 256>}, {pipeline_mode = #tpu.pipeline_mode<synchronous>, transform_indices = @transform_8, window_bounds = array<i64: 1, 256>}, {pipeline_mode = #tpu.pipeline_mode<synchronous>, transform_indices = @transform_9, window_bounds = array<i64: 1, 256>}, {pipeline_mode = #tpu.pipeline_mode<synchronous>, transform_indices = @transform_10, window_bounds = array<i64: 1, 256>}, {pipeline_mode = #tpu.pipeline_mode<synchronous>, transform_indices = @transform_11, window_bounds = array<i64: 1, 256>}]} {
    %c0_i32 = arith.constant 0 : i32
    %0 = arith.cmpi eq, %arg0, %c0_i32 : i32
    %1 = arith.extui %0 : i1 to i32
    %c0_i32_0 = arith.constant 0 : i32
    %2 = arith.cmpi ne, %1, %c0_i32_0 : i32
    scf.if %2 {
      %cst_38 = arith.constant 0.000000e+00 : f32
      %41 = vector.broadcast %cst_38 : f32 to vector<1x256xf32>
      %c0_39 = arith.constant 0 : index
      %c0_40 = arith.constant 0 : index
      %42 = vector.load %arg9[%c0_39, %c0_40] : memref<1x256xf32, #tpu.memory_space<vmem>>, vector<1x256xf32>
      tpu.vector_store %arg9[%c0_39, %c0_40], %41 {strides = array<i32>} : memref<1x256xf32, #tpu.memory_space<vmem>>, vector<1x256xf32>,
      %cst_41 = arith.constant 0.000000e+00 : f32
      %43 = vector.broadcast %cst_41 : f32 to vector<1x256xf32>
      %c0_42 = arith.constant 0 : index
      %c0_43 = arith.constant 0 : index
      %44 = vector.load %arg10[%c0_42, %c0_43] : memref<1x256xf32, #tpu.memory_space<vmem>>, vector<1x256xf32>
      tpu.vector_store %arg10[%c0_42, %c0_43], %43 {strides = array<i32>} : memref<1x256xf32, #tpu.memory_space<vmem>>, vector<1x256xf32>,
      %cst_44 = arith.constant 0.000000e+00 : f32
      %45 = vector.broadcast %cst_44 : f32 to vector<1x256xf32>
      %c0_45 = arith.constant 0 : index
      %c0_46 = arith.constant 0 : index
      %46 = vector.load %arg11[%c0_45, %c0_46] : memref<1x256xf32, #tpu.memory_space<vmem>>, vector<1x256xf32>
      tpu.vector_store %arg11[%c0_45, %c0_46], %45 {strides = array<i32>} : memref<1x256xf32, #tpu.memory_space<vmem>>, vector<1x256xf32>,
      %cst_47 = arith.constant 0.000000e+00 : f32
      %47 = vector.broadcast %cst_47 : f32 to vector<1x256xf32>
      %c0_48 = arith.constant 0 : index
      %c0_49 = arith.constant 0 : index
      %48 = vector.load %arg12[%c0_48, %c0_49] : memref<1x256xf32, #tpu.memory_space<vmem>>, vector<1x256xf32>
      tpu.vector_store %arg12[%c0_48, %c0_49], %47 {strides = array<i32>} : memref<1x256xf32, #tpu.memory_space<vmem>>, vector<1x256xf32>,
    } else {
    }
    %c0 = arith.constant 0 : index
    %c0_1 = arith.constant 0 : index
    %3 = vector.load %arg4[%c0, %c0_1] : memref<256x256xf32, #tpu.memory_space<vmem>>, vector<256x256xf32>
    %c0_2 = arith.constant 0 : index
    %c0_3 = arith.constant 0 : index
    %4 = vector.load %arg1[%c0_2, %c0_3] : memref<256x256xf32, #tpu.memory_space<vmem>>, vector<256x256xf32>
    %c0_4 = arith.constant 0 : index
    %c0_5 = arith.constant 0 : index
    %5 = vector.load %arg2[%c0_4, %c0_5] : memref<1x256xf32, #tpu.memory_space<vmem>>, vector<1x256xf32>
    %6 = vector.broadcast %5 : vector<1x256xf32> to vector<256x256xf32>
    %7 = arith.mulf %4, %6 : vector<256x256xf32>
    %c0_6 = arith.constant 0 : index
    %c0_7 = arith.constant 0 : index
    %8 = vector.load %arg3[%c0_6, %c0_7] : memref<1x256xf32, #tpu.memory_space<vmem>>, vector<1x256xf32>
    %9 = vector.broadcast %8 : vector<1x256xf32> to vector<256x256xf32>
    %10 = arith.addf %7, %9 : vector<256x256xf32>
    %cst = arith.constant 0.000000e+00 : f32
    %11 = vector.broadcast %cst : f32 to vector<256x256xf32>
    %12 = arith.maximumf %10, %11 : vector<256x256xf32>
    %cst_8 = arith.constant dense<0.000000e+00> : vector<256x256xf32>
    %13 = tpu.matmul %12, %3, %cst_8 {dimension_numbers = #tpu.dot_dimension_numbers<[1], [0], [0], [1], [0, 0, 1, 1], [], []>} : vector<256x256xf32>, vector<256x256xf32>, vector<256x256xf32> -> vector<256x256xf32>
    %c0_9 = arith.constant 0 : index
    %c0_10 = arith.constant 0 : index
    %14 = vector.load %arg7[%c0_9, %c0_10] : memref<256x256xf32, #tpu.memory_space<vmem>>, vector<256x256xf32>
    tpu.vector_store %arg7[%c0_9, %c0_10], %13 {strides = array<i32>} : memref<256x256xf32, #tpu.memory_space<vmem>>, vector<256x256xf32>,
    %c0_11 = arith.constant 0 : index
    %c0_12 = arith.constant 0 : index
    %15 = vector.load %arg9[%c0_11, %c0_12] : memref<1x256xf32, #tpu.memory_space<vmem>>, vector<1x256xf32>
    %cst_13 = arith.constant dense<0.000000e+00> : vector<256xf32>
    %16 = vector.multi_reduction <add>, %13, %cst_13 [0] : vector<256x256xf32> to vector<256xf32>
    %17 = vector.shape_cast %16 : vector<256xf32> to vector<1x256xf32>
    %18 = arith.addf %15, %17 : vector<1x256xf32>
    %c0_14 = arith.constant 0 : index
    %c0_15 = arith.constant 0 : index
    %19 = vector.load %arg9[%c0_14, %c0_15] : memref<1x256xf32, #tpu.memory_space<vmem>>, vector<1x256xf32>
    tpu.vector_store %arg9[%c0_14, %c0_15], %18 {strides = array<i32>} : memref<1x256xf32, #tpu.memory_space<vmem>>, vector<1x256xf32>,
    %c0_16 = arith.constant 0 : index
    %c0_17 = arith.constant 0 : index
    %20 = vector.load %arg10[%c0_16, %c0_17] : memref<1x256xf32, #tpu.memory_space<vmem>>, vector<1x256xf32>
    %21 = arith.mulf %13, %13 : vector<256x256xf32>
    %cst_18 = arith.constant dense<0.000000e+00> : vector<256xf32>
    %22 = vector.multi_reduction <add>, %21, %cst_18 [0] : vector<256x256xf32> to vector<256xf32>
    %23 = vector.shape_cast %22 : vector<256xf32> to vector<1x256xf32>
    %24 = arith.addf %20, %23 : vector<1x256xf32>
    %c0_19 = arith.constant 0 : index
    %c0_20 = arith.constant 0 : index
    %25 = vector.load %arg10[%c0_19, %c0_20] : memref<1x256xf32, #tpu.memory_space<vmem>>, vector<1x256xf32>
    tpu.vector_store %arg10[%c0_19, %c0_20], %24 {strides = array<i32>} : memref<1x256xf32, #tpu.memory_space<vmem>>, vector<1x256xf32>,
    %c0_21 = arith.constant 0 : index
    %c0_22 = arith.constant 0 : index
    %26 = vector.load %arg6[%c0_21, %c0_22] : memref<128x256xf32, #tpu.memory_space<vmem>>, vector<128x256xf32>
    %c0_23 = arith.constant 0 : index
    %c0_24 = arith.constant 0 : index
    %27 = vector.load %arg5[%c0_23, %c0_24] : memref<256x128xf32, #tpu.memory_space<vmem>>, vector<256x128xf32>
    %cst_25 = arith.constant dense<0.000000e+00> : vector<256x256xf32>
    %28 = tpu.matmul %27, %26, %cst_25 {dimension_numbers = #tpu.dot_dimension_numbers<[1], [0], [0], [1], [0, 0, 1, 1], [], []>} : vector<256x128xf32>, vector<128x256xf32>, vector<256x256xf32> -> vector<256x256xf32>
    %c0_26 = arith.constant 0 : index
    %c0_27 = arith.constant 0 : index
    %29 = vector.load %arg8[%c0_26, %c0_27] : memref<256x256xf32, #tpu.memory_space<vmem>>, vector<256x256xf32>
    tpu.vector_store %arg8[%c0_26, %c0_27], %28 {strides = array<i32>} : memref<256x256xf32, #tpu.memory_space<vmem>>, vector<256x256xf32>,
    %c0_28 = arith.constant 0 : index
    %c0_29 = arith.constant 0 : index
    %30 = vector.load %arg11[%c0_28, %c0_29] : memref<1x256xf32, #tpu.memory_space<vmem>>, vector<1x256xf32>
    %cst_30 = arith.constant dense<0.000000e+00> : vector<256xf32>
    %31 = vector.multi_reduction <add>, %28, %cst_30 [0] : vector<256x256xf32> to vector<256xf32>
    %32 = vector.shape_cast %31 : vector<256xf32> to vector<1x256xf32>
    %33 = arith.addf %30, %32 : vector<1x256xf32>
    %c0_31 = arith.constant 0 : index
    %c0_32 = arith.constant 0 : index
    %34 = vector.load %arg11[%c0_31, %c0_32] : memref<1x256xf32, #tpu.memory_space<vmem>>, vector<1x256xf32>
    tpu.vector_store %arg11[%c0_31, %c0_32], %33 {strides = array<i32>} : memref<1x256xf32, #tpu.memory_space<vmem>>, vector<1x256xf32>,
    %c0_33 = arith.constant 0 : index
    %c0_34 = arith.constant 0 : index
    %35 = vector.load %arg12[%c0_33, %c0_34] : memref<1x256xf32, #tpu.memory_space<vmem>>, vector<1x256xf32>
    %36 = arith.mulf %28, %28 : vector<256x256xf32>
    %cst_35 = arith.constant dense<0.000000e+00> : vector<256xf32>
    %37 = vector.multi_reduction <add>, %36, %cst_35 [0] : vector<256x256xf32> to vector<256xf32>
    %38 = vector.shape_cast %37 : vector<256xf32> to vector<1x256xf32>
    %39 = arith.addf %35, %38 : vector<1x256xf32>
    %c0_36 = arith.constant 0 : index
    %c0_37 = arith.constant 0 : index
    %40 = vector.load %arg12[%c0_36, %c0_37] : memref<1x256xf32, #tpu.memory_space<vmem>>, vector<1x256xf32>
    tpu.vector_store %arg12[%c0_36, %c0_37], %39 {strides = array<i32>} : memref<1x256xf32, #tpu.memory_space<vmem>>, vector<1x256xf32>,
    return
  }
  func.func @transform_0(%arg0: i32) -> (i32, i32) {
    %c0_i32 = arith.constant 0 : i32
    %c0_i32_0 = arith.constant 0 : i32
    return %arg0, %c0_i32 : i32, i32
  }
  func.func @transform_1(%arg0: i32) -> (i32, i32) {
    %c0_i32 = arith.constant 0 : i32
    %c0_i32_0 = arith.constant 0 : i32
    %c0_i32_1 = arith.constant 0 : i32
    return %c0_i32, %c0_i32_0 : i32, i32
  }
  func.func @transform_2(%arg0: i32) -> (i32, i32) {
    %c0_i32 = arith.constant 0 : i32
    %c0_i32_0 = arith.constant 0 : i32
    %c0_i32_1 = arith.constant 0 : i32
    return %c0_i32, %c0_i32_0 : i32, i32
  }
  func.func @transform_3(%arg0: i32) -> (i32, i32) {
    %c0_i32 = arith.constant 0 : i32
    %c0_i32_0 = arith.constant 0 : i32
    %c0_i32_1 = arith.constant 0 : i32
    return %c0_i32, %c0_i32_0 : i32, i32
  }
  func.func @transform_4(%arg0: i32) -> (i32, i32) {
    %c0_i32 = arith.constant 0 : i32
    %c0_i32_0 = arith.constant 0 : i32
    return %arg0, %c0_i32 : i32, i32
  }
  func.func @transform_5(%arg0: i32) -> (i32, i32) {
    %c0_i32 = arith.constant 0 : i32
    %c0_i32_0 = arith.constant 0 : i32
    %c0_i32_1 = arith.constant 0 : i32
    return %c0_i32, %c0_i32_0 : i32, i32
  }
  func.func @transform_6(%arg0: i32) -> (i32, i32) {
    %c0_i32 = arith.constant 0 : i32
    %c0_i32_0 = arith.constant 0 : i32
    return %arg0, %c0_i32 : i32, i32
  }
  func.func @transform_7(%arg0: i32) -> (i32, i32) {
    %c0_i32 = arith.constant 0 : i32
    %c0_i32_0 = arith.constant 0 : i32
    return %arg0, %c0_i32 : i32, i32
  }
  func.func @transform_8(%arg0: i32) -> (i32, i32) {
    %c0_i32 = arith.constant 0 : i32
    %c0_i32_0 = arith.constant 0 : i32
    %c0_i32_1 = arith.constant 0 : i32
    return %c0_i32, %c0_i32_0 : i32, i32
  }
  func.func @transform_9(%arg0: i32) -> (i32, i32) {
    %c0_i32 = arith.constant 0 : i32
    %c0_i32_0 = arith.constant 0 : i32
    %c0_i32_1 = arith.constant 0 : i32
    return %c0_i32, %c0_i32_0 : i32, i32
  }
  func.func @transform_10(%arg0: i32) -> (i32, i32) {
    %c0_i32 = arith.constant 0 : i32
    %c0_i32_0 = arith.constant 0 : i32
    %c0_i32_1 = arith.constant 0 : i32
    return %c0_i32, %c0_i32_0 : i32, i32
  }
  func.func @transform_11(%arg0: i32) -> (i32, i32) {
    %c0_i32 = arith.constant 0 : i32
    %c0_i32_0 = arith.constant 0 : i32
    %c0_i32_1 = arith.constant 0 : i32
    return %c0_i32, %c0_i32_0 : i32, i32
  }
}

module attributes {stable_mosaic.version = 11 : i64} {
  func.func @bn_add_relu_proj_kernel(%arg0: i32, %arg1: memref<256x256xf32, #tpu.memory_space<vmem>>, %arg2: memref<256x256xf32, #tpu.memory_space<vmem>>, %arg3: memref<1x256xf32, #tpu.memory_space<vmem>>, %arg4: memref<1x256xf32, #tpu.memory_space<vmem>>, %arg5: memref<1x256xf32, #tpu.memory_space<vmem>>, %arg6: memref<1x256xf32, #tpu.memory_space<vmem>>, %arg7: memref<256x256xf32, #tpu.memory_space<vmem>>) attributes {dimension_semantics = [#tpu.dimension_semantics<parallel>], iteration_bounds = array<i64: 2>, scalar_prefetch = 0 : i64, scratch_operands = 0 : i64, tpu.core_type = #tpu.core_type<tc>, window_params = [{transform_indices = @transform_0, window_bounds = array<i64: 256, 256>}, {transform_indices = @transform_1, window_bounds = array<i64: 256, 256>}, {pipeline_mode = #tpu.pipeline_mode<synchronous>, transform_indices = @transform_2, window_bounds = array<i64: 1, 256>}, {pipeline_mode = #tpu.pipeline_mode<synchronous>, transform_indices = @transform_3, window_bounds = array<i64: 1, 256>}, {pipeline_mode = #tpu.pipeline_mode<synchronous>, transform_indices = @transform_4, window_bounds = array<i64: 1, 256>}, {pipeline_mode = #tpu.pipeline_mode<synchronous>, transform_indices = @transform_5, window_bounds = array<i64: 1, 256>}, {transform_indices = @transform_6, window_bounds = array<i64: 256, 256>}]} {
    %c0 = arith.constant 0 : index
    %c0_0 = arith.constant 0 : index
    %0 = vector.load %arg1[%c0, %c0_0] : memref<256x256xf32, #tpu.memory_space<vmem>>, vector<256x256xf32>
    %c0_1 = arith.constant 0 : index
    %c0_2 = arith.constant 0 : index
    %1 = vector.load %arg3[%c0_1, %c0_2] : memref<1x256xf32, #tpu.memory_space<vmem>>, vector<1x256xf32>
    %2 = vector.broadcast %1 : vector<1x256xf32> to vector<256x256xf32>
    %3 = arith.mulf %0, %2 : vector<256x256xf32>
    %c0_3 = arith.constant 0 : index
    %c0_4 = arith.constant 0 : index
    %4 = vector.load %arg4[%c0_3, %c0_4] : memref<1x256xf32, #tpu.memory_space<vmem>>, vector<1x256xf32>
    %5 = vector.broadcast %4 : vector<1x256xf32> to vector<256x256xf32>
    %6 = arith.addf %3, %5 : vector<256x256xf32>
    %c0_5 = arith.constant 0 : index
    %c0_6 = arith.constant 0 : index
    %7 = vector.load %arg2[%c0_5, %c0_6] : memref<256x256xf32, #tpu.memory_space<vmem>>, vector<256x256xf32>
    %c0_7 = arith.constant 0 : index
    %c0_8 = arith.constant 0 : index
    %8 = vector.load %arg5[%c0_7, %c0_8] : memref<1x256xf32, #tpu.memory_space<vmem>>, vector<1x256xf32>
    %9 = vector.broadcast %8 : vector<1x256xf32> to vector<256x256xf32>
    %10 = arith.mulf %7, %9 : vector<256x256xf32>
    %11 = arith.addf %6, %10 : vector<256x256xf32>
    %c0_9 = arith.constant 0 : index
    %c0_10 = arith.constant 0 : index
    %12 = vector.load %arg6[%c0_9, %c0_10] : memref<1x256xf32, #tpu.memory_space<vmem>>, vector<1x256xf32>
    %13 = vector.broadcast %12 : vector<1x256xf32> to vector<256x256xf32>
    %14 = arith.addf %11, %13 : vector<256x256xf32>
    %cst = arith.constant 0.000000e+00 : f32
    %15 = vector.broadcast %cst : f32 to vector<256x256xf32>
    %16 = arith.maximumf %14, %15 : vector<256x256xf32>
    %c0_11 = arith.constant 0 : index
    %c0_12 = arith.constant 0 : index
    %17 = vector.load %arg7[%c0_11, %c0_12] : memref<256x256xf32, #tpu.memory_space<vmem>>, vector<256x256xf32>
    tpu.vector_store %arg7[%c0_11, %c0_12], %16 {strides = array<i32>} : memref<256x256xf32, #tpu.memory_space<vmem>>, vector<256x256xf32>,
    return
  }
  func.func @transform_0(%arg0: i32) -> (i32, i32) {
    %c0_i32 = arith.constant 0 : i32
    %c0_i32_0 = arith.constant 0 : i32
    return %arg0, %c0_i32 : i32, i32
  }
  func.func @transform_1(%arg0: i32) -> (i32, i32) {
    %c0_i32 = arith.constant 0 : i32
    %c0_i32_0 = arith.constant 0 : i32
    return %arg0, %c0_i32 : i32, i32
  }
  func.func @transform_2(%arg0: i32) -> (i32, i32) {
    %c0_i32 = arith.constant 0 : i32
    %c0_i32_0 = arith.constant 0 : i32
    %c0_i32_1 = arith.constant 0 : i32
    return %c0_i32, %c0_i32_0 : i32, i32
  }
  func.func @transform_3(%arg0: i32) -> (i32, i32) {
    %c0_i32 = arith.constant 0 : i32
    %c0_i32_0 = arith.constant 0 : i32
    %c0_i32_1 = arith.constant 0 : i32
    return %c0_i32, %c0_i32_0 : i32, i32
  }
  func.func @transform_4(%arg0: i32) -> (i32, i32) {
    %c0_i32 = arith.constant 0 : i32
    %c0_i32_0 = arith.constant 0 : i32
    %c0_i32_1 = arith.constant 0 : i32
    return %c0_i32, %c0_i32_0 : i32, i32
  }
  func.func @transform_5(%arg0: i32) -> (i32, i32) {
    %c0_i32 = arith.constant 0 : i32
    %c0_i32_0 = arith.constant 0 : i32
    %c0_i32_1 = arith.constant 0 : i32
    return %c0_i32, %c0_i32_0 : i32, i32
  }
  func.func @transform_6(%arg0: i32) -> (i32, i32) {
    %c0_i32 = arith.constant 0 : i32
    %c0_i32_0 = arith.constant 0 : i32
    return %arg0, %c0_i32 : i32, i32
  }
}

</mosaic_0001>

<bundles_post_ra>
// kernel: resnext_block_forward.4
= control target key start
LH: loop header
LB: loop body
LE: loop exit
PB: predicated region body
PF: predicated region fallthrough
CT: control target
= control target key end

     0   :  { %10 = vsyncpa [#allocation3], 0  ;;  %s1684_s0 = inlined_call_operand.hbm [shape: f32[512,128], index: 0, kind: input, shape index: {}]   ;;  %s1685_s1 = inlined_call_operand.hbm [shape: f32[128,256], index: 1, kind: input, shape index: {}]   ;;  %s1686_s2 = inlined_call_operand.vmem [shape: f32[512,256], index: 2, kind: output, shape index: {0}]   ;;  %s1687_s3 = inlined_call_operand.vmem [shape: f32[1,256], index: 3, kind: output, shape index: {1}]   ;;  %s1688_s4 = inlined_call_operand.vmem [shape: f32[1,256], index: 4, kind: output, shape index: {2}]  }
   0x1   :  { %12 = vsyncpa [#allocation3 + $0x1], 0 }
   0x2   :  { %13 = vsyncpa [#allocation5], 0  ;;  %s1161_s15 = smov 0   ;;  %s1163_s16 = smov 0  }
   0x3   :  { %s1165_s17 = smov 0   ;;  %s1167_s18 = smov 0  }
   0x4 LB: > { %s1180_s19 = sadd.s32 4294967295, %s1128_s18   ;;  %p39_p0 = scmp.ne.s32.totalorder %s1120_s16, %s1116_s15  ;;  %s1128_s18 = sphi %s1167_s18, %s1695_s18   ;;  %s1124_s17 = sphi %s1165_s17, %s1694_s17   ;;  %s1120_s16 = sphi %s1163_s16, %s1693_s16   ;;  %s1116_s15 = sphi %s1161_s15, %s1692_s15  }
   0x5   : > { %p40_p1 = scmp.eq.s32.totalorder %s1180_s19, 0  ;;  %p926_p2 = scmp.ge.s32.totalorder %s1128_s18, 1 }
   0x6   : > { %p139_p3 = scmp.lt.s32.totalorder %s1128_s18, 3  ;;  %p927_p4 = scmp.ne.s32.totalorder %s1180_s19, 0 }
   0x7   : > { %p1189_p5 = por %p40_p1, %p39_p0  ;;  %s150_s23 = sshll.u32 %s1685_s1, 4  ;;  %s151_s23 = int_to_ptr.hbm [resolvable:$true] %s150_s23 }
   0x8   : > { %p1196_p6 = pnand %p926_p2, %p139_p3  ;;  %s1130_s25 = smov [#allocation4]  }
   0x9   : > { %s152_s26 = sshll.u32 %s1130_s25, 4  ;;  %s1205_s27 = sadd.s32 1, %s1128_s18   ;;  %s153_s26 = int_to_ptr.vmem [resolvable:$true] %s152_s26 }
   0xa   : > { %p981_p7 = pneg %p1196_p6  ;;  %s1131_s28 = smov 256  }
   0xb   : > { %s1132_s29 = smov 16   ;;  %s23_s30 = ssub.s32 %s1128_s18, %s1205_s27 }
   0xc   : > { %p982_p8 = pnand %p981_p7, %p40_p1  ;;  %s26_s5 = sadd.s32 1, %s1124_s17 }
   0xd   : > { %p24_p9 = scmp.eq.s32.totalorder %s23_s30, 0  ;;  %p33_p10 = scmp.ne.s32.totalorder %s1124_s17, %s1120_s16 }
   0xe   : > { %984 = dma.hbm_to_vmem [thread:$0]  (!%p982_p8), %s151_s23, 4096, %s153_s26, [#allocation5], %s1131_s28, %s1131_s28, %s1132_s29  }
   0xf   : > { %p34_p11 = scmp.eq.s32.totalorder %s1128_s18, 0  ;;  %p990_p12 = scmp.lt.s32.totalorder %s1128_s18, 2 }
  0x10   : > { %s1215_s6 = scalar_select %p24_p9, %s1124_s17, %s26_s5  }
  0x11   : > { %p35_p13 = por %p34_p11, %p33_p10  ;;  %s166_s7 = sand.u32 1, %s1124_s17  }
  0x12   : > { %s929_s8 = sshll.u32 %s166_s7, 8  ;;  %s941_s9 = sshll.u32 %s1128_s18, 8 }
  0x13   : > { %s175_s12 = scalar_lea.hbm %s1684_s0, %s941_s9  ;;  %s170_s13 = scalar_lea.vmem [#allocation2], %s929_s8 }
  0x14   : > { %s178_s14 = sshll.u32 %s170_s13, 4  ;;  %s176_s15 = sshll.u32 %s175_s12, 4  ;;  %s179_s14 = int_to_ptr.vmem [resolvable:$true] %s178_s14  ;;  %s177_s15 = int_to_ptr.hbm [resolvable:$true] %s176_s15 }
  0x15   : > { %p1222_p0 = pnand %p990_p12, %p35_p13  ;;  %s167_s22 = scalar_lea.sflag [#allocation3], %s166_s7 }
  0x16   : > { %s1060_s23 = sshra.s32 %s177_s15, 4  ;;  %s1067_s28 = scalar_lea.hbm %s1684_s0, 512  ;;  %s1061_s23 = int_to_ptr.hbm [resolvable:$true] %s1060_s23 }
  0x17   : > { %s1062_s25 = scalar_lea.hbm %s1061_s23, 256  ;;  %p1064_p3 = pneg %p1222_p0 }
  0x18   : > { %p1063_p2 = scmp.ne.s32.totalorder %s1061_s23, %s1062_s25  ;;  %p1068_p9 = scmp.lt.s32.totalorder %s1061_s23, %s1684_s0 }
  0x19   : > { %p1069_p10 = scmp.lt.s32.totalorder %s1067_s28, %s1062_s25 }
  0x1a   : > { %p1065_p7 = pnand %p1064_p3, %p1063_p2 }
  0x1b   : > { %p1070_p11 = por %p1069_p10, %p1068_p9 }
  0x1c   : > { %p1066_p8 = pneg %p1065_p7 }
  0x1e   : > { %p1071_p12 = pnand %p1070_p11, %p1066_p8 }
  0x20   : > { %1074 = shalt.err (!%p1071_p12)
}
  0x21   : > { %s1133_s5 = smov 128   ;;  %s1134_s7 = smov 8  }
  0x22   : > { %988 = dma.hbm_to_vmem [thread:$0]  (!%p1222_p0), %s177_s15, 4096, %s179_s14, %s167_s22, %s1133_s5, %s1133_s5, %s1134_s7  }
  0x23   : > { %190 = sbr.rel (%p1196_p6) target bundleno = 386 (0x182), region = 28  ;;  %s192_s8 = sand.u32 (!%p1196_p6), 1, %s1120_s16  }
  0x24   : > { %s933_s9 = sshll.u32 (!%p1196_p6), %s192_s8, 8  ;;  %s193_s10 = scalar_lea.sflag (!%p1196_p6), [#allocation3], %s192_s8 }
  0x25   : > { %s1239_s11 = scalar_lea.vmem (!%p1196_p6), [#allocation2], %s933_s9 }
  0x28   : > { %1107 = dma.done.wait (%p1189_p5), %s193_s10, 4096  }
  0x29   : > { %1109 = vsyncadd (%p1189_p5), %s193_s10, 4294963200 }
  0x2a   : > { %1111 = dma.done.wait (%p40_p1), [#allocation5], 4096  }
  0x2b   : > { %1113 = vsyncadd (%p40_p1), [#allocation5], 4294963200  ;;  %s935_s24 = sshll.u32 %s1180_s19, 5 }
  0x2c   : > { %p230_p6 = scmp.lt.s32.totalorder %s935_s24, 63  ;;  %239 = sbr.rel (%p927_p4) target bundleno = 54 (0x36), region = 40 }
  0x2e   : > { %s1697_s24 = smov (!%p230_p6, %s935_s24), 63 }
  0x2f   : > { %s942_s12 = sshll.u32 %s1697_s24, 4 }
  0x30   : > { %s1253_s15 = scalar_lea.vmem %s1686_s2, %s942_s12 }
  0x31   : > { %v240_v0 = vlaneseq  ;;  %v1135_v1 = vmov 0.0  }
  0x33   : > { %vm242_vm0 = vcmp.lt.s32.totalorder %v240_v0, 256 }
  0x34   : > { %244 = vst.msk [vmem:[%s1687_s3] sm:$0x3] %vm242_vm0, %v1135_v1 }
  0x35   : > { %245 = vst.msk [vmem:[%s1688_s4] sm:$0x3] %vm242_vm0, %v1135_v1 }
  0x36 PF: > { %v276_v2 = vld [vmem:[#allocation4 + $0xf0] sm:$0xff]  ;;  %v277_v3 = vld [vmem:[#allocation4 + $0xf8] sm:$0xff]  ;;  %v274_v4 = vld [vmem:[#allocation4 + $0xe0] sm:$0xff]  ;;  %vm678_vm1 = vcmask 1040384  }
  0x37   : > { %310 = vmatpush.msra.mxu0 %v276_v2  ;;  %423 = vmatpush.msra.mxu1 %v277_v3  ;;  %v275_v5 = vld [vmem:[#allocation4 + $0xe8] sm:$0xff]  ;;  %v272_v6 = vld [vmem:[#allocation4 + $0xd0] sm:$0xff]  ;;  %v273_v7 = vld [vmem:[#allocation4 + $0xd8] sm:$0xff] }
  0x38   : > { %943 = vmatpush.msra.mxu2 %v276_v2  ;;  %959 = vmatpush.msra.mxu3 %v277_v3  ;;  %v270_v8 = vld [vmem:[#allocation4 + $0xc0] sm:$0xff]  ;;  %v271_v9 = vld [vmem:[#allocation4 + $0xc8] sm:$0xff]  ;;  %v268_v10 = vld [vmem:[#allocation4 + $0xb0] sm:$0xff] }
  0x39   : > { %311 = vmatpush.msra.mxu0 %v274_v4  ;;  %424 = vmatpush.msra.mxu1 %v275_v5  ;;  %v269_v11 = vld [vmem:[#allocation4 + $0xb8] sm:$0xff]  ;;  %v266_v12 = vld [vmem:[#allocation4 + $0xa0] sm:$0xff]  ;;  %v267_v13 = vld [vmem:[#allocation4 + $0xa8] sm:$0xff] }
  0x3a   : > { %944 = vmatpush.msra.mxu2 %v274_v4  ;;  %960 = vmatpush.msra.mxu3 %v275_v5  ;;  %v264_v14 = vld [vmem:[#allocation4 + $0x90] sm:$0xff]  ;;  %v265_v15 = vld [vmem:[#allocation4 + $0x98] sm:$0xff]  ;;  %v262_v16 = vld [vmem:[#allocation4 + $0x80] sm:$0xff] }
  0x3b   : > { %312 = vmatpush.msra.mxu0 %v272_v6  ;;  %425 = vmatpush.msra.mxu1 %v273_v7  ;;  %v263_v17 = vld [vmem:[#allocation4 + $0x88] sm:$0xff]  ;;  %v260_v18 = vld [vmem:[#allocation4 + $0x70] sm:$0xff]  ;;  %v261_v19 = vld [vmem:[#allocation4 + $0x78] sm:$0xff] }
  0x3c   : > { %945 = vmatpush.msra.mxu2 %v272_v6  ;;  %961 = vmatpush.msra.mxu3 %v273_v7  ;;  %v258_v20 = vld [vmem:[#allocation4 + $0x60] sm:$0xff]  ;;  %v259_v21 = vld [vmem:[#allocation4 + $0x68] sm:$0xff]  ;;  %v256_v22 = vld [vmem:[#allocation4 + $0x50] sm:$0xff] }
  0x3d   : > { %313 = vmatpush.msra.mxu0 %v270_v8  ;;  %426 = vmatpush.msra.mxu1 %v271_v9  ;;  %v257_v23 = vld [vmem:[#allocation4 + $0x58] sm:$0xff]  ;;  %v254_v24 = vld [vmem:[#allocation4 + $0x40] sm:$0xff]  ;;  %v255_v25 = vld [vmem:[#allocation4 + $0x48] sm:$0xff] }
  0x3e   : > { %946 = vmatpush.msra.mxu2 %v270_v8  ;;  %962 = vmatpush.msra.mxu3 %v271_v9  ;;  %v252_v26 = vld [vmem:[#allocation4 + $0x30] sm:$0xff]  ;;  %v253_v27 = vld [vmem:[#allocation4 + $0x38] sm:$0xff]  ;;  %v250_v28 = vld [vmem:[#allocation4 + $0x20] sm:$0xff] }
  0x3f   : > { %314 = vmatpush.msra.mxu0 %v268_v10  ;;  %427 = vmatpush.msra.mxu1 %v269_v11  ;;  %v251_v29 = vld [vmem:[#allocation4 + $0x28] sm:$0xff]  ;;  %v248_v30 = vld [vmem:[#allocation4 + $0x10] sm:$0xff]  ;;  %v249_v31 = vld [vmem:[#allocation4 + $0x18] sm:$0xff] }
  0x40   : > { %947 = vmatpush.msra.mxu2 %v268_v10  ;;  %963 = vmatpush.msra.mxu3 %v269_v11  ;;  %v246_v32 = vld [vmem:[#allocation4] sm:$0xff]  ;;  %v247_v33 = vld [vmem:[#allocation4 + $0x8] sm:$0xff]  ;;  %v280_v38 = vld [vmem:[%s1239_s11 + $0x10] sm:$0xff] }
  0x41   : > { %315 = vmatpush.msra.mxu0 %v266_v12  ;;  %428 = vmatpush.msra.mxu1 %v267_v13  ;;  %v278_v34 = vld [vmem:[%s1239_s11] sm:$0xff]  ;;  %v279_v36 = vld [vmem:[%s1239_s11 + $0x8] sm:$0xff]  ;;  %v296_v39 = vld [vmem:[%s1239_s11 + $0x90] sm:$0xff] }
  0x42   : > { %948 = vmatpush.msra.mxu2 %v266_v12  ;;  %964 = vmatpush.msra.mxu3 %v267_v13  ;;  %v294_v35 = vld [vmem:[%s1239_s11 + $0x80] sm:$0xff]  ;;  %v295_v37 = vld [vmem:[%s1239_s11 + $0x88] sm:$0xff]  ;;  %v281_v40 = vld [vmem:[%s1239_s11 + $0x18] sm:$0xff] }
  0x43   : > { %316 = vmatpush.msra.mxu0 %v264_v14  ;;  %429 = vmatpush.msra.mxu1 %v265_v15  ;;  %v297_v41 = vld [vmem:[%s1239_s11 + $0x98] sm:$0xff]  ;;  %v282_v42 = vld [vmem:[%s1239_s11 + $0x20] sm:$0xff]  ;;  %v283_v44 = vld [vmem:[%s1239_s11 + $0x28] sm:$0xff] }
  0x44   : > { %949 = vmatpush.msra.mxu2 %v264_v14  ;;  %965 = vmatpush.msra.mxu3 %v265_v15  ;;  %v298_v43 = vld [vmem:[%s1239_s11 + $0xa0] sm:$0xff]  ;;  %v299_v45 = vld [vmem:[%s1239_s11 + $0xa8] sm:$0xff]  ;;  %v284_v46 = vld [vmem:[%s1239_s11 + $0x30] sm:$0xff] }
  0x45   : > { %317 = vmatpush.msra.mxu0 %v262_v16  ;;  %430 = vmatpush.msra.mxu1 %v263_v17  ;;  %v300_v47 = vld [vmem:[%s1239_s11 + $0xb0] sm:$0xff]  ;;  %v285_v48 = vld [vmem:[%s1239_s11 + $0x38] sm:$0xff]  ;;  %v286_v50 = vld [vmem:[%s1239_s11 + $0x40] sm:$0xff] }
  0x46   : > { %950 = vmatpush.msra.mxu2 %v262_v16  ;;  %966 = vmatpush.msra.mxu3 %v263_v17  ;;  %v301_v49 = vld [vmem:[%s1239_s11 + $0xb8] sm:$0xff]  ;;  %v302_v51 = vld [vmem:[%s1239_s11 + $0xc0] sm:$0xff]  ;;  %v287_v52 = vld [vmem:[%s1239_s11 + $0x48] sm:$0xff] }
  0x47   : > { %318 = vmatpush.msra.mxu0 %v260_v18  ;;  %431 = vmatpush.msra.mxu1 %v261_v19  ;;  %v303_v53 = vld [vmem:[%s1239_s11 + $0xc8] sm:$0xff]  ;;  %v288_v54 = vld [vmem:[%s1239_s11 + $0x50] sm:$0xff]  ;;  %v289_v56 = vld [vmem:[%s1239_s11 + $0x58] sm:$0xff] }
  0x48   : > { %951 = vmatpush.msra.mxu2 %v260_v18  ;;  %967 = vmatpush.msra.mxu3 %v261_v19  ;;  %v304_v55 = vld [vmem:[%s1239_s11 + $0xd0] sm:$0xff]  ;;  %v305_v57 = vld [vmem:[%s1239_s11 + $0xd8] sm:$0xff]  ;;  %v290_v58 = vld [vmem:[%s1239_s11 + $0x60] sm:$0xff] }
  0x49   : > { %319 = vmatpush.msra.mxu0 %v258_v20  ;;  %432 = vmatpush.msra.mxu1 %v259_v21  ;;  %v306_v59 = vld [vmem:[%s1239_s11 + $0xe0] sm:$0xff]  ;;  %v291_v60 = vld [vmem:[%s1239_s11 + $0x68] sm:$0xff]  ;;  %v292_v62 = vld [vmem:[%s1239_s11 + $0x70] sm:$0xff] }
  0x4a   : > { %952 = vmatpush.msra.mxu2 %v258_v20  ;;  %968 = vmatpush.msra.mxu3 %v259_v21  ;;  %v307_v61 = vld [vmem:[%s1239_s11 + $0xe8] sm:$0xff]  ;;  %v308_v63 = vld [vmem:[%s1239_s11 + $0xf0] sm:$0xff]  ;;  %v293_v0 = vld [vmem:[%s1239_s11 + $0x78] sm:$0xff] }
  0x4b   : > { %320 = vmatpush.msra.mxu0 %v256_v22  ;;  %433 = vmatpush.msra.mxu1 %v257_v23  ;;  %v309_v1 = vld [vmem:[%s1239_s11 + $0xf8] sm:$0xff] }
  0x4c   : > { %953 = vmatpush.msra.mxu2 %v256_v22  ;;  %969 = vmatpush.msra.mxu3 %v257_v23 }
  0x4d   : > { %321 = vmatpush.msra.mxu0 %v254_v24  ;;  %434 = vmatpush.msra.mxu1 %v255_v25 }
  0x4e   : > { %954 = vmatpush.msra.mxu2 %v254_v24  ;;  %970 = vmatpush.msra.mxu3 %v255_v25 }
  0x4f   : > { %322 = vmatpush.msra.mxu0 %v252_v26  ;;  %435 = vmatpush.msra.mxu1 %v253_v27 }
  0x50   : > { %955 = vmatpush.msra.mxu2 %v252_v26  ;;  %971 = vmatpush.msra.mxu3 %v253_v27 }
  0x51   : > { %323 = vmatpush.msra.mxu0 %v250_v28  ;;  %436 = vmatpush.msra.mxu1 %v251_v29 }
  0x52   : > { %956 = vmatpush.msra.mxu2 %v250_v28  ;;  %972 = vmatpush.msra.mxu3 %v251_v29 }
  0x53   : > { %324 = vmatpush.msra.mxu0 %v248_v30  ;;  %437 = vmatpush.msra.mxu1 %v249_v31 }
  0x54   : > { %957 = vmatpush.msra.mxu2 %v248_v30  ;;  %973 = vmatpush.msra.mxu3 %v249_v31 }
  0x55   : > { %325 = vmatpush.msra.mxu0 %v246_v32  ;;  %438 = vmatpush.msra.mxu1 %v247_v33 }
  0x56   : > { %326 = vmatmul.f32.vlgmr.msra.gmra.mxu0 %v278_v34  ;;  %439 = vmatmul.f32.vlgmr.msra.gmra.mxu1 %v278_v34 }
  0x57   : > { %958 = vmatpush.msra.mxu2 %v246_v32  ;;  %974 = vmatpush.msra.mxu3 %v247_v33 }
  0x58   : > { %374 = vmatmul.f32.vlgmr.msra.gmra.mxu2 %v294_v35  ;;  %487 = vmatmul.f32.vlgmr.msra.gmra.mxu3 %v294_v35 }
  0x5e   : > { %329 = vmatmul.f32.gmra.mxu0 %v279_v36  ;;  %442 = vmatmul.f32.gmra.mxu1 %v279_v36 }
  0x60   : > { %377 = vmatmul.f32.gmra.mxu2 %v295_v37  ;;  %490 = vmatmul.f32.gmra.mxu3 %v295_v37 }
  0x66   : > { %332 = vmatmul.f32.gmra.mxu0 %v280_v38  ;;  %445 = vmatmul.f32.gmra.mxu1 %v280_v38 }
  0x68   : > { %380 = vmatmul.f32.gmra.mxu2 %v296_v39  ;;  %493 = vmatmul.f32.gmra.mxu3 %v296_v39 }
  0x6e   : > { %335 = vmatmul.f32.gmra.mxu0 %v281_v40  ;;  %448 = vmatmul.f32.gmra.mxu1 %v281_v40 }
  0x70   : > { %383 = vmatmul.f32.gmra.mxu2 %v297_v41  ;;  %496 = vmatmul.f32.gmra.mxu3 %v297_v41 }
  0x76   : > { %338 = vmatmul.f32.gmra.mxu0 %v282_v42  ;;  %451 = vmatmul.f32.gmra.mxu1 %v282_v42 }
  0x78   : > { %386 = vmatmul.f32.gmra.mxu2 %v298_v43  ;;  %499 = vmatmul.f32.gmra.mxu3 %v298_v43 }
  0x7e   : > { %341 = vmatmul.f32.gmra.mxu0 %v283_v44  ;;  %454 = vmatmul.f32.gmra.mxu1 %v283_v44 }
  0x80   : > { %389 = vmatmul.f32.gmra.mxu2 %v299_v45  ;;  %502 = vmatmul.f32.gmra.mxu3 %v299_v45 }
  0x86   : > { %344 = vmatmul.f32.gmra.mxu0 %v284_v46  ;;  %457 = vmatmul.f32.gmra.mxu1 %v284_v46 }
  0x88   : > { %392 = vmatmul.f32.gmra.mxu2 %v300_v47  ;;  %505 = vmatmul.f32.gmra.mxu3 %v300_v47 }
  0x8e   : > { %347 = vmatmul.f32.gmra.mxu0 %v285_v48  ;;  %460 = vmatmul.f32.gmra.mxu1 %v285_v48 }
  0x90   : > { %395 = vmatmul.f32.gmra.mxu2 %v301_v49  ;;  %508 = vmatmul.f32.gmra.mxu3 %v301_v49 }
  0x96   : > { %350 = vmatmul.f32.gmra.mxu0 %v286_v50  ;;  %463 = vmatmul.f32.gmra.mxu1 %v286_v50 }
  0x98   : > { %398 = vmatmul.f32.gmra.mxu2 %v302_v51  ;;  %511 = vmatmul.f32.gmra.mxu3 %v302_v51 }
  0x9e   : > { %353 = vmatmul.f32.gmra.mxu0 %v287_v52  ;;  %466 = vmatmul.f32.gmra.mxu1 %v287_v52 }
  0xa0   : > { %401 = vmatmul.f32.gmra.mxu2 %v303_v53  ;;  %514 = vmatmul.f32.gmra.mxu3 %v303_v53 }
  0xa6   : > { %356 = vmatmul.f32.gmra.mxu0 %v288_v54  ;;  %469 = vmatmul.f32.gmra.mxu1 %v288_v54 }
  0xa8   : > { %404 = vmatmul.f32.gmra.mxu2 %v304_v55  ;;  %517 = vmatmul.f32.gmra.mxu3 %v304_v55 }
  0xae   : > { %359 = vmatmul.f32.gmra.mxu0 %v289_v56  ;;  %472 = vmatmul.f32.gmra.mxu1 %v289_v56 }
  0xb0   : > { %407 = vmatmul.f32.gmra.mxu2 %v305_v57  ;;  %520 = vmatmul.f32.gmra.mxu3 %v305_v57 }
  0xb6   : > { %362 = vmatmul.f32.gmra.mxu0 %v290_v58  ;;  %475 = vmatmul.f32.gmra.mxu1 %v290_v58 }
  0xb8   : > { %410 = vmatmul.f32.gmra.mxu2 %v306_v59  ;;  %523 = vmatmul.f32.gmra.mxu3 %v306_v59 }
  0xbe   : > { %365 = vmatmul.f32.gmra.mxu0 %v291_v60  ;;  %478 = vmatmul.f32.gmra.mxu1 %v291_v60 }
  0xc0   : > { %413 = vmatmul.f32.gmra.mxu2 %v307_v61  ;;  %526 = vmatmul.f32.gmra.mxu3 %v307_v61 }
  0xc6   : > { %368 = vmatmul.f32.gmra.mxu0 %v292_v62  ;;  %481 = vmatmul.f32.gmra.mxu1 %v292_v62 }
  0xc8   : > { %416 = vmatmul.f32.gmra.mxu2 %v308_v63  ;;  %529 = vmatmul.f32.gmra.mxu3 %v308_v63 }
  0xce   : > { %371 = vmatmul.f32.gmra.mxu0 %v293_v0  ;;  %484 = vmatmul.f32.gmra.mxu1 %v293_v0 }
  0xd0   : > { %419 = vmatmul.f32.gmra.mxu2 %v309_v1  ;;  %532 = vmatmul.f32.gmra.mxu3 %v309_v1 }
  0xd3   : > { %v327_v2 = vpop.f32.mrf.mxu0  ;;  %v440_v3 = vpop.f32.mrf.mxu1 }
  0xd4   : > { %536 = vst [vmem:[%s1253_s15] sm:$0xff] %v327_v2  ;;  %v688_v4 = vmul.f32 %v327_v2, %v327_v2  ;;  %v689_v5 = vmul.f32 %v440_v3, %v440_v3 }
  0xd5   : > { %537 = vst [vmem:[%s1253_s15 + $0x8] sm:$0xff] %v440_v3 }
  0xdb   : > { %v330_v6 = vpop.f32.mrf.mxu0  ;;  %v443_v7 = vpop.f32.mrf.mxu1 }
  0xdc   : > { %538 = vst [vmem:[%s1253_s15 + $0x10] sm:$0xff] %v330_v6  ;;  %v601_v8 = vadd.f32 %v330_v6, %v327_v2  ;;  %v690_v9 = vmul.f32 %v330_v6, %v330_v6  ;;  %v638_v10 = vadd.f32 %v443_v7, %v440_v3  ;;  %v691_v11 = vmul.f32 %v443_v7, %v443_v7  ;;  %v1298_v12 = vpop.f32.mrf.mxu2  ;;  %v1300_v13 = vpop.f32.mrf.mxu3 }
  0xdd   : > { %539 = vst [vmem:[%s1253_s15 + $0x18] sm:$0xff] %v443_v7 }
  0xde   : > { %v752_v14 = vadd.f32 %v690_v9, %v688_v4  ;;  %v789_v15 = vadd.f32 %v691_v11, %v689_v5  ;;  %568 = vst [vmem:[%s1253_s15 + $0x100] sm:$0xff] %v1298_v12 }
  0xdf   : > { %569 = vst [vmem:[%s1253_s15 + $0x108] sm:$0xff] %v1300_v13 }
  0xe3   : > { %v333_v16 = vpop.f32.mrf.mxu0  ;;  %v446_v17 = vpop.f32.mrf.mxu1 }
  0xe4   : > { %540 = vst [vmem:[%s1253_s15 + $0x20] sm:$0xff] %v333_v16  ;;  %v602_v18 = vadd.f32 %v601_v8, %v333_v16  ;;  %v692_v19 = vmul.f32 %v333_v16, %v333_v16  ;;  %v639_v20 = vadd.f32 %v638_v10, %v446_v17  ;;  %v693_v21 = vmul.f32 %v446_v17, %v446_v17  ;;  %v1308_v22 = vpop.f32.mrf.mxu2  ;;  %v1310_v23 = vpop.f32.mrf.mxu3 }
  0xe5   : > { %541 = vst [vmem:[%s1253_s15 + $0x28] sm:$0xff] %v446_v17 }
  0xe6   : > { %v753_v24 = vadd.f32 %v752_v14, %v692_v19  ;;  %v790_v25 = vadd.f32 %v789_v15, %v693_v21  ;;  %570 = vst [vmem:[%s1253_s15 + $0x110] sm:$0xff] %v1308_v22 }
  0xe7   : > { %571 = vst [vmem:[%s1253_s15 + $0x118] sm:$0xff] %v1310_v23 }
  0xeb   : > { %v336_v26 = vpop.f32.mrf.mxu0  ;;  %v449_v27 = vpop.f32.mrf.mxu1 }
  0xec   : > { %542 = vst [vmem:[%s1253_s15 + $0x30] sm:$0xff] %v336_v26  ;;  %v603_v28 = vadd.f32 %v602_v18, %v336_v26  ;;  %v694_v29 = vmul.f32 %v336_v26, %v336_v26  ;;  %v640_v30 = vadd.f32 %v639_v20, %v449_v27  ;;  %v695_v31 = vmul.f32 %v449_v27, %v449_v27  ;;  %v1318_v32 = vpop.f32.mrf.mxu2  ;;  %v1320_v33 = vpop.f32.mrf.mxu3 }
  0xed   : > { %543 = vst [vmem:[%s1253_s15 + $0x38] sm:$0xff] %v449_v27 }
  0xee   : > { %v754_v34 = vadd.f32 %v753_v24, %v694_v29  ;;  %v791_v35 = vadd.f32 %v790_v25, %v695_v31  ;;  %572 = vst [vmem:[%s1253_s15 + $0x120] sm:$0xff] %v1318_v32 }
  0xef   : > { %573 = vst [vmem:[%s1253_s15 + $0x128] sm:$0xff] %v1320_v33 }
  0xf3   : > { %v339_v36 = vpop.f32.mrf.mxu0  ;;  %v452_v37 = vpop.f32.mrf.mxu1 }
  0xf4   : > { %544 = vst [vmem:[%s1253_s15 + $0x40] sm:$0xff] %v339_v36  ;;  %v1328_v38 = vadd.f32 %v603_v28, %v339_v36  ;;  %v696_v39 = vmul.f32 %v339_v36, %v339_v36  ;;  %v1330_v40 = vadd.f32 %v640_v30, %v452_v37  ;;  %v697_v41 = vmul.f32 %v452_v37, %v452_v37  ;;  %v1332_v42 = vpop.f32.mrf.mxu2  ;;  %v1334_v43 = vpop.f32.mrf.mxu3 }
  0xf5   : > { %545 = vst [vmem:[%s1253_s15 + $0x48] sm:$0xff] %v452_v37 }
  0xf6   : > { %v1337_v44 = vadd.f32 %v754_v34, %v696_v39  ;;  %v1339_v45 = vadd.f32 %v791_v35, %v697_v41  ;;  %574 = vst [vmem:[%s1253_s15 + $0x130] sm:$0xff] %v1332_v42 }
  0xf7   : > { %575 = vst [vmem:[%s1253_s15 + $0x138] sm:$0xff] %v1334_v43 }
  0xfb   : > { %v1345_v46 = vpop.f32.mrf.mxu0  ;;  %v1347_v47 = vpop.f32.mrf.mxu1 }
  0xfc   : > { %546 = vst [vmem:[%s1253_s15 + $0x50] sm:$0xff] %v1345_v46  ;;  %v1351_v48 = vpop.f32.mrf.mxu2  ;;  %v1353_v49 = vpop.f32.mrf.mxu3  ;;  %v698_v16 = vmul.f32 %v1345_v46, %v1345_v46  ;;  %v699_v17 = vmul.f32 %v1347_v47, %v1347_v47  ;;  %v605_v20 = vadd.f32 %v1328_v38, %v1345_v46  ;;  %v642_v21 = vadd.f32 %v1330_v40, %v1347_v47 }
  0xfd   : > { %547 = vst [vmem:[%s1253_s15 + $0x58] sm:$0xff] %v1347_v47 }
  0xfe   : > { %576 = vst [vmem:[%s1253_s15 + $0x140] sm:$0xff] %v1351_v48  ;;  %v756_v24 = vadd.f32 %v1337_v44, %v698_v16  ;;  %v793_v25 = vadd.f32 %v1339_v45, %v699_v17 }
  0xff   : > { %577 = vst [vmem:[%s1253_s15 + $0x148] sm:$0xff] %v1353_v49 }
 0x103   : > { %v1361_v50 = vpop.f32.mrf.mxu0  ;;  %v1363_v51 = vpop.f32.mrf.mxu1 }
 0x104   : > { %548 = vst [vmem:[%s1253_s15 + $0x60] sm:$0xff] %v1361_v50  ;;  %v1367_v52 = vpop.f32.mrf.mxu2  ;;  %v1369_v53 = vpop.f32.mrf.mxu3  ;;  %v700_v18 = vmul.f32 %v1361_v50, %v1361_v50  ;;  %v701_v19 = vmul.f32 %v1363_v51, %v1363_v51  ;;  %v606_v28 = vadd.f32 %v605_v20, %v1361_v50  ;;  %v643_v29 = vadd.f32 %v642_v21, %v1363_v51 }
 0x105   : > { %549 = vst [vmem:[%s1253_s15 + $0x68] sm:$0xff] %v1363_v51 }
 0x106   : > { %578 = vst [vmem:[%s1253_s15 + $0x150] sm:$0xff] %v1367_v52  ;;  %v757_v30 = vadd.f32 %v756_v24, %v700_v18  ;;  %v794_v31 = vadd.f32 %v793_v25, %v701_v19 }
 0x107   : > { %579 = vst [vmem:[%s1253_s15 + $0x158] sm:$0xff] %v1369_v53 }
 0x10b   : > { %v1377_v54 = vpop.f32.mrf.mxu0  ;;  %v1379_v55 = vpop.f32.mrf.mxu1 }
 0x10c   : > { %550 = vst [vmem:[%s1253_s15 + $0x70] sm:$0xff] %v1377_v54  ;;  %v1383_v56 = vpop.f32.mrf.mxu2  ;;  %v1385_v57 = vpop.f32.mrf.mxu3  ;;  %v702_v26 = vmul.f32 %v1377_v54, %v1377_v54  ;;  %v703_v27 = vmul.f32 %v1379_v55, %v1379_v55  ;;  %v607_v38 = vadd.f32 %v606_v28, %v1377_v54  ;;  %v644_v39 = vadd.f32 %v643_v29, %v1379_v55 }
 0x10d   : > { %551 = vst [vmem:[%s1253_s15 + $0x78] sm:$0xff] %v1379_v55 }
 0x10e   : > { %580 = vst [vmem:[%s1253_s15 + $0x160] sm:$0xff] %v1383_v56  ;;  %v758_v44 = vadd.f32 %v757_v30, %v702_v26  ;;  %v795_v45 = vadd.f32 %v794_v31, %v703_v27 }
 0x10f   : > { %581 = vst [vmem:[%s1253_s15 + $0x168] sm:$0xff] %v1385_v57 }
 0x113   : > { %v1393_v58 = vpop.f32.mrf.mxu0  ;;  %v1395_v59 = vpop.f32.mrf.mxu1 }
 0x114   : > { %552 = vst [vmem:[%s1253_s15 + $0x80] sm:$0xff] %v1393_v58  ;;  %v1399_v60 = vpop.f32.mrf.mxu2  ;;  %v1401_v61 = vpop.f32.mrf.mxu3  ;;  %v704_v34 = vmul.f32 %v1393_v58, %v1393_v58  ;;  %v705_v35 = vmul.f32 %v1395_v59, %v1395_v59  ;;  %v608_v50 = vadd.f32 %v607_v38, %v1393_v58  ;;  %v645_v51 = vadd.f32 %v644_v39, %v1395_v59 }
 0x115   : > { %553 = vst [vmem:[%s1253_s15 + $0x88] sm:$0xff] %v1395_v59 }
 0x116   : > { %582 = vst [vmem:[%s1253_s15 + $0x170] sm:$0xff] %v1399_v60  ;;  %v759_v54 = vadd.f32 %v758_v44, %v704_v34  ;;  %v796_v55 = vadd.f32 %v795_v45, %v705_v35 }
 0x117   : > { %583 = vst [vmem:[%s1253_s15 + $0x178] sm:$0xff] %v1401_v61 }
 0x11b   : > { %v1409_v62 = vpop.f32.mrf.mxu0  ;;  %v1411_v63 = vpop.f32.mrf.mxu1 }
 0x11c   : > { %554 = vst [vmem:[%s1253_s15 + $0x90] sm:$0xff] %v1409_v62  ;;  %v1415_v0 = vpop.f32.mrf.mxu2  ;;  %v1417_v1 = vpop.f32.mrf.mxu3  ;;  %v706_v46 = vmul.f32 %v1409_v62, %v1409_v62  ;;  %v707_v47 = vmul.f32 %v1411_v63, %v1411_v63  ;;  %v609_v18 = vadd.f32 %v608_v50, %v1409_v62  ;;  %v646_v19 = vadd.f32 %v645_v51, %v1411_v63 }
 0x11d   : > { %555 = vst [vmem:[%s1253_s15 + $0x98] sm:$0xff] %v1411_v63 }
 0x11e   : > { %584 = vst [vmem:[%s1253_s15 + $0x180] sm:$0xff] %v1415_v0  ;;  %v760_v58 = vadd.f32 %v759_v54, %v706_v46  ;;  %v797_v20 = vadd.f32 %v796_v55, %v707_v47 }
 0x11f   : > { %585 = vst [vmem:[%s1253_s15 + $0x188] sm:$0xff] %v1417_v1 }
 0x123   : > { %v1425_v2 = vpop.f32.mrf.mxu0  ;;  %v1427_v3 = vpop.f32.mrf.mxu1 }
 0x124   : > { %556 = vst [vmem:[%s1253_s15 + $0xa0] sm:$0xff] %v1425_v2  ;;  %v1431_v4 = vpop.f32.mrf.mxu2  ;;  %v1433_v5 = vpop.f32.mrf.mxu3  ;;  %v708_v16 = vmul.f32 %v1425_v2, %v1425_v2  ;;  %v709_v17 = vmul.f32 %v1427_v3, %v1427_v3  ;;  %v610_v24 = vadd.f32 %v609_v18, %v1425_v2  ;;  %v647_v25 = vadd.f32 %v646_v19, %v1427_v3 }
 0x125   : > { %557 = vst [vmem:[%s1253_s15 + $0xa8] sm:$0xff] %v1427_v3 }
 0x126   : > { %586 = vst [vmem:[%s1253_s15 + $0x190] sm:$0xff] %v1431_v4  ;;  %v761_v26 = vadd.f32 %v760_v58, %v708_v16  ;;  %v798_v27 = vadd.f32 %v797_v20, %v709_v17 }
 0x127   : > { %587 = vst [vmem:[%s1253_s15 + $0x198] sm:$0xff] %v1433_v5 }
 0x12b   : > { %v1441_v6 = vpop.f32.mrf.mxu0  ;;  %v1443_v7 = vpop.f32.mrf.mxu1 }
 0x12c   : > { %558 = vst [vmem:[%s1253_s15 + $0xb0] sm:$0xff] %v1441_v6  ;;  %v1447_v8 = vpop.f32.mrf.mxu2  ;;  %v1449_v9 = vpop.f32.mrf.mxu3  ;;  %v710_v59 = vmul.f32 %v1441_v6, %v1441_v6  ;;  %v711_v21 = vmul.f32 %v1443_v7, %v1443_v7  ;;  %v611_v30 = vadd.f32 %v610_v24, %v1441_v6  ;;  %v648_v31 = vadd.f32 %v647_v25, %v1443_v7 }
 0x12d   : > { %559 = vst [vmem:[%s1253_s15 + $0xb8] sm:$0xff] %v1443_v7  ;;  %v721_v25 = vmul.f32 %v1300_v13, %v1300_v13 }
 0x12e   : > { %588 = vst [vmem:[%s1253_s15 + $0x1a0] sm:$0xff] %v1447_v8  ;;  %v762_v34 = vadd.f32 %v761_v26, %v710_v59  ;;  %v799_v35 = vadd.f32 %v798_v27, %v711_v21 }
 0x12f   : > { %589 = vst [vmem:[%s1253_s15 + $0x1a8] sm:$0xff] %v1449_v9 }
 0x133   : > { %v1457_v10 = vpop.f32.mrf.mxu0  ;;  %v1459_v11 = vpop.f32.mrf.mxu1 }
 0x134   : > { %560 = vst [vmem:[%s1253_s15 + $0xc0] sm:$0xff] %v1457_v10  ;;  %v1463_v14 = vpop.f32.mrf.mxu2  ;;  %v1465_v15 = vpop.f32.mrf.mxu3  ;;  %v712_v62 = vmul.f32 %v1457_v10, %v1457_v10  ;;  %v713_v63 = vmul.f32 %v1459_v11, %v1459_v11  ;;  %v612_v44 = vadd.f32 %v611_v30, %v1457_v10  ;;  %v649_v45 = vadd.f32 %v648_v31, %v1459_v11 }
 0x135   : > { %561 = vst [vmem:[%s1253_s15 + $0xc8] sm:$0xff] %v1459_v11 }
 0x136   : > { %590 = vst [vmem:[%s1253_s15 + $0x1b0] sm:$0xff] %v1463_v14  ;;  %v763_v6 = vadd.f32 %v762_v34, %v712_v62  ;;  %v800_v7 = vadd.f32 %v799_v35, %v713_v63  ;;  %v725_v35 = vmul.f32 %v1320_v33, %v1320_v33 }
 0x137   : > { %591 = vst [vmem:[%s1253_s15 + $0x1b8] sm:$0xff] %v1465_v15 }
 0x13b   : > { %v366_v36 = vpop.f32.mrf.mxu0  ;;  %v479_v37 = vpop.f32.mrf.mxu1 }
 0x13c   : > { %562 = vst [vmem:[%s1253_s15 + $0xd0] sm:$0xff] %v366_v36  ;;  %v1500_v40 = vpop.f32.mrf.mxu2  ;;  %v1502_v41 = vpop.f32.mrf.mxu3  ;;  %v714_v38 = vmul.f32 %v366_v36, %v366_v36  ;;  %v715_v39 = vmul.f32 %v479_v37, %v479_v37  ;;  %v613_v50 = vadd.f32 %v612_v44, %v366_v36  ;;  %v650_v51 = vadd.f32 %v649_v45, %v479_v37 }
 0x13d   : > { %563 = vst [vmem:[%s1253_s15 + $0xd8] sm:$0xff] %v479_v37  ;;  %v720_v37 = vmul.f32 %v1298_v12, %v1298_v12 }
 0x13e   : > { %592 = vst [vmem:[%s1253_s15 + $0x1c0] sm:$0xff] %v1500_v40  ;;  %v764_v54 = vadd.f32 %v763_v6, %v714_v38  ;;  %v801_v55 = vadd.f32 %v800_v7, %v715_v39 }
 0x13f   : > { %593 = vst [vmem:[%s1253_s15 + $0x1c8] sm:$0xff] %v1502_v41 }
 0x143   : > { %v369_v28 = vpop.f32.mrf.mxu0  ;;  %v482_v29 = vpop.f32.mrf.mxu1 }
 0x144   : > { %564 = vst [vmem:[%s1253_s15 + $0xe0] sm:$0xff] %v369_v28  ;;  %v1534_v2 = vpop.f32.mrf.mxu2  ;;  %v1536_v3 = vpop.f32.mrf.mxu3  ;;  %v716_v46 = vmul.f32 %v369_v28, %v369_v28  ;;  %v717_v47 = vmul.f32 %v482_v29, %v482_v29  ;;  %v614_v16 = vadd.f32 %v613_v50, %v369_v28  ;;  %v651_v17 = vadd.f32 %v650_v51, %v482_v29 }
 0x145   : > { %565 = vst [vmem:[%s1253_s15 + $0xe8] sm:$0xff] %v482_v29  ;;  %v722_v28 = vmul.f32 %v1308_v22, %v1308_v22  ;;  %v723_v29 = vmul.f32 %v1310_v23, %v1310_v23  ;;  %v729_v51 = vmul.f32 %v1353_v49, %v1353_v49 }
 0x146   : > { %594 = vst [vmem:[%s1253_s15 + $0x1d0] sm:$0xff] %v1534_v2  ;;  %v765_v18 = vadd.f32 %v764_v54, %v716_v46  ;;  %v802_v10 = vadd.f32 %v801_v55, %v717_v47 }
 0x147   : > { %595 = vst [vmem:[%s1253_s15 + $0x1d8] sm:$0xff] %v1536_v3 }
 0x14b   : > { %v372_v19 = vpop.f32.mrf.mxu0  ;;  %v485_v11 = vpop.f32.mrf.mxu1 }
 0x14c   : > { %566 = vst [vmem:[%s1253_s15 + $0xf0] sm:$0xff] %v372_v19  ;;  %v615_v58 = vadd.f32 %v614_v16, %v372_v19  ;;  %v718_v20 = vmul.f32 %v372_v19, %v372_v19  ;;  %v652_v59 = vadd.f32 %v651_v17, %v485_v11  ;;  %v719_v21 = vmul.f32 %v485_v11, %v485_v11  ;;  %v1546_v24 = vpop.f32.mrf.mxu2  ;;  %v1548_v36 = vpop.f32.mrf.mxu3 }
 0x14d   : > { %567 = vst [vmem:[%s1253_s15 + $0xf8] sm:$0xff] %v485_v11  ;;  %v731_v17 = vmul.f32 %v1369_v53, %v1369_v53 }
 0x14e   : > { %v616_v26 = vadd.f32 %v615_v58, %v1298_v12  ;;  %v766_v27 = vadd.f32 %v765_v18, %v718_v20  ;;  %v653_v62 = vadd.f32 %v652_v59, %v1300_v13  ;;  %v803_v63 = vadd.f32 %v802_v10, %v719_v21  ;;  %596 = vst [vmem:[%s1253_s15 + $0x1e0] sm:$0xff] %v1546_v24 }
 0x14f   : > { %597 = vst [vmem:[%s1253_s15 + $0x1e8] sm:$0xff] %v1548_v36  ;;  %v724_v13 = vmul.f32 %v1318_v32, %v1318_v32 }
 0x150   : > { %v617_v30 = vadd.f32 %v616_v26, %v1308_v22  ;;  %v767_v31 = vadd.f32 %v766_v27, %v720_v37  ;;  %v654_v34 = vadd.f32 %v653_v62, %v1310_v23  ;;  %v804_v12 = vadd.f32 %v803_v63, %v721_v25 }
 0x151   : > { %v726_v22 = vmul.f32 %v1332_v42, %v1332_v42  ;;  %v727_v23 = vmul.f32 %v1334_v43, %v1334_v43  ;;  %v734_v37 = vmul.f32 %v1399_v60, %v1399_v60  ;;  %v736_v62 = vmul.f32 %v1415_v0, %v1415_v0 }
 0x152   : > { %v618_v38 = vadd.f32 %v617_v30, %v1318_v32  ;;  %v768_v39 = vadd.f32 %v767_v31, %v722_v28  ;;  %v655_v44 = vadd.f32 %v654_v34, %v1320_v33  ;;  %v805_v45 = vadd.f32 %v804_v12, %v723_v29 }
 0x153   : > { %v728_v33 = vmul.f32 %v1351_v48, %v1351_v48  ;;  %v738_v30 = vmul.f32 %v1431_v4, %v1431_v4 }
 0x154   : > { %v619_v6 = vadd.f32 %v618_v38, %v1332_v42  ;;  %v769_v7 = vadd.f32 %v768_v39, %v724_v13  ;;  %v656_v46 = vadd.f32 %v655_v44, %v1334_v43  ;;  %v806_v47 = vadd.f32 %v805_v45, %v725_v35  ;;  %v1579_v50 = vpop.f32.mrf.mxu2  ;;  %v1581_v32 = vpop.f32.mrf.mxu3 }
 0x155   : > { %598 = vst [vmem:[%s1253_s15 + $0x1f0] sm:$0xff] %v1579_v50  ;;  %v730_v43 = vmul.f32 %v1367_v52, %v1367_v52  ;;  %v740_v13 = vmul.f32 %v1447_v8, %v1447_v8  ;;  %v742_v44 = vmul.f32 %v1463_v14, %v1463_v14 }
 0x156   : > { %v620_v54 = vadd.f32 %v619_v6, %v1351_v48  ;;  %v770_v55 = vadd.f32 %v769_v7, %v726_v22  ;;  %v657_v42 = vadd.f32 %v656_v46, %v1353_v49  ;;  %v807_v16 = vadd.f32 %v806_v47, %v727_v23  ;;  %599 = vst [vmem:[%s1253_s15 + $0x1f8] sm:$0xff] %v1581_v32 }
 0x157   : > { %v732_v48 = vmul.f32 %v1383_v56, %v1383_v56  ;;  %v733_v49 = vmul.f32 %v1385_v57, %v1385_v57  ;;  %v744_v6 = vmul.f32 %v1500_v40, %v1500_v40 }
 0x158   : > { %v621_v18 = vadd.f32 %v620_v54, %v1367_v52  ;;  %v771_v10 = vadd.f32 %v770_v55, %v728_v33  ;;  %v658_v19 = vadd.f32 %v657_v42, %v1369_v53  ;;  %v808_v11 = vadd.f32 %v807_v16, %v729_v51 }
 0x159   : > { %v735_v52 = vmul.f32 %v1401_v61, %v1401_v61  ;;  %v746_v33 = vmul.f32 %v1534_v2, %v1534_v2  ;;  %v748_v42 = vmul.f32 %v1546_v24, %v1546_v24  ;;  %v751_v16 = vmul.f32 %v1581_v32, %v1581_v32 }
 0x15a   : > { %v772_v58 = vadd.f32 %v771_v10, %v730_v43  ;;  %v622_v20 = vadd.f32 %v621_v18, %v1383_v56  ;;  %v809_v59 = vadd.f32 %v808_v11, %v731_v17  ;;  %v659_v21 = vadd.f32 %v658_v19, %v1385_v57 }
 0x15b   : > { %v737_v56 = vmul.f32 %v1417_v1, %v1417_v1 }
 0x15c   : > { %v623_v53 = vadd.f32 %v622_v20, %v1399_v60  ;;  %v773_v25 = vadd.f32 %v772_v58, %v732_v48  ;;  %v660_v26 = vadd.f32 %v659_v21, %v1401_v61  ;;  %v810_v27 = vadd.f32 %v809_v59, %v733_v49 }
 0x15d   : > { %v739_v60 = vmul.f32 %v1433_v5, %v1433_v5 }
 0x15e   : > { %v624_v57 = vadd.f32 %v623_v53, %v1415_v0  ;;  %v774_v63 = vadd.f32 %v773_v25, %v734_v37  ;;  %v661_v28 = vadd.f32 %v660_v26, %v1417_v1  ;;  %v811_v29 = vadd.f32 %v810_v27, %v735_v52 }
 0x15f   : > { %v741_v0 = vmul.f32 %v1449_v9, %v1449_v9 }
 0x160   : > { %v625_v61 = vadd.f32 %v624_v57, %v1431_v4  ;;  %v775_v31 = vadd.f32 %v774_v63, %v736_v62  ;;  %v662_v34 = vadd.f32 %v661_v28, %v1433_v5  ;;  %v812_v12 = vadd.f32 %v811_v29, %v737_v56 }
 0x161   : > { %v743_v4 = vmul.f32 %v1465_v15, %v1465_v15 }
 0x162   : > { %v626_v1 = vadd.f32 %v625_v61, %v1447_v8  ;;  %v776_v35 = vadd.f32 %v775_v31, %v738_v30  ;;  %v663_v38 = vadd.f32 %v662_v34, %v1449_v9  ;;  %v813_v39 = vadd.f32 %v812_v12, %v739_v60  ;;  %v600_v31 = vld [vmem:[%s1687_s3] sm:$0x3] }
 0x163   : > { %v745_v8 = vmul.f32 %v1502_v41, %v1502_v41  ;;  %v682_v30 = vlaneseq }
 0x164   : > { %v627_v5 = vadd.f32 %v626_v1, %v1463_v14  ;;  %v777_v45 = vadd.f32 %v776_v35, %v740_v13  ;;  %v664_v22 = vadd.f32 %v663_v38, %v1465_v15  ;;  %v814_v23 = vadd.f32 %v813_v39, %v741_v0  ;;  %v687_v1 = vld [vmem:[%s1688_s4] sm:$0x3] }
 0x165   : > { %v747_v14 = vmul.f32 %v1536_v3, %v1536_v3  ;;  %vm684_vm2 = vcmp.lt.s32.totalorder %v682_v30, 256 }
 0x166   : > { %v778_v9 = vadd.f32 %v777_v45, %v742_v44  ;;  %v815_v7 = vadd.f32 %v814_v23, %v743_v4  ;;  %v628_v46 = vadd.f32 %v627_v5, %v1500_v40  ;;  %v665_v47 = vadd.f32 %v664_v22, %v1502_v41 }
 0x167   : > { %v749_v40 = vmul.f32 %v1548_v36, %v1548_v36  ;;  %v750_v41 = vmul.f32 %v1579_v50, %v1579_v50 }
 0x168   : > { %v779_v15 = vadd.f32 %v778_v9, %v744_v6  ;;  %v816_v51 = vadd.f32 %v815_v7, %v745_v8  ;;  %v629_v54 = vadd.f32 %v628_v46, %v1534_v2  ;;  %v666_v55 = vadd.f32 %v665_v47, %v1536_v3 }
 0x16a   : > { %v780_v43 = vadd.f32 %v779_v15, %v746_v33  ;;  %v817_v17 = vadd.f32 %v816_v51, %v747_v14  ;;  %v630_v18 = vadd.f32 %v629_v54, %v1546_v24  ;;  %v667_v2 = vadd.f32 %v666_v55, %v1548_v36 }
 0x16c   : > { %v781_v10 = vadd.f32 %v780_v43, %v748_v42  ;;  %v818_v3 = vadd.f32 %v817_v17, %v749_v40  ;;  %v631_v19 = vadd.f32 %v630_v18, %v1579_v50  ;;  %v668_v11 = vadd.f32 %v667_v2, %v1581_v32 }
 0x16e   : > { %v632_v48 = vrot.slane %v631_v19, 4  ;;  %v782_v49 = vadd.f32 %v781_v10, %v750_v41  ;;  %v669_v58 = vrot.slane %v668_v11, 4  ;;  %v819_v20 = vadd.f32 %v818_v3, %v751_v16 }
 0x170   : > { %v633_v59 = vadd.f32 %v632_v48, %v631_v19  ;;  %v783_v21 = vrot.slane %v782_v49, 4  ;;  %v670_v37 = vadd.f32 %v669_v58, %v668_v11  ;;  %v820_v52 = vrot.slane %v819_v20, 4 }
 0x172   : > { %v634_v53 = vrot.slane %v633_v59, 2  ;;  %v784_v25 = vadd.f32 %v783_v21, %v782_v49  ;;  %v671_v26 = vrot.slane %v670_v37, 2  ;;  %v821_v24 = vadd.f32 %v820_v52, %v819_v20 }
 0x174   : > { %v635_v27 = vadd.f32 %v634_v53, %v633_v59  ;;  %v785_v36 = vrot.slane %v784_v25, 2  ;;  %v672_v62 = vadd.f32 %v671_v26, %v670_v37  ;;  %v822_v56 = vrot.slane %v821_v24, 2 }
 0x176   : > { %v636_v57 = vrot.slane %v635_v27, 1  ;;  %v786_v50 = vadd.f32 %v785_v36, %v784_v25  ;;  %v673_v63 = vrot.slane %v672_v62, 1  ;;  %v823_v32 = vadd.f32 %v822_v56, %v821_v24 }
 0x178   : > { %v787_v28 = vrot.slane %v786_v50, 1  ;;  %v674_v29 = vadd.f32 %v673_v63, %v672_v62  ;;  %v824_v60 = vrot.slane %v823_v32, 1  ;;  %v637_v61 = vadd.f32 %v636_v57, %v635_v27 }
 0x17a   : > { %v677_v34 = vrot.slane %v674_v29, 7  ;;  %v825_v12 = vadd.f32 %v824_v60, %v823_v32  ;;  %v788_v13 = vadd.f32 %v787_v28, %v786_v50 }
 0x17c   : > { %v679_v0 = vsel %vm678_vm1, %v637_v61, %v677_v34  ;;  %v828_v35 = vrot.slane %v825_v12, 7 }
 0x17d   : > { %v681_v38 = vadd.f32 %v679_v0, %v600_v31 }
 0x17e   : > { %v829_v39 = vsel %vm678_vm1, %v788_v13, %v828_v35 }
 0x17f   : > { %686 = vst.msk [vmem:[%s1687_s3] sm:$0x3] %vm684_vm2, %v681_v38  ;;  %v831_v44 = vadd.f32 %v829_v39, %v687_v1 }
 0x181   : > { %832 = vst.msk [vmem:[%s1688_s4] sm:$0x3] %vm684_vm2, %v831_v44 }
 0x182 PF: > { %p16_p1 = scmp.ge.s32.totalorder %s1205_s27, 4   ;;  %s1692_s15 = smov %s1120_s16 }
 0x183   : > { %s1693_s16 = smov %s1124_s17  ;;  %s1694_s17 = smov %s1215_s6 }
 0x184   : > { %s1695_s18 = smov %s1205_s27  ;;  %18 = sbr.rel (!%p16_p1) target bundleno = 4 (0x4), region = 92 }
 0x189   :  { %869 = vsyncpa [#allocation3], 1 }
 0x18a   :  { %871 = vsyncpa [#allocation3 + $0x1], 1 }
 0x18b   :  { %872 = vsyncpa [#allocation5], 1 }

// kernel: resnext_block_forward.7
= control target key start
LH: loop header
LB: loop body
LE: loop exit
PB: predicated region body
PF: predicated region fallthrough
CT: control target
= control target key end

     0   :  { %11 = vsyncpa [#allocation3], 0  ;;  %s1712_s0 = inlined_call_operand.vmem [shape: f32[512,256], index: 0, kind: input, shape index: {}]   ;;  %s1713_s1 = inlined_call_operand.vmem [shape: f32[512,256], index: 1, kind: input, shape index: {}]   ;;  %s1714_s2 = inlined_call_operand.vmem [shape: f32[1,256], index: 2, kind: input, shape index: {}]   ;;  %s1715_s3 = inlined_call_operand.vmem [shape: f32[1,256], index: 3, kind: input, shape index: {}]   ;;  %s1716_s4 = inlined_call_operand.vmem [shape: f32[1,256], index: 4, kind: input, shape index: {}]   ;;  %s1717_s5 = inlined_call_operand.vmem [shape: f32[1,256], index: 5, kind: input, shape index: {}]   ;;  %s1718_s6 = inlined_call_operand.hbm [shape: f32[512,256], index: 6, kind: output, shape index: {}]  }
   0x1   :  { %13 = vsyncpa [#allocation3 + $0x1], 0  ;;  %s1135_s21 = smov 0   ;;  %s1137_s22 = smov 0  }
   0x2   :  { %s1139_s23 = smov 0   ;;  %s1141_s24 = smov 0  }
   0x3 LB: > { %s1156_s25 = sadd.s32 4294967295, %s1096_s24   ;;  %s972_s26 = sadd.s32 4294967294, %s1096_s24   ;;  %s1096_s24 = sphi %s1141_s24, %s1724_s24   ;;  %s1092_s23 = sphi %s1139_s23, %s1723_s23   ;;  %s1088_s22 = sphi %s1137_s22, %s1722_s22   ;;  %s1084_s21 = sphi %s1135_s21, %s1721_s21  }
   0x4   : > { %s1160_s27 = sadd.s32 1, %s1096_s24   ;;  %s162_s28 = sadd.s32 1, %s1092_s23 }
   0x5   : > { %s159_s29 = ssub.s32 %s1096_s24, %s1160_s27  ;;  %p172_p0 = scmp.ne.s32.totalorder %s1092_s23, %s1088_s22 }
   0x6   : > { %p160_p1 = scmp.eq.s32.totalorder %s159_s29, 0  ;;  %p173_p2 = scmp.eq.s32.totalorder %s1156_s25, 1 }
   0x7   : > { %p178_p3 = scmp.ne.s32.totalorder %s1088_s22, %s1084_s21  ;;  %p179_p4 = scmp.eq.s32.totalorder %s972_s26, 1 }
   0x8   : > { %s1171_s30 = scalar_select %p160_p1, %s1092_s23, %s162_s28  }
   0x9   : > { %p1173_p5 = por %p173_p2, %p172_p0  ;;  %p1177_p6 = por %p179_p4, %p178_p3 }
   0xa   : > { %p975_p7 = scmp.ge.s32.totalorder %s1096_s24, 1  ;;  %p229_p8 = scmp.lt.s32.totalorder %s1096_s24, 3 }
   0xc   : > { %p230_p9 = pnand %p975_p7, %p229_p8 }
   0xd   : > { %s977_s9 = sshll.u32 (!%p230_p9), %s1156_s25, 5  ;;  %s992_s13 = sshll.u32 (!%p230_p9), %s1156_s25, 9 }
   0xe   : > { %233 = sbr.rel (%p230_p9) target bundleno = 129 (0x81), region = 44  ;;  %p267_p10 = scmp.lt.s32.totalorder (!%p230_p9), %s977_s9, 63 }
   0xf   : > { %s894_s15 = scalar_lea.hbm (!%p230_p9), %s1718_s6, %s992_s13  ;;  %s1054_s29 = scalar_lea.hbm (!%p230_p9), %s1718_s6, 1024 }
  0x10   : > { %s897_s17 = sshll.u32 (!%p230_p9), %s894_s15, 4  ;;  %s898_s17 = int_to_ptr.hbm [resolvable:$true] %s897_s17 }
  0x11   : > { %s1048_s19 = sshra.s32 (!%p230_p9), %s898_s17, 4  ;;  %s1049_s19 = int_to_ptr.hbm [resolvable:$true] %s1048_s19 }
  0x12   : > { %s1050_s20 = scalar_lea.hbm (!%p230_p9), %s1049_s19, 512  ;;  %p1055_p0 = scmp.lt.s32.totalorder (!%p230_p9), %s1049_s19, %s1718_s6 }
  0x13   : > { %v345_v0 = vld [vmem:[%s1714_s2] sm:$0x3]  ;;  %s1726_s9 = smov (!%p267_p10, %s977_s9), 63  ;;  %p1051_p11 = scmp.ne.s32.totalorder %s1049_s19, %s1050_s20 }
  0x14   : > { %v549_v1 = vld [vmem:[%s1716_s4] sm:$0x3]  ;;  %v1193_v3 = vperm.slane %v345_v0, 0  ;;  %v1197_v5 = vperm.slane %v345_v0, 1  ;;  %s989_s16 = sshll.u32 %s1726_s9, 4  ;;  %s263_s9 = sand.u32 1, %s1088_s22  }
  0x15   : > { %v415_v2 = vld [vmem:[%s1715_s3] sm:$0x3]  ;;  %v1195_v4 = vperm.slane %v549_v1, 0  ;;  %v1202_v7 = vperm.slane %v549_v1, 1  ;;  %s1207_s26 = scalar_lea.vmem %s1712_s0, %s989_s16  ;;  %s1212_s10 = scalar_lea.vmem %s1713_s1, %s989_s16 }
  0x16   : > { %v683_v6 = vld [vmem:[%s1717_s5] sm:$0x3]  ;;  %v1214_v8 = vperm.slane %v415_v2, 0  ;;  %v1216_v9 = vperm.slane %v415_v2, 1  ;;  %v282_v12 = vld [vmem:[%s1207_s26 + $0x8] sm:$0xff]  ;;  %v283_v18 = vld [vmem:[%s1207_s26 + $0x10] sm:$0xff]  ;;  %p1052_p12 = pnand %p1051_p11, %p1173_p5  ;;  %p1056_p1 = scmp.lt.s32.totalorder %s1054_s29, %s1050_s20 }
  0x17   : > { %v281_v10 = vld [vmem:[%s1207_s26] sm:$0xff]  ;;  %v1223_v15 = vperm.slane %v683_v6, 0  ;;  %v352_v16 = vmul.f32 %v1197_v5, %v282_v12  ;;  %v486_v17 = vld [vmem:[%s1212_s10 + $0x8] sm:$0xff]  ;;  %v487_v19 = vld [vmem:[%s1212_s10 + $0x10] sm:$0xff]  ;;  %v1231_v21 = vperm.slane %v683_v6, 1  ;;  %v353_v22 = vmul.f32 %v1193_v3, %v283_v18  ;;  %s1253_s11 = sshll.u32 %s263_s9, 9 }
  0x18   : > { %v485_v11 = vld [vmem:[%s1212_s10] sm:$0xff]  ;;  %v351_v13 = vmul.f32 %v1193_v3, %v281_v10  ;;  %v556_v20 = vmul.f32 %v1202_v7, %v486_v17  ;;  %v557_v23 = vmul.f32 %v1195_v4, %v487_v19  ;;  %v284_v24 = vld [vmem:[%s1207_s26 + $0x18] sm:$0xff]  ;;  %v286_v32 = vld [vmem:[%s1207_s26 + $0x28] sm:$0xff]  ;;  %s1276_s12 = scalar_lea.vmem [#allocation2], %s1253_s11  ;;  %s882_s18 = scalar_lea.sflag [#allocation3], %s263_s9 }
  0x19   : > { %v555_v14 = vmul.f32 %v1195_v4, %v485_v11  ;;  %v488_v25 = vld [vmem:[%s1212_s10 + $0x18] sm:$0xff]  ;;  %v285_v26 = vld [vmem:[%s1207_s26 + $0x20] sm:$0xff]  ;;  %v422_v28 = vadd.f32 %v1216_v9, %v352_v16  ;;  %v354_v29 = vmul.f32 %v1197_v5, %v284_v24  ;;  %v490_v33 = vld [vmem:[%s1212_s10 + $0x28] sm:$0xff]  ;;  %v423_v34 = vadd.f32 %v1214_v8, %v353_v22  ;;  %s895_s16 = sshll.u32 %s1276_s12, 4  ;;  %p1053_p13 = pneg %p1052_p12  ;;  %s896_s16 = int_to_ptr.vmem [resolvable:$true] %s895_s16 }
  0x1a   : > { %v421_v27 = vadd.f32 %v1214_v8, %v351_v13  ;;  %v558_v30 = vmul.f32 %v1202_v7, %v488_v25  ;;  %v489_v31 = vld [vmem:[%s1212_s10 + $0x20] sm:$0xff]  ;;  %v355_v35 = vmul.f32 %v1193_v3, %v285_v26  ;;  %v356_v37 = vmul.f32 %v1197_v5, %v286_v32  ;;  %v287_v38 = vld [vmem:[%s1207_s26 + $0x30] sm:$0xff]  ;;  %v288_v48 = vld [vmem:[%s1207_s26 + $0x38] sm:$0xff]  ;;  %p1057_p2 = por %p1056_p1, %p1055_p0 }
  0x1b   : > { %v559_v36 = vmul.f32 %v1195_v4, %v489_v31  ;;  %v491_v39 = vld [vmem:[%s1212_s10 + $0x30] sm:$0xff]  ;;  %v620_v41 = vadd.f32 %v556_v20, %v422_v28  ;;  %v424_v42 = vadd.f32 %v1216_v9, %v354_v29  ;;  %v560_v43 = vmul.f32 %v1202_v7, %v490_v33  ;;  %v492_v57 = vld [vmem:[%s1212_s10 + $0x38] sm:$0xff]  ;;  %v289_v58 = vld [vmem:[%s1207_s26 + $0x40] sm:$0xff] }
  0x1c   : > { %v619_v40 = vadd.f32 %v555_v14, %v421_v27  ;;  %v621_v44 = vadd.f32 %v557_v23, %v423_v34  ;;  %v425_v45 = vadd.f32 %v1214_v8, %v355_v35  ;;  %v426_v46 = vadd.f32 %v1216_v9, %v356_v37  ;;  %v493_v63 = vld [vmem:[%s1212_s10 + $0x40] sm:$0xff]  ;;  %v290_v10 = vld [vmem:[%s1207_s26 + $0x48] sm:$0xff]  ;;  %v291_v17 = vld [vmem:[%s1207_s26 + $0x50] sm:$0xff]  ;;  %p1058_p3 = pnand %p1057_p2, %p1053_p13 }
  0x1d   : > { %v357_v47 = vmul.f32 %v1193_v3, %v287_v38  ;;  %v690_v50 = vadd.f32 %v1231_v21, %v620_v41  ;;  %v622_v51 = vadd.f32 %v558_v30, %v424_v42  ;;  %v561_v52 = vmul.f32 %v1195_v4, %v491_v39  ;;  %v494_v11 = vld [vmem:[%s1212_s10 + $0x48] sm:$0xff]  ;;  %v495_v18 = vld [vmem:[%s1212_s10 + $0x50] sm:$0xff]  ;;  %v292_v19 = vld [vmem:[%s1207_s26 + $0x58] sm:$0xff] }
  0x1e   : > { %v689_v49 = vadd.f32 %v1223_v15, %v619_v40  ;;  %v691_v53 = vadd.f32 %v1223_v15, %v621_v44  ;;  %v623_v54 = vadd.f32 %v559_v36, %v425_v45  ;;  %v624_v55 = vadd.f32 %v560_v43, %v426_v46  ;;  %v496_v25 = vld [vmem:[%s1212_s10 + $0x58] sm:$0xff]  ;;  %v293_v30 = vld [vmem:[%s1207_s26 + $0x60] sm:$0xff]  ;;  %v294_v36 = vld [vmem:[%s1207_s26 + $0x68] sm:$0xff] }
  0x1f   : > { %v427_v56 = vadd.f32 %v1214_v8, %v357_v47  ;;  %v754_v60 = vmax.f32 %v690_v50, 0.0  ;;  %v692_v61 = vadd.f32 %v1231_v21, %v622_v51  ;;  %v358_v62 = vmul.f32 %v1197_v5, %v288_v48  ;;  %v497_v31 = vld [vmem:[%s1212_s10 + $0x60] sm:$0xff]  ;;  %v498_v41 = vld [vmem:[%s1212_s10 + $0x68] sm:$0xff]  ;;  %v295_v46 = vld [vmem:[%s1207_s26 + $0x70] sm:$0xff] }
  0x20   : > { %v753_v59 = vmax.f32 %v689_v49, 0.0  ;;  %v755_v0 = vmax.f32 %v691_v53, 0.0  ;;  %v693_v1 = vadd.f32 %v1223_v15, %v623_v54  ;;  %v694_v2 = vadd.f32 %v1231_v21, %v624_v55  ;;  %v499_v51 = vld [vmem:[%s1212_s10 + $0x70] sm:$0xff] }
  0x21   : > { %v625_v6 = vadd.f32 %v561_v52, %v427_v56  ;;  %v756_v12 = vmax.f32 %v692_v61, 0.0  ;;  %v428_v13 = vadd.f32 %v1216_v9, %v358_v62  ;;  %v562_v14 = vmul.f32 %v1202_v7, %v492_v57  ;;  %818 = vst [vmem:[%s1276_s12 + $0x8] sm:$0xff] %v754_v60  ;;  %v296_v56 = vld [vmem:[%s1207_s26 + $0x78] sm:$0xff] }
  0x22   : > { %817 = vst [vmem:[%s1276_s12] sm:$0xff] %v753_v59  ;;  %v359_v16 = vmul.f32 %v1193_v3, %v289_v58  ;;  %v757_v20 = vmax.f32 %v693_v1, 0.0  ;;  %v758_v22 = vmax.f32 %v694_v2, 0.0  ;;  %v563_v24 = vmul.f32 %v1195_v4, %v493_v63  ;;  %v500_v61 = vld [vmem:[%s1212_s10 + $0x78] sm:$0xff]  ;;  %v297_v2 = vld [vmem:[%s1207_s26 + $0x80] sm:$0xff] }
  0x23   : > { %v695_v23 = vadd.f32 %v1223_v15, %v625_v6  ;;  %819 = vst [vmem:[%s1276_s12 + $0x10] sm:$0xff] %v755_v0  ;;  %v626_v26 = vadd.f32 %v562_v14, %v428_v13  ;;  %v360_v28 = vmul.f32 %v1197_v5, %v290_v10  ;;  %v564_v29 = vmul.f32 %v1202_v7, %v494_v11  ;;  %v501_v13 = vld [vmem:[%s1212_s10 + $0x80] sm:$0xff]  ;;  %v298_v14 = vld [vmem:[%s1207_s26 + $0x88] sm:$0xff] }
  0x24   : > { %v429_v27 = vadd.f32 %v1214_v8, %v359_v16  ;;  %820 = vst [vmem:[%s1276_s12 + $0x18] sm:$0xff] %v756_v12  ;;  %v361_v33 = vmul.f32 %v1193_v3, %v291_v17  ;;  %v565_v34 = vmul.f32 %v1195_v4, %v495_v18  ;;  %v362_v35 = vmul.f32 %v1197_v5, %v292_v19  ;;  %v502_v16 = vld [vmem:[%s1212_s10 + $0x88] sm:$0xff] }
  0x25   : > { %v759_v32 = vmax.f32 %v695_v23, 0.0  ;;  %821 = vst [vmem:[%s1276_s12 + $0x20] sm:$0xff] %v757_v20  ;;  %v696_v37 = vadd.f32 %v1231_v21, %v626_v26  ;;  %v430_v39 = vadd.f32 %v1216_v9, %v360_v28  ;;  %v566_v40 = vmul.f32 %v1202_v7, %v496_v25  ;;  %v299_v26 = vld [vmem:[%s1207_s26 + $0x90] sm:$0xff]  ;;  %v300_v28 = vld [vmem:[%s1207_s26 + $0x98] sm:$0xff] }
  0x26   : > { %v627_v38 = vadd.f32 %v563_v24, %v429_v27  ;;  %822 = vst [vmem:[%s1276_s12 + $0x28] sm:$0xff] %v758_v22  ;;  %v431_v42 = vadd.f32 %v1214_v8, %v361_v33  ;;  %v432_v43 = vadd.f32 %v1216_v9, %v362_v35  ;;  %v363_v44 = vmul.f32 %v1193_v3, %v293_v30  ;;  %v503_v27 = vld [vmem:[%s1212_s10 + $0x90] sm:$0xff]  ;;  %v504_v33 = vld [vmem:[%s1212_s10 + $0x98] sm:$0xff] }
  0x27   : > { %v567_v45 = vmul.f32 %v1195_v4, %v497_v31  ;;  %823 = vst [vmem:[%s1276_s12 + $0x30] sm:$0xff] %v759_v32  ;;  %v760_v47 = vmax.f32 %v696_v37, 0.0  ;;  %v628_v49 = vadd.f32 %v564_v29, %v430_v39  ;;  %v364_v50 = vmul.f32 %v1197_v5, %v294_v36 }
  0x28   : > { %v697_v48 = vadd.f32 %v1223_v15, %v627_v38  ;;  %v629_v52 = vadd.f32 %v565_v34, %v431_v42  ;;  %v630_v53 = vadd.f32 %v566_v40, %v432_v43  ;;  %v433_v54 = vadd.f32 %v1214_v8, %v363_v44  ;;  %v301_v38 = vld [vmem:[%s1207_s26 + $0xa0] sm:$0xff]  ;;  %v302_v44 = vld [vmem:[%s1207_s26 + $0xa8] sm:$0xff] }
  0x29   : > { %v568_v55 = vmul.f32 %v1202_v7, %v498_v41  ;;  %824 = vst [vmem:[%s1276_s12 + $0x38] sm:$0xff] %v760_v47  ;;  %v698_v58 = vadd.f32 %v1231_v21, %v628_v49  ;;  %v434_v59 = vadd.f32 %v1216_v9, %v364_v50  ;;  %v365_v60 = vmul.f32 %v1193_v3, %v295_v46  ;;  %v505_v43 = vld [vmem:[%s1212_s10 + $0xa0] sm:$0xff] }
  0x2a   : > { %v761_v57 = vmax.f32 %v697_v48, 0.0  ;;  %v699_v62 = vadd.f32 %v1223_v15, %v629_v52  ;;  %v700_v63 = vadd.f32 %v1231_v21, %v630_v53  ;;  %v631_v0 = vadd.f32 %v567_v45, %v433_v54  ;;  %v506_v53 = vld [vmem:[%s1212_s10 + $0xa8] sm:$0xff]  ;;  %v303_v54 = vld [vmem:[%s1207_s26 + $0xb0] sm:$0xff] }
  0x2b   : > { %v569_v1 = vmul.f32 %v1195_v4, %v499_v51  ;;  %v762_v6 = vmax.f32 %v698_v58, 0.0  ;;  %v632_v10 = vadd.f32 %v568_v55, %v434_v59  ;;  %v435_v11 = vadd.f32 %v1214_v8, %v365_v60 }
  0x2c   : > { %825 = vst [vmem:[%s1276_s12 + $0x40] sm:$0xff] %v761_v57  ;;  %v366_v12 = vmul.f32 %v1197_v5, %v296_v56  ;;  %v763_v17 = vmax.f32 %v699_v62, 0.0  ;;  %v764_v18 = vmax.f32 %v700_v63, 0.0  ;;  %v701_v19 = vadd.f32 %v1223_v15, %v631_v0  ;;  %v507_v63 = vld [vmem:[%s1212_s10 + $0xb0] sm:$0xff]  ;;  %v304_v0 = vld [vmem:[%s1207_s26 + $0xb8] sm:$0xff] }
  0x2d   : > { %v570_v20 = vmul.f32 %v1202_v7, %v500_v61  ;;  %826 = vst [vmem:[%s1276_s12 + $0x48] sm:$0xff] %v762_v6  ;;  %v702_v22 = vadd.f32 %v1231_v21, %v632_v10  ;;  %v633_v23 = vadd.f32 %v569_v1, %v435_v11  ;;  %v367_v25 = vmul.f32 %v1193_v3, %v297_v2  ;;  %v508_v11 = vld [vmem:[%s1212_s10 + $0xb8] sm:$0xff] }
  0x2e   : > { %v436_v24 = vadd.f32 %v1216_v9, %v366_v12  ;;  %827 = vst [vmem:[%s1276_s12 + $0x50] sm:$0xff] %v763_v17  ;;  %v765_v29 = vmax.f32 %v701_v19, 0.0  ;;  %v571_v30 = vmul.f32 %v1195_v4, %v501_v13  ;;  %v368_v31 = vmul.f32 %v1197_v5, %v298_v14  ;;  %v305_v17 = vld [vmem:[%s1207_s26 + $0xc0] sm:$0xff] }
  0x2f   : > { %v572_v32 = vmul.f32 %v1202_v7, %v502_v16  ;;  %828 = vst [vmem:[%s1276_s12 + $0x58] sm:$0xff] %v764_v18  ;;  %v766_v34 = vmax.f32 %v702_v22, 0.0  ;;  %v703_v35 = vadd.f32 %v1223_v15, %v633_v23  ;;  %v437_v37 = vadd.f32 %v1214_v8, %v367_v25  ;;  %v509_v23 = vld [vmem:[%s1212_s10 + $0xc0] sm:$0xff]  ;;  %v510_v25 = vld [vmem:[%s1212_s10 + $0xc8] sm:$0xff] }
  0x30   : > { %v634_v36 = vadd.f32 %v570_v20, %v436_v24  ;;  %829 = vst [vmem:[%s1276_s12 + $0x60] sm:$0xff] %v765_v29  ;;  %v438_v39 = vadd.f32 %v1216_v9, %v368_v31  ;;  %v369_v40 = vmul.f32 %v1193_v3, %v299_v26  ;;  %v573_v41 = vmul.f32 %v1195_v4, %v503_v27  ;;  %v306_v24 = vld [vmem:[%s1207_s26 + $0xc8] sm:$0xff] }
  0x31   : > { %v370_v42 = vmul.f32 %v1197_v5, %v300_v28  ;;  %830 = vst [vmem:[%s1276_s12 + $0x68] sm:$0xff] %v766_v34  ;;  %v767_v45 = vmax.f32 %v703_v35, 0.0  ;;  %v635_v47 = vadd.f32 %v571_v30, %v437_v37  ;;  %v574_v48 = vmul.f32 %v1202_v7, %v504_v33  ;;  %v307_v34 = vld [vmem:[%s1207_s26 + $0xd0] sm:$0xff] }
  0x32   : > { %v704_v46 = vadd.f32 %v1231_v21, %v634_v36  ;;  %v636_v49 = vadd.f32 %v572_v32, %v438_v39  ;;  %v439_v50 = vadd.f32 %v1214_v8, %v369_v40  ;;  %v371_v52 = vmul.f32 %v1193_v3, %v301_v38  ;;  %v511_v35 = vld [vmem:[%s1212_s10 + $0xd0] sm:$0xff]  ;;  %v308_v36 = vld [vmem:[%s1207_s26 + $0xd8] sm:$0xff] }
  0x33   : > { %v440_v51 = vadd.f32 %v1216_v9, %v370_v42  ;;  %831 = vst [vmem:[%s1276_s12 + $0x70] sm:$0xff] %v767_v45  ;;  %v705_v56 = vadd.f32 %v1223_v15, %v635_v47  ;;  %v575_v57 = vmul.f32 %v1195_v4, %v505_v43  ;;  %v372_v58 = vmul.f32 %v1197_v5, %v302_v44 }
  0x34   : > { %v768_v55 = vmax.f32 %v704_v46, 0.0  ;;  %v706_v59 = vadd.f32 %v1231_v21, %v636_v49  ;;  %v637_v60 = vadd.f32 %v573_v41, %v439_v50  ;;  %v441_v62 = vadd.f32 %v1214_v8, %v371_v52  ;;  %v512_v41 = vld [vmem:[%s1212_s10 + $0xd8] sm:$0xff]  ;;  %v309_v46 = vld [vmem:[%s1207_s26 + $0xe0] sm:$0xff]  ;;  %v310_v52 = vld [vmem:[%s1207_s26 + $0xe8] sm:$0xff] }
  0x35   : > { %v638_v61 = vadd.f32 %v574_v48, %v440_v51  ;;  %v769_v1 = vmax.f32 %v705_v56, 0.0  ;;  %v442_v2 = vadd.f32 %v1216_v9, %v372_v58  ;;  %v576_v6 = vmul.f32 %v1202_v7, %v506_v53  ;;  %v513_v51 = vld [vmem:[%s1212_s10 + $0xe0] sm:$0xff] }
  0x36   : > { %832 = vst [vmem:[%s1276_s12 + $0x78] sm:$0xff] %v768_v55  ;;  %v373_v10 = vmul.f32 %v1193_v3, %v303_v54  ;;  %v770_v12 = vmax.f32 %v706_v59, 0.0  ;;  %v707_v13 = vadd.f32 %v1223_v15, %v637_v60  ;;  %v639_v16 = vadd.f32 %v575_v57, %v441_v62  ;;  %v311_v62 = vld [vmem:[%s1207_s26 + $0xf0] sm:$0xff] }
  0x37   : > { %v708_v14 = vadd.f32 %v1231_v21, %v638_v61  ;;  %833 = vst [vmem:[%s1276_s12 + $0x80] sm:$0xff] %v769_v1  ;;  %v640_v18 = vadd.f32 %v576_v6, %v442_v2  ;;  %v577_v20 = vmul.f32 %v1195_v4, %v507_v63  ;;  %v374_v22 = vmul.f32 %v1197_v5, %v304_v0  ;;  %v514_v61 = vld [vmem:[%s1212_s10 + $0xe8] sm:$0xff] }
  0x38   : > { %v443_v19 = vadd.f32 %v1214_v8, %v373_v10  ;;  %834 = vst [vmem:[%s1276_s12 + $0x88] sm:$0xff] %v770_v12  ;;  %v771_v26 = vmax.f32 %v707_v13, 0.0  ;;  %v709_v28 = vadd.f32 %v1223_v15, %v639_v16  ;;  %v578_v29 = vmul.f32 %v1202_v7, %v508_v11  ;;  %v515_v13 = vld [vmem:[%s1212_s10 + $0xf0] sm:$0xff] }
  0x39   : > { %v772_v27 = vmax.f32 %v708_v14, 0.0  ;;  %v710_v30 = vadd.f32 %v1231_v21, %v640_v18  ;;  %v444_v32 = vadd.f32 %v1216_v9, %v374_v22  ;;  %v375_v33 = vmul.f32 %v1193_v3, %v305_v17  ;;  %v312_v14 = vld [vmem:[%s1207_s26 + $0xf8] sm:$0xff] }
  0x3a   : > { %v641_v31 = vadd.f32 %v577_v20, %v443_v19  ;;  %835 = vst [vmem:[%s1276_s12 + $0x90] sm:$0xff] %v771_v26  ;;  %v773_v37 = vmax.f32 %v709_v28, 0.0  ;;  %v579_v38 = vmul.f32 %v1195_v4, %v509_v23  ;;  %v376_v39 = vmul.f32 %v1197_v5, %v306_v24  ;;  %v516_v20 = vld [vmem:[%s1212_s10 + $0xf8] sm:$0xff]  ;;  %v313_v26 = vld [vmem:[%s1207_s26 + $0x100] sm:$0xff] }
  0x3b   : > { %v580_v40 = vmul.f32 %v1202_v7, %v510_v25  ;;  %836 = vst [vmem:[%s1276_s12 + $0x98] sm:$0xff] %v772_v27  ;;  %v774_v42 = vmax.f32 %v710_v30, 0.0  ;;  %v642_v44 = vadd.f32 %v578_v29, %v444_v32  ;;  %v445_v45 = vadd.f32 %v1214_v8, %v375_v33  ;;  %v314_v32 = vld [vmem:[%s1207_s26 + $0x108] sm:$0xff] }
  0x3c   : > { %v711_v43 = vadd.f32 %v1223_v15, %v641_v31  ;;  %837 = vst [vmem:[%s1276_s12 + $0xa0] sm:$0xff] %v773_v37  ;;  %v446_v47 = vadd.f32 %v1216_v9, %v376_v39  ;;  %v377_v48 = vmul.f32 %v1193_v3, %v307_v34  ;;  %v581_v49 = vmul.f32 %v1195_v4, %v511_v35  ;;  %v517_v31 = vld [vmem:[%s1212_s10 + $0x100] sm:$0xff]  ;;  %v518_v33 = vld [vmem:[%s1212_s10 + $0x108] sm:$0xff] }
  0x3d   : > { %v378_v50 = vmul.f32 %v1197_v5, %v308_v36  ;;  %838 = vst [vmem:[%s1276_s12 + $0xa8] sm:$0xff] %v774_v42  ;;  %v712_v54 = vadd.f32 %v1231_v21, %v642_v44  ;;  %v643_v55 = vadd.f32 %v579_v38, %v445_v45  ;;  %v582_v56 = vmul.f32 %v1202_v7, %v512_v41  ;;  %v315_v42 = vld [vmem:[%s1207_s26 + $0x110] sm:$0xff]  ;;  %v316_v44 = vld [vmem:[%s1207_s26 + $0x118] sm:$0xff] }
  0x3e   : > { %v775_v53 = vmax.f32 %v711_v43, 0.0  ;;  %v644_v57 = vadd.f32 %v580_v40, %v446_v47  ;;  %v447_v58 = vadd.f32 %v1214_v8, %v377_v48  ;;  %v379_v60 = vmul.f32 %v1193_v3, %v309_v46  ;;  %v519_v43 = vld [vmem:[%s1212_s10 + $0x110] sm:$0xff] }
  0x3f   : > { %v448_v59 = vadd.f32 %v1216_v9, %v378_v50  ;;  %v776_v63 = vmax.f32 %v712_v54, 0.0  ;;  %v713_v0 = vadd.f32 %v1223_v15, %v643_v55  ;;  %v583_v1 = vmul.f32 %v1195_v4, %v513_v51  ;;  %v317_v54 = vld [vmem:[%s1207_s26 + $0x120] sm:$0xff] }
  0x40   : > { %839 = vst [vmem:[%s1276_s12 + $0xb0] sm:$0xff] %v775_v53  ;;  %v380_v2 = vmul.f32 %v1197_v5, %v310_v52  ;;  %v714_v6 = vadd.f32 %v1231_v21, %v644_v57  ;;  %v645_v10 = vadd.f32 %v581_v49, %v447_v58  ;;  %v449_v12 = vadd.f32 %v1214_v8, %v379_v60  ;;  %v520_v49 = vld [vmem:[%s1212_s10 + $0x118] sm:$0xff]  ;;  %v318_v60 = vld [vmem:[%s1207_s26 + $0x128] sm:$0xff] }
  0x41   : > { %v646_v11 = vadd.f32 %v582_v56, %v448_v59  ;;  %840 = vst [vmem:[%s1276_s12 + $0xb8] sm:$0xff] %v776_v63  ;;  %v777_v16 = vmax.f32 %v713_v0, 0.0  ;;  %v584_v18 = vmul.f32 %v1202_v7, %v514_v61  ;;  %v381_v19 = vmul.f32 %v1193_v3, %v311_v62  ;;  %v521_v59 = vld [vmem:[%s1212_s10 + $0x120] sm:$0xff] }
  0x42   : > { %v450_v17 = vadd.f32 %v1216_v9, %v380_v2  ;;  %v778_v22 = vmax.f32 %v714_v6, 0.0  ;;  %v715_v23 = vadd.f32 %v1223_v15, %v645_v10  ;;  %v647_v25 = vadd.f32 %v583_v1, %v449_v12  ;;  %v319_v12 = vld [vmem:[%s1207_s26 + $0x130] sm:$0xff] }
  0x43   : > { %v716_v24 = vadd.f32 %v1231_v21, %v646_v11  ;;  %841 = vst [vmem:[%s1276_s12 + $0xc0] sm:$0xff] %v777_v16  ;;  %v451_v28 = vadd.f32 %v1214_v8, %v381_v19  ;;  %v585_v29 = vmul.f32 %v1195_v4, %v515_v13  ;;  %v382_v30 = vmul.f32 %v1197_v5, %v312_v14  ;;  %v522_v11 = vld [vmem:[%s1212_s10 + $0x128] sm:$0xff] }
  0x44   : > { %v648_v27 = vadd.f32 %v584_v18, %v450_v17  ;;  %842 = vst [vmem:[%s1276_s12 + $0xc8] sm:$0xff] %v778_v22  ;;  %v779_v34 = vmax.f32 %v715_v23, 0.0  ;;  %v717_v36 = vadd.f32 %v1223_v15, %v647_v25  ;;  %v586_v37 = vmul.f32 %v1202_v7, %v516_v20  ;;  %v523_v23 = vld [vmem:[%s1212_s10 + $0x130] sm:$0xff] }
  0x45   : > { %v780_v35 = vmax.f32 %v716_v24, 0.0  ;;  %v649_v39 = vadd.f32 %v585_v29, %v451_v28  ;;  %v452_v40 = vadd.f32 %v1216_v9, %v382_v30  ;;  %v383_v41 = vmul.f32 %v1193_v3, %v313_v26  ;;  %v320_v24 = vld [vmem:[%s1207_s26 + $0x138] sm:$0xff] }
  0x46   : > { %v718_v38 = vadd.f32 %v1231_v21, %v648_v27  ;;  %843 = vst [vmem:[%s1276_s12 + $0xd0] sm:$0xff] %v779_v34  ;;  %v781_v45 = vmax.f32 %v717_v36, 0.0  ;;  %v587_v46 = vmul.f32 %v1195_v4, %v517_v31  ;;  %v384_v47 = vmul.f32 %v1197_v5, %v314_v32  ;;  %v524_v29 = vld [vmem:[%s1212_s10 + $0x138] sm:$0xff]  ;;  %v321_v34 = vld [vmem:[%s1207_s26 + $0x140] sm:$0xff] }
  0x47   : > { %v588_v48 = vmul.f32 %v1202_v7, %v518_v33  ;;  %844 = vst [vmem:[%s1276_s12 + $0xd8] sm:$0xff] %v780_v35  ;;  %v719_v51 = vadd.f32 %v1223_v15, %v649_v39  ;;  %v650_v52 = vadd.f32 %v586_v37, %v452_v40  ;;  %v453_v53 = vadd.f32 %v1214_v8, %v383_v41  ;;  %v525_v39 = vld [vmem:[%s1212_s10 + $0x140] sm:$0xff]  ;;  %v322_v40 = vld [vmem:[%s1207_s26 + $0x148] sm:$0xff] }
  0x48   : > { %v782_v50 = vmax.f32 %v718_v38, 0.0  ;;  %845 = vst [vmem:[%s1276_s12 + $0xe0] sm:$0xff] %v781_v45  ;;  %v454_v55 = vadd.f32 %v1216_v9, %v384_v47  ;;  %v385_v56 = vmul.f32 %v1193_v3, %v315_v42  ;;  %v589_v57 = vmul.f32 %v1195_v4, %v519_v43  ;;  %v526_v41 = vld [vmem:[%s1212_s10 + $0x148] sm:$0xff] }
  0x49   : > { %v386_v58 = vmul.f32 %v1197_v5, %v316_v44  ;;  %v783_v61 = vmax.f32 %v719_v51, 0.0  ;;  %v720_v62 = vadd.f32 %v1231_v21, %v650_v52  ;;  %v651_v63 = vadd.f32 %v587_v46, %v453_v53  ;;  %v527_v51 = vld [vmem:[%s1212_s10 + $0x150] sm:$0xff]  ;;  %v324_v52 = vld [vmem:[%s1207_s26 + $0x158] sm:$0xff] }
  0x4a   : > { %846 = vst [vmem:[%s1276_s12 + $0xe8] sm:$0xff] %v782_v50  ;;  %v590_v0 = vmul.f32 %v1202_v7, %v520_v49  ;;  %v652_v1 = vadd.f32 %v588_v48, %v454_v55  ;;  %v455_v2 = vadd.f32 %v1214_v8, %v385_v56  ;;  %v387_v10 = vmul.f32 %v1193_v3, %v317_v54  ;;  %v323_v50 = vld [vmem:[%s1207_s26 + $0x150] sm:$0xff] }
  0x4b   : > { %v456_v6 = vadd.f32 %v1216_v9, %v386_v58  ;;  %847 = vst [vmem:[%s1276_s12 + $0xf0] sm:$0xff] %v783_v61  ;;  %v784_v13 = vmax.f32 %v720_v62, 0.0  ;;  %v721_v14 = vadd.f32 %v1223_v15, %v651_v63  ;;  %v591_v16 = vmul.f32 %v1195_v4, %v521_v59  ;;  %v325_v62 = vld [vmem:[%s1207_s26 + $0x160] sm:$0xff] }
  0x4c   : > { %v388_v17 = vmul.f32 %v1197_v5, %v318_v60  ;;  %v722_v18 = vadd.f32 %v1231_v21, %v652_v1  ;;  %v653_v19 = vadd.f32 %v589_v57, %v455_v2  ;;  %v457_v22 = vadd.f32 %v1214_v8, %v387_v10  ;;  %v528_v57 = vld [vmem:[%s1212_s10 + $0x158] sm:$0xff]  ;;  %v326_v10 = vld [vmem:[%s1207_s26 + $0x168] sm:$0xff] }
  0x4d   : > { %v654_v20 = vadd.f32 %v590_v0, %v456_v6  ;;  %848 = vst [vmem:[%s1276_s12 + $0xf8] sm:$0xff] %v784_v13  ;;  %v785_v25 = vmax.f32 %v721_v14, 0.0  ;;  %v592_v27 = vmul.f32 %v1202_v7, %v522_v11  ;;  %v389_v28 = vmul.f32 %v1193_v3, %v319_v12  ;;  %v529_v6 = vld [vmem:[%s1212_s10 + $0x160] sm:$0xff] }
  0x4e   : > { %v458_v26 = vadd.f32 %v1216_v9, %v388_v17  ;;  %v786_v30 = vmax.f32 %v722_v18, 0.0  ;;  %v723_v31 = vadd.f32 %v1223_v15, %v653_v19  ;;  %v655_v33 = vadd.f32 %v591_v16, %v457_v22  ;;  %v327_v22 = vld [vmem:[%s1207_s26 + $0x170] sm:$0xff] }
  0x4f   : > { %v724_v32 = vadd.f32 %v1231_v21, %v654_v20  ;;  %849 = vst [vmem:[%s1276_s12 + $0x100] sm:$0xff] %v785_v25  ;;  %v459_v36 = vadd.f32 %v1214_v8, %v389_v28  ;;  %v593_v37 = vmul.f32 %v1195_v4, %v523_v23  ;;  %v390_v38 = vmul.f32 %v1197_v5, %v320_v24  ;;  %v530_v20 = vld [vmem:[%s1212_s10 + $0x168] sm:$0xff] }
  0x50   : > { %v656_v35 = vadd.f32 %v592_v27, %v458_v26  ;;  %850 = vst [vmem:[%s1276_s12 + $0x108] sm:$0xff] %v786_v30  ;;  %v787_v42 = vmax.f32 %v723_v31, 0.0  ;;  %v725_v44 = vadd.f32 %v1223_v15, %v655_v33  ;;  %v594_v45 = vmul.f32 %v1202_v7, %v524_v29  ;;  %v531_v31 = vld [vmem:[%s1212_s10 + $0x170] sm:$0xff] }
  0x51   : > { %v788_v43 = vmax.f32 %v724_v32, 0.0  ;;  %v657_v47 = vadd.f32 %v593_v37, %v459_v36  ;;  %v460_v48 = vadd.f32 %v1216_v9, %v390_v38  ;;  %v391_v49 = vmul.f32 %v1193_v3, %v321_v34  ;;  %v328_v32 = vld [vmem:[%s1207_s26 + $0x178] sm:$0xff] }
  0x52   : > { %v726_v46 = vadd.f32 %v1231_v21, %v656_v35  ;;  %851 = vst [vmem:[%s1276_s12 + $0x110] sm:$0xff] %v787_v42  ;;  %v789_v53 = vmax.f32 %v725_v44, 0.0  ;;  %v595_v54 = vmul.f32 %v1195_v4, %v525_v39  ;;  %v392_v55 = vmul.f32 %v1197_v5, %v322_v40  ;;  %v532_v37 = vld [vmem:[%s1212_s10 + $0x178] sm:$0xff]  ;;  %v329_v42 = vld [vmem:[%s1207_s26 + $0x180] sm:$0xff] }
  0x53   : > { %v596_v56 = vmul.f32 %v1202_v7, %v526_v41  ;;  %852 = vst [vmem:[%s1276_s12 + $0x118] sm:$0xff] %v788_v43  ;;  %v727_v59 = vadd.f32 %v1223_v15, %v657_v47  ;;  %v658_v60 = vadd.f32 %v594_v45, %v460_v48  ;;  %v461_v61 = vadd.f32 %v1214_v8, %v391_v49  ;;  %v533_v47 = vld [vmem:[%s1212_s10 + $0x180] sm:$0xff]  ;;  %v330_v48 = vld [vmem:[%s1207_s26 + $0x188] sm:$0xff] }
  0x54   : > { %v790_v58 = vmax.f32 %v726_v46, 0.0  ;;  %853 = vst [vmem:[%s1276_s12 + $0x120] sm:$0xff] %v789_v53  ;;  %v462_v63 = vadd.f32 %v1216_v9, %v392_v55  ;;  %v393_v0 = vmul.f32 %v1193_v3, %v323_v50  ;;  %v597_v1 = vmul.f32 %v1195_v4, %v527_v51  ;;  %v534_v49 = vld [vmem:[%s1212_s10 + $0x188] sm:$0xff] }
  0x55   : > { %v394_v2 = vmul.f32 %v1197_v5, %v324_v52  ;;  %v791_v11 = vmax.f32 %v727_v59, 0.0  ;;  %v728_v12 = vadd.f32 %v1231_v21, %v658_v60  ;;  %v659_v13 = vadd.f32 %v595_v54, %v461_v61  ;;  %v535_v59 = vld [vmem:[%s1212_s10 + $0x190] sm:$0xff]  ;;  %v332_v60 = vld [vmem:[%s1207_s26 + $0x198] sm:$0xff] }
  0x56   : > { %854 = vst [vmem:[%s1276_s12 + $0x128] sm:$0xff] %v790_v58  ;;  %v598_v14 = vmul.f32 %v1202_v7, %v528_v57  ;;  %v660_v16 = vadd.f32 %v596_v56, %v462_v63  ;;  %v463_v17 = vadd.f32 %v1214_v8, %v393_v0  ;;  %v395_v19 = vmul.f32 %v1193_v3, %v325_v62  ;;  %v331_v58 = vld [vmem:[%s1207_s26 + $0x190] sm:$0xff] }
  0x57   : > { %v464_v18 = vadd.f32 %v1216_v9, %v394_v2  ;;  %855 = vst [vmem:[%s1276_s12 + $0x130] sm:$0xff] %v791_v11  ;;  %v792_v23 = vmax.f32 %v728_v12, 0.0  ;;  %v729_v24 = vadd.f32 %v1223_v15, %v659_v13  ;;  %v599_v25 = vmul.f32 %v1195_v4, %v529_v6  ;;  %v333_v12 = vld [vmem:[%s1207_s26 + $0x1a0] sm:$0xff] }
  0x58   : > { %v396_v26 = vmul.f32 %v1197_v5, %v326_v10  ;;  %v730_v27 = vadd.f32 %v1231_v21, %v660_v16  ;;  %v661_v28 = vadd.f32 %v597_v1, %v463_v17  ;;  %v465_v30 = vadd.f32 %v1214_v8, %v395_v19  ;;  %v536_v1 = vld [vmem:[%s1212_s10 + $0x198] sm:$0xff]  ;;  %v334_v19 = vld [vmem:[%s1207_s26 + $0x1a8] sm:$0xff] }
  0x59   : > { %v662_v29 = vadd.f32 %v598_v14, %v464_v18  ;;  %856 = vst [vmem:[%s1276_s12 + $0x138] sm:$0xff] %v792_v23  ;;  %v793_v33 = vmax.f32 %v729_v24, 0.0  ;;  %v600_v35 = vmul.f32 %v1202_v7, %v530_v20  ;;  %v397_v36 = vmul.f32 %v1193_v3, %v327_v22  ;;  %v537_v18 = vld [vmem:[%s1212_s10 + $0x1a0] sm:$0xff] }
  0x5a   : > { %v466_v34 = vadd.f32 %v1216_v9, %v396_v26  ;;  %v794_v38 = vmax.f32 %v730_v27, 0.0  ;;  %v731_v39 = vadd.f32 %v1223_v15, %v661_v28  ;;  %v663_v41 = vadd.f32 %v599_v25, %v465_v30  ;;  %v335_v30 = vld [vmem:[%s1207_s26 + $0x1b0] sm:$0xff] }
  0x5b   : > { %v732_v40 = vadd.f32 %v1231_v21, %v662_v29  ;;  %857 = vst [vmem:[%s1276_s12 + $0x140] sm:$0xff] %v793_v33  ;;  %v467_v44 = vadd.f32 %v1214_v8, %v397_v36  ;;  %v601_v45 = vmul.f32 %v1195_v4, %v531_v31  ;;  %v398_v46 = vmul.f32 %v1197_v5, %v328_v32  ;;  %v538_v29 = vld [vmem:[%s1212_s10 + $0x1a8] sm:$0xff] }
  0x5c   : > { %v664_v43 = vadd.f32 %v600_v35, %v466_v34  ;;  %858 = vst [vmem:[%s1276_s12 + $0x148] sm:$0xff] %v794_v38  ;;  %v795_v50 = vmax.f32 %v731_v39, 0.0  ;;  %v733_v52 = vadd.f32 %v1223_v15, %v663_v41  ;;  %v602_v53 = vmul.f32 %v1202_v7, %v532_v37  ;;  %v539_v39 = vld [vmem:[%s1212_s10 + $0x1b0] sm:$0xff] }
  0x5d   : > { %v796_v51 = vmax.f32 %v732_v40, 0.0  ;;  %v665_v55 = vadd.f32 %v601_v45, %v467_v44  ;;  %v468_v56 = vadd.f32 %v1216_v9, %v398_v46  ;;  %v399_v57 = vmul.f32 %v1193_v3, %v329_v42  ;;  %v336_v40 = vld [vmem:[%s1207_s26 + $0x1b8] sm:$0xff] }
  0x5e   : > { %v734_v54 = vadd.f32 %v1231_v21, %v664_v43  ;;  %859 = vst [vmem:[%s1276_s12 + $0x150] sm:$0xff] %v795_v50  ;;  %v797_v61 = vmax.f32 %v733_v52, 0.0  ;;  %v603_v62 = vmul.f32 %v1195_v4, %v533_v47  ;;  %v400_v63 = vmul.f32 %v1197_v5, %v330_v48  ;;  %v540_v45 = vld [vmem:[%s1212_s10 + $0x1b8] sm:$0xff]  ;;  %v337_v50 = vld [vmem:[%s1207_s26 + $0x1c0] sm:$0xff] }
  0x5f   : > { %v604_v0 = vmul.f32 %v1202_v7, %v534_v49  ;;  %860 = vst [vmem:[%s1276_s12 + $0x158] sm:$0xff] %v796_v51  ;;  %v735_v6 = vadd.f32 %v1223_v15, %v665_v55  ;;  %v666_v10 = vadd.f32 %v602_v53, %v468_v56  ;;  %v469_v11 = vadd.f32 %v1214_v8, %v399_v57  ;;  %v541_v55 = vld [vmem:[%s1212_s10 + $0x1c0] sm:$0xff]  ;;  %v338_v56 = vld [vmem:[%s1207_s26 + $0x1c8] sm:$0xff] }
  0x60   : > { %v798_v2 = vmax.f32 %v734_v54, 0.0  ;;  %861 = vst [vmem:[%s1276_s12 + $0x160] sm:$0xff] %v797_v61  ;;  %v470_v13 = vadd.f32 %v1216_v9, %v400_v63  ;;  %v401_v14 = vmul.f32 %v1193_v3, %v331_v58  ;;  %v605_v16 = vmul.f32 %v1195_v4, %v535_v59  ;;  %v542_v57 = vld [vmem:[%s1212_s10 + $0x1c8] sm:$0xff] }
  0x61   : > { %v402_v17 = vmul.f32 %v1197_v5, %v332_v60  ;;  %v799_v20 = vmax.f32 %v735_v6, 0.0  ;;  %v736_v22 = vadd.f32 %v1231_v21, %v666_v10  ;;  %v667_v23 = vadd.f32 %v603_v62, %v469_v11  ;;  %v543_v6 = vld [vmem:[%s1212_s10 + $0x1d0] sm:$0xff]  ;;  %v340_v10 = vld [vmem:[%s1207_s26 + $0x1d8] sm:$0xff] }
  0x62   : > { %862 = vst [vmem:[%s1276_s12 + $0x168] sm:$0xff] %v798_v2  ;;  %v606_v24 = vmul.f32 %v1202_v7, %v536_v1  ;;  %v668_v25 = vadd.f32 %v604_v0, %v470_v13  ;;  %v471_v26 = vadd.f32 %v1214_v8, %v401_v14  ;;  %v403_v28 = vmul.f32 %v1193_v3, %v333_v12  ;;  %v339_v2 = vld [vmem:[%s1207_s26 + $0x1d0] sm:$0xff] }
  0x63   : > { %v472_v27 = vadd.f32 %v1216_v9, %v402_v17  ;;  %863 = vst [vmem:[%s1276_s12 + $0x170] sm:$0xff] %v799_v20  ;;  %v800_v31 = vmax.f32 %v736_v22, 0.0  ;;  %v737_v32 = vadd.f32 %v1223_v15, %v667_v23  ;;  %v607_v33 = vmul.f32 %v1195_v4, %v537_v18  ;;  %v341_v22 = vld [vmem:[%s1207_s26 + $0x1e0] sm:$0xff] }
  0x64   : > { %v404_v34 = vmul.f32 %v1197_v5, %v334_v19  ;;  %v738_v35 = vadd.f32 %v1231_v21, %v668_v25  ;;  %v669_v36 = vadd.f32 %v605_v16, %v471_v26  ;;  %v473_v38 = vadd.f32 %v1214_v8, %v403_v28  ;;  %v544_v16 = vld [vmem:[%s1212_s10 + $0x1d8] sm:$0xff]  ;;  %v342_v28 = vld [vmem:[%s1207_s26 + $0x1e8] sm:$0xff] }
  0x65   : > { %v670_v37 = vadd.f32 %v606_v24, %v472_v27  ;;  %864 = vst [vmem:[%s1276_s12 + $0x178] sm:$0xff] %v800_v31  ;;  %v801_v41 = vmax.f32 %v737_v32, 0.0  ;;  %v608_v43 = vmul.f32 %v1202_v7, %v538_v29  ;;  %v405_v44 = vmul.f32 %v1193_v3, %v335_v30  ;;  %v545_v27 = vld [vmem:[%s1212_s10 + $0x1e0] sm:$0xff] }
  0x66   : > { %v474_v42 = vadd.f32 %v1216_v9, %v404_v34  ;;  %v802_v46 = vmax.f32 %v738_v35, 0.0  ;;  %v739_v47 = vadd.f32 %v1223_v15, %v669_v36  ;;  %v671_v49 = vadd.f32 %v607_v33, %v473_v38  ;;  %v343_v38 = vld [vmem:[%s1207_s26 + $0x1f0] sm:$0xff] }
  0x67   : > { %v740_v48 = vadd.f32 %v1231_v21, %v670_v37  ;;  %865 = vst [vmem:[%s1276_s12 + $0x180] sm:$0xff] %v801_v41  ;;  %v475_v52 = vadd.f32 %v1214_v8, %v405_v44  ;;  %v609_v53 = vmul.f32 %v1195_v4, %v539_v39  ;;  %v406_v54 = vmul.f32 %v1197_v5, %v336_v40  ;;  %v546_v37 = vld [vmem:[%s1212_s10 + $0x1e8] sm:$0xff] }
  0x68   : > { %v672_v51 = vadd.f32 %v608_v43, %v474_v42  ;;  %866 = vst [vmem:[%s1276_s12 + $0x188] sm:$0xff] %v802_v46  ;;  %v803_v58 = vmax.f32 %v739_v47, 0.0  ;;  %v741_v60 = vadd.f32 %v1223_v15, %v671_v49  ;;  %v610_v61 = vmul.f32 %v1202_v7, %v540_v45  ;;  %v547_v47 = vld [vmem:[%s1212_s10 + $0x1f0] sm:$0xff] }
  0x69   : > { %v804_v59 = vmax.f32 %v740_v48, 0.0  ;;  %v673_v63 = vadd.f32 %v609_v53, %v475_v52  ;;  %v476_v0 = vadd.f32 %v1216_v9, %v406_v54  ;;  %v407_v1 = vmul.f32 %v1193_v3, %v337_v50  ;;  %v344_v48 = vld [vmem:[%s1207_s26 + $0x1f8] sm:$0xff] }
  0x6a   : > { %v742_v62 = vadd.f32 %v1231_v21, %v672_v51  ;;  %867 = vst [vmem:[%s1276_s12 + $0x190] sm:$0xff] %v803_v58  ;;  %v805_v11 = vmax.f32 %v741_v60, 0.0  ;;  %v611_v12 = vmul.f32 %v1195_v4, %v541_v55  ;;  %v408_v13 = vmul.f32 %v1197_v5, %v338_v56  ;;  %v548_v53 = vld [vmem:[%s1212_s10 + $0x1f8] sm:$0xff] }
  0x6b   : > { %v612_v14 = vmul.f32 %v1202_v7, %v542_v57  ;;  %868 = vst [vmem:[%s1276_s12 + $0x198] sm:$0xff] %v804_v59  ;;  %v743_v18 = vadd.f32 %v1223_v15, %v673_v63  ;;  %v674_v19 = vadd.f32 %v610_v61, %v476_v0  ;;  %v477_v20 = vadd.f32 %v1214_v8, %v407_v1 }
  0x6c   : > { %v806_v17 = vmax.f32 %v742_v62, 0.0  ;;  %869 = vst [vmem:[%s1276_s12 + $0x1a0] sm:$0xff] %v805_v11  ;;  %v478_v23 = vadd.f32 %v1216_v9, %v408_v13  ;;  %v409_v24 = vmul.f32 %v1193_v3, %v339_v2  ;;  %v613_v25 = vmul.f32 %v1195_v4, %v543_v6 }
  0x6d   : > { %v410_v26 = vmul.f32 %v1197_v5, %v340_v10  ;;  %v807_v29 = vmax.f32 %v743_v18, 0.0  ;;  %v744_v30 = vadd.f32 %v1231_v21, %v674_v19  ;;  %v675_v31 = vadd.f32 %v611_v12, %v477_v20 }
  0x6e   : > { %870 = vst [vmem:[%s1276_s12 + $0x1a8] sm:$0xff] %v806_v17  ;;  %v614_v32 = vmul.f32 %v1202_v7, %v544_v16  ;;  %v676_v33 = vadd.f32 %v612_v14, %v478_v23  ;;  %v479_v34 = vadd.f32 %v1214_v8, %v409_v24  ;;  %v411_v36 = vmul.f32 %v1193_v3, %v341_v22 }
  0x6f   : > { %v480_v35 = vadd.f32 %v1216_v9, %v410_v26  ;;  %871 = vst [vmem:[%s1276_s12 + $0x1b0] sm:$0xff] %v807_v29  ;;  %v808_v39 = vmax.f32 %v744_v30, 0.0  ;;  %v745_v40 = vadd.f32 %v1223_v15, %v675_v31  ;;  %v615_v41 = vmul.f32 %v1195_v4, %v545_v27 }
  0x70   : > { %v412_v42 = vmul.f32 %v1197_v5, %v342_v28  ;;  %v746_v43 = vadd.f32 %v1231_v21, %v676_v33  ;;  %v677_v44 = vadd.f32 %v613_v25, %v479_v34  ;;  %v481_v46 = vadd.f32 %v1214_v8, %v411_v36 }
  0x71   : > { %v678_v45 = vadd.f32 %v614_v32, %v480_v35  ;;  %872 = vst [vmem:[%s1276_s12 + $0x1b8] sm:$0xff] %v808_v39  ;;  %v809_v49 = vmax.f32 %v745_v40, 0.0  ;;  %v616_v51 = vmul.f32 %v1202_v7, %v546_v37  ;;  %v413_v52 = vmul.f32 %v1193_v3, %v343_v38 }
  0x72   : > { %v482_v50 = vadd.f32 %v1216_v9, %v412_v42  ;;  %v810_v54 = vmax.f32 %v746_v43, 0.0  ;;  %v747_v55 = vadd.f32 %v1223_v15, %v677_v44  ;;  %v679_v57 = vadd.f32 %v615_v41, %v481_v46 }
  0x73   : > { %v748_v56 = vadd.f32 %v1231_v21, %v678_v45  ;;  %873 = vst [vmem:[%s1276_s12 + $0x1c0] sm:$0xff] %v809_v49  ;;  %v483_v59 = vadd.f32 %v1214_v8, %v413_v52  ;;  %v617_v60 = vmul.f32 %v1195_v4, %v547_v47  ;;  %v414_v61 = vmul.f32 %v1197_v5, %v344_v48 }
  0x74   : > { %v680_v58 = vadd.f32 %v616_v51, %v482_v50  ;;  %874 = vst [vmem:[%s1276_s12 + $0x1c8] sm:$0xff] %v810_v54  ;;  %v811_v3 = vmax.f32 %v747_v55, 0.0  ;;  %v749_v63 = vadd.f32 %v1223_v15, %v679_v57  ;;  %v618_v0 = vmul.f32 %v1202_v7, %v548_v53 }
  0x75   : > { %v812_v62 = vmax.f32 %v748_v56, 0.0  ;;  %v681_v1 = vadd.f32 %v617_v60, %v483_v59  ;;  %v484_v4 = vadd.f32 %v1216_v9, %v414_v61 }
  0x76   : > { %v750_v8 = vadd.f32 %v1231_v21, %v680_v58  ;;  %875 = vst [vmem:[%s1276_s12 + $0x1d0] sm:$0xff] %v811_v3  ;;  %v813_v5 = vmax.f32 %v749_v63, 0.0 }
  0x77   : > { %876 = vst [vmem:[%s1276_s12 + $0x1d8] sm:$0xff] %v812_v62  ;;  %v751_v6 = vadd.f32 %v1223_v15, %v681_v1  ;;  %v682_v10 = vadd.f32 %v618_v0, %v484_v4 }
  0x78   : > { %v814_v2 = vmax.f32 %v750_v8, 0.0  ;;  %877 = vst [vmem:[%s1276_s12 + $0x1e0] sm:$0xff] %v813_v5 }
  0x79   : > { %v815_v7 = vmax.f32 %v751_v6, 0.0  ;;  %v752_v11 = vadd.f32 %v1231_v21, %v682_v10 }
  0x7a   : > { %878 = vst [vmem:[%s1276_s12 + $0x1e8] sm:$0xff] %v814_v2 }
  0x7b   : > { %879 = vst [vmem:[%s1276_s12 + $0x1f0] sm:$0xff] %v815_v7  ;;  %v816_v9 = vmax.f32 %v752_v11, 0.0 }
  0x7d   : > { %880 = vst [vmem:[%s1276_s12 + $0x1f8] sm:$0xff] %v816_v9 }
  0x7e   : > { %1061 = shalt.err (!%p1058_p3)
}
  0x7f   : > { %s1098_s9 = smov 256   ;;  %s1099_s12 = smov 16  }
  0x80   : > { %993 = dma.vmem_to_hbm [thread:$0]  (%p1173_p5), %s896_s16, 8192, %s898_s17, %s882_s18, %s1098_s9, %s1098_s9, %s1099_s12  }
  0x81 PF: > { %p999_p4 = scmp.ge.s32.totalorder %s1096_s24, 2  ;;  %s912_s13 = sand.u32 1, %s1084_s21  }
  0x82   : > { %s913_s25 = scalar_lea.sflag [#allocation3], %s912_s13 }
  0x83   : > { %p996_p7 = pnand %p999_p4, %p1177_p6 }
  0x85   : > { %p997_p8 = pneg %p996_p7 }
  0x87   : > { %1079 = dma.done.wait (%p997_p8), %s913_s25, 8192  }
  0x88   : > { %1081 = vsyncadd (%p997_p8), %s913_s25, 4294959104  ;;  %p16_p9 = scmp.ge.s32.totalorder %s1160_s27, 4   ;;  %s1721_s21 = smov %s1088_s22 }
  0x89   : > { %s1722_s22 = smov %s1092_s23  ;;  %s1723_s23 = smov %s1171_s30 }
  0x8a   : > { %s1724_s24 = smov %s1160_s27  ;;  %18 = sbr.rel (!%p16_p9) target bundleno = 3 (0x3), region = 82 }
  0x8f   :  { %919 = vsyncpa [#allocation3], 1 }
  0x90   :  { %921 = vsyncpa [#allocation3 + $0x1], 1 }

// kernel: resnext_block_forward.6
= control target key start
LH: loop header
LB: loop body
LE: loop exit
PB: predicated region body
PF: predicated region fallthrough
CT: control target
= control target key end

     0   :  { %s3993_s0 = inlined_call_operand.vmem [shape: f32[512,256], index: 0, kind: input, shape index: {}]   ;;  %s3994_s1 = inlined_call_operand.vmem [shape: f32[1,256], index: 1, kind: input, shape index: {}]   ;;  %s3995_s2 = inlined_call_operand.vmem [shape: f32[1,256], index: 2, kind: input, shape index: {}]   ;;  %s3996_s3 = inlined_call_operand.hbm [shape: f32[256,256], index: 3, kind: input, shape index: {}]   ;;  %s3997_s4 = inlined_call_operand.hbm [shape: f32[512,128], index: 4, kind: input, shape index: {}]   ;;  %s3998_s5 = inlined_call_operand.hbm [shape: f32[128,256], index: 5, kind: input, shape index: {}]   ;;  %s3999_s6 = inlined_call_operand.vmem [shape: f32[512,256], index: 6, kind: output, shape index: {0}]   ;;  %s4000_s7 = inlined_call_operand.vmem [shape: f32[512,256], index: 7, kind: output, shape index: {1}]   ;;  %s4001_s8 = inlined_call_operand.vmem [shape: f32[1,256], index: 8, kind: output, shape index: {2}]   ;;  %s4002_s9 = inlined_call_operand.vmem [shape: f32[1,256], index: 9, kind: output, shape index: {3}]   ;;  %s4003_s10 = inlined_call_operand.vmem [shape: f32[1,256], index: 10, kind: output, shape index: {4}]   ;;  %s4004_s11 = inlined_call_operand.vmem [shape: f32[1,256], index: 11, kind: output, shape index: {5}]  }
   0x1   :  { %4084 = sst [smem:[#allocation26_spill]] %s3996_s3 }
   0x2   :  { %4085 = sst [smem:[#allocation27_spill]] %s3998_s5 }
   0x3   :  { %17 = vsyncpa [#allocation3], 0 }
   0x4   :  { %18 = vsyncpa [#allocation5], 0 }
   0x5   :  { %20 = vsyncpa [#allocation5 + $0x1], 0  ;;  %s2639_s17 = smov 0   ;;  %s2641_s18 = smov 0  }
   0x6   :  { %s2643_s19 = smov 0   ;;  %s2645_s20 = smov 0  }
   0x7 LB: > { %s2658_s21 = sadd.s32 4294967295, %s2570_s20   ;;  %p135_p0 = scmp.ne.s32.totalorder %s2562_s18, %s2558_s17  ;;  %s2570_s20 = sphi %s2645_s20, %s4193_s20   ;;  %s2566_s19 = sphi %s2643_s19, %s4192_s19   ;;  %s2562_s18 = sphi %s2641_s18, %s4191_s18   ;;  %s2558_s17 = sphi %s2639_s17, %s4190_s17  }
   0x8   : > { %p136_p1 = scmp.eq.s32.totalorder %s2658_s21, 0  ;;  %p2314_p2 = scmp.ge.s32.totalorder %s2570_s20, 1 }
   0x9   : > { %p303_p3 = scmp.lt.s32.totalorder %s2570_s20, 3  ;;  %p2315_p4 = scmp.ne.s32.totalorder %s2658_s21, 0 }
   0xa   : > { %p2667_p5 = por %p136_p1, %p135_p0  ;;  %s4088_s5 = sld [smem:[#allocation27_spill]] }
   0xb   : > { %p2671_p6 = pnand %p2314_p2, %p303_p3  ;;  %s2572_s27 = smov [#allocation6]  }
   0xc   : > { %s336_s28 = sshll.u32 %s2572_s27, 4  ;;  %s4089_s3 = sld [smem:[#allocation26_spill]]  ;;  %s337_s28 = int_to_ptr.vmem [resolvable:$true] %s336_s28 }
   0xd   : > { %p2383_p7 = pneg %p2671_p6  ;;  %s2573_s13 = smov 256  }
   0xe   : > { %s2574_s14 = smov 16   ;;  %s2575_s15 = smov [#allocation2]  }
   0xf   : > { %p2384_p8 = pnand %p2383_p7, %p136_p1  ;;  %s322_s16 = sshll.u32 %s2575_s15, 4  ;;  %s323_s16 = int_to_ptr.vmem [resolvable:$true] %s322_s16 }
  0x10   : > { %s334_s26 = sshll.u32 %s4088_s5, 4  ;;  %s2686_s17 = sadd.s32 1, %s2570_s20   ;;  %s335_s26 = int_to_ptr.hbm [resolvable:$true] %s334_s26 }
  0x11   : > { %2389 = dma.hbm_to_vmem [thread:$0]  (!%p2384_p8), %s335_s26, 4096, %s337_s28, [#allocation5], %s2573_s13, %s2573_s13, %s2574_s14  }
  0x12   : > { %s320_s12 = sshll.u32 %s4089_s3, 4  ;;  %s122_s24 = sadd.s32 1, %s2566_s19  ;;  %s321_s12 = int_to_ptr.hbm [resolvable:$true] %s320_s12 }
  0x13   : > { %2386 = dma.hbm_to_vmem [thread:$0]  (!%p2384_p8), %s321_s12, 8192, %s323_s16, [#allocation3], %s2573_s13, %s2573_s13, %s2574_s14  }
  0x14   : > { %s119_s25 = ssub.s32 %s2570_s20, %s2686_s17  ;;  %p129_p9 = scmp.ne.s32.totalorder %s2566_s19, %s2562_s18 }
  0x15   : > { %p120_p10 = scmp.eq.s32.totalorder %s119_s25, 0  ;;  %p130_p11 = scmp.eq.s32.totalorder %s2570_s20, 0 }
  0x16   : > { %p2396_p12 = scmp.lt.s32.totalorder %s2570_s20, 2  ;;  %s360_s27 = sand.u32 1, %s2570_s20  }
  0x17   : > { %s2697_s29 = scalar_select %p120_p10, %s2566_s19, %s122_s24  }
  0x18   : > { %p131_p13 = por %p130_p11, %p129_p9  ;;  %s362_s26 = sand.u32 1, %s2566_s19  }
  0x19   : > { %4090 = sst [smem:[#allocation10_spill]] %s2697_s29  ;;  %s2337_s28 = sshll.u32 %s2570_s20, 8 }
  0x1a   : > { %s2318_s30 = sshll.u32 %s362_s26, 8  ;;  %s369_s12 = scalar_lea.hbm %s3997_s4, %s2337_s28 }
  0x1b   : > { %s370_s13 = sshll.u32 %s369_s12, 4  ;;  %s364_s14 = scalar_lea.vmem [#allocation4], %s2318_s30  ;;  %s371_s13 = int_to_ptr.hbm [resolvable:$true] %s370_s13 }
  0x1c   : > { %s372_s16 = sshll.u32 %s364_s14, 4  ;;  %p2706_p0 = pnand %p2396_p12, %p131_p13  ;;  %s373_s16 = int_to_ptr.vmem [resolvable:$true] %s372_s16 }
  0x1d   : > { %s361_s24 = scalar_lea.sflag [#allocation5], %s360_s27  ;;  %s2498_s5 = sshra.s32 %s371_s13, 4  ;;  %s2499_s5 = int_to_ptr.hbm [resolvable:$true] %s2498_s5 }
  0x1e   : > { %s2500_s29 = scalar_lea.hbm %s2499_s5, 256  ;;  %p2502_p3 = pneg %p2706_p0 }
  0x1f   : > { %p2501_p2 = scmp.ne.s32.totalorder %s2499_s5, %s2500_s29  ;;  %s2505_s28 = scalar_lea.hbm %s3997_s4, 512 }
  0x20   : > { %p2506_p9 = scmp.lt.s32.totalorder %s2499_s5, %s3997_s4  ;;  %p2507_p10 = scmp.lt.s32.totalorder %s2505_s28, %s2500_s29 }
  0x21   : > { %p2503_p7 = pnand %p2502_p3, %p2501_p2 }
  0x22   : > { %p2508_p11 = por %p2507_p10, %p2506_p9 }
  0x23   : > { %p2504_p8 = pneg %p2503_p7 }
  0x25   : > { %p2509_p12 = pnand %p2508_p11, %p2504_p8 }
  0x27   : > { %2512 = shalt.err (!%p2509_p12)
}
  0x28   : > { %s2576_s27 = smov 128   ;;  %s2577_s15 = smov 8  }
  0x29   : > { %2393 = dma.hbm_to_vmem [thread:$0]  (!%p2706_p0), %s371_s13, 4096, %s373_s16, %s361_s24, %s2576_s27, %s2576_s27, %s2577_s15  }
  0x2a   : > { %384 = sbr.rel (%p2671_p6) target bundleno = 635 (0x27b), region = 44 }
  0x2f   : > { %2545 = dma.done.wait (%p136_p1), [#allocation3], 8192  }
  0x30   : > { %2547 = vsyncadd (%p136_p1), [#allocation3], 4294959104  ;;  %s391_s5 = sand.u32 1, %s2658_s21   ;;  %s393_s29 = sand.u32 1, %s2562_s18  }
  0x31   : > { %s2323_s12 = sshll.u32 %s393_s29, 8  ;;  %s392_s14 = scalar_lea.sflag [#allocation5], %s391_s5 }
  0x32   : > { %s2728_s3 = scalar_lea.vmem [#allocation4], %s2323_s12 }
  0x33   : > { %2549 = dma.done.wait (%p2667_p5), %s392_s14, 4096  }
  0x34   : > { %2551 = vsyncadd (%p2667_p5), %s392_s14, 4294963200 }
  0x35   : > { %2553 = dma.done.wait (%p136_p1), [#allocation5], 4096  }
  0x36   : > { %2555 = vsyncadd (%p136_p1), [#allocation5], 4294963200  ;;  %s2325_s23 = sshll.u32 %s2658_s21, 5 }
  0x37   : > { %p454_p6 = scmp.lt.s32.totalorder %s2325_s23, 63 }
  0x38   : > { %478 = sbr.rel (%p2315_p4) target bundleno = 68 (0x44), region = 60 }
  0x39   : > { %s4195_s23 = smov (!%p454_p6, %s2325_s23), 63 }
  0x3a   : > { %s2338_s13 = sshll.u32 %s4195_s23, 4 }
  0x3b   : > { %s2742_s24 = scalar_lea.vmem %s3993_s0, %s2338_s13  ;;  %s2747_s22 = scalar_lea.vmem %s3999_s6, %s2338_s13 }
  0x3c   : > { %s2752_s27 = scalar_lea.vmem %s4000_s7, %s2338_s13 }
  0x3d   : > { %v479_v0 = vlaneseq  ;;  %v2578_v1 = vmov 0.0  }
  0x3f   : > { %vm481_vm0 = vcmp.lt.s32.totalorder %v479_v0, 256 }
  0x40   : > { %483 = vst.msk [vmem:[%s4001_s8] sm:$0x3] %vm481_vm0, %v2578_v1 }
  0x41   : > { %484 = vst.msk [vmem:[%s4002_s9] sm:$0x3] %vm481_vm0, %v2578_v1 }
  0x42   : > { %485 = vst.msk [vmem:[%s4003_s10] sm:$0x3] %vm481_vm0, %v2578_v1 }
  0x43   : > { %486 = vst.msk [vmem:[%s4004_s11] sm:$0x3] %vm481_vm0, %v2578_v1 }
  0x44 PF: > { %v517_v2 = vld [vmem:[#allocation2 + $0xf0] sm:$0xff]  ;;  %v515_v4 = vld [vmem:[#allocation2 + $0xe0] sm:$0xff]  ;;  %v552_v30 = vld [vmem:[%s2742_s24 + $0x8] sm:$0xff]  ;;  %vm1413_vm1 = vcmask 1040384  }
  0x45   : > { %v549_v3 = vld [vmem:[#allocation2 + $0x1f0] sm:$0xff]  ;;  %819 = vmatpush.msra.mxu0 %v517_v2  ;;  %2341 = vmatpush.msra.mxu2 %v517_v2  ;;  %v547_v5 = vld [vmem:[#allocation2 + $0x1e0] sm:$0xff]  ;;  %v584_v31 = vld [vmem:[%s2742_s24 + $0x108] sm:$0xff] }
  0x46   : > { %932 = vmatpush.msra.mxu1 %v549_v3  ;;  %2357 = vmatpush.msra.mxu3 %v549_v3  ;;  %v513_v6 = vld [vmem:[#allocation2 + $0xd0] sm:$0xff]  ;;  %v511_v8 = vld [vmem:[#allocation2 + $0xc0] sm:$0xff]  ;;  %v554_v52 = vld [vmem:[%s2742_s24 + $0x18] sm:$0xff] }
  0x47   : > { %820 = vmatpush.msra.mxu0 %v515_v4  ;;  %2342 = vmatpush.msra.mxu2 %v515_v4  ;;  %v545_v7 = vld [vmem:[#allocation2 + $0x1d0] sm:$0xff]  ;;  %v543_v9 = vld [vmem:[#allocation2 + $0x1c0] sm:$0xff]  ;;  %v586_v53 = vld [vmem:[%s2742_s24 + $0x118] sm:$0xff] }
  0x48   : > { %933 = vmatpush.msra.mxu1 %v547_v5  ;;  %2358 = vmatpush.msra.mxu3 %v547_v5  ;;  %v509_v10 = vld [vmem:[#allocation2 + $0xb0] sm:$0xff]  ;;  %v507_v12 = vld [vmem:[#allocation2 + $0xa0] sm:$0xff]  ;;  %v518_v0 = vld [vmem:[#allocation2 + $0xf8] sm:$0xff] }
  0x49   : > { %821 = vmatpush.msra.mxu0 %v513_v6  ;;  %2343 = vmatpush.msra.mxu2 %v513_v6  ;;  %v541_v11 = vld [vmem:[#allocation2 + $0x1b0] sm:$0xff]  ;;  %v539_v13 = vld [vmem:[#allocation2 + $0x1a0] sm:$0xff]  ;;  %v550_v1 = vld [vmem:[#allocation2 + $0x1f8] sm:$0xff] }
  0x4a   : > { %934 = vmatpush.msra.mxu1 %v545_v7  ;;  %2359 = vmatpush.msra.mxu3 %v545_v7  ;;  %v505_v14 = vld [vmem:[#allocation2 + $0x90] sm:$0xff]  ;;  %v503_v16 = vld [vmem:[#allocation2 + $0x80] sm:$0xff]  ;;  %v516_v2 = vld [vmem:[#allocation2 + $0xe8] sm:$0xff] }
  0x4b   : > { %822 = vmatpush.msra.mxu0 %v511_v8  ;;  %2344 = vmatpush.msra.mxu2 %v511_v8  ;;  %v537_v15 = vld [vmem:[#allocation2 + $0x190] sm:$0xff]  ;;  %v535_v17 = vld [vmem:[#allocation2 + $0x180] sm:$0xff]  ;;  %v548_v5 = vld [vmem:[#allocation2 + $0x1e8] sm:$0xff] }
  0x4c   : > { %935 = vmatpush.msra.mxu1 %v543_v9  ;;  %2360 = vmatpush.msra.mxu3 %v543_v9  ;;  %v501_v18 = vld [vmem:[#allocation2 + $0x70] sm:$0xff]  ;;  %v615_v19 = vld [vmem:[%s3994_s1] sm:$0x3]  ;;  %v1599_v6 = vld [vmem:[#allocation6 + $0xf8] sm:$0xff] }
  0x4d   : > { %823 = vmatpush.msra.mxu0 %v509_v10  ;;  %2345 = vmatpush.msra.mxu2 %v509_v10  ;;  %v533_v20 = vld [vmem:[#allocation2 + $0x170] sm:$0xff]  ;;  %v499_v21 = vld [vmem:[#allocation2 + $0x60] sm:$0xff]  ;;  %v2771_v24 = vperm.slane %v615_v19, 0  ;;  %v2778_v28 = vperm.slane %v615_v19, 1 }
  0x4e   : > { %936 = vmatpush.msra.mxu1 %v541_v11  ;;  %2361 = vmatpush.msra.mxu3 %v541_v11  ;;  %v531_v22 = vld [vmem:[#allocation2 + $0x160] sm:$0xff]  ;;  %v497_v23 = vld [vmem:[#allocation2 + $0x50] sm:$0xff] }
  0x4f   : > { %824 = vmatpush.msra.mxu0 %v507_v12  ;;  %2346 = vmatpush.msra.mxu2 %v507_v12  ;;  %v551_v25 = vld [vmem:[%s2742_s24] sm:$0xff]  ;;  %v529_v29 = vld [vmem:[#allocation2 + $0x150] sm:$0xff]  ;;  %v622_v38 = vmul.f32 %v2778_v28, %v552_v30  ;;  %v654_v40 = vmul.f32 %v2778_v28, %v584_v31  ;;  %v624_v62 = vmul.f32 %v2778_v28, %v554_v52  ;;  %v556_v12 = vld [vmem:[%s2742_s24 + $0x28] sm:$0xff] }
  0x50   : > { %937 = vmatpush.msra.mxu1 %v539_v13  ;;  %2362 = vmatpush.msra.mxu3 %v539_v13  ;;  %v685_v26 = vld [vmem:[%s3995_s2] sm:$0x3]  ;;  %v621_v34 = vmul.f32 %v2771_v24, %v551_v25  ;;  %v493_v37 = vld [vmem:[#allocation2 + $0x30] sm:$0xff]  ;;  %v656_v63 = vmul.f32 %v2778_v28, %v586_v53  ;;  %v588_v13 = vld [vmem:[%s2742_s24 + $0x128] sm:$0xff] }
  0x51   : > { %825 = vmatpush.msra.mxu0 %v505_v14  ;;  %2347 = vmatpush.msra.mxu2 %v505_v14  ;;  %v583_v27 = vld [vmem:[%s2742_s24 + $0x100] sm:$0xff]  ;;  %v2783_v35 = vperm.slane %v685_v26, 0  ;;  %v2787_v39 = vperm.slane %v685_v26, 1  ;;  %v525_v41 = vld [vmem:[#allocation2 + $0x130] sm:$0xff]  ;;  %v1597_v14 = vld [vmem:[#allocation6 + $0xe8] sm:$0xff] }
  0x52   : > { %938 = vmatpush.msra.mxu1 %v537_v15  ;;  %2363 = vmatpush.msra.mxu3 %v537_v15  ;;  %v495_v32 = vld [vmem:[#allocation2 + $0x40] sm:$0xff]  ;;  %v653_v36 = vmul.f32 %v2771_v24, %v583_v27  ;;  %v489_v46 = vld [vmem:[#allocation2 + $0x10] sm:$0xff]  ;;  %v626_v27 = vmul.f32 %v2778_v28, %v556_v12  ;;  %v512_v31 = vld [vmem:[#allocation2 + $0xc8] sm:$0xff] }
  0x53   : > { %826 = vmatpush.msra.mxu0 %v503_v16  ;;  %2348 = vmatpush.msra.mxu2 %v503_v16  ;;  %v527_v33 = vld [vmem:[#allocation2 + $0x140] sm:$0xff]  ;;  %v2791_v44 = vadd.f32 %v2783_v35, %v621_v34  ;;  %v2797_v47 = vadd.f32 %v2787_v39, %v622_v38  ;;  %v2800_v48 = vadd.f32 %v2787_v39, %v654_v40  ;;  %v553_v49 = vld [vmem:[%s2742_s24 + $0x10] sm:$0xff]  ;;  %v514_v16 = vld [vmem:[#allocation2 + $0xd8] sm:$0xff] }
  0x54   : > { %939 = vmatpush.msra.mxu1 %v535_v17  ;;  %2364 = vmatpush.msra.mxu3 %v535_v17  ;;  %v491_v42 = vld [vmem:[#allocation2 + $0x20] sm:$0xff]  ;;  %v2794_v45 = vadd.f32 %v2783_v35, %v653_v36  ;;  %v585_v50 = vld [vmem:[%s2742_s24 + $0x110] sm:$0xff]  ;;  %v623_v58 = vmul.f32 %v2771_v24, %v553_v49  ;;  %v2829_v8 = vadd.f32 %v2787_v39, %v624_v62  ;;  %v546_v17 = vld [vmem:[#allocation2 + $0x1d8] sm:$0xff] }
  0x55   : > { %827 = vmatpush.msra.mxu0 %v501_v18  ;;  %2349 = vmatpush.msra.mxu2 %v501_v18  ;;  %v523_v43 = vld [vmem:[#allocation2 + $0x120] sm:$0xff]  ;;  %v521_v51 = vld [vmem:[#allocation2 + $0x110] sm:$0xff]  ;;  %v4046_v56 = vmax.f32 %v2791_v44, 0.0  ;;  %v655_v59 = vmul.f32 %v2771_v24, %v585_v50  ;;  %v4045_v60 = vmax.f32 %v2797_v47, 0.0  ;;  %v4017_v61 = vmax.f32 %v2800_v48, 0.0  ;;  %v590_v49 = vld [vmem:[%s2742_s24 + $0x138] sm:$0xff] }
  0x56   : > { %940 = vmatpush.msra.mxu1 %v533_v20  ;;  %2365 = vmatpush.msra.mxu3 %v533_v20  ;;  %v487_v54 = vld [vmem:[#allocation2] sm:$0xff]  ;;  %v4018_v57 = vmax.f32 %v2794_v45, 0.0  ;;  %v2819_v3 = vadd.f32 %v2783_v35, %v623_v58  ;;  %v1598_v7 = vld [vmem:[#allocation6 + $0xf0] sm:$0xff]  ;;  %v2832_v9 = vadd.f32 %v2787_v39, %v656_v63  ;;  %v4041_v25 = vmax.f32 %v2829_v8, 0.0  ;;  %v1591_v50 = vld [vmem:[#allocation6 + $0xb8] sm:$0xff] }
  0x57   : > { %828 = vmatpush.msra.mxu0 %v499_v21  ;;  %2350 = vmatpush.msra.mxu2 %v499_v21  ;;  %v519_v55 = vld [vmem:[#allocation2 + $0x100] sm:$0xff]  ;;  %v2822_v4 = vadd.f32 %v2783_v35, %v655_v59  ;;  %v557_v30 = vld [vmem:[%s2742_s24 + $0x30] sm:$0xff]  ;;  %v2863_v40 = vadd.f32 %v2787_v39, %v626_v27  ;;  %v508_v52 = vld [vmem:[#allocation2 + $0xa8] sm:$0xff] }
  0x58   : > { %941 = vmatpush.msra.mxu1 %v531_v22  ;;  %2366 = vmatpush.msra.mxu3 %v531_v22  ;;  %v555_v10 = vld [vmem:[%s2742_s24 + $0x20] sm:$0xff]  ;;  %v4042_v18 = vmax.f32 %v2819_v3, 0.0  ;;  %v1595_v22 = vld [vmem:[#allocation6 + $0xd8] sm:$0xff]  ;;  %v4014_v26 = vmax.f32 %v2832_v9, 0.0  ;;  %v589_v36 = vld [vmem:[%s2742_s24 + $0x130] sm:$0xff]  ;;  %v627_v58 = vmul.f32 %v2771_v24, %v557_v30 }
  0x59   : > { %829 = vmatpush.msra.mxu0 %v497_v23  ;;  %2351 = vmatpush.msra.mxu2 %v497_v23  ;;  %v587_v11 = vld [vmem:[%s2742_s24 + $0x120] sm:$0xff]  ;;  %v4016_v19 = vmax.f32 %v2822_v4, 0.0  ;;  %v625_v20 = vmul.f32 %v2771_v24, %v555_v10  ;;  %v1594_v23 = vld [vmem:[#allocation6 + $0xd0] sm:$0xff]  ;;  %v540_v53 = vld [vmem:[#allocation2 + $0x1a8] sm:$0xff]  ;;  %v659_v59 = vmul.f32 %v2771_v24, %v589_v36  ;;  %v4037_v62 = vmax.f32 %v2863_v40, 0.0 }
  0x5a   : > { %942 = vmatpush.msra.mxu1 %v529_v29  ;;  %2367 = vmatpush.msra.mxu3 %v529_v29  ;;  %v1596_v15 = vld [vmem:[#allocation6 + $0xe0] sm:$0xff]  ;;  %v657_v21 = vmul.f32 %v2771_v24, %v587_v11  ;;  %v658_v29 = vmul.f32 %v2778_v28, %v588_v13  ;;  %v506_v12 = vld [vmem:[#allocation2 + $0x98] sm:$0xff] }
  0x5b   : > { %830 = vmatpush.msra.mxu0 %v495_v32  ;;  %2352 = vmatpush.msra.mxu2 %v495_v32  ;;  %v544_v32 = vld [vmem:[#allocation2 + $0x1c8] sm:$0xff]  ;;  %v1592_v38 = vld [vmem:[#allocation6 + $0xc0] sm:$0xff]  ;;  %v538_v13 = vld [vmem:[#allocation2 + $0x198] sm:$0xff] }
  0x5c   : > { %943 = vmatpush.msra.mxu1 %v527_v33  ;;  %2368 = vmatpush.msra.mxu3 %v527_v33  ;;  %v2852_v33 = vadd.f32 %v2783_v35, %v625_v20  ;;  %v2855_v34 = vadd.f32 %v2783_v35, %v657_v21 }
  0x5d   : > { %831 = vmatpush.msra.mxu0 %v493_v37  ;;  %2353 = vmatpush.msra.mxu2 %v493_v37  ;;  %v1593_v37 = vld [vmem:[#allocation6 + $0xc8] sm:$0xff] }
  0x5e   : > { %944 = vmatpush.msra.mxu1 %v525_v41  ;;  %2369 = vmatpush.msra.mxu3 %v525_v41  ;;  %v2866_v41 = vadd.f32 %v2787_v39, %v658_v29 }
  0x5f   : > { %832 = vmatpush.msra.mxu0 %v491_v42  ;;  %2354 = vmatpush.msra.mxu2 %v491_v42  ;;  %v558_v42 = vld [vmem:[%s2742_s24 + $0x38] sm:$0xff] }
  0x60   : > { %945 = vmatpush.msra.mxu1 %v523_v43  ;;  %2370 = vmatpush.msra.mxu3 %v523_v43  ;;  %v510_v43 = vld [vmem:[#allocation2 + $0xb8] sm:$0xff]  ;;  %v4012_v63 = vmax.f32 %v2866_v41, 0.0 }
  0x61   : > { %833 = vmatpush.msra.mxu0 %v489_v46  ;;  %2355 = vmatpush.msra.mxu2 %v489_v46  ;;  %v542_v46 = vld [vmem:[#allocation2 + $0x1b8] sm:$0xff] }
  0x62   : > { %946 = vmatpush.msra.mxu1 %v521_v51  ;;  %2371 = vmatpush.msra.mxu3 %v521_v51  ;;  %v1590_v51 = vld [vmem:[#allocation6 + $0xb0] sm:$0xff] }
  0x63   : > { %834 = vmatpush.msra.mxu0 %v487_v54  ;;  %2356 = vmatpush.msra.mxu2 %v487_v54  ;;  %v4038_v54 = vmax.f32 %v2852_v33, 0.0 }
  0x64   : > { %947 = vmatpush.msra.mxu1 %v519_v55  ;;  %2372 = vmatpush.msra.mxu3 %v519_v55  ;;  %v4013_v55 = vmax.f32 %v2855_v34, 0.0 }
  0x65   : > { %835 = vmatmul.f32.vlgmr.msra.gmra.mxu0 %v4046_v56  ;;  %883 = vmatmul.f32.vlgmr.msra.gmra.mxu2 %v4018_v57  ;;  %v1572_v56 = vld [vmem:[#allocation6 + $0x20] sm:$0xff] }
  0x66   : > { %948 = vmatmul.f32.vlgmr.msra.gmra.mxu1 %v4045_v60  ;;  %996 = vmatmul.f32.vlgmr.msra.gmra.mxu3 %v4017_v61  ;;  %v576_v60 = vld [vmem:[%s2742_s24 + $0xc8] sm:$0xff] }
  0x67   : > { %1045 = vmatpush.msrb.mxu2 %v518_v0  ;;  %1158 = vmatpush.msrb.mxu3 %v550_v1  ;;  %v628_v0 = vmul.f32 %v2778_v28, %v558_v42  ;;  %v660_v1 = vmul.f32 %v2778_v28, %v590_v49  ;;  %v536_v49 = vld [vmem:[#allocation2 + $0x188] sm:$0xff] }
  0x68   : > { %1745 = vmatpush.msrb.mxu1 %v1599_v6  ;;  %1632 = vmatpush.msrb.mxu0 %v1598_v7  ;;  %v559_v6 = vld [vmem:[%s2742_s24 + $0x40] sm:$0xff] }
  0x69   : > { %1046 = vmatpush.msrb.mxu2 %v516_v2  ;;  %1159 = vmatpush.msrb.mxu3 %v548_v5  ;;  %v2883_v2 = vadd.f32 %v2783_v35, %v627_v58  ;;  %v2886_v5 = vadd.f32 %v2783_v35, %v659_v59  ;;  %v591_v7 = vld [vmem:[%s2742_s24 + $0x140] sm:$0xff]  ;;  %v2895_v10 = vadd.f32 %v2787_v39, %v628_v0 }
  0x6a   : > { %1746 = vmatpush.msrb.mxu1 %v1597_v14  ;;  %1633 = vmatpush.msrb.mxu0 %v1596_v15  ;;  %v2898_v11 = vadd.f32 %v2787_v39, %v660_v1  ;;  %v1589_v14 = vld [vmem:[#allocation6 + $0xa8] sm:$0xff] }
  0x6b   : > { %1047 = vmatpush.msrb.mxu2 %v514_v16  ;;  %1160 = vmatpush.msrb.mxu3 %v546_v17  ;;  %v560_v15 = vld [vmem:[%s2742_s24 + $0x48] sm:$0xff]  ;;  %v1588_v17 = vld [vmem:[#allocation6 + $0xa0] sm:$0xff]  ;;  %v4034_v20 = vmax.f32 %v2883_v2, 0.0  ;;  %v4010_v21 = vmax.f32 %v2886_v5, 0.0  ;;  %v4033_v27 = vmax.f32 %v2895_v10, 0.0 }
  0x6c   : > { %1747 = vmatpush.msrb.mxu1 %v1595_v22  ;;  %1634 = vmatpush.msrb.mxu0 %v1594_v23  ;;  %v592_v16 = vld [vmem:[%s2742_s24 + $0x148] sm:$0xff]  ;;  %v629_v22 = vmul.f32 %v2771_v24, %v559_v6  ;;  %v661_v23 = vmul.f32 %v2771_v24, %v591_v7  ;;  %v4009_v29 = vmax.f32 %v2898_v11, 0.0  ;;  %v630_v30 = vmul.f32 %v2778_v28, %v560_v15 }
  0x6d   : > { %838 = vmatmul.f32.gmra.mxu0 %v4042_v18  ;;  %886 = vmatmul.f32.gmra.mxu2 %v4016_v19 }
  0x6e   : > { %951 = vmatmul.f32.gmra.mxu1 %v4041_v25  ;;  %999 = vmatmul.f32.gmra.mxu3 %v4014_v26  ;;  %v2918_v36 = vadd.f32 %v2783_v35, %v661_v23  ;;  %v2927_v42 = vadd.f32 %v2787_v39, %v630_v30  ;;  %v502_v30 = vld [vmem:[#allocation2 + $0x78] sm:$0xff]  ;;  %v1580_v26 = vld [vmem:[#allocation6 + $0x60] sm:$0xff] }
  0x6f   : > { %1048 = vmatpush.msrb.mxu2 %v512_v31  ;;  %1161 = vmatpush.msrb.mxu3 %v544_v32  ;;  %v662_v31 = vmul.f32 %v2778_v28, %v592_v16  ;;  %v2915_v32 = vadd.f32 %v2783_v35, %v629_v22  ;;  %v563_v16 = vld [vmem:[%s2742_s24 + $0x60] sm:$0xff] }
  0x70   : > { %1748 = vmatpush.msrb.mxu1 %v1593_v37  ;;  %1635 = vmatpush.msrb.mxu0 %v1592_v38  ;;  %v561_v37 = vld [vmem:[%s2742_s24 + $0x50] sm:$0xff]  ;;  %v4008_v59 = vmax.f32 %v2918_v36, 0.0  ;;  %v4029_v6 = vmax.f32 %v2927_v42, 0.0 }
  0x71   : > { %1049 = vmatpush.msrb.mxu2 %v510_v43  ;;  %1162 = vmatpush.msrb.mxu3 %v542_v46  ;;  %v593_v38 = vld [vmem:[%s2742_s24 + $0x150] sm:$0xff]  ;;  %v2930_v43 = vadd.f32 %v2787_v39, %v662_v31  ;;  %v504_v46 = vld [vmem:[#allocation2 + $0x88] sm:$0xff]  ;;  %v4030_v58 = vmax.f32 %v2915_v32, 0.0  ;;  %v631_v0 = vmul.f32 %v2771_v24, %v561_v37  ;;  %v534_v31 = vld [vmem:[#allocation2 + $0x178] sm:$0xff] }
  0x72   : > { %1749 = vmatpush.msrb.mxu1 %v1591_v50  ;;  %1636 = vmatpush.msrb.mxu0 %v1590_v51  ;;  %v1587_v50 = vld [vmem:[#allocation6 + $0x98] sm:$0xff]  ;;  %v663_v1 = vmul.f32 %v2771_v24, %v593_v38  ;;  %v1585_v37 = vld [vmem:[#allocation6 + $0x88] sm:$0xff] }
  0x73   : > { %1050 = vmatpush.msrb.mxu2 %v508_v52  ;;  %1163 = vmatpush.msrb.mxu3 %v540_v53  ;;  %v562_v51 = vld [vmem:[%s2742_s24 + $0x58] sm:$0xff]  ;;  %v1586_v53 = vld [vmem:[#allocation6 + $0x90] sm:$0xff]  ;;  %v4006_v7 = vmax.f32 %v2930_v43, 0.0  ;;  %v564_v38 = vld [vmem:[%s2742_s24 + $0x68] sm:$0xff] }
  0x74   : > { %1750 = vmatpush.msrb.mxu1 %v1589_v14  ;;  %1637 = vmatpush.msrb.mxu0 %v1588_v17  ;;  %v594_v52 = vld [vmem:[%s2742_s24 + $0x158] sm:$0xff]  ;;  %v2947_v14 = vadd.f32 %v2783_v35, %v631_v0  ;;  %v2950_v15 = vadd.f32 %v2783_v35, %v663_v1  ;;  %v595_v17 = vld [vmem:[%s2742_s24 + $0x160] sm:$0xff] }
  0x75   : > { %841 = vmatmul.f32.gmra.mxu0 %v4038_v54  ;;  %889 = vmatmul.f32.gmra.mxu2 %v4013_v55  ;;  %v568_v55 = vld [vmem:[%s2742_s24 + $0x88] sm:$0xff]  ;;  %v1574_v54 = vld [vmem:[#allocation6 + $0x30] sm:$0xff] }
  0x76   : > { %954 = vmatmul.f32.gmra.mxu1 %v4037_v62  ;;  %1002 = vmatmul.f32.gmra.mxu3 %v4012_v63  ;;  %v1581_v63 = vld [vmem:[#allocation6 + $0x68] sm:$0xff]  ;;  %v574_v62 = vld [vmem:[%s2742_s24 + $0xb8] sm:$0xff] }
  0x77   : > { %1051 = vmatpush.msrb.mxu2 %v506_v12  ;;  %1164 = vmatpush.msrb.mxu3 %v538_v13  ;;  %v632_v12 = vmul.f32 %v2778_v28, %v562_v51  ;;  %v664_v13 = vmul.f32 %v2778_v28, %v594_v52  ;;  %v4005_v51 = vmax.f32 %v2950_v15, 0.0  ;;  %v633_v52 = vmul.f32 %v2771_v24, %v563_v16 }
  0x78   : > { %1751 = vmatpush.msrb.mxu1 %v1587_v50  ;;  %1638 = vmatpush.msrb.mxu0 %v1586_v53  ;;  %v4026_v50 = vmax.f32 %v2947_v14, 0.0  ;;  %v665_v53 = vmul.f32 %v2771_v24, %v595_v17 }
  0x79   : > { %1052 = vmatpush.msrb.mxu2 %v504_v46  ;;  %1165 = vmatpush.msrb.mxu3 %v536_v49  ;;  %v2959_v22 = vadd.f32 %v2787_v39, %v632_v12  ;;  %v2962_v23 = vadd.f32 %v2787_v39, %v664_v13  ;;  %v596_v46 = vld [vmem:[%s2742_s24 + $0x168] sm:$0xff]  ;;  %v1584_v49 = vld [vmem:[#allocation6 + $0x80] sm:$0xff]  ;;  %v634_v12 = vmul.f32 %v2778_v28, %v564_v38 }
  0x7a   : > { %1752 = vmatpush.msrb.mxu1 %v1585_v37  ;;  %1639 = vmatpush.msrb.mxu0 %v1584_v49  ;;  %v666_v13 = vmul.f32 %v2778_v28, %v596_v46  ;;  %v2979_v16 = vadd.f32 %v2783_v35, %v633_v52  ;;  %v2982_v17 = vadd.f32 %v2783_v35, %v665_v53  ;;  %v500_v46 = vld [vmem:[#allocation2 + $0x68] sm:$0xff]  ;;  %v1583_v52 = vld [vmem:[#allocation6 + $0x78] sm:$0xff] }
  0x7b   : > { %1053 = vmatpush.msrb.mxu2 %v502_v30  ;;  %1166 = vmatpush.msrb.mxu3 %v534_v31  ;;  %v4025_v0 = vmax.f32 %v2959_v22, 0.0  ;;  %v4007_v1 = vmax.f32 %v2962_v23, 0.0  ;;  %v565_v30 = vld [vmem:[%s2742_s24 + $0x70] sm:$0xff]  ;;  %v2991_v37 = vadd.f32 %v2787_v39, %v634_v12  ;;  %v532_v49 = vld [vmem:[#allocation2 + $0x168] sm:$0xff]  ;;  %v598_v53 = vld [vmem:[%s2742_s24 + $0x178] sm:$0xff] }
  0x7c   : > { %v597_v31 = vld [vmem:[%s2742_s24 + $0x170] sm:$0xff]  ;;  %v2994_v38 = vadd.f32 %v2787_v39, %v666_v13  ;;  %1753 = vmatpush.msrb.mxu1 %v1583_v52  ;;  %v4011_v12 = vmax.f32 %v2982_v17, 0.0  ;;  %v599_v52 = vld [vmem:[%s2742_s24 + $0x180] sm:$0xff] }
  0x7d   : > { %844 = vmatmul.f32.gmra.mxu0 %v4034_v20  ;;  %892 = vmatmul.f32.gmra.mxu2 %v4010_v21  ;;  %v667_v13 = vmul.f32 %v2771_v24, %v597_v31  ;;  %v567_v31 = vld [vmem:[%s2742_s24 + $0x80] sm:$0xff] }
  0x7e   : > { %957 = vmatmul.f32.gmra.mxu1 %v4033_v27  ;;  %1005 = vmatmul.f32.gmra.mxu3 %v4009_v29  ;;  %v4021_v29 = vmax.f32 %v2991_v37, 0.0  ;;  %v4015_v21 = vmax.f32 %v2994_v38, 0.0  ;;  %v637_v19 = vmul.f32 %v2771_v24, %v567_v31  ;;  %v569_v31 = vld [vmem:[%s2742_s24 + $0x90] sm:$0xff] }
  0x7f   : > { %1054 = vmatpush.msrb.mxu2 %v500_v46  ;;  %1167 = vmatpush.msrb.mxu3 %v532_v49  ;;  %v668_v49 = vmul.f32 %v2778_v28, %v598_v53 }
  0x80   : > { %1754 = vmatpush.msrb.mxu1 %v1581_v63 }
  0x81   : > { %v3026_v53 = vadd.f32 %v2787_v39, %v668_v49  ;;  %v669_v49 = vmul.f32 %v2771_v24, %v599_v52  ;;  %v601_v52 = vld [vmem:[%s2742_s24 + $0x190] sm:$0xff] }
  0x83   : > { %4092 = vst [vmem:[#allocation11_spill] sm:$0xff] %v3026_v53  ;;  %v4023_v57 = vmax.f32 %v3026_v53, 0.0  ;;  %v3046_v63 = vadd.f32 %v2783_v35, %v669_v49  ;;  %v602_v49 = vld [vmem:[%s2742_s24 + $0x198] sm:$0xff] }
  0x85   : > { %847 = vmatmul.f32.gmra.mxu0 %v4030_v58  ;;  %895 = vmatmul.f32.gmra.mxu2 %v4008_v59  ;;  %v635_v59 = vmul.f32 %v2771_v24, %v565_v30  ;;  %v3014_v30 = vadd.f32 %v2783_v35, %v667_v13  ;;  %v600_v13 = vld [vmem:[%s2742_s24 + $0x188] sm:$0xff]  ;;  %4093 = vst [vmem:[#allocation12_spill] sm:$0xff] %v3046_v63  ;;  %v1576_v58 = vld [vmem:[#allocation6 + $0x40] sm:$0xff] }
  0x86   : > { %960 = vmatmul.f32.gmra.mxu1 %v4029_v6  ;;  %1008 = vmatmul.f32.gmra.mxu3 %v4006_v7  ;;  %v1582_v7 = vld [vmem:[#allocation6 + $0x70] sm:$0xff]  ;;  %v572_v6 = vld [vmem:[%s2742_s24 + $0xa8] sm:$0xff] }
  0x87   : > { %1640 = vmatpush.msrb.mxu0 %v1582_v7  ;;  %v3011_v7 = vadd.f32 %v2783_v35, %v635_v59  ;;  %v530_v59 = vld [vmem:[#allocation2 + $0x158] sm:$0xff] }
  0x88   : > { %1168 = vmatpush.msrb.mxu3 %v530_v59  ;;  %v670_v59 = vmul.f32 %v2778_v28, %v600_v13 }
  0x89   : > { %1641 = vmatpush.msrb.mxu0 %v1580_v26  ;;  %v3043_v26 = vadd.f32 %v2783_v35, %v637_v19  ;;  %v528_v19 = vld [vmem:[#allocation2 + $0x148] sm:$0xff] }
  0x8a   : > { %v3058_v13 = vadd.f32 %v2787_v39, %v670_v59  ;;  %1169 = vmatpush.msrb.mxu3 %v528_v19  ;;  %v671_v59 = vmul.f32 %v2771_v24, %v601_v52  ;;  %v672_v19 = vmul.f32 %v2778_v28, %v602_v49  ;;  %v603_v52 = vld [vmem:[%s2742_s24 + $0x1a0] sm:$0xff] }
  0x8c   : > { %4094 = vst [vmem:[#allocation13_spill] sm:$0xff] %v3058_v13  ;;  %v3090_v49 = vadd.f32 %v2787_v39, %v672_v19  ;;  %v673_v19 = vmul.f32 %v2771_v24, %v603_v52  ;;  %v605_v52 = vld [vmem:[%s2742_s24 + $0x1b0] sm:$0xff] }
  0x8d   : > { %850 = vmatmul.f32.gmra.mxu0 %v4026_v50  ;;  %898 = vmatmul.f32.gmra.mxu2 %v4005_v51  ;;  %v566_v51 = vld [vmem:[%s2742_s24 + $0x78] sm:$0xff]  ;;  %v4031_v50 = vmax.f32 %v3058_v13, 0.0 }
  0x8e   : > { %963 = vmatmul.f32.gmra.mxu1 %v4025_v0  ;;  %1011 = vmatmul.f32.gmra.mxu3 %v4007_v1  ;;  %v4022_v1 = vmax.f32 %v2979_v16, 0.0  ;;  %v636_v46 = vmul.f32 %v2778_v28, %v566_v51  ;;  %4096 = vst [vmem:[#allocation15_spill] sm:$0xff] %v3090_v49  ;;  %v4039_v20 = vmax.f32 %v3090_v49, 0.0  ;;  %v1570_v49 = vld [vmem:[#allocation6 + $0x10] sm:$0xff] }
  0x90   : > { %v3023_v51 = vadd.f32 %v2787_v39, %v636_v46  ;;  %v4019_v46 = vmax.f32 %v3014_v30, 0.0 }
  0x92   : > { %v4024_v61 = vmax.f32 %v3023_v51, 0.0 }
  0x95   : > { %853 = vmatmul.f32.gmra.mxu0 %v4022_v1  ;;  %901 = vmatmul.f32.gmra.mxu2 %v4011_v12  ;;  %v498_v12 = vld [vmem:[#allocation2 + $0x58] sm:$0xff]  ;;  %v1578_v1 = vld [vmem:[#allocation6 + $0x50] sm:$0xff] }
  0x96   : > { %966 = vmatmul.f32.gmra.mxu1 %v4021_v29  ;;  %1014 = vmatmul.f32.gmra.mxu3 %v4015_v21  ;;  %v4020_v21 = vmax.f32 %v3011_v7, 0.0  ;;  %v570_v29 = vld [vmem:[%s2742_s24 + $0x98] sm:$0xff] }
  0x97   : > { %1055 = vmatpush.msrb.mxu2 %v498_v12  ;;  %v638_v12 = vmul.f32 %v2778_v28, %v568_v55  ;;  %1642 = vmatpush.msrb.mxu0 %v1578_v1  ;;  %v3078_v1 = vadd.f32 %v2783_v35, %v671_v59  ;;  %v604_v59 = vld [vmem:[%s2742_s24 + $0x1a8] sm:$0xff] }
  0x99   : > { %v3055_v55 = vadd.f32 %v2787_v39, %v638_v12  ;;  %v4027_v12 = vmax.f32 %v3046_v63, 0.0  ;;  %4095 = vst [vmem:[#allocation14_spill] sm:$0xff] %v3078_v1  ;;  %1643 = vmatpush.msrb.mxu0 %v1576_v58  ;;  %v3110_v58 = vadd.f32 %v2783_v35, %v673_v19  ;;  %v606_v19 = vld [vmem:[%s2742_s24 + $0x1b8] sm:$0xff] }
  0x9b   : > { %v4032_v0 = vmax.f32 %v3055_v55, 0.0  ;;  %4097 = vst [vmem:[#allocation16_spill] sm:$0xff] %v3110_v58  ;;  %1644 = vmatpush.msrb.mxu0 %v1574_v54 }
  0x9d   : > { %856 = vmatmul.f32.gmra.mxu0 %v4020_v21  ;;  %904 = vmatmul.f32.gmra.mxu2 %v4019_v46  ;;  %v496_v46 = vld [vmem:[#allocation2 + $0x48] sm:$0xff]  ;;  %v1579_v21 = vld [vmem:[#allocation6 + $0x58] sm:$0xff] }
  0x9e   : > { %969 = vmatmul.f32.gmra.mxu1 %v4024_v61  ;;  %1017 = vmatmul.f32.gmra.mxu3 %v4023_v57  ;;  %v4028_v57 = vmax.f32 %v3043_v26, 0.0  ;;  %v639_v61 = vmul.f32 %v2771_v24, %v569_v31  ;;  %v571_v31 = vld [vmem:[%s2742_s24 + $0xa0] sm:$0xff] }
  0x9f   : > { %1056 = vmatpush.msrb.mxu2 %v496_v46  ;;  %1755 = vmatpush.msrb.mxu1 %v1579_v21  ;;  %v640_v46 = vmul.f32 %v2778_v28, %v570_v29 }
  0xa0   : > { %v3075_v21 = vadd.f32 %v2783_v35, %v639_v61  ;;  %v526_v61 = vld [vmem:[#allocation2 + $0x138] sm:$0xff]  ;;  %1645 = vmatpush.msrb.mxu0 %v1572_v56 }
  0xa1   : > { %v3087_v29 = vadd.f32 %v2787_v39, %v640_v46  ;;  %1170 = vmatpush.msrb.mxu3 %v526_v61  ;;  %v4035_v46 = vmax.f32 %v3078_v1, 0.0  ;;  %v674_v61 = vmul.f32 %v2778_v28, %v604_v59 }
  0xa2   : > { %1646 = vmatpush.msrb.mxu0 %v1570_v49  ;;  %v1568_v49 = vld [vmem:[#allocation6] sm:$0xff] }
  0xa3   : > { %v4040_v27 = vmax.f32 %v3087_v29, 0.0  ;;  %v3122_v59 = vadd.f32 %v2787_v39, %v674_v61  ;;  %v675_v61 = vmul.f32 %v2771_v24, %v605_v52  ;;  %v607_v52 = vld [vmem:[%s2742_s24 + $0x1c0] sm:$0xff] }
  0xa4   : > { %1647 = vmatpush.msrb.mxu0 %v1568_v49 }
  0xa5   : > { %859 = vmatmul.f32.gmra.mxu0 %v4028_v57  ;;  %907 = vmatmul.f32.gmra.mxu2 %v4027_v12  ;;  %v494_v12 = vld [vmem:[#allocation2 + $0x38] sm:$0xff]  ;;  %v1577_v57 = vld [vmem:[#allocation6 + $0x48] sm:$0xff]  ;;  %4098 = vst [vmem:[#allocation17_spill] sm:$0xff] %v3122_v59  ;;  %v4047_v18 = vmax.f32 %v3122_v59, 0.0 }
  0xa6   : > { %972 = vmatmul.f32.gmra.mxu1 %v4032_v0  ;;  %1020 = vmatmul.f32.gmra.mxu3 %v4031_v50  ;;  %v4036_v50 = vmax.f32 %v3075_v21, 0.0  ;;  %v641_v0 = vmul.f32 %v2771_v24, %v571_v31  ;;  %v573_v31 = vld [vmem:[%s2742_s24 + $0xb0] sm:$0xff] }
  0xa7   : > { %1057 = vmatpush.msrb.mxu2 %v494_v12  ;;  %1756 = vmatpush.msrb.mxu1 %v1577_v57  ;;  %v642_v12 = vmul.f32 %v2778_v28, %v572_v6 }
  0xa8   : > { %v3107_v57 = vadd.f32 %v2783_v35, %v641_v0  ;;  %v524_v0 = vld [vmem:[#allocation2 + $0x128] sm:$0xff] }
  0xa9   : > { %v3119_v6 = vadd.f32 %v2787_v39, %v642_v12  ;;  %1171 = vmatpush.msrb.mxu3 %v524_v0  ;;  %v4043_v12 = vmax.f32 %v3110_v58, 0.0  ;;  %v676_v0 = vmul.f32 %v2778_v28, %v606_v19 }
  0xab   : > { %v4048_v25 = vmax.f32 %v3119_v6, 0.0  ;;  %v3154_v19 = vadd.f32 %v2787_v39, %v676_v0  ;;  %v677_v0 = vmul.f32 %v2771_v24, %v607_v52  ;;  %v609_v52 = vld [vmem:[%s2742_s24 + $0x1d0] sm:$0xff] }
  0xad   : > { %862 = vmatmul.f32.gmra.mxu0 %v4036_v50  ;;  %910 = vmatmul.f32.gmra.mxu2 %v4035_v46  ;;  %v492_v46 = vld [vmem:[#allocation2 + $0x28] sm:$0xff]  ;;  %v1575_v50 = vld [vmem:[#allocation6 + $0x38] sm:$0xff]  ;;  %4100 = vst [vmem:[#allocation19_spill] sm:$0xff] %v3154_v19  ;;  %v4056_v58 = vmax.f32 %v3154_v19, 0.0 }
  0xae   : > { %975 = vmatmul.f32.gmra.mxu1 %v4040_v27  ;;  %1023 = vmatmul.f32.gmra.mxu3 %v4039_v20  ;;  %v4044_v20 = vmax.f32 %v3107_v57, 0.0  ;;  %v643_v27 = vmul.f32 %v2771_v24, %v573_v31  ;;  %v575_v31 = vld [vmem:[%s2742_s24 + $0xc0] sm:$0xff] }
  0xaf   : > { %1058 = vmatpush.msrb.mxu2 %v492_v46  ;;  %1757 = vmatpush.msrb.mxu1 %v1575_v50  ;;  %v644_v46 = vmul.f32 %v2778_v28, %v574_v62  ;;  %v3142_v50 = vadd.f32 %v2783_v35, %v675_v61  ;;  %v608_v61 = vld [vmem:[%s2742_s24 + $0x1c8] sm:$0xff] }
  0xb0   : > { %v3139_v54 = vadd.f32 %v2783_v35, %v643_v27  ;;  %v522_v27 = vld [vmem:[#allocation2 + $0x118] sm:$0xff] }
  0xb1   : > { %4099 = vst [vmem:[#allocation18_spill] sm:$0xff] %v3142_v50  ;;  %v3151_v62 = vadd.f32 %v2787_v39, %v644_v46  ;;  %1172 = vmatpush.msrb.mxu3 %v522_v27  ;;  %v4051_v46 = vmax.f32 %v3142_v50, 0.0  ;;  %v678_v27 = vmul.f32 %v2778_v28, %v608_v61  ;;  %v578_v50 = vld [vmem:[%s2742_s24 + $0xd8] sm:$0xff] }
  0xb3   : > { %v4055_v59 = vmax.f32 %v3151_v62, 0.0  ;;  %v3186_v61 = vadd.f32 %v2787_v39, %v678_v27  ;;  %v679_v27 = vmul.f32 %v2771_v24, %v609_v52 }
  0xb5   : > { %865 = vmatmul.f32.gmra.mxu0 %v4044_v20  ;;  %913 = vmatmul.f32.gmra.mxu2 %v4043_v12  ;;  %v490_v12 = vld [vmem:[#allocation2 + $0x18] sm:$0xff]  ;;  %v1573_v20 = vld [vmem:[#allocation6 + $0x28] sm:$0xff]  ;;  %4102 = vst [vmem:[#allocation21_spill] sm:$0xff] %v3186_v61  ;;  %v4063_v1 = vmax.f32 %v3186_v61, 0.0  ;;  %v3206_v52 = vadd.f32 %v2783_v35, %v679_v27 }
  0xb6   : > { %978 = vmatmul.f32.gmra.mxu1 %v4048_v25  ;;  %1026 = vmatmul.f32.gmra.mxu3 %v4047_v18  ;;  %v4052_v18 = vmax.f32 %v3139_v54, 0.0  ;;  %v645_v25 = vmul.f32 %v2771_v24, %v575_v31  ;;  %v577_v31 = vld [vmem:[%s2742_s24 + $0xd0] sm:$0xff] }
  0xb7   : > { %1059 = vmatpush.msrb.mxu2 %v490_v12  ;;  %1758 = vmatpush.msrb.mxu1 %v1573_v20  ;;  %v646_v12 = vmul.f32 %v2778_v28, %v576_v60  ;;  %v3174_v20 = vadd.f32 %v2783_v35, %v677_v0  ;;  %v610_v0 = vld [vmem:[%s2742_s24 + $0x1d8] sm:$0xff]  ;;  %4103 = vst [vmem:[#allocation22_spill] sm:$0xff] %v3206_v52 }
  0xb8   : > { %v3171_v56 = vadd.f32 %v2783_v35, %v645_v25  ;;  %v520_v25 = vld [vmem:[#allocation2 + $0x108] sm:$0xff] }
  0xb9   : > { %4101 = vst [vmem:[#allocation20_spill] sm:$0xff] %v3174_v20  ;;  %v3183_v60 = vadd.f32 %v2787_v39, %v646_v12  ;;  %1173 = vmatpush.msrb.mxu3 %v520_v25  ;;  %v647_v12 = vmul.f32 %v2771_v24, %v577_v31  ;;  %v1569_v25 = vld [vmem:[#allocation6 + $0x8] sm:$0xff] }
  0xbb   : > { %v4062_v19 = vmax.f32 %v3183_v60, 0.0  ;;  %v3203_v31 = vadd.f32 %v2783_v35, %v647_v12  ;;  %v612_v12 = vld [vmem:[%s2742_s24 + $0x1e8] sm:$0xff] }
  0xbc   : > { %v682_v49 = vmul.f32 %v2778_v28, %v612_v12  ;;  %v581_v12 = vld [vmem:[%s2742_s24 + $0xf0] sm:$0xff] }
  0xbd   : > { %868 = vmatmul.f32.gmra.mxu0 %v4052_v18  ;;  %916 = vmatmul.f32.gmra.mxu2 %v4051_v46  ;;  %v488_v46 = vld [vmem:[#allocation2 + $0x8] sm:$0xff]  ;;  %v1571_v18 = vld [vmem:[#allocation6 + $0x18] sm:$0xff]  ;;  %v4067_v27 = vmax.f32 %v3203_v31, 0.0  ;;  %v651_v63 = vmul.f32 %v2771_v24, %v581_v12 }
  0xbe   : > { %981 = vmatmul.f32.gmra.mxu1 %v4055_v59  ;;  %1029 = vmatmul.f32.gmra.mxu3 %v4056_v58  ;;  %v4059_v59 = vmax.f32 %v3171_v56, 0.0  ;;  %v4060_v58 = vmax.f32 %v3174_v20, 0.0  ;;  %v580_v20 = vld [vmem:[%s2742_s24 + $0xe8] sm:$0xff] }
  0xbf   : > { %1060 = vmatpush.msrb.mxu2 %v488_v46  ;;  %1759 = vmatpush.msrb.mxu1 %v1571_v18  ;;  %v648_v46 = vmul.f32 %v2778_v28, %v578_v50  ;;  %v680_v18 = vmul.f32 %v2778_v28, %v610_v0  ;;  %v650_v13 = vmul.f32 %v2778_v28, %v580_v20 }
  0xc0   : > { %v3267_v53 = vadd.f32 %v2783_v35, %v651_v63 }
  0xc1   : > { %v3213_v50 = vadd.f32 %v2787_v39, %v648_v46  ;;  %v3216_v0 = vadd.f32 %v2787_v39, %v680_v18  ;;  %1760 = vmatpush.msrb.mxu1 %v1569_v25  ;;  %v3245_v20 = vadd.f32 %v2787_v39, %v650_v13  ;;  %v3248_v25 = vadd.f32 %v2787_v39, %v682_v49 }
  0xc3   : > { %4104 = vst [vmem:[#allocation23_spill] sm:$0xff] %v3216_v0  ;;  %v4070_v18 = vmax.f32 %v3213_v50, 0.0  ;;  %v4071_v61 = vmax.f32 %v3216_v0, 0.0  ;;  %v4075_v13 = vmax.f32 %v3248_v25, 0.0 }
  0xc5   : > { %871 = vmatmul.f32.gmra.mxu0 %v4059_v59  ;;  %919 = vmatmul.f32.gmra.mxu2 %v4060_v58  ;;  %v579_v59 = vld [vmem:[%s2742_s24 + $0xe0] sm:$0xff] }
  0xc6   : > { %984 = vmatmul.f32.gmra.mxu1 %v4062_v19  ;;  %1032 = vmatmul.f32.gmra.mxu3 %v4063_v1  ;;  %v611_v58 = vld [vmem:[%s2742_s24 + $0x1e0] sm:$0xff]  ;;  %v4066_v19 = vmax.f32 %v3206_v52, 0.0  ;;  %v649_v1 = vmul.f32 %v2771_v24, %v579_v59 }
  0xc7   : > { %v681_v46 = vmul.f32 %v2771_v24, %v611_v58 }
  0xc8   : > { %v3235_v59 = vadd.f32 %v2783_v35, %v649_v1  ;;  %v614_v1 = vld [vmem:[%s2742_s24 + $0x1f8] sm:$0xff] }
  0xc9   : > { %v3238_v58 = vadd.f32 %v2783_v35, %v681_v46  ;;  %v684_v49 = vmul.f32 %v2778_v28, %v614_v1 }
  0xca   : > { %v4081_v52 = vmax.f32 %v3235_v59, 0.0 }
  0xcb   : > { %v4076_v46 = vmax.f32 %v3238_v58, 0.0 }
  0xcd   : > { %874 = vmatmul.f32.gmra.mxu0 %v4067_v27  ;;  %922 = vmatmul.f32.gmra.mxu2 %v4066_v19  ;;  %v613_v19 = vld [vmem:[%s2742_s24 + $0x1f0] sm:$0xff]  ;;  %v582_v27 = vld [vmem:[%s2742_s24 + $0xf8] sm:$0xff] }
  0xce   : > { %987 = vmatmul.f32.gmra.mxu1 %v4070_v18  ;;  %1035 = vmatmul.f32.gmra.mxu3 %v4071_v61  ;;  %v683_v18 = vmul.f32 %v2771_v24, %v613_v19  ;;  %v4080_v61 = vmax.f32 %v3245_v20, 0.0  ;;  %v652_v0 = vmul.f32 %v2778_v28, %v582_v27  ;;  %v3280_v19 = vadd.f32 %v2787_v39, %v684_v49 }
  0xcf   : > { %v4079_v27 = vmax.f32 %v3267_v53, 0.0  ;;  %v4107_v49 = vmax.f32 %v2791_v44, 0.0 }
  0xd0   : > { %v3270_v24 = vadd.f32 %v2783_v35, %v683_v18  ;;  %v3277_v28 = vadd.f32 %v2787_v39, %v652_v0  ;;  %4106 = vst [vmem:[#allocation25_spill] sm:$0xff] %v3280_v19  ;;  %v4078_v18 = vmax.f32 %v3280_v19, 0.0  ;;  %v1600_v0 = vld [vmem:[%s2728_s3] sm:$0xff] }
  0xd2   : > { %4105 = vst [vmem:[#allocation24_spill] sm:$0xff] %v3270_v24  ;;  %v4074_v63 = vmax.f32 %v3270_v24, 0.0  ;;  %v4077_v35 = vmax.f32 %v3277_v28, 0.0  ;;  %v1602_v24 = vld [vmem:[%s2728_s3 + $0x10] sm:$0xff] }
  0xd5   : > { %877 = vmatmul.f32.gmra.mxu0 %v4081_v52  ;;  %925 = vmatmul.f32.gmra.mxu2 %v4076_v46 }
  0xd6   : > { %990 = vmatmul.f32.gmra.mxu1 %v4080_v61  ;;  %1038 = vmatmul.f32.gmra.mxu3 %v4075_v13 }
  0xdd   : > { %880 = vmatmul.f32.gmra.mxu0 %v4079_v27  ;;  %928 = vmatmul.f32.gmra.mxu2 %v4074_v63  ;;  %v4108_v63 = vmax.f32 %v2797_v47, 0.0  ;;  %v1601_v27 = vld [vmem:[%s2728_s3 + $0x8] sm:$0xff] }
  0xde   : > { %993 = vmatmul.f32.gmra.mxu1 %v4077_v35  ;;  %1041 = vmatmul.f32.gmra.mxu3 %v4078_v18 }
  0xe2   : > { %v836_v39 = vpop.f32.mrf.mxu0 }
  0xe3   : > { %v949_v12 = vpop.f32.mrf.mxu1 }
  0xe4   : > { %v950_v1 = vadd.f32 %v949_v12, %v836_v39  ;;  %v4109_v39 = vmax.f32 %v2819_v3, 0.0 }
  0xe5   : > { %1061 = vmatmul.f32.vlgmr.msrb.gmra.mxu2 %v4107_v49  ;;  %1648 = vmatmul.f32.vlgmr.msrb.gmra.mxu0 %v1600_v0 }
  0xe6   : > { %1271 = vst [vmem:[%s2747_s22] sm:$0xff] %v950_v1  ;;  %1174 = vmatmul.f32.vlgmr.msrb.gmra.mxu3 %v4108_v63  ;;  %1761 = vmatmul.f32.vlgmr.msrb.gmra.mxu1 %v1600_v0  ;;  %v1423_v52 = vmul.f32 %v950_v1, %v950_v1 }
  0xe8   : > { %v884_v13 = vpop.f32.mrf.mxu2 }
  0xe9   : > { %v997_v46 = vpop.f32.mrf.mxu3 }
  0xea   : > { %v3300_v35 = vadd.f32 %v997_v46, %v884_v13  ;;  %v839_v18 = vpop.f32.mrf.mxu0  ;;  %v4110_v46 = vmax.f32 %v2829_v8, 0.0 }
  0xeb   : > { %v952_v61 = vpop.f32.mrf.mxu1 }
  0xec   : > { %1303 = vst [vmem:[%s2747_s22 + $0x100] sm:$0xff] %v3300_v35  ;;  %v953_v44 = vadd.f32 %v952_v61, %v839_v18  ;;  %v4111_v18 = vmax.f32 %v2852_v33, 0.0 }
  0xed   : > { %1064 = vmatmul.f32.gmra.mxu2 %v4109_v39  ;;  %1651 = vmatmul.f32.gmra.mxu0 %v1601_v27 }
  0xee   : > { %1273 = vst [vmem:[%s2747_s22 + $0x10] sm:$0xff] %v953_v44  ;;  %v1336_v47 = vadd.f32 %v953_v44, %v950_v1  ;;  %v1425_v63 = vmul.f32 %v953_v44, %v953_v44  ;;  %1177 = vmatmul.f32.gmra.mxu3 %v4110_v46  ;;  %1764 = vmatmul.f32.gmra.mxu1 %v1601_v27  ;;  %v4112_v27 = vmax.f32 %v2863_v40, 0.0 }
  0xf0   : > { %v1487_v13 = vadd.f32 %v1425_v63, %v1423_v52  ;;  %v887_v0 = vpop.f32.mrf.mxu2 }
  0xf1   : > { %v1000_v12 = vpop.f32.mrf.mxu3 }
  0xf2   : > { %v3310_v49 = vadd.f32 %v1000_v12, %v887_v0  ;;  %v842_v19 = vpop.f32.mrf.mxu0  ;;  %v1603_v0 = vld [vmem:[%s2728_s3 + $0x18] sm:$0xff] }
  0xf3   : > { %v955_v61 = vpop.f32.mrf.mxu1 }
  0xf4   : > { %1305 = vst [vmem:[%s2747_s22 + $0x110] sm:$0xff] %v3310_v49  ;;  %v956_v3 = vadd.f32 %v955_v61, %v842_v19 }
  0xf5   : > { %1067 = vmatmul.f32.gmra.mxu2 %v4111_v18  ;;  %1654 = vmatmul.f32.gmra.mxu0 %v1602_v24 }
  0xf6   : > { %1275 = vst [vmem:[%s2747_s22 + $0x20] sm:$0xff] %v956_v3  ;;  %v1337_v8 = vadd.f32 %v1336_v47, %v956_v3  ;;  %v1427_v52 = vmul.f32 %v956_v3, %v956_v3  ;;  %1180 = vmatmul.f32.gmra.mxu3 %v4112_v27  ;;  %1767 = vmatmul.f32.gmra.mxu1 %v1602_v24  ;;  %v4113_v47 = vmax.f32 %v2883_v2, 0.0  ;;  %v1604_v27 = vld [vmem:[%s2728_s3 + $0x20] sm:$0xff] }
  0xf8   : > { %v1488_v1 = vadd.f32 %v1487_v13, %v1427_v52  ;;  %v890_v44 = vpop.f32.mrf.mxu2  ;;  %v4114_v13 = vmax.f32 %v2895_v10, 0.0 }
  0xf9   : > { %v1003_v39 = vpop.f32.mrf.mxu3 }
  0xfa   : > { %v3320_v63 = vadd.f32 %v1003_v39, %v890_v44  ;;  %v845_v46 = vpop.f32.mrf.mxu0  ;;  %v4116_v39 = vmax.f32 %v2927_v42, 0.0 }
  0xfb   : > { %v958_v19 = vpop.f32.mrf.mxu1 }
  0xfc   : > { %1307 = vst [vmem:[%s2747_s22 + $0x120] sm:$0xff] %v3320_v63  ;;  %v959_v33 = vadd.f32 %v958_v19, %v845_v46 }
  0xfd   : > { %1070 = vmatmul.f32.gmra.mxu2 %v4113_v47  ;;  %1657 = vmatmul.f32.gmra.mxu0 %v1603_v0 }
  0xfe   : > { %1277 = vst [vmem:[%s2747_s22 + $0x30] sm:$0xff] %v959_v33  ;;  %v1338_v40 = vadd.f32 %v1337_v8, %v959_v33  ;;  %v1429_v24 = vmul.f32 %v959_v33, %v959_v33  ;;  %1183 = vmatmul.f32.gmra.mxu3 %v4114_v13  ;;  %1770 = vmatmul.f32.gmra.mxu1 %v1603_v0  ;;  %v4115_v8 = vmax.f32 %v2915_v32, 0.0 }
 0x100   : > { %v1489_v12 = vadd.f32 %v1488_v1, %v1429_v24  ;;  %v893_v61 = vpop.f32.mrf.mxu2  ;;  %v1605_v24 = vld [vmem:[%s2728_s3 + $0x28] sm:$0xff] }
 0x101   : > { %v1006_v3 = vpop.f32.mrf.mxu3 }
 0x102   : > { %v3330_v18 = vadd.f32 %v1006_v3, %v893_v61  ;;  %v848_v52 = vpop.f32.mrf.mxu0  ;;  %v4118_v61 = vmax.f32 %v2959_v22, 0.0 }
 0x103   : > { %v961_v44 = vpop.f32.mrf.mxu1 }
 0x104   : > { %1309 = vst [vmem:[%s2747_s22 + $0x130] sm:$0xff] %v3330_v18  ;;  %v962_v2 = vadd.f32 %v961_v44, %v848_v52 }
 0x105   : > { %1073 = vmatmul.f32.gmra.mxu2 %v4115_v8  ;;  %1660 = vmatmul.f32.gmra.mxu0 %v1604_v27  ;;  %v1606_v8 = vld [vmem:[%s2728_s3 + $0x30] sm:$0xff] }
 0x106   : > { %1279 = vst [vmem:[%s2747_s22 + $0x40] sm:$0xff] %v962_v2  ;;  %v1339_v10 = vadd.f32 %v1338_v40, %v962_v2  ;;  %v1431_v1 = vmul.f32 %v962_v2, %v962_v2  ;;  %1186 = vmatmul.f32.gmra.mxu3 %v4116_v39  ;;  %1773 = vmatmul.f32.gmra.mxu1 %v1604_v27  ;;  %v4117_v40 = vmax.f32 %v2947_v14, 0.0 }
 0x108   : > { %v1490_v46 = vadd.f32 %v1489_v12, %v1431_v1  ;;  %v896_v0 = vpop.f32.mrf.mxu2 }
 0x109   : > { %v1009_v19 = vpop.f32.mrf.mxu3 }
 0x10a   : > { %v3340_v33 = vadd.f32 %v1009_v19, %v896_v0  ;;  %v851_v47 = vpop.f32.mrf.mxu0 }
 0x10b   : > { %v964_v13 = vpop.f32.mrf.mxu1 }
 0x10c   : > { %1311 = vst [vmem:[%s2747_s22 + $0x140] sm:$0xff] %v3340_v33  ;;  %v965_v32 = vadd.f32 %v964_v13, %v851_v47 }
 0x10d   : > { %1076 = vmatmul.f32.gmra.mxu2 %v4117_v40  ;;  %1663 = vmatmul.f32.gmra.mxu0 %v1605_v24 }
 0x10e   : > { %1281 = vst [vmem:[%s2747_s22 + $0x50] sm:$0xff] %v965_v32  ;;  %v1340_v42 = vadd.f32 %v1339_v10, %v965_v32  ;;  %v1433_v12 = vmul.f32 %v965_v32, %v965_v32  ;;  %1189 = vmatmul.f32.gmra.mxu3 %v4118_v61  ;;  %1776 = vmatmul.f32.gmra.mxu1 %v1605_v24  ;;  %v4119_v10 = vmax.f32 %v2979_v16, 0.0  ;;  %v1607_v32 = vld [vmem:[%s2728_s3 + $0x38] sm:$0xff]  ;;  %v4122_v61 = vmax.f32 %v3023_v51, 0.0 }
 0x110   : > { %v1491_v3 = vadd.f32 %v1490_v46, %v1433_v12  ;;  %v899_v52 = vpop.f32.mrf.mxu2  ;;  %v4120_v46 = vmax.f32 %v2991_v37, 0.0 }
 0x111   : > { %v1012_v27 = vpop.f32.mrf.mxu3 }
 0x112   : > { %v3350_v44 = vadd.f32 %v1012_v27, %v899_v52  ;;  %v854_v2 = vpop.f32.mrf.mxu0 }
 0x113   : > { %v967_v1 = vpop.f32.mrf.mxu1 }
 0x114   : > { %1313 = vst [vmem:[%s2747_s22 + $0x150] sm:$0xff] %v3350_v44  ;;  %v968_v14 = vadd.f32 %v967_v1, %v854_v2  ;;  %v1608_v1 = vld [vmem:[%s2728_s3 + $0x40] sm:$0xff] }
 0x115   : > { %1079 = vmatmul.f32.gmra.mxu2 %v4119_v10  ;;  %1666 = vmatmul.f32.gmra.mxu0 %v1606_v8  ;;  %v4123_v10 = vmax.f32 %v3043_v26, 0.0 }
 0x116   : > { %1283 = vst [vmem:[%s2747_s22 + $0x60] sm:$0xff] %v968_v14  ;;  %v1341_v22 = vadd.f32 %v1340_v42, %v968_v14  ;;  %v1435_v39 = vmul.f32 %v968_v14, %v968_v14  ;;  %1192 = vmatmul.f32.gmra.mxu3 %v4120_v46  ;;  %1779 = vmatmul.f32.gmra.mxu1 %v1606_v8  ;;  %v4121_v42 = vmax.f32 %v3011_v7, 0.0 }
 0x118   : > { %v1492_v0 = vadd.f32 %v1491_v3, %v1435_v39  ;;  %v902_v19 = vpop.f32.mrf.mxu2  ;;  %v4124_v39 = vmax.f32 %v3055_v55, 0.0 }
 0x119   : > { %v1015_v47 = vpop.f32.mrf.mxu3 }
 0x11a   : > { %v3360_v24 = vadd.f32 %v1015_v47, %v902_v19  ;;  %v857_v13 = vpop.f32.mrf.mxu0 }
 0x11b   : > { %v970_v40 = vpop.f32.mrf.mxu1 }
 0x11c   : > { %1315 = vst [vmem:[%s2747_s22 + $0x160] sm:$0xff] %v3360_v24  ;;  %v971_v16 = vadd.f32 %v970_v40, %v857_v13 }
 0x11d   : > { %1082 = vmatmul.f32.gmra.mxu2 %v4121_v42  ;;  %1669 = vmatmul.f32.gmra.mxu0 %v1607_v32 }
 0x11e   : > { %1285 = vst [vmem:[%s2747_s22 + $0x70] sm:$0xff] %v971_v16  ;;  %v1342_v37 = vadd.f32 %v1341_v22, %v971_v16  ;;  %v1437_v12 = vmul.f32 %v971_v16, %v971_v16  ;;  %1195 = vmatmul.f32.gmra.mxu3 %v4122_v61  ;;  %1782 = vmatmul.f32.gmra.mxu1 %v1607_v32  ;;  %v1609_v32 = vld [vmem:[%s2728_s3 + $0x48] sm:$0xff]  ;;  %v4125_v16 = vmax.f32 %v3075_v21, 0.0 }
 0x120   : > { %v1493_v3 = vadd.f32 %v1492_v0, %v1437_v12  ;;  %v905_v52 = vpop.f32.mrf.mxu2 }
 0x121   : > { %v1018_v27 = vpop.f32.mrf.mxu3 }
 0x122   : > { %v3370_v2 = vadd.f32 %v1018_v27, %v905_v52  ;;  %v860_v8 = vpop.f32.mrf.mxu0 }
 0x123   : > { %v973_v14 = vpop.f32.mrf.mxu1 }
 0x124   : > { %1317 = vst [vmem:[%s2747_s22 + $0x170] sm:$0xff] %v3370_v2  ;;  %v974_v7 = vadd.f32 %v973_v14, %v860_v8  ;;  %v1610_v8 = vld [vmem:[%s2728_s3 + $0x50] sm:$0xff]  ;;  %v4127_v14 = vmax.f32 %v3107_v57, 0.0 }
 0x125   : > { %1085 = vmatmul.f32.gmra.mxu2 %v4123_v10  ;;  %1672 = vmatmul.f32.gmra.mxu0 %v1608_v1  ;;  %v4128_v10 = vmax.f32 %v3119_v6, 0.0 }
 0x126   : > { %1287 = vst [vmem:[%s2747_s22 + $0x80] sm:$0xff] %v974_v7  ;;  %v1343_v51 = vadd.f32 %v1342_v37, %v974_v7  ;;  %v1439_v22 = vmul.f32 %v974_v7, %v974_v7  ;;  %1198 = vmatmul.f32.gmra.mxu3 %v4124_v39  ;;  %1785 = vmatmul.f32.gmra.mxu1 %v1608_v1  ;;  %v4126_v37 = vmax.f32 %v3087_v29, 0.0 }
 0x128   : > { %v1494_v46 = vadd.f32 %v1493_v3, %v1439_v22  ;;  %v908_v0 = vpop.f32.mrf.mxu2 }
 0x129   : > { %v1021_v19 = vpop.f32.mrf.mxu3 }
 0x12a   : > { %v3380_v47 = vadd.f32 %v1021_v19, %v908_v0  ;;  %v863_v13 = vpop.f32.mrf.mxu0  ;;  %v1611_v19 = vld [vmem:[%s2728_s3 + $0x58] sm:$0xff] }
 0x12b   : > { %v976_v40 = vpop.f32.mrf.mxu1 }
 0x12c   : > { %1319 = vst [vmem:[%s2747_s22 + $0x180] sm:$0xff] %v3380_v47  ;;  %v977_v26 = vadd.f32 %v976_v40, %v863_v13 }
 0x12d   : > { %1088 = vmatmul.f32.gmra.mxu2 %v4125_v16  ;;  %1675 = vmatmul.f32.gmra.mxu0 %v1609_v32 }
 0x12e   : > { %1289 = vst [vmem:[%s2747_s22 + $0x90] sm:$0xff] %v977_v26  ;;  %v1344_v55 = vadd.f32 %v1343_v51, %v977_v26  ;;  %v1441_v42 = vmul.f32 %v977_v26, %v977_v26  ;;  %1201 = vmatmul.f32.gmra.mxu3 %v4126_v37  ;;  %1788 = vmatmul.f32.gmra.mxu1 %v1609_v32  ;;  %v4129_v32 = vmax.f32 %v3139_v54, 0.0  ;;  %v4130_v26 = vmax.f32 %v3151_v62, 0.0 }
 0x130   : > { %v1495_v12 = vadd.f32 %v1494_v46, %v1441_v42  ;;  %v911_v61 = vpop.f32.mrf.mxu2 }
 0x131   : > { %v1024_v3 = vpop.f32.mrf.mxu3 }
 0x132   : > { %v3390_v52 = vadd.f32 %v1024_v3, %v911_v61  ;;  %v866_v27 = vpop.f32.mrf.mxu0  ;;  %v1612_v61 = vld [vmem:[%s2728_s3 + $0x60] sm:$0xff] }
 0x133   : > { %v979_v1 = vpop.f32.mrf.mxu1 }
 0x134   : > { %1321 = vst [vmem:[%s2747_s22 + $0x190] sm:$0xff] %v3390_v52  ;;  %v980_v21 = vadd.f32 %v979_v1, %v866_v27  ;;  %v4131_v27 = vmax.f32 %v3171_v56, 0.0  ;;  %v4132_v1 = vmax.f32 %v3183_v60, 0.0 }
 0x135   : > { %1091 = vmatmul.f32.gmra.mxu2 %v4127_v14  ;;  %1678 = vmatmul.f32.gmra.mxu0 %v1610_v8 }
 0x136   : > { %1291 = vst [vmem:[%s2747_s22 + $0xa0] sm:$0xff] %v980_v21  ;;  %v1345_v29 = vadd.f32 %v1344_v55, %v980_v21  ;;  %v1443_v7 = vmul.f32 %v980_v21, %v980_v21  ;;  %1204 = vmatmul.f32.gmra.mxu3 %v4128_v10  ;;  %1791 = vmatmul.f32.gmra.mxu1 %v1610_v8 }
 0x138   : > { %v1496_v51 = vadd.f32 %v1495_v12, %v1443_v7  ;;  %v914_v22 = vpop.f32.mrf.mxu2 }
 0x139   : > { %v1027_v39 = vpop.f32.mrf.mxu3 }
 0x13a   : > { %v3400_v46 = vadd.f32 %v1027_v39, %v914_v22  ;;  %v869_v0 = vpop.f32.mrf.mxu0  ;;  %v4133_v39 = vmax.f32 %v3203_v31, 0.0 }
 0x13b   : > { %v982_v13 = vpop.f32.mrf.mxu1 }
 0x13c   : > { %1323 = vst [vmem:[%s2747_s22 + $0x1a0] sm:$0xff] %v3400_v46  ;;  %v983_v57 = vadd.f32 %v982_v13, %v869_v0 }
 0x13d   : > { %1094 = vmatmul.f32.gmra.mxu2 %v4129_v32  ;;  %1681 = vmatmul.f32.gmra.mxu0 %v1611_v19 }
 0x13e   : > { %1293 = vst [vmem:[%s2747_s22 + $0xb0] sm:$0xff] %v983_v57  ;;  %v1346_v6 = vadd.f32 %v1345_v29, %v983_v57  ;;  %v1445_v40 = vmul.f32 %v983_v57, %v983_v57  ;;  %1207 = vmatmul.f32.gmra.mxu3 %v4130_v26  ;;  %1794 = vmatmul.f32.gmra.mxu1 %v1611_v19  ;;  %v4134_v19 = vmax.f32 %v3213_v50, 0.0  ;;  %v1614_v26 = vld [vmem:[%s2728_s3 + $0x70] sm:$0xff] }
 0x140   : > { %v1497_v16 = vadd.f32 %v1496_v51, %v1445_v40  ;;  %v917_v55 = vpop.f32.mrf.mxu2  ;;  %v1613_v51 = vld [vmem:[%s2728_s3 + $0x68] sm:$0xff] }
 0x141   : > { %v1030_v42 = vpop.f32.mrf.mxu3 }
 0x142   : > { %v3410_v37 = vadd.f32 %v1030_v42, %v917_v55  ;;  %v872_v12 = vpop.f32.mrf.mxu0  ;;  %v4135_v55 = vmax.f32 %v3235_v59, 0.0 }
 0x143   : > { %v985_v3 = vpop.f32.mrf.mxu1 }
 0x144   : > { %1325 = vst [vmem:[%s2747_s22 + $0x1b0] sm:$0xff] %v3410_v37  ;;  %v986_v54 = vadd.f32 %v985_v3, %v872_v12  ;;  %v4136_v12 = vmax.f32 %v3245_v20, 0.0 }
 0x145   : > { %1097 = vmatmul.f32.gmra.mxu2 %v4131_v27  ;;  %1684 = vmatmul.f32.gmra.mxu0 %v1612_v61 }
 0x146   : > { %1295 = vst [vmem:[%s2747_s22 + $0xc0] sm:$0xff] %v986_v54  ;;  %v1347_v62 = vadd.f32 %v1346_v6, %v986_v54  ;;  %v1447_v8 = vmul.f32 %v986_v54, %v986_v54  ;;  %1210 = vmatmul.f32.gmra.mxu3 %v4132_v1  ;;  %1797 = vmatmul.f32.gmra.mxu1 %v1612_v61 }
 0x148   : > { %v1498_v21 = vadd.f32 %v1497_v16, %v1447_v8  ;;  %v920_v14 = vpop.f32.mrf.mxu2  ;;  %v1615_v8 = vld [vmem:[%s2728_s3 + $0x78] sm:$0xff] }
 0x149   : > { %v1033_v29 = vpop.f32.mrf.mxu3 }
 0x14a   : > { %v3420_v7 = vadd.f32 %v1033_v29, %v920_v14  ;;  %v875_v10 = vpop.f32.mrf.mxu0  ;;  %v4138_v29 = vmax.f32 %v3277_v28, 0.0 }
 0x14b   : > { %v988_v22 = vpop.f32.mrf.mxu1 }
 0x14c   : > { %1327 = vst [vmem:[%s2747_s22 + $0x1c0] sm:$0xff] %v3420_v7  ;;  %v989_v56 = vadd.f32 %v988_v22, %v875_v10  ;;  %v1455_v10 = vmul.f32 %v3300_v35, %v3300_v35 }
 0x14d   : > { %1100 = vmatmul.f32.gmra.mxu2 %v4133_v39  ;;  %1687 = vmatmul.f32.gmra.mxu0 %v1613_v51  ;;  %v1457_v39 = vmul.f32 %v3310_v49, %v3310_v49 }
 0x14e   : > { %1297 = vst [vmem:[%s2747_s22 + $0xd0] sm:$0xff] %v989_v56  ;;  %v1348_v60 = vadd.f32 %v1347_v62, %v989_v56  ;;  %v1449_v0 = vmul.f32 %v989_v56, %v989_v56  ;;  %1213 = vmatmul.f32.gmra.mxu3 %v4134_v19  ;;  %1800 = vmatmul.f32.gmra.mxu1 %v1613_v51 }
 0x150   : > { %v1499_v13 = vadd.f32 %v1498_v21, %v1449_v0  ;;  %v923_v57 = vpop.f32.mrf.mxu2  ;;  %v4137_v21 = vmax.f32 %v3267_v53, 0.0 }
 0x151   : > { %v1036_v32 = vpop.f32.mrf.mxu3 }
 0x152   : > { %v3430_v6 = vadd.f32 %v1036_v32, %v923_v57  ;;  %v878_v40 = vpop.f32.mrf.mxu0 }
 0x153   : > { %v991_v16 = vpop.f32.mrf.mxu1 }
 0x154   : > { %1329 = vst [vmem:[%s2747_s22 + $0x1d0] sm:$0xff] %v3430_v6  ;;  %v992_v31 = vadd.f32 %v991_v16, %v878_v40 }
 0x155   : > { %1103 = vmatmul.f32.gmra.mxu2 %v4135_v55  ;;  %1690 = vmatmul.f32.gmra.mxu0 %v1614_v26  ;;  %v4140_v55 = vmax.f32 %v2800_v48, 0.0 }
 0x156   : > { %1299 = vst [vmem:[%s2747_s22 + $0xe0] sm:$0xff] %v992_v31  ;;  %v1349_v50 = vadd.f32 %v1348_v60, %v992_v31  ;;  %v1451_v42 = vmul.f32 %v992_v31, %v992_v31  ;;  %1216 = vmatmul.f32.gmra.mxu3 %v4136_v12  ;;  %1803 = vmatmul.f32.gmra.mxu1 %v1614_v26 }
 0x157   : > { %v1461_v26 = vmul.f32 %v3330_v18, %v3330_v18 }
 0x158   : > { %v1500_v61 = vadd.f32 %v1499_v13, %v1451_v42  ;;  %v926_v3 = vpop.f32.mrf.mxu2  ;;  %v1616_v13 = vld [vmem:[%s2728_s3 + $0x80] sm:$0xff] }
 0x159   : > { %v1039_v54 = vpop.f32.mrf.mxu3 }
 0x15a   : > { %v3440_v27 = vadd.f32 %v1039_v54, %v926_v3  ;;  %v881_v62 = vpop.f32.mrf.mxu0 }
 0x15b   : > { %v994_v1 = vpop.f32.mrf.mxu1 }
 0x15c   : > { %1331 = vst [vmem:[%s2747_s22 + $0x1e0] sm:$0xff] %v3440_v27  ;;  %v995_v59 = vadd.f32 %v994_v1, %v881_v62  ;;  %v1617_v62 = vld [vmem:[%s2728_s3 + $0x88] sm:$0xff] }
 0x15d   : > { %1106 = vmatmul.f32.gmra.mxu2 %v4137_v21  ;;  %1693 = vmatmul.f32.gmra.mxu0 %v1615_v8  ;;  %v1469_v21 = vmul.f32 %v3370_v2, %v3370_v2 }
 0x15e   : > { %1301 = vst [vmem:[%s2747_s22 + $0xf0] sm:$0xff] %v995_v59  ;;  %v1350_v20 = vadd.f32 %v1349_v50, %v995_v59  ;;  %v1453_v14 = vmul.f32 %v995_v59, %v995_v59  ;;  %1219 = vmatmul.f32.gmra.mxu3 %v4138_v29  ;;  %1806 = vmatmul.f32.gmra.mxu1 %v1615_v8  ;;  %v4142_v29 = vmax.f32 %v2832_v9, 0.0 }
 0x160   : > { %v1351_v51 = vadd.f32 %v1350_v20, %v3300_v35  ;;  %v1501_v22 = vadd.f32 %v1500_v61, %v1453_v14  ;;  %v929_v53 = vpop.f32.mrf.mxu2  ;;  %v1459_v35 = vmul.f32 %v3320_v63, %v3320_v63  ;;  %v1465_v61 = vmul.f32 %v3350_v44, %v3350_v44 }
 0x161   : > { %v1042_v56 = vpop.f32.mrf.mxu3 }
 0x162   : > { %v1352_v60 = vadd.f32 %v1351_v51, %v3310_v49  ;;  %v1502_v0 = vadd.f32 %v1501_v22, %v1455_v10  ;;  %v3456_v19 = vadd.f32 %v1042_v56, %v929_v53  ;;  %v3458_v28 = vpop.f32.mrf.mxu0  ;;  %v4139_v49 = vmax.f32 %v2794_v45, 0.0 }
 0x163   : > { %1858 = vst [vmem:[%s2752_s27] sm:$0xff] %v3458_v28  ;;  %v3463_v57 = vpop.f32.mrf.mxu1  ;;  %v1473_v53 = vmul.f32 %v3390_v52, %v3390_v52 }
 0x164   : > { %v1353_v32 = vadd.f32 %v1352_v60, %v3320_v63  ;;  %v1503_v40 = vadd.f32 %v1502_v0, %v1457_v39  ;;  %1333 = vst [vmem:[%s2747_s22 + $0x1f0] sm:$0xff] %v3456_v19  ;;  %v1463_v63 = vmul.f32 %v3340_v33, %v3340_v33  ;;  %v1618_v60 = vld [vmem:[%s2728_s3 + $0x90] sm:$0xff]  ;;  %v1475_v0 = vmul.f32 %v3400_v46, %v3400_v46 }
 0x165   : > { %1859 = vst [vmem:[%s2752_s27 + $0x8] sm:$0xff] %v3463_v57  ;;  %1109 = vmatmul.f32.gmra.mxu2 %v4139_v49  ;;  %1696 = vmatmul.f32.gmra.mxu0 %v1616_v13 }
 0x166   : > { %v1354_v16 = vadd.f32 %v1353_v32, %v3330_v18  ;;  %v1504_v31 = vadd.f32 %v1503_v40, %v1459_v35  ;;  %1222 = vmatmul.f32.gmra.mxu3 %v4140_v55  ;;  %1809 = vmatmul.f32.gmra.mxu1 %v1616_v13 }
 0x168   : > { %v1355_v45 = vadd.f32 %v1354_v16, %v3340_v33  ;;  %v1505_v50 = vadd.f32 %v1504_v31, %v1461_v26  ;;  %v1062_v42 = vpop.f32.mrf.mxu2  ;;  %v1467_v33 = vmul.f32 %v3360_v24, %v3360_v24  ;;  %v4143_v26 = vmax.f32 %v2855_v34, 0.0 }
 0x169   : > { %v1175_v12 = vpop.f32.mrf.mxu3 }
 0x16a   : > { %v1356_v18 = vadd.f32 %v1355_v45, %v3350_v44  ;;  %v1506_v3 = vadd.f32 %v1505_v50, %v1463_v63  ;;  %v1176_v54 = vadd.f32 %v1175_v12, %v1062_v42  ;;  %v3485_v48 = vpop.f32.mrf.mxu0  ;;  %v4141_v44 = vmax.f32 %v2822_v4, 0.0 }
 0x16b   : > { %1860 = vst [vmem:[%s2752_s27 + $0x10] sm:$0xff] %v3485_v48  ;;  %v3490_v8 = vpop.f32.mrf.mxu1  ;;  %v1479_v63 = vmul.f32 %v3420_v7, %v3420_v7 }
 0x16c   : > { %v1357_v1 = vadd.f32 %v1356_v18, %v3360_v24  ;;  %v1507_v59 = vadd.f32 %v1506_v3, %v1465_v61  ;;  %1272 = vst [vmem:[%s2747_s22 + $0x8] sm:$0xff] %v1176_v54  ;;  %v1471_v24 = vmul.f32 %v3380_v47, %v3380_v47  ;;  %v1424_v13 = vmul.f32 %v1176_v54, %v1176_v54  ;;  %v1619_v3 = vld [vmem:[%s2728_s3 + $0x98] sm:$0xff] }
 0x16d   : > { %1861 = vst [vmem:[%s2752_s27 + $0x18] sm:$0xff] %v3490_v8  ;;  %1112 = vmatmul.f32.gmra.mxu2 %v4141_v44  ;;  %1699 = vmatmul.f32.gmra.mxu0 %v1617_v62  ;;  %v4145_v44 = vmax.f32 %v2886_v5, 0.0  ;;  %v1620_v5 = vld [vmem:[%s2728_s3 + $0xa0] sm:$0xff] }
 0x16e   : > { %v1508_v20 = vadd.f32 %v1507_v59, %v1467_v33  ;;  %v1358_v14 = vadd.f32 %v1357_v1, %v3370_v2  ;;  %1225 = vmatmul.f32.gmra.mxu3 %v4142_v29  ;;  %1812 = vmatmul.f32.gmra.mxu1 %v1617_v62 }
 0x170   : > { %v1359_v10 = vadd.f32 %v1358_v14, %v3380_v47  ;;  %v1509_v4 = vadd.f32 %v1508_v20, %v1469_v21  ;;  %v1065_v51 = vpop.f32.mrf.mxu2  ;;  %v4146_v14 = vmax.f32 %v2898_v11, 0.0 }
 0x171   : > { %v1178_v22 = vpop.f32.mrf.mxu3 }
 0x172   : > { %v1360_v2 = vadd.f32 %v1359_v10, %v3390_v52  ;;  %v1510_v56 = vadd.f32 %v1509_v4, %v1471_v24  ;;  %v1179_v9 = vadd.f32 %v1178_v22, %v1065_v51  ;;  %v3511_v39 = vpop.f32.mrf.mxu0  ;;  %v1477_v52 = vmul.f32 %v3410_v37, %v3410_v37 }
 0x173   : > { %1862 = vst [vmem:[%s2752_s27 + $0x20] sm:$0xff] %v3511_v39  ;;  %v3518_v47 = vpop.f32.mrf.mxu1 }
 0x174   : > { %v1361_v35 = vadd.f32 %v1360_v2, %v3400_v46  ;;  %v1511_v32 = vadd.f32 %v1510_v56, %v1473_v53  ;;  %1274 = vst [vmem:[%s2747_s22 + $0x18] sm:$0xff] %v1179_v9  ;;  %v1373_v40 = vadd.f32 %v1179_v9, %v1176_v54  ;;  %v1426_v49 = vmul.f32 %v1179_v9, %v1179_v9 }
 0x175   : > { %1863 = vst [vmem:[%s2752_s27 + $0x28] sm:$0xff] %v3518_v47  ;;  %1115 = vmatmul.f32.gmra.mxu2 %v4143_v26  ;;  %1702 = vmatmul.f32.gmra.mxu0 %v1618_v60  ;;  %v4144_v46 = vmax.f32 %v2866_v41, 0.0  ;;  %v1483_v54 = vmul.f32 %v3440_v27, %v3440_v27  ;;  %v4147_v53 = vmax.f32 %v2918_v36, 0.0  ;;  %v4148_v56 = vmax.f32 %v2930_v43, 0.0 }
 0x176   : > { %v1362_v16 = vadd.f32 %v1361_v35, %v3410_v37  ;;  %v1512_v31 = vadd.f32 %v1511_v32, %v1475_v0  ;;  %v1524_v55 = vadd.f32 %v1426_v49, %v1424_v13  ;;  %1815 = vmatmul.f32.gmra.mxu1 %v1618_v60  ;;  %v1481_v37 = vmul.f32 %v3430_v6, %v3430_v6  ;;  %v1621_v35 = vld [vmem:[%s2728_s3 + $0xa8] sm:$0xff] }
 0x177   : > { %1228 = vmatmul.f32.gmra.mxu3 %v4144_v46  ;;  %v4149_v43 = vmax.f32 %v2950_v15, 0.0  ;;  %v1622_v46 = vld [vmem:[%s2728_s3 + $0xb0] sm:$0xff] }
 0x178   : > { %v1363_v45 = vadd.f32 %v1362_v16, %v3420_v7  ;;  %v1513_v50 = vadd.f32 %v1512_v31, %v1477_v52  ;;  %v1068_v34 = vpop.f32.mrf.mxu2  ;;  %v4150_v52 = vmax.f32 %v2962_v23, 0.0 }
 0x179   : > { %v1181_v42 = vpop.f32.mrf.mxu3 }
 0x17a   : > { %v1364_v12 = vadd.f32 %v1363_v45, %v3430_v6  ;;  %v1514_v61 = vadd.f32 %v1513_v50, %v1479_v63  ;;  %v1182_v18 = vadd.f32 %v1181_v42, %v1068_v34  ;;  %v3537_v41 = vpop.f32.mrf.mxu0  ;;  %v1485_v6 = vmul.f32 %v3456_v19, %v3456_v19 }
 0x17b   : > { %1864 = vst [vmem:[%s2752_s27 + $0x30] sm:$0xff] %v3537_v41  ;;  %v3544_v7 = vpop.f32.mrf.mxu1  ;;  %v4151_v50 = vmax.f32 %v2982_v17, 0.0  ;;  %v4152_v34 = vmax.f32 %v2994_v38, 0.0  ;;  %v2005_v42 = vmul.f32 %v3458_v28, %v3458_v28  ;;  %v2008_v17 = vmul.f32 %v3490_v8, %v3490_v8 }
 0x17c   : > { %v1365_v62 = vadd.f32 %v1364_v12, %v3440_v27  ;;  %v1515_v33 = vadd.f32 %v1514_v61, %v1481_v37  ;;  %1276 = vst [vmem:[%s2747_s22 + $0x28] sm:$0xff] %v1182_v18  ;;  %v1374_v1 = vadd.f32 %v1373_v40, %v1182_v18  ;;  %v1428_v59 = vmul.f32 %v1182_v18, %v1182_v18 }
 0x17d   : > { %1865 = vst [vmem:[%s2752_s27 + $0x38] sm:$0xff] %v3544_v7  ;;  %1118 = vmatmul.f32.gmra.mxu2 %v4145_v44  ;;  %1705 = vmatmul.f32.gmra.mxu0 %v1619_v3  ;;  %v2006_v37 = vmul.f32 %v3463_v57, %v3463_v57  ;;  %v2007_v12 = vmul.f32 %v3485_v48, %v3485_v48 }
 0x17e   : > { %v3555_v21 = vadd.f32 %v1365_v62, %v3456_v19  ;;  %v1516_v27 = vadd.f32 %v1515_v33, %v1483_v54  ;;  %v1525_v20 = vadd.f32 %v1524_v55, %v1428_v59  ;;  %1818 = vmatmul.f32.gmra.mxu1 %v1619_v3  ;;  %v1923_v38 = vadd.f32 %v3485_v48, %v3458_v28 }
 0x17f   : > { %1231 = vmatmul.f32.gmra.mxu3 %v4146_v14  ;;  %v2009_v18 = vmul.f32 %v3511_v39, %v3511_v39  ;;  %v2010_v3 = vmul.f32 %v3518_v47, %v3518_v47  ;;  %v2069_v59 = vadd.f32 %v2007_v12, %v2005_v42  ;;  %v2106_v44 = vadd.f32 %v2008_v17, %v2006_v37  ;;  %v4156_v37 = vld [vmem:[#allocation12_spill] sm:$0xff] }
 0x180   : > { %v3559_v29 = vadd.f32 %v1516_v27, %v1485_v6  ;;  %v1071_v24 = vpop.f32.mrf.mxu2  ;;  %v1960_v6 = vadd.f32 %v3490_v8, %v3463_v57  ;;  %v1924_v27 = vadd.f32 %v1923_v38, %v3511_v39  ;;  %v2011_v48 = vmul.f32 %v3537_v41, %v3537_v41 }
 0x181   : > { %v1184_v10 = vpop.f32.mrf.mxu3  ;;  %v4153_v57 = vmax.f32 %v3014_v30, 0.0  ;;  %v4157_v12 = vmax.f32 %v4156_v37, 0.0  ;;  %v1627_v37 = vld [vmem:[%s2728_s3 + $0xd8] sm:$0xff] }
 0x182   : > { %v1185_v4 = vadd.f32 %v1184_v10, %v1071_v24  ;;  %v3561_v51 = vpop.f32.mrf.mxu0  ;;  %v2070_v10 = vadd.f32 %v2069_v59, %v2009_v18 }
 0x183   : > { %1866 = vst [vmem:[%s2752_s27 + $0x40] sm:$0xff] %v3561_v51  ;;  %v3566_v19 = vpop.f32.mrf.mxu1  ;;  %v2013_v8 = vmul.f32 %v3561_v51, %v3561_v51 }
 0x184   : > { %1278 = vst [vmem:[%s2747_s22 + $0x38] sm:$0xff] %v1185_v4  ;;  %v1375_v22 = vadd.f32 %v1374_v1, %v1185_v4  ;;  %v1430_v11 = vmul.f32 %v1185_v4, %v1185_v4  ;;  %v1623_v1 = vld [vmem:[%s2728_s3 + $0xb8] sm:$0xff]  ;;  %v1961_v4 = vadd.f32 %v1960_v6, %v3518_v47  ;;  %v2014_v39 = vmul.f32 %v3566_v19, %v3566_v19 }
 0x185   : > { %1867 = vst [vmem:[%s2752_s27 + $0x48] sm:$0xff] %v3566_v19  ;;  %1121 = vmatmul.f32.gmra.mxu2 %v4147_v53  ;;  %1708 = vmatmul.f32.gmra.mxu0 %v1620_v5  ;;  %v1925_v47 = vadd.f32 %v1924_v27, %v3537_v41 }
 0x186   : > { %v1526_v2 = vadd.f32 %v1525_v20, %v1430_v11  ;;  %1821 = vmatmul.f32.gmra.mxu1 %v1620_v5  ;;  %v2012_v20 = vmul.f32 %v3544_v7, %v3544_v7  ;;  %v2107_v5 = vadd.f32 %v2106_v44, %v2010_v3  ;;  %v4154_v11 = vld [vmem:[#allocation11_spill] sm:$0xff] }
 0x187   : > { %1234 = vmatmul.f32.gmra.mxu3 %v4148_v56  ;;  %v4155_v53 = vmax.f32 %v4154_v11, 0.0  ;;  %v2071_v56 = vadd.f32 %v2070_v10, %v2011_v48  ;;  %v4160_v11 = vld [vmem:[#allocation14_spill] sm:$0xff] }
 0x188   : > { %v1074_v9 = vpop.f32.mrf.mxu2  ;;  %v2108_v30 = vadd.f32 %v2107_v5, %v2012_v20 }
 0x189   : > { %v1187_v60 = vpop.f32.mrf.mxu3 }
 0x18a   : > { %v1188_v0 = vadd.f32 %v1187_v60, %v1074_v9  ;;  %v3575_v13 = vpop.f32.mrf.mxu0  ;;  %v2109_v41 = vadd.f32 %v2108_v30, %v2014_v39 }
 0x18b   : > { %1868 = vst [vmem:[%s2752_s27 + $0x50] sm:$0xff] %v3575_v13  ;;  %v3580_v32 = vpop.f32.mrf.mxu1  ;;  %v2015_v9 = vmul.f32 %v3575_v13, %v3575_v13 }
 0x18c   : > { %1280 = vst [vmem:[%s2747_s22 + $0x48] sm:$0xff] %v1188_v0  ;;  %v1376_v36 = vadd.f32 %v1375_v22, %v1188_v0  ;;  %v1432_v40 = vmul.f32 %v1188_v0, %v1188_v0  ;;  %v2016_v60 = vmul.f32 %v3580_v32, %v3580_v32 }
 0x18d   : > { %1869 = vst [vmem:[%s2752_s27 + $0x58] sm:$0xff] %v3580_v32  ;;  %1124 = vmatmul.f32.gmra.mxu2 %v4149_v43  ;;  %1711 = vmatmul.f32.gmra.mxu0 %v1621_v35  ;;  %v2072_v43 = vadd.f32 %v2071_v56, %v2013_v8  ;;  %v4162_v56 = vld [vmem:[#allocation15_spill] sm:$0xff] }
 0x18e   : > { %v1527_v49 = vadd.f32 %v1526_v2, %v1432_v40  ;;  %1824 = vmatmul.f32.gmra.mxu1 %v1621_v35  ;;  %v1962_v2 = vadd.f32 %v1961_v4, %v3544_v7  ;;  %v1926_v35 = vadd.f32 %v1925_v47, %v3561_v51  ;;  %v4163_v30 = vmax.f32 %v4162_v56, 0.0 }
 0x18f   : > { %1237 = vmatmul.f32.gmra.mxu3 %v4150_v52 }
 0x190   : > { %v1077_v26 = vpop.f32.mrf.mxu2 }
 0x191   : > { %v1190_v16 = vpop.f32.mrf.mxu3 }
 0x192   : > { %v1191_v31 = vadd.f32 %v1190_v16, %v1077_v26  ;;  %v3589_v55 = vpop.f32.mrf.mxu0  ;;  %v1624_v26 = vld [vmem:[%s2728_s3 + $0xc0] sm:$0xff]  ;;  %v1927_v16 = vadd.f32 %v1926_v35, %v3575_v13 }
 0x193   : > { %1870 = vst [vmem:[%s2752_s27 + $0x60] sm:$0xff] %v3589_v55  ;;  %v3594_v63 = vpop.f32.mrf.mxu1  ;;  %v2017_v7 = vmul.f32 %v3589_v55, %v3589_v55 }
 0x194   : > { %1282 = vst [vmem:[%s2747_s22 + $0x58] sm:$0xff] %v1191_v31  ;;  %v1377_v15 = vadd.f32 %v1376_v36, %v1191_v31  ;;  %v1434_v45 = vmul.f32 %v1191_v31, %v1191_v31  ;;  %v1963_v36 = vadd.f32 %v1962_v2, %v3566_v19  ;;  %v2018_v51 = vmul.f32 %v3594_v63, %v3594_v63 }
 0x195   : > { %1871 = vst [vmem:[%s2752_s27 + $0x68] sm:$0xff] %v3594_v63  ;;  %1127 = vmatmul.f32.gmra.mxu2 %v4151_v50  ;;  %1714 = vmatmul.f32.gmra.mxu0 %v1622_v46  ;;  %v2073_v19 = vadd.f32 %v2072_v43, %v2015_v9 }
 0x196   : > { %v1528_v23 = vadd.f32 %v1527_v49, %v1434_v45  ;;  %1827 = vmatmul.f32.gmra.mxu1 %v1622_v46  ;;  %v1964_v31 = vadd.f32 %v1963_v36, %v3580_v32  ;;  %v1626_v36 = vld [vmem:[%s2728_s3 + $0xd0] sm:$0xff] }
 0x197   : > { %1240 = vmatmul.f32.gmra.mxu3 %v4152_v34  ;;  %v2074_v13 = vadd.f32 %v2073_v19, %v2017_v7 }
 0x198   : > { %v1080_v61 = vpop.f32.mrf.mxu2  ;;  %v1965_v32 = vadd.f32 %v1964_v31, %v3594_v63  ;;  %v4164_v31 = vld [vmem:[#allocation16_spill] sm:$0xff] }
 0x199   : > { %v1193_v54 = vpop.f32.mrf.mxu3 }
 0x19a   : > { %v1194_v62 = vadd.f32 %v1193_v54, %v1080_v61  ;;  %v1670_v33 = vpop.f32.mrf.mxu0  ;;  %v4158_v61 = vld [vmem:[#allocation13_spill] sm:$0xff] }
 0x19b   : > { %1872 = vst [vmem:[%s2752_s27 + $0x70] sm:$0xff] %v1670_v33  ;;  %v1783_v28 = vpop.f32.mrf.mxu1  ;;  %v2019_v34 = vmul.f32 %v1670_v33, %v1670_v33  ;;  %v4159_v38 = vmax.f32 %v4158_v61, 0.0 }
 0x19c   : > { %1284 = vst [vmem:[%s2747_s22 + $0x68] sm:$0xff] %v1194_v62  ;;  %v1378_v14 = vadd.f32 %v1377_v15, %v1194_v62  ;;  %v1436_v24 = vmul.f32 %v1194_v62, %v1194_v62  ;;  %v2110_v15 = vadd.f32 %v2109_v41, %v2016_v60  ;;  %v2020_v42 = vmul.f32 %v1783_v28, %v1783_v28 }
 0x19d   : > { %1873 = vst [vmem:[%s2752_s27 + $0x78] sm:$0xff] %v1783_v28  ;;  %1130 = vmatmul.f32.gmra.mxu2 %v4153_v57  ;;  %1717 = vmatmul.f32.gmra.mxu0 %v1623_v1  ;;  %v1966_v62 = vadd.f32 %v1965_v32, %v1783_v28  ;;  %v2075_v6 = vadd.f32 %v2074_v13, %v2019_v34 }
 0x19e   : > { %v1529_v22 = vadd.f32 %v1528_v23, %v1436_v24  ;;  %1830 = vmatmul.f32.gmra.mxu1 %v1623_v1  ;;  %v1928_v23 = vadd.f32 %v1927_v16, %v3589_v55  ;;  %v2111_v18 = vadd.f32 %v2110_v15, %v2018_v51  ;;  %v4165_v51 = vmax.f32 %v4164_v31, 0.0  ;;  %v4166_v15 = vld [vmem:[#allocation17_spill] sm:$0xff] }
 0x19f   : > { %1243 = vmatmul.f32.gmra.mxu3 %v4155_v53  ;;  %v4161_v53 = vmax.f32 %v4160_v11, 0.0 }
 0x1a0   : > { %v1083_v0 = vpop.f32.mrf.mxu2  ;;  %v1929_v3 = vadd.f32 %v1928_v23, %v1670_v33  ;;  %v2112_v44 = vadd.f32 %v2111_v18, %v2020_v42 }
 0x1a1   : > { %v1196_v40 = vpop.f32.mrf.mxu3 }
 0x1a2   : > { %v1197_v49 = vadd.f32 %v1196_v40, %v1083_v0  ;;  %v1673_v52 = vpop.f32.mrf.mxu0 }
 0x1a3   : > { %1874 = vst [vmem:[%s2752_s27 + $0x80] sm:$0xff] %v1673_v52  ;;  %v1786_v46 = vpop.f32.mrf.mxu1  ;;  %v2021_v55 = vmul.f32 %v1673_v52, %v1673_v52  ;;  %v1930_v59 = vadd.f32 %v1929_v3, %v1673_v52 }
 0x1a4   : > { %1286 = vst [vmem:[%s2747_s22 + $0x78] sm:$0xff] %v1197_v49  ;;  %v1379_v45 = vadd.f32 %v1378_v14, %v1197_v49  ;;  %v1438_v50 = vmul.f32 %v1197_v49, %v1197_v49  ;;  %v2022_v54 = vmul.f32 %v1786_v46, %v1786_v46  ;;  %v1967_v48 = vadd.f32 %v1966_v62, %v1786_v46  ;;  %v1625_v14 = vld [vmem:[%s2728_s3 + $0xc8] sm:$0xff] }
 0x1a5   : > { %1875 = vst [vmem:[%s2752_s27 + $0x88] sm:$0xff] %v1786_v46  ;;  %1133 = vmatmul.f32.gmra.mxu2 %v4157_v12  ;;  %1720 = vmatmul.f32.gmra.mxu0 %v1624_v26  ;;  %v2076_v24 = vadd.f32 %v2075_v6, %v2021_v55  ;;  %v4168_v55 = vld [vmem:[#allocation18_spill] sm:$0xff] }
 0x1a6   : > { %v1530_v17 = vadd.f32 %v1529_v22, %v1438_v50  ;;  %1833 = vmatmul.f32.gmra.mxu1 %v1624_v26  ;;  %v2113_v10 = vadd.f32 %v2112_v44, %v2022_v54  ;;  %v4169_v54 = vmax.f32 %v4168_v55, 0.0  ;;  %v4181_v55 = vmax.f32 %v3248_v25, 0.0  ;;  %v4182_v25 = vld [vmem:[#allocation24_spill] sm:$0xff] }
 0x1a7   : > { %1246 = vmatmul.f32.gmra.mxu3 %v4159_v38 }
 0x1a8   : > { %v1086_v1 = vpop.f32.mrf.mxu2 }
 0x1a9   : > { %v1199_v27 = vpop.f32.mrf.mxu3 }
 0x1aa   : > { %v1200_v63 = vadd.f32 %v1199_v27, %v1086_v1  ;;  %v1676_v20 = vpop.f32.mrf.mxu0 }
 0x1ab   : > { %1876 = vst [vmem:[%s2752_s27 + $0x90] sm:$0xff] %v1676_v20  ;;  %v1931_v4 = vadd.f32 %v1930_v59, %v1676_v20  ;;  %v2023_v5 = vmul.f32 %v1676_v20, %v1676_v20  ;;  %v1789_v33 = vpop.f32.mrf.mxu1  ;;  %v4170_v59 = vld [vmem:[#allocation19_spill] sm:$0xff] }
 0x1ac   : > { %1288 = vst [vmem:[%s2747_s22 + $0x88] sm:$0xff] %v1200_v63  ;;  %v1380_v57 = vadd.f32 %v1379_v45, %v1200_v63  ;;  %v1440_v28 = vmul.f32 %v1200_v63, %v1200_v63  ;;  %v1968_v8 = vadd.f32 %v1967_v48, %v1789_v33  ;;  %v2024_v39 = vmul.f32 %v1789_v33, %v1789_v33  ;;  %v1628_v20 = vld [vmem:[%s2728_s3 + $0xe0] sm:$0xff] }
 0x1ad   : > { %v2077_v22 = vadd.f32 %v2076_v24, %v2023_v5  ;;  %1877 = vst [vmem:[%s2752_s27 + $0x98] sm:$0xff] %v1789_v33  ;;  %1136 = vmatmul.f32.gmra.mxu2 %v4161_v53  ;;  %1723 = vmatmul.f32.gmra.mxu0 %v1625_v14  ;;  %v4167_v45 = vmax.f32 %v4166_v15, 0.0  ;;  %v4171_v6 = vmax.f32 %v4170_v59, 0.0  ;;  %v4174_v53 = vld [vmem:[#allocation21_spill] sm:$0xff] }
 0x1ae   : > { %v1531_v47 = vadd.f32 %v1530_v17, %v1440_v28  ;;  %v2114_v2 = vadd.f32 %v2113_v10, %v2024_v39  ;;  %1836 = vmatmul.f32.gmra.mxu1 %v1625_v14 }
 0x1af   : > { %1249 = vmatmul.f32.gmra.mxu3 %v4163_v30 }
 0x1b0   : > { %v1089_v9 = vpop.f32.mrf.mxu2 }
 0x1b1   : > { %v1202_v60 = vpop.f32.mrf.mxu3 }
 0x1b2   : > { %v1203_v0 = vadd.f32 %v1202_v60, %v1089_v9  ;;  %v1679_v35 = vpop.f32.mrf.mxu0  ;;  %v1629_v60 = vld [vmem:[%s2728_s3 + $0xe8] sm:$0xff] }
 0x1b3   : > { %1878 = vst [vmem:[%s2752_s27 + $0xa0] sm:$0xff] %v1679_v35  ;;  %v1932_v40 = vadd.f32 %v1931_v4, %v1679_v35  ;;  %v2025_v43 = vmul.f32 %v1679_v35, %v1679_v35  ;;  %v1792_v41 = vpop.f32.mrf.mxu1 }
 0x1b4   : > { %1290 = vst [vmem:[%s2747_s22 + $0x98] sm:$0xff] %v1203_v0  ;;  %v1381_v7 = vadd.f32 %v1380_v57, %v1203_v0  ;;  %v1442_v49 = vmul.f32 %v1203_v0, %v1203_v0  ;;  %v1969_v52 = vadd.f32 %v1968_v8, %v1792_v41  ;;  %v2026_v26 = vmul.f32 %v1792_v41, %v1792_v41  ;;  %v4172_v8 = vld [vmem:[#allocation20_spill] sm:$0xff] }
 0x1b5   : > { %v2078_v16 = vadd.f32 %v2077_v22, %v2025_v43  ;;  %1879 = vst [vmem:[%s2752_s27 + $0xa8] sm:$0xff] %v1792_v41  ;;  %1139 = vmatmul.f32.gmra.mxu2 %v4165_v51  ;;  %1726 = vmatmul.f32.gmra.mxu0 %v1626_v36  ;;  %v4173_v39 = vmax.f32 %v4172_v8, 0.0  ;;  %v4178_v51 = vld [vmem:[#allocation23_spill] sm:$0xff] }
 0x1b6   : > { %v1532_v46 = vadd.f32 %v1531_v47, %v1442_v49  ;;  %v2115_v19 = vadd.f32 %v2114_v2, %v2026_v26  ;;  %1839 = vmatmul.f32.gmra.mxu1 %v1626_v36  ;;  %v4175_v47 = vmax.f32 %v4174_v53, 0.0 }
 0x1b7   : > { %1252 = vmatmul.f32.gmra.mxu3 %v4167_v45 }
 0x1b8   : > { %v1092_v50 = vpop.f32.mrf.mxu2 }
 0x1b9   : > { %v1205_v23 = vpop.f32.mrf.mxu3 }
 0x1ba   : > { %v1206_v34 = vadd.f32 %v1205_v23, %v1092_v50  ;;  %v1682_v42 = vpop.f32.mrf.mxu0  ;;  %v1630_v23 = vld [vmem:[%s2728_s3 + $0xf0] sm:$0xff] }
 0x1bb   : > { %1880 = vst [vmem:[%s2752_s27 + $0xb0] sm:$0xff] %v1682_v42  ;;  %v1933_v12 = vadd.f32 %v1932_v40, %v1682_v42  ;;  %v2027_v13 = vmul.f32 %v1682_v42, %v1682_v42  ;;  %v1795_v32 = vpop.f32.mrf.mxu1 }
 0x1bc   : > { %1292 = vst [vmem:[%s2747_s22 + $0xa8] sm:$0xff] %v1206_v34  ;;  %v1382_v17 = vadd.f32 %v1381_v7, %v1206_v34  ;;  %v1444_v61 = vmul.f32 %v1206_v34, %v1206_v34  ;;  %v1970_v38 = vadd.f32 %v1969_v52, %v1795_v32  ;;  %v2028_v18 = vmul.f32 %v1795_v32, %v1795_v32  ;;  %v4176_v52 = vld [vmem:[#allocation22_spill] sm:$0xff] }
 0x1bd   : > { %v2079_v3 = vadd.f32 %v2078_v16, %v2027_v13  ;;  %1881 = vst [vmem:[%s2752_s27 + $0xb8] sm:$0xff] %v1795_v32  ;;  %1142 = vmatmul.f32.gmra.mxu2 %v4169_v54  ;;  %1729 = vmatmul.f32.gmra.mxu0 %v1627_v37  ;;  %v4177_v26 = vmax.f32 %v4176_v52, 0.0 }
 0x1be   : > { %v1533_v62 = vadd.f32 %v1532_v46, %v1444_v61  ;;  %v2116_v1 = vadd.f32 %v2115_v19, %v2028_v18  ;;  %1842 = vmatmul.f32.gmra.mxu1 %v1627_v37  ;;  %v4179_v46 = vmax.f32 %v4178_v51, 0.0 }
 0x1bf   : > { %1255 = vmatmul.f32.gmra.mxu3 %v4171_v6  ;;  %v1631_v6 = vld [vmem:[%s2728_s3 + $0xf8] sm:$0xff] }
 0x1c0   : > { %v1095_v44 = vpop.f32.mrf.mxu2 }
 0x1c1   : > { %v1208_v27 = vpop.f32.mrf.mxu3 }
 0x1c2   : > { %v1209_v48 = vadd.f32 %v1208_v27, %v1095_v44  ;;  %v1685_v63 = vpop.f32.mrf.mxu0 }
 0x1c3   : > { %1882 = vst [vmem:[%s2752_s27 + $0xc0] sm:$0xff] %v1685_v63  ;;  %v1934_v14 = vadd.f32 %v1933_v12, %v1685_v63  ;;  %v2029_v24 = vmul.f32 %v1685_v63, %v1685_v63  ;;  %v1798_v10 = vpop.f32.mrf.mxu1 }
 0x1c4   : > { %1294 = vst [vmem:[%s2747_s22 + $0xb8] sm:$0xff] %v1209_v48  ;;  %v1383_v4 = vadd.f32 %v1382_v17, %v1209_v48  ;;  %v1446_v5 = vmul.f32 %v1209_v48, %v1209_v48  ;;  %v1971_v33 = vadd.f32 %v1970_v38, %v1798_v10  ;;  %v2030_v57 = vmul.f32 %v1798_v10, %v1798_v10 }
 0x1c5   : > { %v2080_v28 = vadd.f32 %v2079_v3, %v2029_v24  ;;  %1883 = vst [vmem:[%s2752_s27 + $0xc8] sm:$0xff] %v1798_v10  ;;  %1145 = vmatmul.f32.gmra.mxu2 %v4173_v39  ;;  %1732 = vmatmul.f32.gmra.mxu0 %v1628_v20  ;;  %v4180_v38 = vmax.f32 %v3238_v58, 0.0  ;;  %v4183_v10 = vmax.f32 %v4182_v25, 0.0 }
 0x1c6   : > { %v1534_v22 = vadd.f32 %v1533_v62, %v1446_v5  ;;  %v2117_v11 = vadd.f32 %v2116_v1, %v2030_v57  ;;  %1845 = vmatmul.f32.gmra.mxu1 %v1628_v20 }
 0x1c7   : > { %1258 = vmatmul.f32.gmra.mxu3 %v4175_v47 }
 0x1c8   : > { %v1098_v2 = vpop.f32.mrf.mxu2 }
 0x1c9   : > { %v1211_v56 = vpop.f32.mrf.mxu3 }
 0x1ca   : > { %v1212_v30 = vadd.f32 %v1211_v56, %v1098_v2  ;;  %v1688_v9 = vpop.f32.mrf.mxu0 }
 0x1cb   : > { %1884 = vst [vmem:[%s2752_s27 + $0xd0] sm:$0xff] %v1688_v9  ;;  %v1935_v0 = vadd.f32 %v1934_v14, %v1688_v9  ;;  %v2031_v35 = vmul.f32 %v1688_v9, %v1688_v9  ;;  %v1801_v36 = vpop.f32.mrf.mxu1 }
 0x1cc   : > { %1296 = vst [vmem:[%s2747_s22 + $0xc8] sm:$0xff] %v1212_v30  ;;  %v1384_v40 = vadd.f32 %v1383_v4, %v1212_v30  ;;  %v1448_v43 = vmul.f32 %v1212_v30, %v1212_v30  ;;  %v1972_v41 = vadd.f32 %v1971_v33, %v1801_v36  ;;  %v2032_v7 = vmul.f32 %v1801_v36, %v1801_v36  ;;  %v4184_v33 = vld [vmem:[#allocation25_spill] sm:$0xff] }
 0x1cd   : > { %v2081_v49 = vadd.f32 %v2080_v28, %v2031_v35  ;;  %1885 = vst [vmem:[%s2752_s27 + $0xd8] sm:$0xff] %v1801_v36  ;;  %1148 = vmatmul.f32.gmra.mxu2 %v4177_v26  ;;  %1735 = vmatmul.f32.gmra.mxu0 %v1629_v60  ;;  %v4185_v57 = vmax.f32 %v4184_v33, 0.0 }
 0x1ce   : > { %v1535_v16 = vadd.f32 %v1534_v22, %v1448_v43  ;;  %v2118_v31 = vadd.f32 %v2117_v11, %v2032_v7  ;;  %1848 = vmatmul.f32.gmra.mxu1 %v1629_v60 }
 0x1cf   : > { %1261 = vmatmul.f32.gmra.mxu3 %v4179_v46 }
 0x1d0   : > { %v1101_v19 = vpop.f32.mrf.mxu2 }
 0x1d1   : > { %v1214_v15 = vpop.f32.mrf.mxu3 }
 0x1d2   : > { %v1215_v45 = vadd.f32 %v1214_v15, %v1101_v19  ;;  %v1691_v50 = vpop.f32.mrf.mxu0 }
 0x1d3   : > { %1886 = vst [vmem:[%s2752_s27 + $0xe0] sm:$0xff] %v1691_v50  ;;  %v1936_v34 = vadd.f32 %v1935_v0, %v1691_v50  ;;  %v2033_v42 = vmul.f32 %v1691_v50, %v1691_v50  ;;  %v1804_v37 = vpop.f32.mrf.mxu1 }
 0x1d4   : > { %1298 = vst [vmem:[%s2747_s22 + $0xd8] sm:$0xff] %v1215_v45  ;;  %v1385_v12 = vadd.f32 %v1384_v40, %v1215_v45  ;;  %v1450_v13 = vmul.f32 %v1215_v45, %v1215_v45  ;;  %v1973_v32 = vadd.f32 %v1972_v41, %v1804_v37  ;;  %v2034_v17 = vmul.f32 %v1804_v37, %v1804_v37 }
 0x1d5   : > { %v2082_v61 = vadd.f32 %v2081_v49, %v2033_v42  ;;  %1887 = vst [vmem:[%s2752_s27 + $0xe8] sm:$0xff] %v1804_v37  ;;  %1151 = vmatmul.f32.gmra.mxu2 %v4180_v38  ;;  %1738 = vmatmul.f32.gmra.mxu0 %v1630_v23 }
 0x1d6   : > { %v1536_v18 = vadd.f32 %v1535_v16, %v1450_v13  ;;  %v2119_v3 = vadd.f32 %v2118_v31, %v2034_v17  ;;  %1851 = vmatmul.f32.gmra.mxu1 %v1630_v23 }
 0x1d7   : > { %1264 = vmatmul.f32.gmra.mxu3 %v4181_v55 }
 0x1d8   : > { %v1104_v54 = vpop.f32.mrf.mxu2 }
 0x1d9   : > { %v1217_v62 = vpop.f32.mrf.mxu3 }
 0x1da   : > { %v1218_v1 = vadd.f32 %v1217_v62, %v1104_v54  ;;  %v1694_v59 = vpop.f32.mrf.mxu0 }
 0x1db   : > { %1888 = vst [vmem:[%s2752_s27 + $0xf0] sm:$0xff] %v1694_v59  ;;  %v1937_v44 = vadd.f32 %v1936_v34, %v1694_v59  ;;  %v2035_v27 = vmul.f32 %v1694_v59, %v1694_v59  ;;  %v1807_v48 = vpop.f32.mrf.mxu1 }
 0x1dc   : > { %1300 = vst [vmem:[%s2747_s22 + $0xe8] sm:$0xff] %v1218_v1  ;;  %v1386_v58 = vadd.f32 %v1385_v12, %v1218_v1  ;;  %v1452_v63 = vmul.f32 %v1218_v1, %v1218_v1  ;;  %v1974_v20 = vadd.f32 %v1973_v32, %v1807_v48  ;;  %v2036_v14 = vmul.f32 %v1807_v48, %v1807_v48 }
 0x1dd   : > { %v2083_v24 = vadd.f32 %v2082_v61, %v2035_v27  ;;  %1889 = vst [vmem:[%s2752_s27 + $0xf8] sm:$0xff] %v1807_v48  ;;  %1154 = vmatmul.f32.gmra.mxu2 %v4183_v10  ;;  %1741 = vmatmul.f32.gmra.mxu0 %v1631_v6 }
 0x1de   : > { %v1537_v4 = vadd.f32 %v1536_v18, %v1452_v63  ;;  %v2120_v5 = vadd.f32 %v2119_v3, %v2036_v14  ;;  %1854 = vmatmul.f32.gmra.mxu1 %v1631_v6 }
 0x1df   : > { %1267 = vmatmul.f32.gmra.mxu3 %v4185_v57 }
 0x1e0   : > { %v1107_v28 = vpop.f32.mrf.mxu2 }
 0x1e1   : > { %v1220_v8 = vpop.f32.mrf.mxu3 }
 0x1e2   : > { %v1221_v39 = vadd.f32 %v1220_v8, %v1107_v28  ;;  %v1697_v22 = vpop.f32.mrf.mxu0 }
 0x1e3   : > { %1890 = vst [vmem:[%s2752_s27 + $0x100] sm:$0xff] %v1697_v22  ;;  %v1938_v11 = vadd.f32 %v1937_v44, %v1697_v22  ;;  %v2037_v53 = vmul.f32 %v1697_v22, %v1697_v22  ;;  %v1810_v47 = vpop.f32.mrf.mxu1 }
 0x1e4   : > { %1302 = vst [vmem:[%s2747_s22 + $0xf8] sm:$0xff] %v1221_v39  ;;  %v1387_v2 = vadd.f32 %v1386_v58, %v1221_v39  ;;  %v1454_v56 = vmul.f32 %v1221_v39, %v1221_v39  ;;  %v1975_v30 = vadd.f32 %v1974_v20, %v1810_v47  ;;  %v2038_v9 = vmul.f32 %v1810_v47, %v1810_v47 }
 0x1e5   : > { %v2084_v60 = vadd.f32 %v2083_v24, %v2037_v53  ;;  %1891 = vst [vmem:[%s2752_s27 + $0x108] sm:$0xff] %v1810_v47 }
 0x1e6   : > { %v1538_v0 = vadd.f32 %v1537_v4, %v1454_v56  ;;  %v2121_v35 = vadd.f32 %v2120_v5, %v2038_v9 }
 0x1e8   : > { %v1110_v36 = vpop.f32.mrf.mxu2 }
 0x1e9   : > { %v1223_v40 = vpop.f32.mrf.mxu3 }
 0x1ea   : > { %v1224_v43 = vadd.f32 %v1223_v40, %v1110_v36  ;;  %v1700_v41 = vpop.f32.mrf.mxu0 }
 0x1eb   : > { %1892 = vst [vmem:[%s2752_s27 + $0x110] sm:$0xff] %v1700_v41  ;;  %v1939_v7 = vadd.f32 %v1938_v11, %v1700_v41  ;;  %v2039_v49 = vmul.f32 %v1700_v41, %v1700_v41  ;;  %v1813_v52 = vpop.f32.mrf.mxu1 }
 0x1ec   : > { %1304 = vst [vmem:[%s2747_s22 + $0x108] sm:$0xff] %v1224_v43  ;;  %v1388_v26 = vadd.f32 %v1387_v2, %v1224_v43  ;;  %v1456_v16 = vmul.f32 %v1224_v43, %v1224_v43  ;;  %v1976_v31 = vadd.f32 %v1975_v30, %v1813_v52  ;;  %v2040_v51 = vmul.f32 %v1813_v52, %v1813_v52 }
 0x1ed   : > { %v2085_v46 = vadd.f32 %v2084_v60, %v2039_v49  ;;  %1893 = vst [vmem:[%s2752_s27 + $0x118] sm:$0xff] %v1813_v52 }
 0x1ee   : > { %v1539_v19 = vadd.f32 %v1538_v0, %v1456_v16  ;;  %v2122_v15 = vadd.f32 %v2121_v35, %v2040_v51 }
 0x1f0   : > { %v1113_v45 = vpop.f32.mrf.mxu2 }
 0x1f1   : > { %v1226_v50 = vpop.f32.mrf.mxu3 }
 0x1f2   : > { %v1227_v23 = vadd.f32 %v1226_v50, %v1113_v45  ;;  %v1703_v34 = vpop.f32.mrf.mxu0 }
 0x1f3   : > { %1894 = vst [vmem:[%s2752_s27 + $0x120] sm:$0xff] %v1703_v34  ;;  %v1940_v42 = vadd.f32 %v1939_v7, %v1703_v34  ;;  %v2041_v37 = vmul.f32 %v1703_v34, %v1703_v34  ;;  %v1816_v12 = vpop.f32.mrf.mxu1 }
 0x1f4   : > { %1306 = vst [vmem:[%s2747_s22 + $0x118] sm:$0xff] %v1227_v23  ;;  %v1389_v13 = vadd.f32 %v1388_v26, %v1227_v23  ;;  %v1458_v32 = vmul.f32 %v1227_v23, %v1227_v23  ;;  %v1977_v17 = vadd.f32 %v1976_v31, %v1816_v12  ;;  %v2042_v61 = vmul.f32 %v1816_v12, %v1816_v12 }
 0x1f5   : > { %v2086_v38 = vadd.f32 %v2085_v46, %v2041_v37  ;;  %1895 = vst [vmem:[%s2752_s27 + $0x128] sm:$0xff] %v1816_v12 }
 0x1f6   : > { %v1540_v18 = vadd.f32 %v1539_v19, %v1458_v32  ;;  %v2123_v3 = vadd.f32 %v2122_v15, %v2042_v61 }
 0x1f8   : > { %v1116_v55 = vpop.f32.mrf.mxu2 }
 0x1fa   : > { %v1229_v54 = vpop.f32.mrf.mxu3  ;;  %v1706_v1 = vpop.f32.mrf.mxu0 }
 0x1fb   : > { %v1230_v62 = vadd.f32 %v1229_v54, %v1116_v55  ;;  %1896 = vst [vmem:[%s2752_s27 + $0x130] sm:$0xff] %v1706_v1  ;;  %v1941_v59 = vadd.f32 %v1940_v42, %v1706_v1  ;;  %v2043_v6 = vmul.f32 %v1706_v1, %v1706_v1  ;;  %v1819_v44 = vpop.f32.mrf.mxu1 }
 0x1fc   : > { %v1978_v58 = vadd.f32 %v1977_v17, %v1819_v44  ;;  %v2044_v63 = vmul.f32 %v1819_v44, %v1819_v44  ;;  %1897 = vst [vmem:[%s2752_s27 + $0x138] sm:$0xff] %v1819_v44 }
 0x1fd   : > { %1308 = vst [vmem:[%s2747_s22 + $0x128] sm:$0xff] %v1230_v62  ;;  %v1390_v27 = vadd.f32 %v1389_v13, %v1230_v62  ;;  %v1460_v48 = vmul.f32 %v1230_v62, %v1230_v62  ;;  %v2087_v20 = vadd.f32 %v2086_v38, %v2043_v6 }
 0x1fe   : > { %v2124_v24 = vadd.f32 %v2123_v3, %v2044_v63 }
 0x1ff   : > { %v1541_v14 = vadd.f32 %v1540_v18, %v1460_v48 }
 0x200   : > { %v1119_v25 = vpop.f32.mrf.mxu2 }
 0x202   : > { %v1232_v10 = vpop.f32.mrf.mxu3  ;;  %v1709_v5 = vpop.f32.mrf.mxu0 }
 0x203   : > { %v1233_v4 = vadd.f32 %v1232_v10, %v1119_v25  ;;  %1898 = vst [vmem:[%s2752_s27 + $0x140] sm:$0xff] %v1709_v5  ;;  %v3730_v33 = vadd.f32 %v1941_v59, %v1709_v5  ;;  %v2045_v57 = vmul.f32 %v1709_v5, %v1709_v5  ;;  %v1822_v28 = vpop.f32.mrf.mxu1  ;;  %v1367_v25 = vrot.slane %v3555_v21, 4 }
 0x204   : > { %v3733_v22 = vadd.f32 %v1978_v58, %v1822_v28  ;;  %v2046_v11 = vmul.f32 %v1822_v28, %v1822_v28  ;;  %1899 = vst [vmem:[%s2752_s27 + $0x148] sm:$0xff] %v1822_v28 }
 0x205   : > { %1310 = vst [vmem:[%s2747_s22 + $0x138] sm:$0xff] %v1233_v4  ;;  %v1391_v8 = vadd.f32 %v1390_v27, %v1233_v4  ;;  %v1462_v39 = vmul.f32 %v1233_v4, %v1233_v4  ;;  %v3735_v53 = vadd.f32 %v2087_v20, %v2045_v57 }
 0x206   : > { %v3738_v2 = vadd.f32 %v2124_v24, %v2046_v11 }
 0x207   : > { %v1542_v47 = vadd.f32 %v1541_v14, %v1462_v39 }
 0x208   : > { %v1122_v56 = vpop.f32.mrf.mxu2 }
 0x20a   : > { %v1235_v30 = vpop.f32.mrf.mxu3  ;;  %v3740_v60 = vpop.f32.mrf.mxu0 }
 0x20b   : > { %v1236_v9 = vadd.f32 %v1235_v30, %v1122_v56  ;;  %1900 = vst [vmem:[%s2752_s27 + $0x150] sm:$0xff] %v3740_v60  ;;  %v3744_v0 = vpop.f32.mrf.mxu1  ;;  %v2047_v58 = vmul.f32 %v3740_v60, %v3740_v60  ;;  %v1943_v20 = vadd.f32 %v3730_v33, %v3740_v60 }
 0x20c   : > { %1901 = vst [vmem:[%s2752_s27 + $0x158] sm:$0xff] %v3744_v0  ;;  %v2048_v63 = vmul.f32 %v3744_v0, %v3744_v0  ;;  %v1980_v4 = vadd.f32 %v3733_v22, %v3744_v0 }
 0x20d   : > { %1312 = vst [vmem:[%s2747_s22 + $0x148] sm:$0xff] %v1236_v9  ;;  %v3747_v35 = vadd.f32 %v1391_v8, %v1236_v9  ;;  %v1464_v36 = vmul.f32 %v1236_v9, %v1236_v9  ;;  %v2089_v10 = vadd.f32 %v3735_v53, %v2047_v58 }
 0x20e   : > { %v2126_v33 = vadd.f32 %v3738_v2, %v2048_v63 }
 0x20f   : > { %v3751_v40 = vadd.f32 %v1542_v47, %v1464_v36 }
 0x210   : > { %v1125_v43 = vpop.f32.mrf.mxu2 }
 0x212   : > { %v1238_v41 = vpop.f32.mrf.mxu3  ;;  %v3755_v49 = vpop.f32.mrf.mxu0 }
 0x213   : > { %v3753_v7 = vadd.f32 %v1238_v41, %v1125_v43  ;;  %1902 = vst [vmem:[%s2752_s27 + $0x160] sm:$0xff] %v3755_v49  ;;  %v3759_v52 = vpop.f32.mrf.mxu1  ;;  %v2049_v24 = vmul.f32 %v3755_v49, %v3755_v49  ;;  %v1944_v8 = vadd.f32 %v1943_v20, %v3755_v49 }
 0x214   : > { %1903 = vst [vmem:[%s2752_s27 + $0x168] sm:$0xff] %v3759_v52  ;;  %v2050_v5 = vmul.f32 %v3759_v52, %v3759_v52  ;;  %v1981_v53 = vadd.f32 %v1980_v4, %v3759_v52 }
 0x215   : > { %1314 = vst [vmem:[%s2747_s22 + $0x158] sm:$0xff] %v3753_v7  ;;  %v1466_v14 = vmul.f32 %v3753_v7, %v3753_v7  ;;  %v1393_v28 = vadd.f32 %v3747_v35, %v3753_v7  ;;  %v2090_v9 = vadd.f32 %v2089_v10, %v2049_v24 }
 0x216   : > { %v2127_v36 = vadd.f32 %v2126_v33, %v2050_v5 }
 0x217   : > { %v1544_v30 = vadd.f32 %v3751_v40, %v1466_v14 }
 0x218   : > { %v1128_v26 = vpop.f32.mrf.mxu2 }
 0x21a   : > { %v1241_v16 = vpop.f32.mrf.mxu3  ;;  %v3767_v51 = vpop.f32.mrf.mxu0 }
 0x21b   : > { %v3765_v31 = vadd.f32 %v1241_v16, %v1128_v26  ;;  %1904 = vst [vmem:[%s2752_s27 + $0x170] sm:$0xff] %v3767_v51  ;;  %v3771_v46 = vpop.f32.mrf.mxu1  ;;  %v2051_v39 = vmul.f32 %v3767_v51, %v3767_v51  ;;  %v1945_v60 = vadd.f32 %v1944_v8, %v3767_v51 }
 0x21c   : > { %1905 = vst [vmem:[%s2752_s27 + $0x178] sm:$0xff] %v3771_v46  ;;  %v2052_v47 = vmul.f32 %v3771_v46, %v3771_v46  ;;  %v1982_v43 = vadd.f32 %v1981_v53, %v3771_v46 }
 0x21d   : > { %1316 = vst [vmem:[%s2747_s22 + $0x168] sm:$0xff] %v3765_v31  ;;  %v1468_v22 = vmul.f32 %v3765_v31, %v3765_v31  ;;  %v1394_v40 = vadd.f32 %v1393_v28, %v3765_v31  ;;  %v2091_v49 = vadd.f32 %v2090_v9, %v2051_v39 }
 0x21e   : > { %v2128_v51 = vadd.f32 %v2127_v36, %v2052_v47 }
 0x21f   : > { %v1545_v16 = vadd.f32 %v1544_v30, %v1468_v22 }
 0x220   : > { %v1131_v19 = vpop.f32.mrf.mxu2 }
 0x222   : > { %v1244_v15 = vpop.f32.mrf.mxu3  ;;  %v3779_v50 = vpop.f32.mrf.mxu0 }
 0x223   : > { %v3777_v45 = vadd.f32 %v1244_v15, %v1131_v19  ;;  %1906 = vst [vmem:[%s2752_s27 + $0x180] sm:$0xff] %v3779_v50  ;;  %v3783_v23 = vpop.f32.mrf.mxu1  ;;  %v2053_v0 = vmul.f32 %v3779_v50, %v3779_v50  ;;  %v1946_v52 = vadd.f32 %v1945_v60, %v3779_v50 }
 0x224   : > { %1907 = vst [vmem:[%s2752_s27 + $0x188] sm:$0xff] %v3783_v23  ;;  %v2054_v7 = vmul.f32 %v3783_v23, %v3783_v23  ;;  %v1983_v46 = vadd.f32 %v1982_v43, %v3783_v23 }
 0x225   : > { %1318 = vst [vmem:[%s2747_s22 + $0x178] sm:$0xff] %v3777_v45  ;;  %v1470_v41 = vmul.f32 %v3777_v45, %v3777_v45  ;;  %v1395_v15 = vadd.f32 %v1394_v40, %v3777_v45 }
 0x227   : > { %v1546_v50 = vadd.f32 %v1545_v16, %v1470_v41 }
 0x228   : > { %v1134_v34 = vpop.f32.mrf.mxu2 }
 0x22a   : > { %v1247_v42 = vpop.f32.mrf.mxu3  ;;  %v3791_v12 = vpop.f32.mrf.mxu0 }
 0x22b   : > { %v3789_v37 = vadd.f32 %v1247_v42, %v1134_v34  ;;  %1908 = vst [vmem:[%s2752_s27 + $0x190] sm:$0xff] %v3791_v12  ;;  %v3795_v13 = vpop.f32.mrf.mxu1  ;;  %v2055_v26 = vmul.f32 %v3791_v12, %v3791_v12  ;;  %v2092_v34 = vadd.f32 %v2091_v49, %v2053_v0  ;;  %v1947_v42 = vadd.f32 %v1946_v52, %v3791_v12 }
 0x22c   : > { %1909 = vst [vmem:[%s2752_s27 + $0x198] sm:$0xff] %v3795_v13  ;;  %v2056_v19 = vmul.f32 %v3795_v13, %v3795_v13 }
 0x22d   : > { %1320 = vst [vmem:[%s2747_s22 + $0x188] sm:$0xff] %v3789_v37  ;;  %v1396_v24 = vadd.f32 %v1395_v15, %v3789_v37 }
 0x230   : > { %v1137_v32 = vpop.f32.mrf.mxu2 }
 0x232   : > { %v1250_v17 = vpop.f32.mrf.mxu3  ;;  %v3803_v38 = vpop.f32.mrf.mxu0 }
 0x233   : > { %v3801_v61 = vadd.f32 %v1250_v17, %v1137_v32  ;;  %1910 = vst [vmem:[%s2752_s27 + $0x1a0] sm:$0xff] %v3803_v38  ;;  %v3807_v18 = vpop.f32.mrf.mxu1  ;;  %v2057_v31 = vmul.f32 %v3803_v38, %v3803_v38  ;;  %v2129_v32 = vadd.f32 %v2128_v51, %v2054_v7  ;;  %v1984_v17 = vadd.f32 %v1983_v46, %v3795_v13 }
 0x234   : > { %1911 = vst [vmem:[%s2752_s27 + $0x1a8] sm:$0xff] %v3807_v18  ;;  %v1948_v45 = vadd.f32 %v1947_v42, %v3803_v38 }
 0x235   : > { %1322 = vst [vmem:[%s2747_s22 + $0x198] sm:$0xff] %v3801_v61  ;;  %v2130_v58 = vadd.f32 %v2129_v32, %v2056_v19  ;;  %v1985_v63 = vadd.f32 %v1984_v17, %v3807_v18 }
 0x238   : > { %v1140_v3 = vpop.f32.mrf.mxu2 }
 0x23a   : > { %v1253_v55 = vpop.f32.mrf.mxu3  ;;  %v3815_v62 = vpop.f32.mrf.mxu0 }
 0x23b   : > { %v3813_v54 = vadd.f32 %v1253_v55, %v1140_v3  ;;  %1912 = vst [vmem:[%s2752_s27 + $0x1b0] sm:$0xff] %v3815_v62  ;;  %v3819_v1 = vpop.f32.mrf.mxu1  ;;  %v2058_v3 = vmul.f32 %v3807_v18, %v3807_v18  ;;  %v1472_v55 = vmul.f32 %v3789_v37, %v3789_v37  ;;  %v2059_v12 = vmul.f32 %v3815_v62, %v3815_v62 }
 0x23c   : > { %1913 = vst [vmem:[%s2752_s27 + $0x1b8] sm:$0xff] %v3819_v1  ;;  %v2060_v13 = vmul.f32 %v3819_v1, %v3819_v1  ;;  %v1949_v38 = vadd.f32 %v1948_v45, %v3815_v62  ;;  %v1474_v18 = vmul.f32 %v3801_v61, %v3801_v61  ;;  %v1986_v33 = vadd.f32 %v1985_v63, %v3819_v1 }
 0x23d   : > { %1324 = vst [vmem:[%s2747_s22 + $0x1a8] sm:$0xff] %v3813_v54  ;;  %v1547_v37 = vadd.f32 %v1546_v50, %v1472_v55  ;;  %v1397_v1 = vadd.f32 %v1396_v24, %v3801_v61  ;;  %v1518_v55 = vrot.slane %v3559_v29, 4 }
 0x23f   : > { %v1548_v0 = vadd.f32 %v1547_v37, %v1474_v18  ;;  %v1398_v7 = vadd.f32 %v1397_v1, %v3813_v54 }
 0x240   : > { %v1143_v59 = vpop.f32.mrf.mxu2 }
 0x242   : > { %v1256_v6 = vpop.f32.mrf.mxu3  ;;  %v3827_v27 = vpop.f32.mrf.mxu0 }
 0x243   : > { %v3825_v44 = vadd.f32 %v1256_v6, %v1143_v59  ;;  %1914 = vst [vmem:[%s2752_s27 + $0x1c0] sm:$0xff] %v3827_v27  ;;  %v3831_v48 = vpop.f32.mrf.mxu1  ;;  %v2093_v59 = vadd.f32 %v2092_v34, %v2055_v26  ;;  %v2061_v4 = vmul.f32 %v3827_v27, %v3827_v27  ;;  %v1950_v62 = vadd.f32 %v1949_v38, %v3827_v27 }
 0x244   : > { %1915 = vst [vmem:[%s2752_s27 + $0x1c8] sm:$0xff] %v3831_v48  ;;  %v2062_v28 = vmul.f32 %v3831_v48, %v3831_v48  ;;  %v1987_v22 = vadd.f32 %v1986_v33, %v3831_v48  ;;  %v1368_v38 = vadd.f32 %v1367_v25, %v3555_v21 }
 0x245   : > { %1326 = vst [vmem:[%s2747_s22 + $0x1b8] sm:$0xff] %v3825_v44  ;;  %v2094_v10 = vadd.f32 %v2093_v59, %v2057_v31  ;;  %v1478_v40 = vmul.f32 %v3825_v44, %v3825_v44  ;;  %v1399_v34 = vadd.f32 %v1398_v7, %v3825_v44 }
 0x246   : > { %v1369_v1 = vrot.slane %v1368_v38, 2 }
 0x247   : > { %v2095_v8 = vadd.f32 %v2094_v10, %v2059_v12 }
 0x248   : > { %v1146_v57 = vpop.f32.mrf.mxu2 }
 0x249   : > { %v2096_v30 = vadd.f32 %v2095_v8, %v2061_v4  ;;  %v1519_v8 = vadd.f32 %v1518_v55, %v3559_v29 }
 0x24a   : > { %v1259_v11 = vpop.f32.mrf.mxu3  ;;  %v1736_v2 = vpop.f32.mrf.mxu0 }
 0x24b   : > { %v3864_v56 = vadd.f32 %v1259_v11, %v1146_v57  ;;  %1916 = vst [vmem:[%s2752_s27 + $0x1d0] sm:$0xff] %v1736_v2  ;;  %v1849_v35 = vpop.f32.mrf.mxu1  ;;  %v2131_v57 = vadd.f32 %v2130_v58, %v2058_v3  ;;  %v2063_v39 = vmul.f32 %v1736_v2, %v1736_v2  ;;  %v1476_v11 = vmul.f32 %v3813_v54, %v3813_v54 }
 0x24c   : > { %1917 = vst [vmem:[%s2752_s27 + $0x1d8] sm:$0xff] %v1849_v35  ;;  %v2064_v47 = vmul.f32 %v1849_v35, %v1849_v35  ;;  %v1951_v9 = vadd.f32 %v1950_v62, %v1736_v2  ;;  %v1988_v43 = vadd.f32 %v1987_v22, %v1849_v35 }
 0x24d   : > { %1328 = vst [vmem:[%s2747_s22 + $0x1c8] sm:$0xff] %v3864_v56  ;;  %v2132_v53 = vadd.f32 %v2131_v57, %v2060_v13  ;;  %v2097_v49 = vadd.f32 %v2096_v30, %v2063_v39  ;;  %v1549_v26 = vadd.f32 %v1548_v0, %v1476_v11  ;;  %v1480_v35 = vmul.f32 %v3864_v56, %v3864_v56 }
 0x24e   : > { %v1400_v59 = vadd.f32 %v1399_v34, %v3864_v56 }
 0x24f   : > { %v2133_v36 = vadd.f32 %v2132_v53, %v2062_v28  ;;  %v1550_v32 = vadd.f32 %v1549_v26, %v1478_v40 }
 0x250   : > { %v1149_v23 = vpop.f32.mrf.mxu2 }
 0x251   : > { %v2134_v61 = vadd.f32 %v2133_v36, %v2064_v47  ;;  %v1520_v36 = vrot.slane %v1519_v8, 2 }
 0x252   : > { %v1262_v6 = vpop.f32.mrf.mxu3  ;;  %v1739_v14 = vpop.f32.mrf.mxu0 }
 0x253   : > { %v3901_v20 = vadd.f32 %v1262_v6, %v1149_v23  ;;  %1918 = vst [vmem:[%s2752_s27 + $0x1e0] sm:$0xff] %v1739_v14  ;;  %v1852_v5 = vpop.f32.mrf.mxu1  ;;  %v2065_v60 = vmul.f32 %v1739_v14, %v1739_v14  ;;  %v1952_v48 = vadd.f32 %v1951_v9, %v1739_v14  ;;  %v1551_v6 = vadd.f32 %v1550_v32, %v1480_v35 }
 0x254   : > { %1919 = vst [vmem:[%s2752_s27 + $0x1e8] sm:$0xff] %v1852_v5  ;;  %v2066_v41 = vmul.f32 %v1852_v5, %v1852_v5  ;;  %v1989_v16 = vadd.f32 %v1988_v43, %v1852_v5 }
 0x255   : > { %1330 = vst [vmem:[%s2747_s22 + $0x1d8] sm:$0xff] %v3901_v20  ;;  %v2098_v46 = vadd.f32 %v2097_v49, %v2065_v60  ;;  %v1482_v17 = vmul.f32 %v3901_v20, %v3901_v20  ;;  %v1401_v13 = vadd.f32 %v1400_v59, %v3901_v20  ;;  %v1370_v49 = vadd.f32 %v1369_v1, %v1368_v38 }
 0x256   : > { %v2135_v42 = vadd.f32 %v2134_v61, %v2066_v41  ;;  %v1417_v41 = vlaneseq }
 0x257   : > { %v1552_v4 = vadd.f32 %v1551_v6, %v1482_v17  ;;  %v1335_v6 = vld [vmem:[%s4001_s8] sm:$0x3] }
 0x258   : > { %v1152_v27 = vpop.f32.mrf.mxu2  ;;  %vm3943_vm2 = vcmp.lt.s32.totalorder %v1417_v41, 256 }
 0x25a   : > { %v1265_v52 = vpop.f32.mrf.mxu3  ;;  %v1742_v51 = vpop.f32.mrf.mxu0 }
 0x25b   : > { %v1266_v2 = vadd.f32 %v1265_v52, %v1152_v27  ;;  %1920 = vst [vmem:[%s2752_s27 + $0x1f0] sm:$0xff] %v1742_v51  ;;  %v1953_v19 = vadd.f32 %v1952_v48, %v1742_v51  ;;  %v2067_v54 = vmul.f32 %v1742_v51, %v1742_v51  ;;  %v1855_v15 = vpop.f32.mrf.mxu1  ;;  %v1922_v52 = vld [vmem:[%s4003_s10] sm:$0x3]  ;;  %v1521_v51 = vadd.f32 %v1520_v36, %v1519_v8 }
 0x25c   : > { %v1990_v31 = vadd.f32 %v1989_v16, %v1855_v15  ;;  %v2068_v50 = vmul.f32 %v1855_v15, %v1855_v15  ;;  %1921 = vst [vmem:[%s2752_s27 + $0x1f8] sm:$0xff] %v1855_v15 }
 0x25d   : > { %1332 = vst [vmem:[%s2747_s22 + $0x1e8] sm:$0xff] %v1266_v2  ;;  %v1954_v3 = vrot.slane %v1953_v19, 4  ;;  %v2099_v23 = vadd.f32 %v2098_v46, %v2067_v54  ;;  %v1484_v58 = vmul.f32 %v1266_v2, %v1266_v2  ;;  %v1402_v57 = vadd.f32 %v1401_v13, %v1266_v2  ;;  %v2004_v54 = vld [vmem:[%s4004_s11] sm:$0x3] }
 0x25e   : > { %v1991_v45 = vrot.slane %v1990_v31, 4  ;;  %v2136_v12 = vadd.f32 %v2135_v42, %v2068_v50  ;;  %v1371_v50 = vrot.slane %v1370_v49, 1  ;;  %v1522_v55 = vrot.slane %v1521_v51, 1 }
 0x25f   : > { %v1955_v44 = vadd.f32 %v1954_v3, %v1953_v19  ;;  %v2100_v63 = vrot.slane %v2099_v23, 4  ;;  %v1553_v62 = vadd.f32 %v1552_v4, %v1484_v58 }
 0x260   : > { %v1992_v14 = vadd.f32 %v1991_v45, %v1990_v31  ;;  %v2137_v24 = vrot.slane %v2136_v12, 4  ;;  %v1155_v10 = vpop.f32.mrf.mxu2 }
 0x261   : > { %v1956_v5 = vrot.slane %v1955_v44, 2  ;;  %v2101_v18 = vadd.f32 %v2100_v63, %v2099_v23  ;;  %v1523_v63 = vadd.f32 %v1522_v55, %v1521_v51 }
 0x262   : > { %v1268_v56 = vpop.f32.mrf.mxu3  ;;  %v1993_v33 = vrot.slane %v1992_v14, 2  ;;  %v2138_v28 = vadd.f32 %v2137_v24, %v2136_v12  ;;  %v1372_v12 = vadd.f32 %v1371_v50, %v1370_v49 }
 0x263   : > { %v1269_v37 = vadd.f32 %v1268_v56, %v1155_v10  ;;  %v1957_v20 = vadd.f32 %v1956_v5, %v1955_v44  ;;  %v2102_v39 = vrot.slane %v2101_v18, 2 }
 0x264   : > { %v1994_v11 = vadd.f32 %v1993_v33, %v1992_v14  ;;  %v2139_v53 = vrot.slane %v2138_v28, 2  ;;  %v1422_v14 = vld [vmem:[%s4002_s9] sm:$0x3] }
 0x265   : > { %1334 = vst [vmem:[%s2747_s22 + $0x1f8] sm:$0xff] %v1269_v37  ;;  %v1403_v22 = vadd.f32 %v1402_v57, %v1269_v37  ;;  %v1486_v47 = vmul.f32 %v1269_v37, %v1269_v37  ;;  %v1958_v21 = vrot.slane %v1957_v20, 1  ;;  %v2103_v25 = vadd.f32 %v2102_v39, %v2101_v18 }
 0x266   : > { %v1995_v30 = vrot.slane %v1994_v11, 1  ;;  %v2140_v9 = vadd.f32 %v2139_v53, %v2138_v28 }
 0x267   : > { %v1404_v60 = vrot.slane %v1403_v22, 4  ;;  %v1554_v0 = vadd.f32 %v1553_v62, %v1486_v47  ;;  %v2104_v43 = vrot.slane %v2103_v25, 1  ;;  %v1959_v48 = vadd.f32 %v1958_v21, %v1957_v20 }
 0x268   : > { %v1996_v27 = vadd.f32 %v1995_v30, %v1994_v11  ;;  %v2141_v29 = vrot.slane %v2140_v9, 1 }
 0x269   : > { %v1405_v7 = vadd.f32 %v1404_v60, %v1403_v22  ;;  %v1555_v40 = vrot.slane %v1554_v0, 4  ;;  %v2105_v35 = vadd.f32 %v2104_v43, %v2103_v25 }
 0x26a   : > { %v1999_v26 = vrot.slane %v1996_v27, 7  ;;  %v2142_v61 = vadd.f32 %v2141_v29, %v2140_v9 }
 0x26b   : > { %v1406_v16 = vrot.slane %v1405_v7, 2  ;;  %v1556_v2 = vadd.f32 %v1555_v40, %v1554_v0 }
 0x26c   : > { %v2000_v19 = vsel %vm1413_vm1, %v1959_v48, %v1999_v26  ;;  %v2145_v15 = vrot.slane %v2142_v61, 7 }
 0x26d   : > { %v1407_v34 = vadd.f32 %v1406_v16, %v1405_v7  ;;  %v1557_v42 = vrot.slane %v1556_v2, 2  ;;  %v2002_v31 = vadd.f32 %v2000_v19, %v1922_v52 }
 0x26e   : > { %v2146_v32 = vsel %vm1413_vm1, %v2105_v35, %v2145_v15 }
 0x26f   : > { %v1408_v17 = vrot.slane %v1407_v34, 1  ;;  %v1558_v3 = vadd.f32 %v1557_v42, %v1556_v2  ;;  %2003 = vst.msk [vmem:[%s4003_s10] sm:$0x3] %vm3943_vm2, %v2002_v31  ;;  %v2148_v23 = vadd.f32 %v2146_v32, %v2004_v54 }
 0x271   : > { %v1409_v59 = vadd.f32 %v1408_v17, %v1407_v34  ;;  %v1559_v45 = vrot.slane %v1558_v3, 1  ;;  %2149 = vst.msk [vmem:[%s4004_s11] sm:$0x3] %vm3943_vm2, %v2148_v23 }
 0x273   : > { %v1412_v58 = vrot.slane %v1409_v59, 7  ;;  %v1560_v44 = vadd.f32 %v1559_v45, %v1558_v3 }
 0x275   : > { %v1414_v13 = vsel %vm1413_vm1, %v1372_v12, %v1412_v58  ;;  %v1563_v24 = vrot.slane %v1560_v44, 7 }
 0x276   : > { %v1416_v10 = vadd.f32 %v1414_v13, %v1335_v6 }
 0x277   : > { %v1564_v38 = vsel %vm1413_vm1, %v1523_v63, %v1563_v24 }
 0x278   : > { %1421 = vst.msk [vmem:[%s4001_s8] sm:$0x3] %vm3943_vm2, %v1416_v10  ;;  %v1566_v4 = vadd.f32 %v1564_v38, %v1422_v14 }
 0x27a   : > { %1567 = vst.msk [vmem:[%s4002_s9] sm:$0x3] %vm3943_vm2, %v1566_v4 }
 0x27b PF: > { %s4188_s26 = sld [smem:[#allocation10_spill]]  ;;  %s4189_s28 = smov %s2686_s17 }
 0x27c   : > { %p23_p1 = scmp.ge.s32.totalorder %s2686_s17, 4   ;;  %s4190_s17 = smov %s2562_s18 }
 0x27d   : > { %s4191_s18 = smov %s2566_s19  ;;  %s4193_s20 = smov %s4189_s28 }
 0x27e   :  { %25 = sbr.rel (!%p23_p1) target bundleno = 7 (0x7), region = 144 }
 0x281   : > { %s4192_s19 = smov %s4188_s26 }
 0x283   :  { %2217 = vsyncpa [#allocation3], 1 }
 0x284   :  { %2219 = vsyncpa [#allocation3 + $0x1], 1 }
 0x285   :  { %2220 = vsyncpa [#allocation5], 1 }
 0x286   :  { %2222 = vsyncpa [#allocation5 + $0x1], 1 }

// kernel: resnext_block_forward.5
= control target key start
LH: loop header
LB: loop body
LE: loop exit
PB: predicated region body
PF: predicated region fallthrough
CT: control target
= control target key end

     0   :  { %s4935_s0 = inlined_call_operand.vmem [shape: f32[2,16,16,256], index: 0, kind: input, shape index: {}]   ;;  %s4936_s1 = inlined_call_operand.vmem [shape: f32[1,256], index: 1, kind: input, shape index: {}]   ;;  %s4937_s2 = inlined_call_operand.vmem [shape: f32[1,256], index: 2, kind: input, shape index: {}]   ;;  %s4938_s3 = inlined_call_operand.hbm [shape: f32[2,9,128,128], index: 3, kind: input, shape index: {}]   ;;  %s4939_s4 = inlined_call_operand.vmem [shape: f32[2,16,16,256], index: 4, kind: output, shape index: {0}]   ;;  %s4940_s5 = inlined_call_operand.vmem [shape: f32[1,256], index: 5, kind: output, shape index: {1}]   ;;  %s4941_s6 = inlined_call_operand.vmem [shape: f32[1,256], index: 6, kind: output, shape index: {2}]  }
   0x1   :  { %5000 = sst [smem:[#allocation69_spill]] %s4935_s0 }
   0x2   :  { %5001 = sst [smem:[#allocation70_spill]] %s4938_s3 }
   0x3   :  { %12 = vsyncpa [#allocation5], 0 }
   0x4   :  { %14 = vsyncpa [#allocation5 + $0x1], 0  ;;  %s3440_s21 = smov 0   ;;  %s3442_s22 = smov 0  }
   0x5   :  { %s3444_s23 = smov 0   ;;  %s3446_s24 = smov 0  }
   0x6   :  { %s3448_s25 = smov 0   ;;  %s3450_s26 = smov 0  }
   0x7   :  { %s3452_s27 = smov 0   ;;  %s3454_s28 = smov 0  }
   0x8   :  { %s3456_s29 = smov 0   ;;  %s3458_s30 = smov 0  }
   0x9 LB: > { %5002 = sst [smem:[#allocation8_spill]] %s3391_s28  ;;  %s2969_s7 = sadd.s32 4294967295, %s3399_s30   ;;  %s3399_s30 = sphi %s3458_s30, %s20_s30   ;;  %s3395_s29 = sphi %s3456_s29, %s5145_s29   ;;  %s3391_s28 = sphi %s3454_s28, %s5136_s28   ;;  %s3387_s27 = sphi %s3452_s27, %s5144_s27   ;;  %s3383_s26 = sphi %s3450_s26, %s5143_s26   ;;  %s3379_s25 = sphi %s3448_s25, %s5142_s25   ;;  %s3375_s24 = sphi %s3446_s24, %s5141_s24   ;;  %s3371_s23 = sphi %s3444_s23, %s5140_s23   ;;  %s3367_s22 = sphi %s3442_s22, %s5139_s22   ;;  %s3363_s21 = sphi %s3440_s21, %s5138_s21  }
   0xa   : > { %s29_s8 = sadd.s32 1, %s3391_s28  ;;  %s32_s9 = sadd.s32 1, %s3395_s29 }
   0xb   : > { %p30_p0 = scmp.ge.s32.totalorder %s29_s8, 2  ;;  %s41_s10 = sadd.s32 1, %s3379_s25 }
   0xc   : > { %p48_p1 = scmp.ne.s32.totalorder %s3379_s25, %s3375_s24  ;;  %p49_p2 = scmp.eq.s32.totalorder %s3399_s30, 0 }
   0xd   : > { %s5147_s8 = smov (%p30_p0, %s29_s8), 0  ;;  %s5149_s9 = smov (!%p30_p0, %s32_s9), %s3395_s29 }
   0xe   : > { %5003 = sst [smem:[#allocation9_spill]] %s5147_s8  ;;  %s36_s11 = ssub.s32 %s3391_s28, %s5147_s8 }
   0xf   : > { %p34_p3 = scmp.ge.s32.totalorder %s5149_s9, 2  ;;  %s119_s12 = sadd.s32 1, %s3371_s23 }
  0x10   : > { %p3506_p4 = por %p49_p2, %p48_p1  ;;  %p126_p5 = scmp.ne.s32.totalorder %s3371_s23, %s3367_s22 }
  0x11   : > { %s5151_s9 = smov (%p34_p3, %s5149_s9), 0  ;;  %p132_p7 = scmp.ne.s32.totalorder %s3367_s22, %s3363_s21 }
  0x12   : > { %5005 = sst [smem:[#allocation10_spill]] %s5151_s9  ;;  %p3514_p6 = por %p126_p5, %p49_p2 }
  0x13   : > { %s37_s15 = ssub.s32 %s3395_s29, %s5151_s9  ;;  %p133_p8 = scmp.eq.s32.totalorder %s2969_s7, 0 }
  0x14   : > { %s38_s16 = sor.u32 %s37_s15, %s36_s11  ;;  %p117_p9 = scmp.eq.s32.totalorder %s37_s15, 0 }
  0x15   : > { %p39_p10 = scmp.eq.s32.totalorder %s38_s16, 0  ;;  %p3522_p11 = por %p133_p8, %p132_p7 }
  0x16   : > { %s3527_s18 = scalar_select %p117_p9, %s3371_s23, %s119_s12  }
  0x17   : > { %s3530_s19 = scalar_select %p39_p10, %s3379_s25, %s41_s10  }
  0x18   : > { %p158_p12 = scmp.eq.s32.totalorder %s2969_s7, 3  ;;  %p2972_p0 = scmp.ge.s32.totalorder %s3399_s30, 4 }
  0x19   : > { %5008 = sst [smem:[#allocation11_spill]] %s3530_s19 }
  0x1a   : > { %p3535_p13 = por %p158_p12, %p48_p1  ;;  %232 = sbr.rel (%p2972_p0) target bundleno = 83 (0x53), region = 16 }
  0x1f   : > { %235 = sbr.rel (!%p3506_p4) target bundleno = 73 (0x49), region = 20  ;;  %s237_s21 = sand.u32 (%p3506_p4), 1, %s3379_s25  }
  0x20   : > { %s2974_s11 = sshll.u32 (%p3506_p4), %s3391_s28, 6  ;;  %s2973_s12 = sshll.u32 (%p3506_p4), %s237_s21, 8 }
  0x21   : > { %s241_s10 = sadd.s32 (%p3506_p4), %s3395_s29, %s2974_s11  ;;  %s5010_s0 = sld [smem:[#allocation69_spill]] (%p3506_p4) }
  0x22   : > { %s2975_s15 = sshll.u32 (%p3506_p4), %s241_s10, 3  ;;  %s3553_s13 = scalar_lea.vmem (%p3506_p4), [#allocation3], %s2973_s12 }
  0x27   : > { %s3548_s9 = scalar_lea.vmem %s5010_s0, %s2975_s15 }
  0x28   : > { %v334_v0 = vld [vmem:[%s3548_s9] sm:$0xff]  ;;  %v336_v1 = vld [vmem:[%s3548_s9 + $0x10] sm:$0xff] }
  0x29   : > { %v338_v2 = vld [vmem:[%s3548_s9 + $0x20] sm:$0xff]  ;;  %335 = vst [vmem:[%s3553_s13] sm:$0xff] %v334_v0  ;;  %v340_v3 = vld [vmem:[%s3548_s9 + $0x30] sm:$0xff] }
  0x2a   : > { %337 = vst [vmem:[%s3553_s13 + $0x8] sm:$0xff] %v336_v1  ;;  %v342_v4 = vld [vmem:[%s3548_s9 + $0x40] sm:$0xff]  ;;  %v344_v5 = vld [vmem:[%s3548_s9 + $0x50] sm:$0xff] }
  0x2b   : > { %339 = vst [vmem:[%s3553_s13 + $0x10] sm:$0xff] %v338_v2  ;;  %v346_v6 = vld [vmem:[%s3548_s9 + $0x60] sm:$0xff]  ;;  %v348_v7 = vld [vmem:[%s3548_s9 + $0x70] sm:$0xff] }
  0x2c   : > { %341 = vst [vmem:[%s3553_s13 + $0x18] sm:$0xff] %v340_v3  ;;  %v350_v8 = vld [vmem:[%s3548_s9 + $0x80] sm:$0xff]  ;;  %v352_v9 = vld [vmem:[%s3548_s9 + $0x90] sm:$0xff] }
  0x2d   : > { %343 = vst [vmem:[%s3553_s13 + $0x20] sm:$0xff] %v342_v4  ;;  %v354_v10 = vld [vmem:[%s3548_s9 + $0xa0] sm:$0xff]  ;;  %v356_v11 = vld [vmem:[%s3548_s9 + $0xb0] sm:$0xff] }
  0x2e   : > { %345 = vst [vmem:[%s3553_s13 + $0x28] sm:$0xff] %v344_v5  ;;  %v358_v12 = vld [vmem:[%s3548_s9 + $0xc0] sm:$0xff]  ;;  %v360_v13 = vld [vmem:[%s3548_s9 + $0xd0] sm:$0xff] }
  0x2f   : > { %347 = vst [vmem:[%s3553_s13 + $0x30] sm:$0xff] %v346_v6  ;;  %v362_v14 = vld [vmem:[%s3548_s9 + $0xe0] sm:$0xff]  ;;  %v364_v15 = vld [vmem:[%s3548_s9 + $0xf0] sm:$0xff] }
  0x30   : > { %349 = vst [vmem:[%s3553_s13 + $0x38] sm:$0xff] %v348_v7  ;;  %v366_v16 = vld [vmem:[%s3548_s9 + $0x100] sm:$0xff]  ;;  %v368_v17 = vld [vmem:[%s3548_s9 + $0x110] sm:$0xff] }
  0x31   : > { %351 = vst [vmem:[%s3553_s13 + $0x40] sm:$0xff] %v350_v8  ;;  %v370_v18 = vld [vmem:[%s3548_s9 + $0x120] sm:$0xff]  ;;  %v372_v19 = vld [vmem:[%s3548_s9 + $0x130] sm:$0xff] }
  0x32   : > { %353 = vst [vmem:[%s3553_s13 + $0x48] sm:$0xff] %v352_v9  ;;  %v374_v20 = vld [vmem:[%s3548_s9 + $0x140] sm:$0xff]  ;;  %v376_v21 = vld [vmem:[%s3548_s9 + $0x150] sm:$0xff] }
  0x33   : > { %355 = vst [vmem:[%s3553_s13 + $0x50] sm:$0xff] %v354_v10  ;;  %v378_v22 = vld [vmem:[%s3548_s9 + $0x160] sm:$0xff]  ;;  %v380_v23 = vld [vmem:[%s3548_s9 + $0x170] sm:$0xff] }
  0x34   : > { %357 = vst [vmem:[%s3553_s13 + $0x58] sm:$0xff] %v356_v11  ;;  %v382_v24 = vld [vmem:[%s3548_s9 + $0x180] sm:$0xff]  ;;  %v384_v25 = vld [vmem:[%s3548_s9 + $0x190] sm:$0xff] }
  0x35   : > { %359 = vst [vmem:[%s3553_s13 + $0x60] sm:$0xff] %v358_v12  ;;  %v386_v26 = vld [vmem:[%s3548_s9 + $0x1a0] sm:$0xff]  ;;  %v388_v27 = vld [vmem:[%s3548_s9 + $0x1b0] sm:$0xff] }
  0x36   : > { %361 = vst [vmem:[%s3553_s13 + $0x68] sm:$0xff] %v360_v13  ;;  %v390_v28 = vld [vmem:[%s3548_s9 + $0x1c0] sm:$0xff]  ;;  %v392_v29 = vld [vmem:[%s3548_s9 + $0x1d0] sm:$0xff] }
  0x37   : > { %363 = vst [vmem:[%s3553_s13 + $0x70] sm:$0xff] %v362_v14  ;;  %v394_v30 = vld [vmem:[%s3548_s9 + $0x1e0] sm:$0xff]  ;;  %v396_v31 = vld [vmem:[%s3548_s9 + $0x1f0] sm:$0xff] }
  0x38   : > { %365 = vst [vmem:[%s3553_s13 + $0x78] sm:$0xff] %v364_v15 }
  0x39   : > { %367 = vst [vmem:[%s3553_s13 + $0x80] sm:$0xff] %v366_v16 }
  0x3a   : > { %369 = vst [vmem:[%s3553_s13 + $0x88] sm:$0xff] %v368_v17 }
  0x3b   : > { %371 = vst [vmem:[%s3553_s13 + $0x90] sm:$0xff] %v370_v18 }
  0x3c   : > { %373 = vst [vmem:[%s3553_s13 + $0x98] sm:$0xff] %v372_v19 }
  0x3d   : > { %375 = vst [vmem:[%s3553_s13 + $0xa0] sm:$0xff] %v374_v20 }
  0x3e   : > { %377 = vst [vmem:[%s3553_s13 + $0xa8] sm:$0xff] %v376_v21 }
  0x3f   : > { %379 = vst [vmem:[%s3553_s13 + $0xb0] sm:$0xff] %v378_v22 }
  0x40   : > { %381 = vst [vmem:[%s3553_s13 + $0xb8] sm:$0xff] %v380_v23 }
  0x41   : > { %383 = vst [vmem:[%s3553_s13 + $0xc0] sm:$0xff] %v382_v24 }
  0x42   : > { %385 = vst [vmem:[%s3553_s13 + $0xc8] sm:$0xff] %v384_v25 }
  0x43   : > { %387 = vst [vmem:[%s3553_s13 + $0xd0] sm:$0xff] %v386_v26 }
  0x44   : > { %389 = vst [vmem:[%s3553_s13 + $0xd8] sm:$0xff] %v388_v27 }
  0x45   : > { %391 = vst [vmem:[%s3553_s13 + $0xe0] sm:$0xff] %v390_v28 }
  0x46   : > { %393 = vst [vmem:[%s3553_s13 + $0xe8] sm:$0xff] %v392_v29 }
  0x47   : > { %395 = vst [vmem:[%s3553_s13 + $0xf0] sm:$0xff] %v394_v30 }
  0x48   : > { %397 = vst [vmem:[%s3553_s13 + $0xf8] sm:$0xff] %v396_v31 }
  0x49 PF: > { %s416_s21 = sand.u32 1, %s3371_s23   ;;  %s3163_s11 = smul.u32 1152, %s3395_s29 }
  0x4a   : > { %s3162_s12 = smul.u32 1152, %s416_s21  ;;  %s5011_s3 = sld [smem:[#allocation70_spill]] }
  0x4b   : > { %s417_s9 = scalar_lea.sflag [#allocation5], %s416_s21  ;;  %s3401_s28 = smov 128  }
  0x4c   : > { %s420_s0 = scalar_lea.vmem [#allocation4], %s3162_s12  ;;  %s3402_s19 = smov 8  }
  0x4d   : > { %s428_s8 = sshll.u32 %s420_s0, 4  ;;  %s429_s8 = int_to_ptr.vmem [resolvable:$true] %s428_s8 }
  0x50   : > { %s425_s7 = scalar_lea.hbm %s5011_s3, %s3163_s11 }
  0x51   : > { %s426_s16 = sshll.u32 %s425_s7, 4  ;;  %s427_s16 = int_to_ptr.hbm [resolvable:$true] %s426_s16 }
  0x52   : > { %3165 = dma.hbm_to_vmem [thread:$0]  (%p3514_p6), %s427_s16, 18432, %s429_s8, %s417_s9, %s3401_s28, %s3401_s28, %s3402_s19  }
  0x53 PF: > { %p2977_p1 = scmp.ge.s32.totalorder %s3399_s30, 1  ;;  %p436_p2 = scmp.lt.s32.totalorder %s3399_s30, 5 }
  0x55   : > { %p437_p3 = pnand %p2977_p1, %p436_p2 }
  0x57   : > { %440 = sbr.rel (%p437_p3) target bundleno = 901 (0x385), region = 70 }
  0x5c   : > { %s443_s13 = sand.u32 1, %s3375_s24   ;;  %s449_s11 = sand.u32 1, %s3367_s22  }
  0x5d   : > { %s2978_s12 = sshll.u32 %s443_s13, 8  ;;  %s3164_s0 = smul.u32 1152, %s449_s11 }
  0x5e   : > { %s3627_s10 = scalar_lea.vmem [#allocation3], %s2978_s12  ;;  %s450_s21 = scalar_lea.sflag [#allocation5], %s449_s11 }
  0x5f   : > { %s3629_s15 = scalar_lea.vmem [#allocation4], %s3164_s0 }
  0x60   : > { %3358 = dma.done.wait (%p3522_p11), %s450_s21, 18432  }
  0x61   : > { %3360 = vsyncadd (%p3522_p11), %s450_s21, 4294948864  ;;  %p498_p4 = scmp.lt.s32.totalorder %s3387_s27, 1  ;;  %s3657_s3 = scalar_lea.vmem [#allocation6], %s2978_s12 }
  0x62   : > { %p2980_p5 = scmp.ne.s32.totalorder %s3383_s26, 0 }
  0x63   : > { %s499_s28 = scalar_select %p498_p4, %s3387_s27, 1 }
  0x64   : > { %513 = sbr.rel (%p2980_p5) target bundleno = 108 (0x6c), region = 82 }
  0x65   : > { %s3640_s24 = scalar_lea.vmem %s4936_s1, %s499_s28  ;;  %s3645_s16 = scalar_lea.vmem %s4937_s2, %s499_s28 }
  0x66   : > { %s3650_s11 = scalar_lea.vmem %s4940_s5, %s499_s28  ;;  %s3655_s21 = scalar_lea.vmem %s4941_s6, %s499_s28 }
  0x69   : > { %v3403_v32 = vmov 0.0  }
  0x6a   : > { %514 = vst [vmem:[%s3650_s11] sm:$0x1] %v3403_v32 }
  0x6b   : > { %515 = vst [vmem:[%s3655_s21] sm:$0x1] %v3403_v32 }
  0x6c PF: > { %v2996_v33 = vld [vmem:[%s3629_s15 + $0xf8] sm:$0xff]  ;;  %v2995_v34 = vld [vmem:[%s3629_s15 + $0xf0] sm:$0xff]  ;;  %v3404_v35 = vmov 0.0   ;;  %v2994_v36 = vld [vmem:[%s3629_s15 + $0xe8] sm:$0xff]  ;;  %vm874_vm0 = vcmask 1046528   ;;  %vm1230_vm1 = vcmask 1045504  }
  0x6d   : > { %3114 = vmatpush.msra.mxu1 %v2996_v33  ;;  %3115 = vmatpush.msra.mxu2 %v2996_v33  ;;  %664 = vst [vmem:[#allocation2 + $0x60] sm:$0xff] %v3404_v35  ;;  %v2993_v37 = vld [vmem:[%s3629_s15 + $0xe0] sm:$0xff]  ;;  %v2992_v38 = vld [vmem:[%s3629_s15 + $0xd8] sm:$0xff]  ;;  %v522_v39 = vld [vmem:[%s3627_s10 + $0x30] sm:$0xff]  ;;  %v875_v13 = vrot.slane %v3404_v35, 1  ;;  %s3110_s12 = sshll.u32 (%p3535_p13), %s3383_s26, 6 }
  0x6e   : > { %3116 = vmatpush.msra.mxu3 %v2996_v33  ;;  %987 = vmatpush.msra.mxu0 %v2996_v33  ;;  %665 = vst [vmem:[#allocation2 + $0x68] sm:$0xff] %v3404_v35  ;;  %v523_v40 = vld [vmem:[%s3627_s10 + $0x38] sm:$0xff]  ;;  %v3674_v41 = vld [vmem:[%s3640_s24] ss:$0 sm:$0xff]  ;;  %v2990_v46 = vld [vmem:[%s3629_s15 + $0xc8] sm:$0xff] }
  0x6f   : > { %3117 = vmatpush.msra.mxu1 %v2995_v34  ;;  %3118 = vmatpush.msra.mxu2 %v2995_v34  ;;  %666 = vst [vmem:[#allocation2 + $0x70] sm:$0x3] %v3404_v35  ;;  %v3677_v42 = vld [vmem:[%s3645_s16] ss:$0 sm:$0xff]  ;;  %v558_v44 = vmul.f32 %v3674_v41, %v522_v39  ;;  %v559_v45 = vmul.f32 %v3674_v41, %v523_v40  ;;  %v2989_v49 = vld [vmem:[%s3629_s15 + $0xc0] sm:$0xff]  ;;  %v2988_v52 = vld [vmem:[%s3629_s15 + $0xb8] sm:$0xff] }
  0x70   : > { %3119 = vmatpush.msra.mxu3 %v2995_v34  ;;  %988 = vmatpush.msra.mxu0 %v2995_v34  ;;  %652 = vst [vmem:[#allocation2] sm:$0xff] %v3404_v35  ;;  %v2991_v43 = vld [vmem:[%s3629_s15 + $0xd0] sm:$0xff]  ;;  %v2986_v54 = vld [vmem:[%s3629_s15 + $0xa8] sm:$0xff]  ;;  %v2985_v55 = vld [vmem:[%s3629_s15 + $0xa0] sm:$0xff] }
  0x71   : > { %3120 = vmatpush.msra.mxu1 %v2994_v36  ;;  %3121 = vmatpush.msra.mxu2 %v2994_v36  ;;  %654 = vst [vmem:[#allocation2 + $0x10] sm:$0x3] %v3404_v35  ;;  %v594_v47 = vadd.f32 %v3677_v42, %v558_v44  ;;  %v595_v48 = vadd.f32 %v3677_v42, %v559_v45  ;;  %v2987_v53 = vld [vmem:[%s3629_s15 + $0xb0] sm:$0xff]  ;;  %v2984_v56 = vld [vmem:[%s3629_s15 + $0x98] sm:$0xff]  ;;  %v2982_v62 = vld [vmem:[%s3629_s15 + $0x88] sm:$0xff] }
  0x72   : > { %3122 = vmatpush.msra.mxu3 %v2994_v36  ;;  %989 = vmatpush.msra.mxu0 %v2994_v36  ;;  %655 = vst [vmem:[#allocation2 + $0x18] sm:$0xff] %v3404_v35  ;;  %v2983_v59 = vld [vmem:[%s3629_s15 + $0x90] sm:$0xff]  ;;  %v2981_v63 = vld [vmem:[%s3629_s15 + $0x80] sm:$0xff]  ;;  %v3012_v1 = vld [vmem:[%s3629_s15 + $0x178] sm:$0xff] }
  0x73   : > { %3123 = vmatpush.msra.mxu1 %v2993_v37  ;;  %3124 = vmatpush.msra.mxu2 %v2993_v37  ;;  %656 = vst [vmem:[#allocation2 + $0x20] sm:$0xff] %v3404_v35  ;;  %v626_v50 = vmax.f32 %v594_v47, 0.0  ;;  %v627_v51 = vmax.f32 %v595_v48, 0.0  ;;  %v3028_v2 = vld [vmem:[%s3629_s15 + $0x1f8] sm:$0xff]  ;;  %v3011_v4 = vld [vmem:[%s3629_s15 + $0x170] sm:$0xff]  ;;  %v3010_v16 = vld [vmem:[%s3629_s15 + $0x168] sm:$0xff] }
  0x74   : > { %3125 = vmatpush.msra.mxu3 %v2993_v37  ;;  %990 = vmatpush.msra.mxu0 %v2993_v37  ;;  %657 = vst [vmem:[#allocation2 + $0x28] sm:$0x3] %v3404_v35  ;;  %v808_v3 = vld [vmem:[%s3629_s15 + $0x78] sm:$0xff]  ;;  %v3027_v5 = vld [vmem:[%s3629_s15 + $0x1f0] sm:$0xff]  ;;  %v524_v17 = vld [vmem:[%s3627_s10 + $0x40] sm:$0xff] }
  0x75   : > { %3126 = vmatpush.msra.mxu1 %v2992_v38  ;;  %3127 = vmatpush.msra.mxu2 %v2992_v38  ;;  %658 = vst [vmem:[#allocation2 + $0x30] sm:$0xff] %v3404_v35  ;;  %v530_v8 = vld [vmem:[%s3627_s10 + $0x70] sm:$0xff]  ;;  %v531_v9 = vld [vmem:[%s3627_s10 + $0x78] sm:$0xff]  ;;  %v525_v19 = vld [vmem:[%s3627_s10 + $0x48] sm:$0xff]  ;;  %v560_v29 = vmul.f32 %v3674_v41, %v524_v17 }
  0x76   : > { %3128 = vmatpush.msra.mxu3 %v2992_v38  ;;  %991 = vmatpush.msra.mxu0 %v2992_v38  ;;  %659 = vst [vmem:[#allocation2 + $0x38] sm:$0xff] %v3404_v35  ;;  %v538_v11 = vld [vmem:[%s3627_s10 + $0xb0] sm:$0xff]  ;;  %v539_v12 = vld [vmem:[%s3627_s10 + $0xb8] sm:$0xff]  ;;  %v566_v14 = vmul.f32 %v3674_v41, %v530_v8  ;;  %v567_v18 = vmul.f32 %v3674_v41, %v531_v9  ;;  %v532_v20 = vld [vmem:[%s3627_s10 + $0x80] sm:$0xff] }
  0x77   : > { %3129 = vmatpush.msra.mxu1 %v2991_v43  ;;  %3130 = vmatpush.msra.mxu2 %v2991_v43  ;;  %660 = vst [vmem:[#allocation2 + $0x40] sm:$0x3] %v3404_v35  ;;  %v807_v15 = vld [vmem:[%s3629_s15 + $0x70] sm:$0xff]  ;;  %v574_v21 = vmul.f32 %v3674_v41, %v538_v11  ;;  %v575_v22 = vmul.f32 %v3674_v41, %v539_v12  ;;  %v3026_v23 = vld [vmem:[%s3629_s15 + $0x1e8] sm:$0xff]  ;;  %v3044_v24 = vld [vmem:[%s3629_s15 + $0x278] sm:$0xff] }
  0x78   : > { %3131 = vmatpush.msra.mxu3 %v2991_v43  ;;  %992 = vmatpush.msra.mxu0 %v2991_v43  ;;  %713 = vst [vmem:[#allocation2 + $0x61] sm:$0xff] %v626_v50  ;;  %v806_v25 = vld [vmem:[%s3629_s15 + $0x68] sm:$0xff]  ;;  %v3009_v26 = vld [vmem:[%s3629_s15 + $0x160] sm:$0xff]  ;;  %v3043_v28 = vld [vmem:[%s3629_s15 + $0x270] sm:$0xff]  ;;  %v602_v30 = vadd.f32 %v3677_v42, %v566_v14  ;;  %v603_v32 = vadd.f32 %v3677_v42, %v567_v18 }
  0x79   : > { %3132 = vmatpush.msra.mxu1 %v2990_v46  ;;  %3133 = vmatpush.msra.mxu2 %v2990_v46  ;;  %714 = vst [vmem:[#allocation2 + $0x69] sm:$0xff] %v627_v51  ;;  %v3025_v27 = vld [vmem:[%s3629_s15 + $0x1e0] sm:$0xff]  ;;  %v533_v31 = vld [vmem:[%s3627_s10 + $0x88] sm:$0xff]  ;;  %v561_v33 = vmul.f32 %v3674_v41, %v525_v19  ;;  %v610_v37 = vadd.f32 %v3677_v42, %v574_v21  ;;  %v3008_v50 = vld [vmem:[%s3629_s15 + $0x158] sm:$0xff] }
  0x7a   : > { %3134 = vmatpush.msra.mxu3 %v2990_v46  ;;  %993 = vmatpush.msra.mxu0 %v2990_v46  ;;  %661 = vst [vmem:[#allocation2 + $0x48] sm:$0xff] %v3404_v35  ;;  %v540_v34 = vld [vmem:[%s3627_s10 + $0xc0] sm:$0xff]  ;;  %v541_v36 = vld [vmem:[%s3627_s10 + $0xc8] sm:$0xff]  ;;  %v611_v38 = vadd.f32 %v3677_v42, %v575_v22  ;;  %v568_v39 = vmul.f32 %v3674_v41, %v532_v20  ;;  %v634_v48 = vmax.f32 %v602_v30, 0.0  ;;  %v543_v20 = vld [vmem:[%s3627_s10 + $0xd8] sm:$0xff] }
  0x7b   : > { %3135 = vmatpush.msra.mxu1 %v2989_v49  ;;  %3136 = vmatpush.msra.mxu2 %v2989_v49  ;;  %662 = vst [vmem:[#allocation2 + $0x50] sm:$0xff] %v3404_v35  ;;  %v3784_v40 = vld [vmem:[#allocation2 + $0x10] sm:$0x3]  ;;  %v596_v43 = vadd.f32 %v3677_v42, %v560_v29  ;;  %v569_v44 = vmul.f32 %v3674_v41, %v533_v31  ;;  %v517_v47 = vld [vmem:[%s3627_s10 + $0x8] sm:$0xff]  ;;  %v518_v29 = vld [vmem:[%s3627_s10 + $0x10] sm:$0xff] }
  0x7c   : > { %3137 = vmatpush.msra.mxu3 %v2989_v49  ;;  %994 = vmatpush.msra.mxu0 %v2989_v49  ;;  %663 = vst [vmem:[#allocation2 + $0x58] sm:$0x3] %v3404_v35  ;;  %v878_v45 = vrot.slane %v3784_v40, 1  ;;  %v516_v46 = vld [vmem:[%s3627_s10] sm:$0xff]  ;;  %v576_v51 = vmul.f32 %v3674_v41, %v540_v34  ;;  %v553_v9 = vmul.f32 %v3674_v41, %v517_v47 }
  0x7d   : > { %3138 = vmatpush.msra.mxu1 %v2988_v52  ;;  %3139 = vmatpush.msra.mxu2 %v2988_v52  ;;  %667 = vst [vmem:[#allocation2 + $0x78] sm:$0xff] %v3404_v35  ;;  %v805_v49 = vld [vmem:[%s3629_s15 + $0x60] sm:$0xff] }
  0x7e   : > { %3140 = vmatpush.msra.mxu3 %v2988_v52  ;;  %995 = vmatpush.msra.mxu0 %v2988_v52  ;;  %668 = vst [vmem:[#allocation2 + $0x80] sm:$0xff] %v3404_v35  ;;  %v577_v52 = vmul.f32 %v3674_v41, %v541_v36  ;;  %v3041_v8 = vld [vmem:[%s3629_s15 + $0x260] sm:$0xff]  ;;  %v612_v11 = vadd.f32 %v3677_v42, %v576_v51  ;;  %v3022_v36 = vld [vmem:[%s3629_s15 + $0x1c8] sm:$0xff] }
  0x7f   : > { %3141 = vmatpush.msra.mxu1 %v2987_v53  ;;  %3142 = vmatpush.msra.mxu2 %v2987_v53  ;;  %669 = vst [vmem:[#allocation2 + $0x88] sm:$0x3] %v3404_v35  ;;  %v751_v57 = vld [vmem:[#allocation2 + $0x60] sm:$0xff]  ;;  %v589_v22 = vadd.f32 %v3677_v42, %v553_v9  ;;  %v3021_v47 = vld [vmem:[%s3629_s15 + $0x1c0] sm:$0xff] }
  0x80   : > { %3143 = vmatpush.msra.mxu3 %v2987_v53  ;;  %996 = vmatpush.msra.mxu0 %v2987_v53  ;;  %v3704_v58 = vld [vmem:[#allocation2 + $0x68] sm:$0xff]  ;;  %670 = vst [vmem:[#allocation2 + $0x90] sm:$0xff] %v3404_v35  ;;  %v895_v60 = vrot.slane %v751_v57, 1  ;;  %v753_v6 = vld [vmem:[#allocation2 + $0x70] sm:$0x3]  ;;  %v526_v53 = vld [vmem:[%s3627_s10 + $0x50] sm:$0xff]  ;;  %v613_v12 = vadd.f32 %v3677_v42, %v577_v52 }
  0x81   : > { %3144 = vmatpush.msra.mxu1 %v2986_v54  ;;  %3145 = vmatpush.msra.mxu2 %v2986_v54  ;;  %671 = vst [vmem:[#allocation2 + $0x98] sm:$0xff] %v3404_v35  ;;  %v896_v61 = vrot.slane %v3704_v58, 1  ;;  %v898_v7 = vrot.slane %v753_v6, 1  ;;  %v527_v57 = vld [vmem:[%s3627_s10 + $0x58] sm:$0xff]  ;;  %v534_v58 = vld [vmem:[%s3627_s10 + $0x90] sm:$0xff] }
  0x82   : > { %3146 = vmatpush.msra.mxu3 %v2986_v54  ;;  %997 = vmatpush.msra.mxu0 %v2986_v54  ;;  %672 = vst [vmem:[#allocation2 + $0xa0] sm:$0x3] %v3404_v35  ;;  %v635_v54 = vmax.f32 %v603_v32, 0.0  ;;  %v3007_v6 = vld [vmem:[%s3629_s15 + $0x150] sm:$0xff]  ;;  %v579_v32 = vmul.f32 %v3674_v41, %v543_v20 }
  0x83   : > { %3147 = vmatpush.msra.mxu1 %v2985_v55  ;;  %3148 = vmatpush.msra.mxu2 %v2985_v55  ;;  %673 = vst [vmem:[#allocation2 + $0xa8] sm:$0xff] %v3404_v35  ;;  %v3718_v0 = vsel %vm874_vm0, %v895_v60, %v896_v61  ;;  %v3745_v10 = vsel %vm874_vm0, %v896_v61, %v898_v7  ;;  %v642_v60 = vmax.f32 %v610_v37, 0.0  ;;  %v643_v61 = vmax.f32 %v611_v38, 0.0  ;;  %v3023_v7 = vld [vmem:[%s3629_s15 + $0x1d0] sm:$0xff]  ;;  %v3040_v37 = vld [vmem:[%s3629_s15 + $0x258] sm:$0xff]  ;;  %v802_v38 = vld [vmem:[%s3629_s15 + $0x48] sm:$0xff] }
  0x84   : > { %3149 = vmatpush.msra.mxu3 %v2985_v55  ;;  %998 = vmatpush.msra.mxu0 %v2985_v55  ;;  %674 = vst [vmem:[#allocation2 + $0xb0] sm:$0xff] %v3404_v35  ;;  %v597_v55 = vadd.f32 %v3677_v42, %v561_v33  ;;  %v519_v33 = vld [vmem:[%s3627_s10 + $0x18] sm:$0xff]  ;;  %v3039_v52 = vld [vmem:[%s3629_s15 + $0x250] sm:$0xff] }
  0x85   : > { %3150 = vmatpush.msra.mxu1 %v2984_v56  ;;  %3151 = vmatpush.msra.mxu2 %v2984_v56  ;;  %675 = vst [vmem:[#allocation2 + $0xb8] sm:$0x3] %v3404_v35 }
  0x86   : > { %3152 = vmatpush.msra.mxu3 %v2984_v56  ;;  %999 = vmatpush.msra.mxu0 %v2984_v56  ;;  %676 = vst [vmem:[#allocation2 + $0xc0] sm:$0xff] %v3404_v35  ;;  %v879_v56 = vsel %vm874_vm0, %v875_v13, %v878_v45  ;;  %v629_v14 = vmax.f32 %v597_v55, 0.0  ;;  %v621_v45 = vmax.f32 %v589_v22, 0.0 }
  0x87   : > { %3153 = vmatpush.msra.mxu1 %v2983_v59  ;;  %3154 = vmatpush.msra.mxu2 %v2983_v59  ;;  %5012 = vst [vmem:[#allocation12_spill] sm:$0xff] %v3718_v0 }
  0x88   : > { %3155 = vmatpush.msra.mxu3 %v2983_v59  ;;  %1000 = vmatpush.msra.mxu0 %v2983_v59  ;;  %677 = vst [vmem:[#allocation2 + $0xc8] sm:$0xff] %v3404_v35  ;;  %v535_v59 = vld [vmem:[%s3627_s10 + $0x98] sm:$0xff] }
  0x89   : > { %3156 = vmatpush.msra.mxu1 %v2982_v62  ;;  %3157 = vmatpush.msra.mxu2 %v2982_v62  ;;  %678 = vst [vmem:[#allocation2 + $0xd0] sm:$0x3] %v3404_v35  ;;  %v571_v19 = vmul.f32 %v3674_v41, %v535_v59 }
  0x8a   : > { %3158 = vmatpush.msra.mxu3 %v2982_v62  ;;  %1001 = vmatpush.msra.mxu0 %v2982_v62  ;;  %679 = vst [vmem:[#allocation2 + $0xd8] sm:$0xff] %v3404_v35  ;;  %v604_v62 = vadd.f32 %v3677_v42, %v568_v39 }
  0x8b   : > { %3159 = vmatpush.msra.mxu1 %v2981_v63  ;;  %3160 = vmatpush.msra.mxu2 %v2981_v63  ;;  %680 = vst [vmem:[#allocation2 + $0xe0] sm:$0xff] %v3404_v35  ;;  %v3839_v39 = vadd.f32 %v3677_v42, %v571_v19  ;;  %v536_v19 = vld [vmem:[%s3627_s10 + $0xa0] sm:$0xff] }
  0x8c   : > { %1027 = vmatmul.f32.vlgmr.msra.gmra.mxu1 %v3718_v0  ;;  %3161 = vmatpush.msra.mxu3 %v2981_v63  ;;  %681 = vst [vmem:[#allocation2 + $0xe8] sm:$0x3] %v3404_v35  ;;  %v636_v17 = vmax.f32 %v604_v62, 0.0 }
  0x8d   : > { %1002 = vmatpush.msra.mxu0 %v2981_v63  ;;  %682 = vst [vmem:[#allocation2 + $0xf0] sm:$0xff] %v3404_v35  ;;  %1343 = vmatpush.msrb.mxu2 %v3012_v1  ;;  %v3024_v63 = vld [vmem:[%s3629_s15 + $0x1d8] sm:$0xff]  ;;  %v3042_v1 = vld [vmem:[%s3629_s15 + $0x268] sm:$0xff]  ;;  %v639_v62 = vmax.f32 %v3839_v39, 0.0 }
  0x8e   : > { %683 = vst [vmem:[#allocation2 + $0xf8] sm:$0xff] %v3404_v35  ;;  %1505 = vmatpush.msrb.mxu3 %v3028_v2  ;;  %1100 = vmatpush.msrb.mxu1 %v808_v3  ;;  %v804_v2 = vld [vmem:[%s3629_s15 + $0x58] sm:$0xff]  ;;  %v552_v3 = vmul.f32 %v3674_v41, %v516_v46  ;;  %v3005_v46 = vld [vmem:[%s3629_s15 + $0x140] sm:$0xff] }
  0x8f   : > { %684 = vst [vmem:[#allocation2 + $0x100] sm:$0x3] %v3404_v35  ;;  %1344 = vmatpush.msrb.mxu2 %v3011_v4  ;;  %1003 = vmatmul.f32.vlgmr.msra.gmra.mxu0 %v875_v13  ;;  %v628_v4 = vmax.f32 %v596_v43, 0.0  ;;  %v542_v13 = vld [vmem:[%s3627_s10 + $0xd0] sm:$0xff]  ;;  %v554_v43 = vmul.f32 %v3674_v41, %v518_v29 }
  0x90   : > { %685 = vst [vmem:[#allocation2 + $0x108] sm:$0xff] %v3404_v35  ;;  %1506 = vmatpush.msrb.mxu3 %v3027_v5  ;;  %1101 = vmatpush.msrb.mxu1 %v807_v15  ;;  %v605_v5 = vadd.f32 %v3677_v42, %v569_v44  ;;  %v563_v15 = vmul.f32 %v3674_v41, %v527_v57  ;;  %v3003_v29 = vld [vmem:[%s3629_s15 + $0x130] sm:$0xff] }
  0x91   : > { %686 = vst [vmem:[#allocation2 + $0x110] sm:$0xff] %v3404_v35  ;;  %1345 = vmatpush.msrb.mxu2 %v3010_v16  ;;  %1677 = vmatpush.msrb.mxu0 %v3044_v24  ;;  %v570_v16 = vmul.f32 %v3674_v41, %v534_v58  ;;  %v588_v18 = vadd.f32 %v3677_v42, %v552_v3  ;;  %v644_v24 = vmax.f32 %v612_v11, 0.0 }
  0x92   : > { %687 = vst [vmem:[#allocation2 + $0x118] sm:$0x3] %v3404_v35  ;;  %1507 = vmatpush.msrb.mxu3 %v3026_v23  ;;  %1102 = vmatpush.msrb.mxu1 %v806_v25  ;;  %v637_v21 = vmax.f32 %v605_v5, 0.0  ;;  %v578_v23 = vmul.f32 %v3674_v41, %v542_v13  ;;  %v645_v25 = vmax.f32 %v613_v12, 0.0  ;;  %v599_v30 = vadd.f32 %v3677_v42, %v563_v15  ;;  %v801_v12 = vld [vmem:[%s3629_s15 + $0x40] sm:$0xff] }
  0x93   : > { %688 = vst [vmem:[#allocation2 + $0x120] sm:$0xff] %v3404_v35  ;;  %1346 = vmatpush.msrb.mxu2 %v3009_v26  ;;  %1678 = vmatpush.msrb.mxu0 %v3043_v28  ;;  %v803_v26 = vld [vmem:[%s3629_s15 + $0x50] sm:$0xff]  ;;  %v3831_v31 = vadd.f32 %v3677_v42, %v570_v16  ;;  %v620_v34 = vmax.f32 %v588_v18, 0.0  ;;  %v615_v58 = vadd.f32 %v3677_v42, %v579_v32 }
  0x94   : > { %689 = vst [vmem:[#allocation2 + $0x128] sm:$0xff] %v3404_v35  ;;  %1030 = vmatmul.f32.gmra.mxu1 %v3745_v10  ;;  %1508 = vmatpush.msrb.mxu3 %v3025_v27  ;;  %v3006_v27 = vld [vmem:[%s3629_s15 + $0x148] sm:$0xff] }
  0x95   : > { %690 = vst [vmem:[#allocation2 + $0x130] sm:$0x3] %v3404_v35  ;;  %1103 = vmatpush.msrb.mxu1 %v805_v49  ;;  %1347 = vmatpush.msrb.mxu2 %v3008_v50  ;;  %v555_v49 = vmul.f32 %v3674_v41, %v519_v33  ;;  %v638_v57 = vmax.f32 %v3831_v31, 0.0  ;;  %v647_v18 = vmax.f32 %v615_v58, 0.0  ;;  %v572_v31 = vmul.f32 %v3674_v41, %v536_v19 }
  0x96   : > { %691 = vst [vmem:[#allocation2 + $0x138] sm:$0xff] %v3404_v35  ;;  %1509 = vmatpush.msrb.mxu3 %v3024_v63  ;;  %1679 = vmatpush.msrb.mxu0 %v3042_v1  ;;  %v590_v63 = vadd.f32 %v3677_v42, %v554_v43 }
  0x97   : > { %692 = vst [vmem:[#allocation2 + $0x140] sm:$0xff] %v3404_v35  ;;  %1006 = vmatmul.f32.gmra.mxu0 %v879_v56  ;;  %1104 = vmatpush.msrb.mxu1 %v804_v2  ;;  %v631_v56 = vmax.f32 %v599_v30, 0.0  ;;  %v591_v5 = vadd.f32 %v3677_v42, %v555_v49  ;;  %v608_v58 = vadd.f32 %v3677_v42, %v572_v31 }
  0x98   : > { %5013 = vst [vmem:[#allocation13_spill] sm:$0xff] %v3745_v10  ;;  %1348 = vmatpush.msrb.mxu2 %v3007_v6  ;;  %1510 = vmatpush.msrb.mxu3 %v3023_v7  ;;  %v528_v6 = vld [vmem:[%s3627_s10 + $0x60] sm:$0xff]  ;;  %v529_v7 = vld [vmem:[%s3627_s10 + $0x68] sm:$0xff]  ;;  %v622_v22 = vmax.f32 %v590_v63, 0.0 }
  0x99   : > { %693 = vst [vmem:[#allocation2 + $0x148] sm:$0x3] %v3404_v35  ;;  %1680 = vmatpush.msrb.mxu0 %v3041_v8  ;;  %1105 = vmatpush.msrb.mxu1 %v803_v26  ;;  %v565_v13 = vmul.f32 %v3674_v41, %v529_v7  ;;  %v3038_v26 = vld [vmem:[%s3629_s15 + $0x248] sm:$0xff]  ;;  %v640_v19 = vmax.f32 %v608_v58, 0.0 }
  0x9a   : > { %694 = vst [vmem:[#allocation2 + $0x150] sm:$0xff] %v3404_v35  ;;  %1349 = vmatpush.msrb.mxu2 %v3006_v27  ;;  %1511 = vmatpush.msrb.mxu3 %v3022_v36  ;;  %v800_v27 = vld [vmem:[%s3629_s15 + $0x38] sm:$0xff]  ;;  %v3019_v36 = vld [vmem:[%s3629_s15 + $0x1b0] sm:$0xff] }
  0x9b   : > { %695 = vst [vmem:[#allocation2 + $0x158] sm:$0xff] %v3404_v35  ;;  %1681 = vmatpush.msrb.mxu0 %v3040_v37  ;;  %1106 = vmatpush.msrb.mxu1 %v802_v38  ;;  %v601_v30 = vadd.f32 %v3677_v42, %v565_v13  ;;  %v3037_v37 = vld [vmem:[%s3629_s15 + $0x240] sm:$0xff] }
  0x9c   : > { %696 = vst [vmem:[#allocation2 + $0x160] sm:$0x3] %v3404_v35  ;;  %1350 = vmatpush.msrb.mxu2 %v3005_v46  ;;  %1512 = vmatpush.msrb.mxu3 %v3021_v47 }
  0x9d   : > { %697 = vst [vmem:[#allocation2 + $0x168] sm:$0xff] %v3404_v35  ;;  %1682 = vmatpush.msrb.mxu0 %v3039_v52  ;;  %1107 = vmatpush.msrb.mxu1 %v801_v12  ;;  %v544_v52 = vld [vmem:[%s3627_s10 + $0xe0] sm:$0xff] }
  0x9e   : > { %698 = vst [vmem:[#allocation2 + $0x170] sm:$0xff] %v3404_v35 }
  0x9f   : > { %699 = vst [vmem:[#allocation2 + $0x178] sm:$0x3] %v3404_v35  ;;  %1683 = vmatpush.msrb.mxu0 %v3038_v26  ;;  %1108 = vmatpush.msrb.mxu1 %v800_v27  ;;  %v3017_v27 = vld [vmem:[%s3629_s15 + $0x1a0] sm:$0xff] }
  0xa0   : > { %700 = vst [vmem:[#allocation2 + $0x180] sm:$0xff] %v3404_v35 }
  0xa1   : > { %701 = vst [vmem:[#allocation2 + $0x188] sm:$0xff] %v3404_v35  ;;  %1684 = vmatpush.msrb.mxu0 %v3037_v37 }
  0xa2   : > { %702 = vst [vmem:[#allocation2 + $0x190] sm:$0x3] %v3404_v35 }
  0xa3   : > { %705 = vst [vmem:[#allocation2 + $0x1a8] sm:$0x3] %v3404_v35  ;;  %v562_v35 = vmul.f32 %v3674_v41, %v526_v53 }
  0xa4   : > { %721 = vst [vmem:[#allocation2 + $0xc1] sm:$0xff] %v634_v48  ;;  %v614_v48 = vadd.f32 %v3677_v42, %v578_v23 }
  0xa5   : > { %722 = vst [vmem:[#allocation2 + $0xc9] sm:$0xff] %v635_v54  ;;  %v598_v28 = vadd.f32 %v3677_v42, %v562_v35  ;;  %v564_v35 = vmul.f32 %v3674_v41, %v528_v6 }
  0xa6   : > { %729 = vst [vmem:[#allocation2 + $0x121] sm:$0xff] %v642_v60 }
  0xa7   : > { %730 = vst [vmem:[#allocation2 + $0x129] sm:$0xff] %v643_v61  ;;  %v630_v53 = vmax.f32 %v598_v28, 0.0  ;;  %v600_v23 = vadd.f32 %v3677_v42, %v564_v35  ;;  %v623_v28 = vmax.f32 %v591_v5, 0.0  ;;  %v545_v5 = vld [vmem:[%s3627_s10 + $0xe8] sm:$0xff] }
  0xa8   : > { %715 = vst [vmem:[#allocation2 + $0x79] sm:$0xff] %v628_v4  ;;  %v646_v4 = vmax.f32 %v614_v48, 0.0  ;;  %v581_v12 = vmul.f32 %v3674_v41, %v545_v5  ;;  %v3034_v5 = vld [vmem:[%s3629_s15 + $0x228] sm:$0xff] }
  0xa9   : > { %716 = vst [vmem:[#allocation2 + $0x81] sm:$0xff] %v629_v14  ;;  %v632_v46 = vmax.f32 %v600_v23, 0.0 }
  0xaa   : > { %723 = vst [vmem:[#allocation2 + $0xd9] sm:$0xff] %v636_v17  ;;  %v3004_v17 = vld [vmem:[%s3629_s15 + $0x138] sm:$0xff] }
  0xab   : > { %v3842_v44 = vld [vmem:[#allocation2 + $0xc0] sm:$0xff]  ;;  %724 = vst [vmem:[#allocation2 + $0xe1] sm:$0xff] %v637_v21  ;;  %1351 = vmatpush.msrb.mxu2 %v3004_v17  ;;  %v3020_v21 = vld [vmem:[%s3629_s15 + $0x1b8] sm:$0xff]  ;;  %v798_v17 = vld [vmem:[%s3629_s15 + $0x28] sm:$0xff] }
  0xac   : > { %v3848_v50 = vld [vmem:[#allocation2 + $0xc8] sm:$0xff]  ;;  %v915_v51 = vrot.slane %v3842_v44, 1  ;;  %731 = vst [vmem:[#allocation2 + $0x139] sm:$0xff] %v644_v24  ;;  %v3857_v61 = vld [vmem:[#allocation2 + $0xd0] sm:$0x3]  ;;  %1513 = vmatpush.msrb.mxu3 %v3020_v21 }
  0xad   : > { %v916_v54 = vrot.slane %v3848_v50, 1  ;;  %v775_v55 = vld [vmem:[#allocation2 + $0x120] sm:$0xff]  ;;  %732 = vst [vmem:[#allocation2 + $0x141] sm:$0xff] %v645_v25  ;;  %v918_v15 = vrot.slane %v3857_v61, 1  ;;  %1352 = vmatpush.msrb.mxu2 %v3003_v29 }
  0xae   : > { %v3855_v59 = vld [vmem:[#allocation2 + $0x128] sm:$0xff]  ;;  %v935_v60 = vrot.slane %v775_v55, 1  ;;  %707 = vst [vmem:[#allocation2 + $0x19] sm:$0xff] %v620_v34  ;;  %v777_v8 = vld [vmem:[#allocation2 + $0x130] sm:$0x3]  ;;  %1514 = vmatpush.msrb.mxu3 %v3019_v36  ;;  %v799_v55 = vld [vmem:[%s3629_s15 + $0x30] sm:$0xff] }
  0xaf   : > { %v3862_v1 = vsel %vm874_vm0, %v915_v51, %v916_v54  ;;  %v936_v2 = vrot.slane %v3855_v59, 1  ;;  %v3865_v3 = vld [vmem:[#allocation2 + $0x78] sm:$0xff]  ;;  %708 = vst [vmem:[#allocation2 + $0x21] sm:$0xff] %v621_v45  ;;  %v938_v24 = vrot.slane %v777_v8, 1  ;;  %v3899_v32 = vsel %vm874_vm0, %v916_v54, %v918_v15  ;;  %1109 = vmatpush.msrb.mxu1 %v799_v55 }
  0xb0   : > { %5014 = vst [vmem:[#allocation14_spill] sm:$0xff] %v3862_v1  ;;  %1051 = vmatmul.f32.vlgmr.msra.gmra.mxu2 %v3862_v1  ;;  %v3871_v9 = vld [vmem:[#allocation2 + $0x80] sm:$0xff]  ;;  %v900_v11 = vrot.slane %v3865_v3, 1  ;;  %v3885_v20 = vld [vmem:[#allocation2 + $0x88] sm:$0x3]  ;;  %v537_v51 = vld [vmem:[%s3627_s10 + $0xa8] sm:$0xff]  ;;  %v580_v59 = vmul.f32 %v3674_v41, %v544_v52 }
  0xb1   : > { %717 = vst [vmem:[#allocation2 + $0x91] sm:$0xff] %v630_v53  ;;  %v3878_v14 = vsel %vm874_vm0, %v935_v60, %v936_v2  ;;  %v901_v16 = vrot.slane %v3871_v9, 1  ;;  %v903_v33 = vrot.slane %v3885_v20, 1  ;;  %v3906_v38 = vld [vmem:[#allocation2 + $0xd8] sm:$0xff]  ;;  %v3914_v47 = vsel %vm874_vm0, %v936_v2, %v938_v24  ;;  %1110 = vmatpush.msrb.mxu1 %v798_v17  ;;  %v3000_v52 = vld [vmem:[%s3629_s15 + $0x118] sm:$0xff]  ;;  %v3015_v17 = vld [vmem:[%s3629_s15 + $0x190] sm:$0xff] }
  0xb2   : > { %5015 = vst [vmem:[#allocation15_spill] sm:$0xff] %v3878_v14  ;;  %1075 = vmatmul.f32.vlgmr.msra.gmra.mxu3 %v3878_v14  ;;  %v3908_v39 = vld [vmem:[#allocation2 + $0xe0] sm:$0xff]  ;;  %v920_v60 = vrot.slane %v3906_v38, 1  ;;  %v3018_v8 = vld [vmem:[%s3629_s15 + $0x1a8] sm:$0xff]  ;;  %v616_v21 = vadd.f32 %v3677_v42, %v580_v59  ;;  %v3964_v29 = vld [vmem:[#allocation2 + $0xe8] sm:$0x3] }
  0xb3   : > { %718 = vst [vmem:[#allocation2 + $0x99] sm:$0xff] %v631_v56  ;;  %v3890_v25 = vsel %vm874_vm0, %v900_v11, %v901_v16  ;;  %v778_v48 = vld [vmem:[#allocation2 + $0x138] sm:$0xff]  ;;  %v633_v56 = vmax.f32 %v601_v30, 0.0  ;;  %v3931_v63 = vsel %vm874_vm0, %v901_v16, %v903_v33  ;;  %1515 = vmatpush.msrb.mxu3 %v3018_v8  ;;  %v3036_v16 = vld [vmem:[%s3629_s15 + $0x238] sm:$0xff]  ;;  %v923_v58 = vrot.slane %v3964_v29, 1 }
  0xb4   : > { %725 = vst [vmem:[#allocation2 + $0xf1] sm:$0xff] %v638_v57  ;;  %1033 = vmatmul.f32.gmra.mxu1 %v3890_v25  ;;  %v3920_v53 = vld [vmem:[#allocation2 + $0x140] sm:$0xff]  ;;  %v573_v57 = vmul.f32 %v3674_v41, %v537_v51  ;;  %v940_v35 = vrot.slane %v778_v48, 1  ;;  %1685 = vmatpush.msrb.mxu0 %v3036_v16  ;;  %v780_v30 = vld [vmem:[#allocation2 + $0x148] sm:$0x3]  ;;  %v797_v51 = vld [vmem:[%s3629_s15 + $0x20] sm:$0xff] }
  0xb5   : > { %5016 = vst [vmem:[#allocation16_spill] sm:$0xff] %v3890_v25  ;;  %v3902_v34 = vld [vmem:[#allocation2 + $0x18] sm:$0xff]  ;;  %v941_v13 = vrot.slane %v3920_v53, 1  ;;  %1516 = vmatpush.msrb.mxu3 %v3017_v27  ;;  %v648_v55 = vmax.f32 %v616_v21, 0.0  ;;  %1111 = vmatpush.msrb.mxu1 %v797_v51  ;;  %v796_v8 = vld [vmem:[%s3629_s15 + $0x18] sm:$0xff]  ;;  %v2999_v16 = vld [vmem:[%s3629_s15 + $0x110] sm:$0xff] }
  0xb6   : > { %726 = vst [vmem:[#allocation2 + $0xf9] sm:$0xff] %v639_v62  ;;  %v3910_v43 = vld [vmem:[#allocation2 + $0x20] sm:$0xff]  ;;  %v880_v45 = vrot.slane %v3902_v34, 1  ;;  %v3922_v54 = vld [vmem:[#allocation2 + $0x28] sm:$0x3]  ;;  %v921_v62 = vrot.slane %v3908_v39, 1  ;;  %v609_v11 = vadd.f32 %v3677_v42, %v573_v57 }
  0xb7   : > { %733 = vst [vmem:[#allocation2 + $0x151] sm:$0xff] %v646_v4  ;;  %v881_v49 = vrot.slane %v3910_v43, 1  ;;  %v3002_v4 = vld [vmem:[%s3629_s15 + $0x128] sm:$0xff]  ;;  %v883_v15 = vrot.slane %v3922_v54, 1  ;;  %v3969_v33 = vsel %vm874_vm0, %v940_v35, %v941_v13  ;;  %1112 = vmatpush.msrb.mxu1 %v796_v8  ;;  %v3013_v8 = vld [vmem:[%s3629_s15 + $0x180] sm:$0xff] }
  0xb8   : > { %5017 = vst [vmem:[#allocation17_spill] sm:$0xff] %v3899_v32  ;;  %1054 = vmatmul.f32.gmra.mxu2 %v3899_v32  ;;  %v3940_v6 = vld [vmem:[#allocation2 + $0x90] sm:$0xff]  ;;  %v3958_v23 = vsel %vm874_vm0, %v920_v60, %v921_v62  ;;  %v641_v31 = vmax.f32 %v609_v11, 0.0  ;;  %v2998_v51 = vld [vmem:[%s3629_s15 + $0x108] sm:$0xff] }
  0xb9   : > { %734 = vst [vmem:[#allocation2 + $0x159] sm:$0xff] %v647_v18  ;;  %v3934_v2 = vsel %vm874_vm0, %v880_v45, %v881_v49  ;;  %1353 = vmatpush.msrb.mxu2 %v3002_v4  ;;  %v3001_v18 = vld [vmem:[%s3629_s15 + $0x120] sm:$0xff]  ;;  %v905_v24 = vrot.slane %v3940_v6, 1  ;;  %v3972_v36 = vsel %vm874_vm0, %v881_v49, %v883_v15  ;;  %v943_v4 = vrot.slane %v780_v30, 1 }
  0xba   : > { %709 = vst [vmem:[#allocation2 + $0x31] sm:$0xff] %v622_v22  ;;  %1078 = vmatmul.f32.gmra.mxu3 %v3914_v47  ;;  %1009 = vmatmul.f32.gmra.mxu0 %v3934_v2  ;;  %v3942_v7 = vld [vmem:[#allocation2 + $0x98] sm:$0xff]  ;;  %v617_v22 = vadd.f32 %v3677_v42, %v581_v12  ;;  %v520_v45 = vld [vmem:[%s3627_s10 + $0x20] sm:$0xff]  ;;  %v3991_v60 = vld [vmem:[#allocation2 + $0xa0] sm:$0x3] }
  0xbb   : > { %5018 = vst [vmem:[#allocation18_spill] sm:$0xff] %v3914_v47  ;;  %v906_v26 = vrot.slane %v3942_v7, 1  ;;  %1354 = vmatpush.msrb.mxu2 %v3001_v18  ;;  %v556_v57 = vmul.f32 %v3674_v41, %v520_v45  ;;  %v3033_v18 = vld [vmem:[%s3629_s15 + $0x220] sm:$0xff]  ;;  %v3059_v47 = vld [vmem:[%s3629_s15 + $0x2f0] sm:$0xff] }
  0xbc   : > { %710 = vst [vmem:[#allocation2 + $0x39] sm:$0xff] %v623_v28  ;;  %1036 = vmatmul.f32.gmra.mxu1 %v3931_v63  ;;  %v3035_v28 = vld [vmem:[%s3629_s15 + $0x230] sm:$0xff] }
  0xbd   : > { %5019 = vst [vmem:[#allocation19_spill] sm:$0xff] %v3931_v63  ;;  %1686 = vmatpush.msrb.mxu0 %v3035_v28  ;;  %v3989_v59 = vsel %vm874_vm0, %v905_v24, %v906_v26  ;;  %1355 = vmatpush.msrb.mxu2 %v3000_v52  ;;  %v592_v11 = vadd.f32 %v3677_v42, %v556_v57  ;;  %v4012_v24 = vld [vmem:[#allocation2 + $0xf0] sm:$0xff]  ;;  %v4014_v27 = vld [vmem:[#allocation2 + $0xf8] sm:$0xff] }
  0xbe   : > { %719 = vst [vmem:[#allocation2 + $0xa9] sm:$0xff] %v632_v46  ;;  %v521_v46 = vld [vmem:[%s3627_s10 + $0x28] sm:$0xff]  ;;  %v4019_v28 = vsel %vm874_vm0, %v941_v13, %v943_v4  ;;  %v781_v30 = vld [vmem:[#allocation2 + $0x150] sm:$0xff]  ;;  %v925_v53 = vrot.slane %v4012_v24, 1  ;;  %v926_v13 = vrot.slane %v4014_v27, 1  ;;  %v3032_v4 = vld [vmem:[%s3629_s15 + $0x218] sm:$0xff] }
  0xbf   : > { %720 = vst [vmem:[#allocation2 + $0xb1] sm:$0xff] %v633_v56  ;;  %v649_v56 = vmax.f32 %v617_v22, 0.0  ;;  %v557_v49 = vmul.f32 %v3674_v41, %v521_v46  ;;  %v3016_v41 = vld [vmem:[%s3629_s15 + $0x198] sm:$0xff]  ;;  %1687 = vmatpush.msrb.mxu0 %v3034_v5  ;;  %1356 = vmatpush.msrb.mxu2 %v2999_v16  ;;  %v908_v22 = vrot.slane %v3991_v60, 1  ;;  %v795_v46 = vld [vmem:[%s3629_s15 + $0x10] sm:$0xff]  ;;  %v3014_v57 = vld [vmem:[%s3629_s15 + $0x188] sm:$0xff] }
  0xc0   : > { %5020 = vst [vmem:[#allocation20_spill] sm:$0xff] %v3958_v23  ;;  %1057 = vmatmul.f32.gmra.mxu2 %v3958_v23  ;;  %1517 = vmatpush.msrb.mxu3 %v3016_v41  ;;  %v794_v41 = vld [vmem:[%s3629_s15 + $0x8] sm:$0xff]  ;;  %v2997_v5 = vld [vmem:[%s3629_s15 + $0x100] sm:$0xff] }
  0xc1   : > { %727 = vst [vmem:[#allocation2 + $0x109] sm:$0xff] %v640_v19  ;;  %v3974_v37 = vld [vmem:[#allocation2 + $0x30] sm:$0xff]  ;;  %v593_v12 = vadd.f32 %v3677_v42, %v557_v49  ;;  %v624_v19 = vmax.f32 %v592_v11, 0.0  ;;  %v4009_v42 = vsel %vm874_vm0, %v921_v62, %v923_v58  ;;  %1688 = vmatpush.msrb.mxu0 %v3033_v18  ;;  %v4036_v52 = vsel %vm874_vm0, %v906_v26, %v908_v22  ;;  %v3031_v11 = vld [vmem:[%s3629_s15 + $0x210] sm:$0xff] }
  0xc2   : > { %5021 = vst [vmem:[#allocation21_spill] sm:$0xff] %v3969_v33  ;;  %1081 = vmatmul.f32.gmra.mxu3 %v3969_v33  ;;  %1012 = vmatmul.f32.gmra.mxu0 %v3972_v36  ;;  %v885_v35 = vrot.slane %v3974_v37, 1  ;;  %v945_v49 = vrot.slane %v781_v30, 1  ;;  %v4059_v18 = vld [vmem:[#allocation2 + $0x100] sm:$0x3] }
  0xc3   : > { %v3979_v48 = vld [vmem:[#allocation2 + $0x38] sm:$0xff]  ;;  %728 = vst [vmem:[#allocation2 + $0x111] sm:$0xff] %v641_v31  ;;  %v625_v21 = vmax.f32 %v593_v12, 0.0  ;;  %1518 = vmatpush.msrb.mxu3 %v3015_v17  ;;  %v4027_v45 = vld [vmem:[#allocation2 + $0x40] sm:$0x3]  ;;  %1113 = vmatpush.msrb.mxu1 %v795_v46  ;;  %v793_v12 = vld [vmem:[%s3629_s15] sm:$0xff] }
  0xc4   : > { %5022 = vst [vmem:[#allocation22_spill] sm:$0xff] %v3989_v59  ;;  %v886_v15 = vrot.slane %v3979_v48, 1  ;;  %1039 = vmatmul.f32.gmra.mxu1 %v3989_v59  ;;  %v4021_v31 = vld [vmem:[#allocation2 + $0x158] sm:$0xff]  ;;  %1357 = vmatpush.msrb.mxu2 %v2998_v51  ;;  %v888_v26 = vrot.slane %v4027_v45, 1  ;;  %v3076_v46 = vld [vmem:[%s3629_s15 + $0x378] sm:$0xff]  ;;  %v928_v51 = vrot.slane %v4059_v18, 1 }
  0xc5   : > { %735 = vst [vmem:[#allocation2 + $0x169] sm:$0xff] %v648_v55  ;;  %v4040_v55 = vld [vmem:[#allocation2 + $0xa8] sm:$0xff]  ;;  %v946_v58 = vrot.slane %v4021_v31, 1  ;;  %1519 = vmatpush.msrb.mxu3 %v3014_v57  ;;  %1689 = vmatpush.msrb.mxu0 %v3032_v4 }
  0xc6   : > { %736 = vst [vmem:[#allocation2 + $0x171] sm:$0xff] %v649_v56  ;;  %v4024_v62 = vsel %vm874_vm0, %v885_v35, %v886_v15  ;;  %v4042_v56 = vld [vmem:[#allocation2 + $0xb0] sm:$0xff]  ;;  %v4055_v35 = vsel %vm874_vm0, %v925_v53, %v926_v13  ;;  %v910_v16 = vrot.slane %v4040_v55, 1  ;;  %1114 = vmatpush.msrb.mxu1 %v794_v41  ;;  %1358 = vmatpush.msrb.mxu2 %v2997_v5  ;;  %v4077_v57 = vld [vmem:[#allocation2 + $0xb8] sm:$0x3] }
  0xc7   : > { %711 = vst [vmem:[#allocation2 + $0x49] sm:$0xff] %v624_v19  ;;  %v911_v17 = vrot.slane %v4042_v56, 1  ;;  %1520 = vmatpush.msrb.mxu3 %v3013_v8  ;;  %1690 = vmatpush.msrb.mxu0 %v3031_v11  ;;  %v4062_v19 = vsel %vm874_vm0, %v945_v49, %v946_v58  ;;  %v4065_v22 = vsel %vm874_vm0, %v886_v15, %v888_v26  ;;  %v3030_v15 = vld [vmem:[%s3629_s15 + $0x208] sm:$0xff]  ;;  %v3092_v49 = vld [vmem:[%s3629_s15 + $0x3f8] sm:$0xff]  ;;  %v3029_v8 = vld [vmem:[%s3629_s15 + $0x200] sm:$0xff] }
  0xc8   : > { %5023 = vst [vmem:[#allocation23_spill] sm:$0xff] %v4019_v28  ;;  %1060 = vmatmul.f32.gmra.mxu2 %v4009_v42  ;;  %1115 = vmatpush.msrb.mxu1 %v793_v12  ;;  %v3060_v26 = vld [vmem:[%s3629_s15 + $0x2f8] sm:$0xff]  ;;  %v4089_v11 = vsel %vm874_vm0, %v926_v13, %v928_v51  ;;  %v913_v12 = vrot.slane %v4077_v57, 1 }
  0xc9   : > { %712 = vst [vmem:[#allocation2 + $0x51] sm:$0xff] %v625_v21  ;;  %v783_v21 = vld [vmem:[#allocation2 + $0x160] sm:$0x3]  ;;  %v4075_v53 = vsel %vm874_vm0, %v910_v16, %v911_v17  ;;  %2008 = vmatpush.msra.mxu2 %v3076_v46  ;;  %1691 = vmatpush.msrb.mxu0 %v3030_v15  ;;  %v4092_v16 = vld [vmem:[#allocation2 + $0x108] sm:$0xff] }
  0xca   : > { %5024 = vst [vmem:[#allocation24_spill] sm:$0xff] %v4036_v52  ;;  %1084 = vmatmul.f32.gmra.mxu3 %v4019_v28  ;;  %1015 = vmatmul.f32.gmra.mxu0 %v4024_v62  ;;  %v948_v4 = vrot.slane %v783_v21, 1  ;;  %v4094_v21 = vld [vmem:[#allocation2 + $0x110] sm:$0xff] }
  0xcb   : > { %5025 = vst [vmem:[#allocation25_spill] sm:$0xff] %v4055_v35  ;;  %2180 = vmatpush.msra.mxu3 %v3092_v49  ;;  %1846 = vmatpush.msra.mxu1 %v3060_v26  ;;  %v930_v26 = vrot.slane %v4092_v16, 1 }
  0xcc   : > { %1042 = vmatmul.f32.gmra.mxu1 %v4036_v52  ;;  %5026 = vst [vmem:[#allocation26_spill] sm:$0xff] %v4062_v19  ;;  %1692 = vmatpush.msrb.mxu0 %v3029_v8  ;;  %v4097_v46 = vsel %vm874_vm0, %v946_v58, %v948_v4  ;;  %v4103_v49 = vld [vmem:[#allocation2 + $0x168] sm:$0xff]  ;;  %v931_v8 = vrot.slane %v4094_v21, 1 }
  0xcd   : > { %5027 = vst [vmem:[#allocation27_spill] sm:$0xff] %v4075_v53  ;;  %v4105_v13 = vld [vmem:[#allocation2 + $0x170] sm:$0xff]  ;;  %v3108_v58 = vld [vmem:[%s3629_s15 + $0x478] sm:$0xff]  ;;  %v950_v4 = vrot.slane %v4103_v49, 1  ;;  %1847 = vmatpush.msra.mxu1 %v3059_v47  ;;  %v3074_v47 = vld [vmem:[%s3629_s15 + $0x368] sm:$0xff] }
  0xce   : > { %v4068_v30 = vld [vmem:[#allocation2 + $0x48] sm:$0xff]  ;;  %5028 = vst [vmem:[#allocation28_spill] sm:$0xff] %v4097_v46  ;;  %2349 = vmatpush.msra.mxu0 %v3108_v58  ;;  %v4122_v33 = vsel %vm874_vm0, %v930_v26, %v931_v8  ;;  %v3091_v26 = vld [vmem:[%s3629_s15 + $0x3f0] sm:$0xff] }
  0xcf   : > { %v890_v41 = vrot.slane %v4068_v30, 1  ;;  %5029 = vst [vmem:[#allocation29_spill] sm:$0xff] %v4103_v49  ;;  %v3075_v49 = vld [vmem:[%s3629_s15 + $0x370] sm:$0xff]  ;;  %2181 = vmatpush.msra.mxu3 %v3091_v26 }
  0xd0   : > { %1063 = vmatmul.f32.gmra.mxu2 %v4055_v35  ;;  %v4070_v31 = vld [vmem:[#allocation2 + $0x50] sm:$0xff]  ;;  %5030 = vst [vmem:[#allocation30_spill] sm:$0xff] %v4105_v13  ;;  %v4107_v51 = vld [vmem:[#allocation2 + $0x58] sm:$0x3]  ;;  %v3107_v26 = vld [vmem:[%s3629_s15 + $0x470] sm:$0xff] }
  0xd1   : > { %v891_v5 = vrot.slane %v4070_v31, 1  ;;  %v893_v28 = vrot.slane %v4107_v51, 1  ;;  %2009 = vmatpush.msra.mxu2 %v3075_v49  ;;  %2350 = vmatpush.msra.mxu0 %v3107_v26  ;;  %v1239_v26 = vrot.slane %v3922_v54, 2  ;;  %v1241_v54 = vrot.slane %v3974_v37, 2 }
  0xd2   : > { %1087 = vmatmul.f32.gmra.mxu3 %v4062_v19  ;;  %1018 = vmatmul.f32.gmra.mxu0 %v4065_v22  ;;  %v4112_v19 = vsel %vm874_vm0, %v911_v17, %v913_v12  ;;  %v4124_v17 = vld [vmem:[#allocation2 + $0x118] sm:$0x3] }
  0xd3   : > { %v4100_v15 = vsel %vm874_vm0, %v890_v41, %v891_v5  ;;  %5031 = vst [vmem:[#allocation31_spill] sm:$0xff] %v4112_v19  ;;  %v951_v41 = vrot.slane %v4105_v13, 1  ;;  %v4133_v13 = vld [vmem:[#allocation2 + $0x178] sm:$0x3]  ;;  %v933_v58 = vrot.slane %v4124_v17, 1  ;;  %2010 = vmatpush.msra.mxu2 %v3074_v47  ;;  %v3057_v47 = vld [vmem:[%s3629_s15 + $0x2e0] sm:$0xff] }
  0xd4   : > { %1045 = vmatmul.f32.gmra.mxu1 %v4075_v53 }
  0xd5   : > { %v4127_v12 = vsel %vm874_vm0, %v950_v4, %v951_v41  ;;  %v953_v4 = vrot.slane %v4133_v13, 1 }
  0xd6   : > { %5032 = vst [vmem:[#allocation32_spill] sm:$0xff] %v4127_v12 }
  0xd7   : > { %v4146_v49 = vsel %vm874_vm0, %v951_v41, %v953_v4  ;;  %v3090_v41 = vld [vmem:[%s3629_s15 + $0x3e8] sm:$0xff]  ;;  %v1236_v4 = vrot.slane %v3902_v34, 2 }
  0xd8   : > { %1066 = vmatmul.f32.gmra.mxu2 %v4089_v11  ;;  %5033 = vst [vmem:[#allocation33_spill] sm:$0xff] %v4146_v49  ;;  %2182 = vmatpush.msra.mxu3 %v3090_v41  ;;  %v3105_v41 = vld [vmem:[%s3629_s15 + $0x460] sm:$0xff] }
  0xda   : > { %1090 = vmatmul.f32.gmra.mxu3 %v4097_v46  ;;  %1021 = vmatmul.f32.gmra.mxu0 %v4100_v15  ;;  %v4130_v46 = vsel %vm874_vm0, %v891_v5, %v893_v28  ;;  %v3253_v28 = vld [vmem:[#allocation2] sm:$0xff]  ;;  %v4143_v5 = vsel %vm874_vm0, %v931_v8, %v933_v58  ;;  %v1234_v8 = vrot.slane %v3784_v40, 2  ;;  %v3058_v58 = vld [vmem:[%s3629_s15 + $0x2e8] sm:$0xff]  ;;  %v1237_v40 = vrot.slane %v3910_v43, 2 }
  0xdb   : > { %1848 = vmatpush.msra.mxu1 %v3058_v58 }
  0xdc   : > { %1048 = vmatmul.f32.gmra.mxu1 %v4112_v19 }
  0xdd   : > { %1849 = vmatpush.msra.mxu1 %v3057_v47  ;;  %v1249_v47 = vrot.slane %v4107_v51, 2 }
  0xe0   : > { %1069 = vmatmul.f32.gmra.mxu2 %v4122_v33 }
  0xe2   : > { %1093 = vmatmul.f32.gmra.mxu3 %v4127_v12  ;;  %1024 = vmatmul.f32.gmra.mxu0 %v4130_v46  ;;  %v1231_v12 = vrot.slane %v3253_v28, 2 }
  0xe4   : > { %1116 = vmatmul.f32.vlgmr.msrb.gmra.mxu1 %v3253_v28 }
  0xe8   : > { %1072 = vmatmul.f32.gmra.mxu2 %v4143_v5 }
  0xea   : > { %1096 = vmatmul.f32.gmra.mxu3 %v4146_v49  ;;  %1693 = vmatmul.f32.vlgmr.msrb.gmra.mxu0 %v3934_v2  ;;  %v1235_v2 = vsel %vm1230_vm1, %v1231_v12, %v1234_v8  ;;  %v1242_v8 = vrot.slane %v3979_v48, 2 }
  0xec   : > { %1119 = vmatmul.f32.gmra.mxu1 %v3253_v28  ;;  %v4167_v28 = vsel %vm1230_vm1, %v1236_v4, %v1237_v40  ;;  %v4188_v58 = vsel %vm1230_vm1, %v1241_v54, %v1242_v8  ;;  %v3088_v4 = vld [vmem:[%s3629_s15 + $0x3d8] sm:$0xff]  ;;  %v4216_v54 = vld [vmem:[#allocation2 + $0x60] sm:$0xff] }
  0xed   : > { %5034 = vst [vmem:[#allocation34_spill] sm:$0xff] %v4216_v54 }
  0xf0   : > { %1359 = vmatmul.f32.vlgmr.msrb.gmra.mxu2 %v1231_v12  ;;  %v3073_v12 = vld [vmem:[%s3629_s15 + $0x360] sm:$0xff] }
  0xf1   : > { %2011 = vmatpush.msra.mxu2 %v3073_v12  ;;  %v3104_v12 = vld [vmem:[%s3629_s15 + $0x458] sm:$0xff] }
  0xf2   : > { %1521 = vmatmul.f32.vlgmr.msrb.gmra.mxu3 %v3902_v34  ;;  %1696 = vmatmul.f32.gmra.mxu0 %v3972_v36  ;;  %v3106_v36 = vld [vmem:[%s3629_s15 + $0x468] sm:$0xff] }
  0xf3   : > { %2351 = vmatpush.msra.mxu0 %v3106_v36  ;;  %v1246_v36 = vrot.slane %v4068_v30, 2 }
  0xf4   : > { %1122 = vmatmul.f32.gmra.mxu1 %v3902_v34  ;;  %v3089_v34 = vld [vmem:[%s3629_s15 + $0x3e0] sm:$0xff] }
  0xf5   : > { %2183 = vmatpush.msra.mxu3 %v3089_v34  ;;  %2352 = vmatpush.msra.mxu0 %v3105_v41  ;;  %v3055_v41 = vld [vmem:[%s3629_s15 + $0x2d0] sm:$0xff] }
  0xf7   : > { %2184 = vmatpush.msra.mxu3 %v3088_v4  ;;  %2353 = vmatpush.msra.mxu0 %v3104_v12  ;;  %v4232_v4 = vld [vmem:[#allocation2 + $0x68] sm:$0xff] }
  0xf8   : > { %1362 = vmatmul.f32.gmra.mxu2 %v1235_v2  ;;  %v3072_v2 = vld [vmem:[%s3629_s15 + $0x358] sm:$0xff]  ;;  %5035 = vst [vmem:[#allocation35_spill] sm:$0xff] %v4232_v4 }
  0xf9   : > { %2012 = vmatpush.msra.mxu2 %v3072_v2 }
  0xfa   : > { %1524 = vmatmul.f32.gmra.mxu3 %v3910_v43  ;;  %1699 = vmatmul.f32.gmra.mxu0 %v4024_v62 }
  0xfc   : > { %1125 = vmatmul.f32.gmra.mxu1 %v3910_v43  ;;  %v4178_v43 = vsel %vm1230_vm1, %v1237_v40, %v1239_v26  ;;  %v3056_v40 = vld [vmem:[%s3629_s15 + $0x2d8] sm:$0xff] }
  0xfd   : > { %1850 = vmatpush.msra.mxu1 %v3056_v40  ;;  %v1252_v40 = vrot.slane %v4232_v4, 2 }
  0xff   : > { %1851 = vmatpush.msra.mxu1 %v3055_v41 }
 0x100   : > { %1365 = vmatmul.f32.gmra.mxu2 %v4167_v28 }
 0x102   : > { %1527 = vmatmul.f32.gmra.mxu3 %v3974_v37  ;;  %1702 = vmatmul.f32.gmra.mxu0 %v4065_v22 }
 0x104   : > { %1128 = vmatmul.f32.gmra.mxu1 %v3974_v37  ;;  %v1244_v37 = vrot.slane %v4027_v45, 2  ;;  %v1247_v45 = vrot.slane %v4070_v31, 2 }
 0x106   : > { %v4209_v26 = vsel %vm1230_vm1, %v1246_v36, %v1247_v45  ;;  %v4226_v2 = vsel %vm1230_vm1, %v1247_v45, %v1249_v47  ;;  %v3103_v36 = vld [vmem:[%s3629_s15 + $0x450] sm:$0xff]  ;;  %v3256_v47 = vld [vmem:[#allocation2 + $0x70] sm:$0x3] }
 0x107   : > { %2354 = vmatpush.msra.mxu0 %v3103_v36  ;;  %v3086_v36 = vld [vmem:[%s3629_s15 + $0x3c8] sm:$0xff] }
 0x108   : > { %1368 = vmatmul.f32.gmra.mxu2 %v4178_v43 }
 0x109   : > { %v4211_v34 = vpop.f32.mrf.mxu1 }
 0x10a   : > { %1530 = vmatmul.f32.gmra.mxu3 %v3979_v48  ;;  %1705 = vmatmul.f32.gmra.mxu0 %v4100_v15 }
 0x10c   : > { %1131 = vmatmul.f32.gmra.mxu1 %v3979_v48  ;;  %v4199_v48 = vsel %vm1230_vm1, %v1242_v8, %v1244_v37  ;;  %v3087_v8 = vld [vmem:[%s3629_s15 + $0x3d0] sm:$0xff]  ;;  %v1251_v37 = vrot.slane %v4216_v54, 2 }
 0x10d   : > { %2185 = vmatpush.msra.mxu3 %v3087_v8  ;;  %v1254_v8 = vrot.slane %v3256_v47, 2  ;;  %v1256_v47 = vrot.slane %v3865_v3, 2 }
 0x10e   : > { %v4240_v45 = vsel %vm1230_vm1, %v1251_v37, %v1252_v40  ;;  %v3054_v37 = vld [vmem:[%s3629_s15 + $0x2c8] sm:$0xff] }
 0x10f   : > { %2186 = vmatpush.msra.mxu3 %v3086_v36  ;;  %1852 = vmatpush.msra.mxu1 %v3054_v37  ;;  %v3102_v36 = vld [vmem:[%s3629_s15 + $0x448] sm:$0xff] }
 0x110   : > { %1371 = vmatmul.f32.gmra.mxu2 %v4188_v58  ;;  %2355 = vmatpush.msra.mxu0 %v3102_v36 }
 0x111   : > { %v4228_v51 = vpop.f32.mrf.mxu1 }
 0x112   : > { %1533 = vmatmul.f32.gmra.mxu3 %v4068_v30  ;;  %1708 = vmatmul.f32.gmra.mxu0 %v4130_v46 }
 0x114   : > { %1134 = vmatmul.f32.gmra.mxu1 %v4068_v30  ;;  %v3071_v30 = vld [vmem:[%s3629_s15 + $0x350] sm:$0xff] }
 0x115   : > { %2013 = vmatpush.msra.mxu2 %v3071_v30  ;;  %v3070_v30 = vld [vmem:[%s3629_s15 + $0x348] sm:$0xff] }
 0x117   : > { %2014 = vmatpush.msra.mxu2 %v3070_v30 }
 0x118   : > { %1374 = vmatmul.f32.gmra.mxu2 %v4199_v48 }
 0x11a   : > { %1536 = vmatmul.f32.gmra.mxu3 %v4070_v31  ;;  %1711 = vmatmul.f32.gmra.mxu0 %v3718_v0 }
 0x11c   : > { %1137 = vmatmul.f32.gmra.mxu1 %v4070_v31  ;;  %v4221_v31 = vpop.f32.mrf.mxu0 }
 0x120   : > { %1377 = vmatmul.f32.gmra.mxu2 %v4209_v26 }
 0x122   : > { %1539 = vmatmul.f32.gmra.mxu3 %v4216_v54  ;;  %1714 = vmatmul.f32.gmra.mxu0 %v3745_v10 }
 0x124   : > { %1140 = vmatmul.f32.gmra.mxu1 %v4216_v54  ;;  %v4242_v12 = vpop.f32.mrf.mxu0 }
 0x128   : > { %1380 = vmatmul.f32.gmra.mxu2 %v4226_v2 }
 0x12a   : > { %1542 = vmatmul.f32.gmra.mxu3 %v4232_v4  ;;  %1717 = vmatmul.f32.gmra.mxu0 %v3890_v25 }
 0x12c   : > { %1143 = vmatmul.f32.gmra.mxu1 %v4232_v4  ;;  %v4258_v4 = vsel %vm1230_vm1, %v1252_v40, %v1254_v8 }
 0x12d   : > { %5037 = vst [vmem:[#allocation37_spill] sm:$0xff] %v4258_v4 }
 0x130   : > { %1383 = vmatmul.f32.gmra.mxu2 %v4240_v45 }
 0x131   : > { %v4246_v41 = vpop.f32.mrf.mxu1 }
 0x132   : > { %1545 = vmatmul.f32.gmra.mxu3 %v3865_v3  ;;  %1720 = vmatmul.f32.gmra.mxu0 %v3931_v63  ;;  %v1257_v63 = vrot.slane %v3871_v9, 2 }
 0x133   : > { %v4251_v25 = vpop.f32.mrf.mxu2 }
 0x134   : > { %1146 = vmatmul.f32.gmra.mxu1 %v3865_v3  ;;  %v4276_v3 = vsel %vm1230_vm1, %v1256_v47, %v1257_v63  ;;  %v3053_v47 = vld [vmem:[%s3629_s15 + $0x2c0] sm:$0xff] }
 0x135   : > { %v4255_v10 = vpop.f32.mrf.mxu3  ;;  %5039 = vst [vmem:[#allocation39_spill] sm:$0xff] %v4276_v3  ;;  %1853 = vmatpush.msra.mxu1 %v3053_v47 }
 0x136   : > { %5036 = vst [vmem:[#allocation36_spill] sm:$0xff] %v4255_v10  ;;  %v3069_v10 = vld [vmem:[%s3629_s15 + $0x340] sm:$0xff] }
 0x137   : > { %v4260_v30 = vpop.f32.mrf.mxu0  ;;  %2015 = vmatpush.msra.mxu2 %v3069_v10 }
 0x138   : > { %1386 = vmatmul.f32.gmra.mxu2 %v4258_v4  ;;  %v1259_v4 = vrot.slane %v3885_v20, 2  ;;  %v1261_v20 = vrot.slane %v3940_v6, 2 }
 0x139   : > { %v4265_v0 = vpop.f32.mrf.mxu1 }
 0x13a   : > { %1548 = vmatmul.f32.gmra.mxu3 %v3871_v9  ;;  %1723 = vmatmul.f32.gmra.mxu0 %v3989_v59 }
 0x13b   : > { %v4270_v40 = vpop.f32.mrf.mxu2 }
 0x13c   : > { %1149 = vmatmul.f32.gmra.mxu1 %v3871_v9  ;;  %v3085_v9 = vld [vmem:[%s3629_s15 + $0x3c0] sm:$0xff] }
 0x13d   : > { %v4273_v8 = vpop.f32.mrf.mxu3  ;;  %2187 = vmatpush.msra.mxu3 %v3085_v9  ;;  %v3101_v9 = vld [vmem:[%s3629_s15 + $0x440] sm:$0xff] }
 0x13e   : > { %5038 = vst [vmem:[#allocation38_spill] sm:$0xff] %v4273_v8  ;;  %2356 = vmatpush.msra.mxu0 %v3101_v9 }
 0x13f   : > { %v4278_v37 = vpop.f32.mrf.mxu0 }
 0x140   : > { %1389 = vmatmul.f32.gmra.mxu2 %v4276_v3  ;;  %v4295_v3 = vsel %vm1230_vm1, %v1257_v63, %v1259_v4 }
 0x141   : > { %v4283_v59 = vpop.f32.mrf.mxu1  ;;  %5041 = vst [vmem:[#allocation41_spill] sm:$0xff] %v4295_v3 }
 0x142   : > { %1551 = vmatmul.f32.gmra.mxu3 %v3940_v6  ;;  %1726 = vmatmul.f32.gmra.mxu0 %v4036_v52  ;;  %v1262_v52 = vrot.slane %v3942_v7, 2 }
 0x143   : > { %v4288_v36 = vpop.f32.mrf.mxu2 }
 0x144   : > { %1152 = vmatmul.f32.gmra.mxu1 %v3940_v6  ;;  %v4313_v6 = vsel %vm1230_vm1, %v1261_v20, %v1262_v52  ;;  %v3052_v20 = vld [vmem:[%s3629_s15 + $0x2b8] sm:$0xff] }
 0x145   : > { %v4292_v8 = vpop.f32.mrf.mxu3  ;;  %5043 = vst [vmem:[#allocation43_spill] sm:$0xff] %v4313_v6  ;;  %1854 = vmatpush.msra.mxu1 %v3052_v20 }
 0x146   : > { %5040 = vst [vmem:[#allocation40_spill] sm:$0xff] %v4292_v8  ;;  %v3068_v8 = vld [vmem:[%s3629_s15 + $0x338] sm:$0xff] }
 0x147   : > { %v4297_v10 = vpop.f32.mrf.mxu0  ;;  %2016 = vmatpush.msra.mxu2 %v3068_v8  ;;  %v1266_v8 = vrot.slane %v4040_v55, 2 }
 0x148   : > { %1392 = vmatmul.f32.gmra.mxu2 %v4295_v3  ;;  %v1264_v3 = vrot.slane %v3991_v60, 2 }
 0x149   : > { %v4302_v54 = vpop.f32.mrf.mxu1 }
 0x14a   : > { %1554 = vmatmul.f32.gmra.mxu3 %v3942_v7  ;;  %1729 = vmatmul.f32.gmra.mxu0 %v4075_v53 }
 0x14b   : > { %v4307_v63 = vpop.f32.mrf.mxu2 }
 0x14c   : > { %1155 = vmatmul.f32.gmra.mxu1 %v3942_v7  ;;  %v3084_v7 = vld [vmem:[%s3629_s15 + $0x3b8] sm:$0xff] }
 0x14d   : > { %v4310_v4 = vpop.f32.mrf.mxu3  ;;  %2188 = vmatpush.msra.mxu3 %v3084_v7  ;;  %v3100_v7 = vld [vmem:[%s3629_s15 + $0x438] sm:$0xff] }
 0x14e   : > { %5042 = vst [vmem:[#allocation42_spill] sm:$0xff] %v4310_v4  ;;  %2357 = vmatpush.msra.mxu0 %v3100_v7 }
 0x14f   : > { %v4315_v47 = vpop.f32.mrf.mxu0 }
 0x150   : > { %1395 = vmatmul.f32.gmra.mxu2 %v4313_v6  ;;  %v4332_v6 = vsel %vm1230_vm1, %v1262_v52, %v1264_v3 }
 0x151   : > { %v4320_v53 = vpop.f32.mrf.mxu1  ;;  %5046 = vst [vmem:[#allocation46_spill] sm:$0xff] %v4332_v6 }
 0x152   : > { %1557 = vmatmul.f32.gmra.mxu3 %v4040_v55  ;;  %1732 = vmatmul.f32.gmra.mxu0 %v4112_v19  ;;  %v1267_v19 = vrot.slane %v4042_v56, 2 }
 0x153   : > { %v4325_v9 = vpop.f32.mrf.mxu2 }
 0x154   : > { %5044 = vst [vmem:[#allocation44_spill] sm:$0xff] %v4325_v9  ;;  %1158 = vmatmul.f32.gmra.mxu1 %v4040_v55  ;;  %v4350_v55 = vsel %vm1230_vm1, %v1266_v8, %v1267_v19  ;;  %v3051_v8 = vld [vmem:[%s3629_s15 + $0x2b0] sm:$0xff] }
 0x155   : > { %v4329_v4 = vpop.f32.mrf.mxu3  ;;  %5049 = vst [vmem:[#allocation49_spill] sm:$0xff] %v4350_v55  ;;  %1855 = vmatpush.msra.mxu1 %v3051_v8  ;;  %v3066_v8 = vld [vmem:[%s3629_s15 + $0x328] sm:$0xff] }
 0x156   : > { %5045 = vst [vmem:[#allocation45_spill] sm:$0xff] %v4329_v4  ;;  %v3067_v4 = vld [vmem:[%s3629_s15 + $0x330] sm:$0xff] }
 0x157   : > { %v4334_v60 = vpop.f32.mrf.mxu0  ;;  %2017 = vmatpush.msra.mxu2 %v3067_v4  ;;  %v1271_v4 = vrot.slane %v3842_v44, 2 }
 0x158   : > { %1398 = vmatmul.f32.gmra.mxu2 %v4332_v6  ;;  %v1269_v6 = vrot.slane %v4077_v57, 2 }
 0x159   : > { %v4339_v9 = vpop.f32.mrf.mxu1  ;;  %2018 = vmatpush.msra.mxu2 %v3066_v8 }
 0x15a   : > { %1560 = vmatmul.f32.gmra.mxu3 %v4042_v56  ;;  %1735 = vmatmul.f32.gmra.mxu0 %v3862_v1 }
 0x15b   : > { %v4344_v52 = vpop.f32.mrf.mxu2 }
 0x15c   : > { %5047 = vst [vmem:[#allocation47_spill] sm:$0xff] %v4344_v52  ;;  %1161 = vmatmul.f32.gmra.mxu1 %v4042_v56  ;;  %v3083_v56 = vld [vmem:[%s3629_s15 + $0x3b0] sm:$0xff] }
 0x15d   : > { %v4347_v3 = vpop.f32.mrf.mxu3  ;;  %2189 = vmatpush.msra.mxu3 %v3083_v56  ;;  %v3099_v56 = vld [vmem:[%s3629_s15 + $0x430] sm:$0xff] }
 0x15e   : > { %5048 = vst [vmem:[#allocation48_spill] sm:$0xff] %v4347_v3  ;;  %2358 = vmatpush.msra.mxu0 %v3099_v56 }
 0x15f   : > { %v4352_v20 = vpop.f32.mrf.mxu0 }
 0x160   : > { %1401 = vmatmul.f32.gmra.mxu2 %v4350_v55  ;;  %v4367_v55 = vsel %vm1230_vm1, %v1267_v19, %v1269_v6 }
 0x161   : > { %v1117_v1 = vpop.f32.mrf.mxu1  ;;  %5052 = vst [vmem:[#allocation52_spill] sm:$0xff] %v4367_v55 }
 0x162   : > { %1563 = vmatmul.f32.gmra.mxu3 %v3842_v44  ;;  %1738 = vmatmul.f32.gmra.mxu0 %v3899_v32  ;;  %v1272_v32 = vrot.slane %v3848_v50, 2 }
 0x163   : > { %v4360_v7 = vpop.f32.mrf.mxu2 }
 0x164   : > { %5050 = vst [vmem:[#allocation50_spill] sm:$0xff] %v4360_v7  ;;  %1164 = vmatmul.f32.gmra.mxu1 %v3842_v44  ;;  %v4381_v6 = vsel %vm1230_vm1, %v1271_v4, %v1272_v32  ;;  %v1118_v7 = vadd.f32 %v1117_v1, %v4221_v31  ;;  %v3050_v4 = vld [vmem:[%s3629_s15 + $0x2a8] sm:$0xff]  ;;  %v1276_v31 = vrot.slane %v3906_v38, 2 }
 0x165   : > { %v4364_v3 = vpop.f32.mrf.mxu3  ;;  %5055 = vst [vmem:[#allocation55_spill] sm:$0xff] %v4381_v6  ;;  %1856 = vmatpush.msra.mxu1 %v3050_v4 }
 0x166   : > { %5051 = vst [vmem:[#allocation51_spill] sm:$0xff] %v4364_v3 }
 0x167   : > { %v1694_v57 = vpop.f32.mrf.mxu0 }
 0x168   : > { %1404 = vmatmul.f32.gmra.mxu2 %v4367_v55  ;;  %v1274_v55 = vrot.slane %v3857_v61, 2 }
 0x169   : > { %v1120_v52 = vpop.f32.mrf.mxu1 }
 0x16a   : > { %1566 = vmatmul.f32.gmra.mxu3 %v3848_v50  ;;  %1741 = vmatmul.f32.gmra.mxu0 %v3958_v23 }
 0x16b   : > { %v4375_v3 = vpop.f32.mrf.mxu2 }
 0x16c   : > { %5053 = vst [vmem:[#allocation53_spill] sm:$0xff] %v4375_v3  ;;  %1167 = vmatmul.f32.gmra.mxu1 %v3848_v50  ;;  %v3082_v50 = vld [vmem:[%s3629_s15 + $0x3a8] sm:$0xff]  ;;  %v4393_v3 = vsel %vm1230_vm1, %v1272_v32, %v1274_v55 }
 0x16d   : > { %v4378_v19 = vpop.f32.mrf.mxu3  ;;  %2190 = vmatpush.msra.mxu3 %v3082_v50  ;;  %v1277_v50 = vrot.slane %v3908_v39, 2  ;;  %v3098_v32 = vld [vmem:[%s3629_s15 + $0x428] sm:$0xff] }
 0x16e   : > { %5054 = vst [vmem:[#allocation54_spill] sm:$0xff] %v4378_v19  ;;  %2359 = vmatpush.msra.mxu0 %v3098_v32 }
 0x16f   : > { %v1697_v44 = vpop.f32.mrf.mxu0 }
 0x170   : > { %1407 = vmatmul.f32.gmra.mxu2 %v4381_v6 }
 0x171   : > { %v1123_v23 = vpop.f32.mrf.mxu1 }
 0x172   : > { %1569 = vmatmul.f32.gmra.mxu3 %v3906_v38  ;;  %1744 = vmatmul.f32.gmra.mxu0 %v4009_v42 }
 0x173   : > { %v1360_v56 = vpop.f32.mrf.mxu2 }
 0x174   : > { %v1456_v19 = vadd.f32 %v1360_v56, %v1118_v7  ;;  %1170 = vmatmul.f32.gmra.mxu1 %v3906_v38  ;;  %v1121_v56 = vadd.f32 %v1120_v52, %v4242_v12  ;;  %v4406_v38 = vsel %vm1230_vm1, %v1276_v31, %v1277_v50  ;;  %v3065_v12 = vld [vmem:[%s3629_s15 + $0x320] sm:$0xff]  ;;  %v1279_v52 = vrot.slane %v3964_v29, 2 }
 0x175   : > { %v1522_v6 = vpop.f32.mrf.mxu3  ;;  %2019 = vmatpush.msra.mxu2 %v3065_v12 }
 0x176   : > { %v1618_v61 = vadd.f32 %v1522_v6, %v1456_v19 }
 0x177   : > { %v1700_v8 = vpop.f32.mrf.mxu0 }
 0x178   : > { %v4395_v1 = vadd.f32 %v1694_v57, %v1618_v61  ;;  %1410 = vmatmul.f32.gmra.mxu2 %v4393_v3 }
 0x179   : > { %v1126_v7 = vpop.f32.mrf.mxu1 }
 0x17a   : > { %1572 = vmatmul.f32.gmra.mxu3 %v3908_v39  ;;  %1747 = vmatmul.f32.gmra.mxu0 %v4055_v35 }
 0x17b   : > { %v1363_v55 = vpop.f32.mrf.mxu2 }
 0x17c   : > { %v1457_v57 = vadd.f32 %v1363_v55, %v1121_v56  ;;  %1173 = vmatmul.f32.gmra.mxu1 %v3908_v39  ;;  %v1124_v56 = vadd.f32 %v1123_v23, %v4260_v30  ;;  %v3081_v39 = vld [vmem:[%s3629_s15 + $0x3a0] sm:$0xff]  ;;  %v1281_v30 = vrot.slane %v4012_v24, 2 }
 0x17d   : > { %v1525_v19 = vpop.f32.mrf.mxu3  ;;  %2191 = vmatpush.msra.mxu3 %v3081_v39 }
 0x17e   : > { %v1619_v6 = vadd.f32 %v1525_v19, %v1457_v57  ;;  %v4420_v57 = vsel %vm1230_vm1, %v1277_v50, %v1279_v52  ;;  %v3097_v50 = vld [vmem:[%s3629_s15 + $0x420] sm:$0xff] }
 0x17f   : > { %v1703_v4 = vpop.f32.mrf.mxu0  ;;  %2360 = vmatpush.msra.mxu0 %v3097_v50 }
 0x180   : > { %v4408_v61 = vadd.f32 %v1697_v44, %v1619_v6  ;;  %1413 = vmatmul.f32.gmra.mxu2 %v4406_v38  ;;  %v3049_v44 = vld [vmem:[%s3629_s15 + $0x2a0] sm:$0xff]  ;;  %v1282_v6 = vrot.slane %v4014_v27, 2 }
 0x181   : > { %v1129_v35 = vpop.f32.mrf.mxu1  ;;  %1857 = vmatpush.msra.mxu1 %v3049_v44 }
 0x182   : > { %1575 = vmatmul.f32.gmra.mxu3 %v4012_v24  ;;  %1750 = vmatmul.f32.gmra.mxu0 %v4089_v11 }
 0x183   : > { %v1366_v31 = vpop.f32.mrf.mxu2 }
 0x184   : > { %v1458_v32 = vadd.f32 %v1366_v31, %v1124_v56  ;;  %1176 = vmatmul.f32.gmra.mxu1 %v4012_v24  ;;  %v1127_v56 = vadd.f32 %v1126_v7, %v4278_v37  ;;  %v4433_v24 = vsel %vm1230_vm1, %v1281_v30, %v1282_v6  ;;  %v3064_v37 = vld [vmem:[%s3629_s15 + $0x318] sm:$0xff]  ;;  %v1284_v7 = vrot.slane %v4059_v18, 2 }
 0x185   : > { %v1528_v55 = vpop.f32.mrf.mxu3  ;;  %2020 = vmatpush.msra.mxu2 %v3064_v37 }
 0x186   : > { %v1620_v29 = vadd.f32 %v1528_v55, %v1458_v32 }
 0x187   : > { %v1706_v19 = vpop.f32.mrf.mxu0 }
 0x188   : > { %v4422_v23 = vadd.f32 %v1700_v8, %v1620_v29  ;;  %1416 = vmatmul.f32.gmra.mxu2 %v4420_v57  ;;  %v1130_v29 = vadd.f32 %v1129_v35, %v4297_v10  ;;  %v1286_v10 = vrot.slane %v4092_v16, 2 }
 0x189   : > { %v1132_v12 = vpop.f32.mrf.mxu1 }
 0x18a   : > { %1578 = vmatmul.f32.gmra.mxu3 %v4014_v27  ;;  %1753 = vmatmul.f32.gmra.mxu0 %v4122_v33  ;;  %v1133_v37 = vadd.f32 %v1132_v12, %v4315_v47  ;;  %v3063_v47 = vld [vmem:[%s3629_s15 + $0x310] sm:$0xff]  ;;  %v1289_v12 = vrot.slane %v4124_v17, 2 }
 0x18b   : > { %v1369_v52 = vpop.f32.mrf.mxu2  ;;  %2021 = vmatpush.msra.mxu2 %v3063_v47 }
 0x18c   : > { %v1459_v8 = vadd.f32 %v1369_v52, %v1127_v56  ;;  %1179 = vmatmul.f32.gmra.mxu1 %v4014_v27  ;;  %v3080_v27 = vld [vmem:[%s3629_s15 + $0x398] sm:$0xff]  ;;  %v4447_v52 = vsel %vm1230_vm1, %v1282_v6, %v1284_v7 }
 0x18d   : > { %v1531_v39 = vpop.f32.mrf.mxu3  ;;  %2192 = vmatpush.msra.mxu3 %v3080_v27  ;;  %v3096_v6 = vld [vmem:[%s3629_s15 + $0x418] sm:$0xff] }
 0x18e   : > { %v1621_v31 = vadd.f32 %v1531_v39, %v1459_v8  ;;  %v1287_v39 = vrot.slane %v4094_v21, 2  ;;  %2361 = vmatpush.msra.mxu0 %v3096_v6  ;;  %v3047_v6 = vld [vmem:[%s3629_s15 + $0x290] sm:$0xff] }
 0x18f   : > { %v1709_v32 = vpop.f32.mrf.mxu0 }
 0x190   : > { %v4435_v44 = vadd.f32 %v1703_v4, %v1621_v31  ;;  %1419 = vmatmul.f32.gmra.mxu2 %v4433_v24  ;;  %v3048_v4 = vld [vmem:[%s3629_s15 + $0x298] sm:$0xff]  ;;  %v4476_v17 = vsel %vm1230_vm1, %v1287_v39, %v1289_v12  ;;  %v3095_v12 = vld [vmem:[%s3629_s15 + $0x410] sm:$0xff] }
 0x191   : > { %v1135_v55 = vpop.f32.mrf.mxu1  ;;  %1858 = vmatpush.msra.mxu1 %v3048_v4  ;;  %2362 = vmatpush.msra.mxu0 %v3095_v12 }
 0x192   : > { %1581 = vmatmul.f32.gmra.mxu3 %v4092_v16  ;;  %1756 = vmatmul.f32.gmra.mxu0 %v4143_v5 }
 0x193   : > { %v1372_v30 = vpop.f32.mrf.mxu2  ;;  %1859 = vmatpush.msra.mxu1 %v3047_v6 }
 0x194   : > { %v1460_v56 = vadd.f32 %v1372_v30, %v1130_v29  ;;  %1182 = vmatmul.f32.gmra.mxu1 %v4092_v16  ;;  %v4460_v16 = vsel %vm1230_vm1, %v1286_v10, %v1287_v39  ;;  %v3079_v10 = vld [vmem:[%s3629_s15 + $0x390] sm:$0xff]  ;;  %v5061_v39 = vld [vmem:[#allocation21_spill] sm:$0xff] }
 0x195   : > { %v1534_v50 = vpop.f32.mrf.mxu3  ;;  %2193 = vmatpush.msra.mxu3 %v3079_v10 }
 0x196   : > { %v1622_v18 = vadd.f32 %v1534_v50, %v1460_v56  ;;  %v1136_v50 = vadd.f32 %v1135_v55, %v4334_v60 }
 0x197   : > { %v1712_v8 = vpop.f32.mrf.mxu0 }
 0x198   : > { %v4449_v35 = vadd.f32 %v1706_v19, %v1622_v18  ;;  %1422 = vmatmul.f32.gmra.mxu2 %v4447_v52  ;;  %v4468_v18 = vld [vmem:[#allocation2 + $0x120] sm:$0xff] }
 0x199   : > { %v1138_v31 = vpop.f32.mrf.mxu1 }
 0x19a   : > { %5056 = vst [vmem:[#allocation56_spill] sm:$0xff] %v4449_v35  ;;  %1584 = vmatmul.f32.gmra.mxu3 %v4094_v21  ;;  %1759 = vmatmul.f32.gmra.mxu0 %v3878_v14  ;;  %v1139_v10 = vadd.f32 %v1138_v31, %v4352_v20  ;;  %v3062_v20 = vld [vmem:[%s3629_s15 + $0x308] sm:$0xff]  ;;  %v3259_v31 = vld [vmem:[#allocation2 + $0x130] sm:$0x3]  ;;  %v4516_v35 = vld [vmem:[#allocation2 + $0x140] sm:$0xff] }
 0x19b   : > { %v1375_v7 = vpop.f32.mrf.mxu2  ;;  %v1294_v12 = vrot.slane %v3259_v31, 2  ;;  %2022 = vmatpush.msra.mxu2 %v3062_v20  ;;  %v3046_v31 = vld [vmem:[%s3629_s15 + $0x288] sm:$0xff]  ;;  %5065 = vst [vmem:[#allocation62_spill] sm:$0xff] %v4516_v35 }
 0x19c   : > { %v1461_v29 = vadd.f32 %v1375_v7, %v1133_v37  ;;  %1185 = vmatmul.f32.gmra.mxu1 %v4094_v21  ;;  %v5058_v21 = vld [vmem:[#allocation18_spill] sm:$0xff] }
 0x19d   : > { %v1537_v19 = vpop.f32.mrf.mxu3  ;;  %1860 = vmatpush.msra.mxu1 %v3046_v31 }
 0x19e   : > { %v1623_v27 = vadd.f32 %v1537_v19, %v1461_v29  ;;  %v1291_v19 = vrot.slane %v4468_v18, 2 }
 0x19f   : > { %v1715_v30 = vpop.f32.mrf.mxu0 }
 0x1a0   : > { %v4462_v56 = vadd.f32 %v1709_v32, %v1623_v27  ;;  %1425 = vmatmul.f32.gmra.mxu2 %v4460_v16  ;;  %v4482_v27 = vld [vmem:[#allocation2 + $0x128] sm:$0xff] }
 0x1a1   : > { %v1141_v4 = vpop.f32.mrf.mxu1  ;;  %5060 = vst [vmem:[#allocation59_spill] sm:$0xff] %v4482_v27  ;;  %v1292_v47 = vrot.slane %v4482_v27, 2 }
 0x1a2   : > { %5057 = vst [vmem:[#allocation57_spill] sm:$0xff] %v4462_v56  ;;  %1587 = vmatmul.f32.gmra.mxu3 %v4468_v18  ;;  %1762 = vmatmul.f32.gmra.mxu0 %v5058_v21  ;;  %v3262_v56 = vld [vmem:[%s3645_s16] ss:$0 sm:$0xff] }
 0x1a3   : > { %v1378_v37 = vpop.f32.mrf.mxu2  ;;  %v4491_v6 = vsel %vm1230_vm1, %v1291_v19, %v1292_v47  ;;  %v5063_v19 = vld [vmem:[#allocation23_spill] sm:$0xff] }
 0x1a4   : > { %v1462_v32 = vadd.f32 %v1378_v37, %v1136_v50  ;;  %1188 = vmatmul.f32.gmra.mxu1 %v4468_v18 }
 0x1a5   : > { %v1540_v7 = vpop.f32.mrf.mxu3 }
 0x1a6   : > { %v1624_v60 = vadd.f32 %v1540_v7, %v1462_v32 }
 0x1a7   : > { %v1718_v55 = vpop.f32.mrf.mxu0 }
 0x1a8   : > { %v4478_v29 = vadd.f32 %v1712_v8, %v1624_v60  ;;  %1428 = vmatmul.f32.gmra.mxu2 %v4476_v17 }
 0x1a9   : > { %v1144_v50 = vpop.f32.mrf.mxu1 }
 0x1aa   : > { %5059 = vst [vmem:[#allocation58_spill] sm:$0xff] %v4478_v29  ;;  %1590 = vmatmul.f32.gmra.mxu3 %v4482_v27  ;;  %1765 = vmatmul.f32.gmra.mxu0 %v5061_v39  ;;  %v4498_v39 = vld [vmem:[#allocation2 + $0x138] sm:$0xff] }
 0x1ab   : > { %v1381_v37 = vpop.f32.mrf.mxu2 }
 0x1ac   : > { %v1463_v8 = vadd.f32 %v1381_v37, %v1139_v10  ;;  %1191 = vmatmul.f32.gmra.mxu1 %v4482_v27  ;;  %v1142_v37 = vadd.f32 %v1141_v4, %v4211_v34  ;;  %v4508_v34 = vsel %vm1230_vm1, %v1292_v47, %v1294_v12 }
 0x1ad   : > { %v1543_v32 = vpop.f32.mrf.mxu3 }
 0x1ae   : > { %v1625_v7 = vadd.f32 %v1543_v32, %v1463_v8  ;;  %v546_v32 = vld [vmem:[%s3627_s10 + $0xf0] sm:$0xff] }
 0x1af   : > { %v1721_v60 = vpop.f32.mrf.mxu0 }
 0x1b0   : > { %v4493_v29 = vadd.f32 %v1715_v30, %v1625_v7  ;;  %1431 = vmatmul.f32.gmra.mxu2 %v4491_v6  ;;  %v3078_v30 = vld [vmem:[%s3629_s15 + $0x388] sm:$0xff] }
 0x1b1   : > { %v1147_v10 = vpop.f32.mrf.mxu1  ;;  %2194 = vmatpush.msra.mxu3 %v3078_v30  ;;  %v547_v30 = vld [vmem:[%s3627_s10 + $0xf8] sm:$0xff]  ;;  %s2652_s10 = sadd.s32 (%p3535_p13), %s3387_s27, %s3110_s12 }
 0x1b2   : > { %5062 = vst [vmem:[#allocation60_spill] sm:$0xff] %v4493_v29  ;;  %1593 = vmatmul.f32.gmra.mxu3 %v4498_v39  ;;  %1768 = vmatmul.f32.gmra.mxu0 %v5063_v19  ;;  %v3261_v29 = vld [vmem:[%s3640_s24] ss:$0 sm:$0xff] }
 0x1b3   : > { %v1384_v8 = vpop.f32.mrf.mxu2  ;;  %v582_v20 = vmul.f32 %v3261_v29, %v546_v32  ;;  %v1297_v32 = vrot.slane %v4516_v35, 2  ;;  %v583_v12 = vmul.f32 %v3261_v29, %v547_v30 }
 0x1b4   : > { %v1464_v7 = vadd.f32 %v1384_v8, %v1142_v37  ;;  %1194 = vmatmul.f32.gmra.mxu1 %v4498_v39  ;;  %v1296_v8 = vrot.slane %v4498_v39, 2 }
 0x1b5   : > { %v1546_v21 = vpop.f32.mrf.mxu3  ;;  %v618_v19 = vadd.f32 %v3262_v56, %v582_v20 }
 0x1b6   : > { %v1626_v4 = vadd.f32 %v1546_v21, %v1464_v7  ;;  %v1145_v21 = vadd.f32 %v1144_v50, %v4228_v51  ;;  %v5066_v7 = vld [vmem:[#allocation26_spill] sm:$0xff] }
 0x1b7   : > { %v1724_v27 = vpop.f32.mrf.mxu0  ;;  %v650_v37 = vmax.f32 %v618_v19, 0.0  ;;  %v619_v19 = vadd.f32 %v3262_v56, %v583_v12 }
 0x1b8   : > { %v4511_v14 = vadd.f32 %v1718_v55, %v1626_v4  ;;  %1434 = vmatmul.f32.gmra.mxu2 %v4508_v34  ;;  %v3094_v55 = vld [vmem:[%s3629_s15 + $0x408] sm:$0xff] }
 0x1b9   : > { %v1150_v47 = vpop.f32.mrf.mxu1  ;;  %737 = vst [vmem:[#allocation2 + $0x181] sm:$0xff] %v650_v37  ;;  %2363 = vmatpush.msra.mxu0 %v3094_v55  ;;  %v651_v29 = vmax.f32 %v619_v19, 0.0  ;;  %v3061_v37 = vld [vmem:[%s3629_s15 + $0x300] sm:$0xff]  ;;  %v3264_v55 = vld [vmem:[#allocation2 + $0x148] sm:$0x3] }
 0x1ba   : > { %5064 = vst [vmem:[#allocation61_spill] sm:$0xff] %v4511_v14  ;;  %1596 = vmatmul.f32.gmra.mxu3 %v4516_v35  ;;  %1771 = vmatmul.f32.gmra.mxu0 %v5066_v7  ;;  %v4525_v14 = vsel %vm1230_vm1, %v1296_v8, %v1297_v32  ;;  %v1299_v56 = vrot.slane %v3264_v55, 2  ;;  %v5069_v8 = vld [vmem:[#allocation28_spill] sm:$0xff] }
 0x1bb   : > { %v1387_v31 = vpop.f32.mrf.mxu2  ;;  %738 = vst [vmem:[#allocation2 + $0x189] sm:$0xff] %v651_v29  ;;  %2023 = vmatpush.msra.mxu2 %v3061_v37  ;;  %v3077_v19 = vld [vmem:[%s3629_s15 + $0x380] sm:$0xff] }
 0x1bc   : > { %v1465_v20 = vadd.f32 %v1387_v31, %v1145_v21  ;;  %1197 = vmatmul.f32.gmra.mxu1 %v4516_v35  ;;  %v1148_v21 = vadd.f32 %v1147_v10, %v4246_v41  ;;  %v4532_v31 = vld [vmem:[#allocation2 + $0x150] sm:$0xff]  ;;  %2195 = vmatpush.msra.mxu3 %v3077_v19 }
 0x1bd   : > { %v1549_v4 = vpop.f32.mrf.mxu3  ;;  %5068 = vst [vmem:[#allocation64_spill] sm:$0xff] %v4532_v31  ;;  %v1301_v55 = vrot.slane %v4532_v31, 2 }
 0x1be   : > { %v1627_v51 = vadd.f32 %v1549_v4, %v1465_v20  ;;  %v3045_v4 = vld [vmem:[%s3629_s15 + $0x280] sm:$0xff] }
 0x1bf   : > { %v1727_v50 = vpop.f32.mrf.mxu0  ;;  %1861 = vmatpush.msra.mxu1 %v3045_v4 }
 0x1c0   : > { %v4527_v30 = vadd.f32 %v1721_v60, %v1627_v51  ;;  %1437 = vmatmul.f32.gmra.mxu2 %v4525_v14  ;;  %v4540_v51 = vsel %vm1230_vm1, %v1297_v32, %v1299_v56  ;;  %v5072_v32 = vld [vmem:[#allocation32_spill] sm:$0xff] }
 0x1c1   : > { %v1153_v12 = vpop.f32.mrf.mxu1  ;;  %v3093_v56 = vld [vmem:[%s3629_s15 + $0x400] sm:$0xff]  ;;  %s3111_s15 = sshll.u32 (%p3535_p13), %s2652_s10, 3 }
 0x1c2   : > { %5067 = vst [vmem:[#allocation63_spill] sm:$0xff] %v4527_v30  ;;  %1599 = vmatmul.f32.gmra.mxu3 %v4532_v31  ;;  %1774 = vmatmul.f32.gmra.mxu0 %v5069_v8  ;;  %v4546_v8 = vld [vmem:[#allocation2 + $0x158] sm:$0xff]  ;;  %s4841_s20 = scalar_lea.vmem (%p3535_p13), %s4939_s4, %s3111_s15 }
 0x1c3   : > { %v1390_v20 = vpop.f32.mrf.mxu2  ;;  %5071 = vst [vmem:[#allocation66_spill] sm:$0xff] %v4546_v8  ;;  %2364 = vmatpush.msra.mxu0 %v3093_v56  ;;  %v1154_v56 = vadd.f32 %v1153_v12, %v4283_v59 }
 0x1c4   : > { %v1466_v60 = vadd.f32 %v1390_v20, %v1148_v21  ;;  %1200 = vmatmul.f32.gmra.mxu1 %v4532_v31  ;;  %v1302_v21 = vrot.slane %v4546_v8, 2  ;;  %v1151_v20 = vadd.f32 %v1150_v47, %v4265_v0  ;;  %v4560_v0 = vld [vmem:[#allocation2 + $0x188] sm:$0xff]  ;;  %v3267_v47 = vld [vmem:[#allocation2 + $0x160] sm:$0x3] }
 0x1c5   : > { %v1552_v29 = vpop.f32.mrf.mxu3 }
 0x1c6   : > { %v1628_v41 = vadd.f32 %v1552_v29, %v1466_v60  ;;  %v4555_v29 = vsel %vm1230_vm1, %v1301_v55, %v1302_v21 }
 0x1c7   : > { %v1730_v10 = vpop.f32.mrf.mxu0  ;;  %5073 = vst [vmem:[#allocation67_spill] sm:$0xff] %v4555_v29 }
 0x1c8   : > { %v4542_v37 = vadd.f32 %v1724_v27, %v1628_v41  ;;  %1440 = vmatmul.f32.gmra.mxu2 %v4540_v51 }
 0x1c9   : > { %v1156_v19 = vpop.f32.mrf.mxu1 }
 0x1ca   : > { %5070 = vst [vmem:[#allocation65_spill] sm:$0xff] %v4542_v37  ;;  %1602 = vmatmul.f32.gmra.mxu3 %v4546_v8  ;;  %1777 = vmatmul.f32.gmra.mxu0 %v5072_v32  ;;  %v1304_v32 = vrot.slane %v3267_v47, 2  ;;  %v1157_v35 = vadd.f32 %v1156_v19, %v4302_v54  ;;  %v1309_v19 = vrot.slane %v4133_v13, 2 }
 0x1cb   : > { %v1393_v60 = vpop.f32.mrf.mxu2 }
 0x1cc   : > { %v1467_v27 = vadd.f32 %v1393_v60, %v1151_v20  ;;  %1203 = vmatmul.f32.gmra.mxu1 %v4546_v8  ;;  %v5075_v20 = vld [vmem:[#allocation29_spill] sm:$0xff]  ;;  %v4564_v60 = vld [vmem:[#allocation2 + $0x180] sm:$0xff]  ;;  %v4571_v47 = vsel %vm1230_vm1, %v1302_v21, %v1304_v32 }
 0x1cd   : > { %v1555_v4 = vpop.f32.mrf.mxu3  ;;  %v1306_v31 = vrot.slane %v5075_v20, 2 }
 0x1ce   : > { %v1629_v41 = vadd.f32 %v1555_v4, %v1467_v27  ;;  %v1670_v27 = vrot.slane %v4564_v60, 1 }
 0x1cf   : > { %v1733_v37 = vpop.f32.mrf.mxu0 }
 0x1d0   : > { %v4557_v30 = vadd.f32 %v1727_v50, %v1629_v41  ;;  %1443 = vmatmul.f32.gmra.mxu2 %v4555_v29  ;;  %v1671_v50 = vrot.slane %v4560_v0, 1 }
 0x1d1   : > { %v1159_v7 = vpop.f32.mrf.mxu1 }
 0x1d2   : > { %5074 = vst [vmem:[#allocation68_spill] sm:$0xff] %v4557_v30  ;;  %1605 = vmatmul.f32.gmra.mxu3 %v5075_v20  ;;  %1780 = vmatmul.f32.gmra.mxu0 %v4146_v49  ;;  %v4574_v12 = vsel %vm874_vm0, %v1670_v27, %v1671_v50  ;;  %v4579_v49 = vld [vmem:[#allocation2 + $0x190] sm:$0x3] }
 0x1d3   : > { %v1396_v55 = vpop.f32.mrf.mxu2  ;;  %5076 = vst [vmem:[#allocation29_spill] sm:$0xff] %v4574_v12  ;;  %v1673_v32 = vrot.slane %v4579_v49, 1 }
 0x1d4   : > { %v1468_v4 = vadd.f32 %v1396_v55, %v1154_v56  ;;  %1206 = vmatmul.f32.gmra.mxu1 %v5075_v20  ;;  %v5077_v56 = vld [vmem:[#allocation30_spill] sm:$0xff] }
 0x1d5   : > { %v1558_v41 = vpop.f32.mrf.mxu3  ;;  %v1307_v55 = vrot.slane %v5077_v56, 2 }
 0x1d6   : > { %v1630_v30 = vadd.f32 %v1558_v41, %v1468_v4  ;;  %v4592_v41 = vsel %vm874_vm0, %v1671_v50, %v1673_v32 }
 0x1d7   : > { %v1736_v59 = vpop.f32.mrf.mxu0  ;;  %v4589_v27 = vsel %vm1230_vm1, %v1306_v31, %v1307_v55  ;;  %v4603_v50 = vsel %vm1230_vm1, %v1307_v55, %v1309_v19 }
 0x1d8   : > { %v4576_v8 = vadd.f32 %v1730_v10, %v1630_v30  ;;  %1446 = vmatmul.f32.gmra.mxu2 %v4571_v47 }
 0x1d9   : > { %v1162_v29 = vpop.f32.mrf.mxu1 }
 0x1da   : > { %1608 = vmatmul.f32.gmra.mxu3 %v5077_v56  ;;  %1783 = vmatmul.f32.gmra.mxu0 %v4574_v12 }
 0x1db   : > { %v1399_v21 = vpop.f32.mrf.mxu2 }
 0x1dc   : > { %v1469_v30 = vadd.f32 %v1399_v21, %v1157_v35  ;;  %1209 = vmatmul.f32.gmra.mxu1 %v5077_v56  ;;  %v1160_v35 = vadd.f32 %v1159_v7, %v4320_v53  ;;  %v1163_v53 = vadd.f32 %v1162_v29, %v4339_v9 }
 0x1dd   : > { %v1561_v10 = vpop.f32.mrf.mxu3 }
 0x1de   : > { %v1631_v20 = vadd.f32 %v1561_v10, %v1469_v30 }
 0x1df   : > { %v1739_v4 = vpop.f32.mrf.mxu0 }
 0x1e0   : > { %v4594_v54 = vadd.f32 %v1733_v37, %v1631_v20  ;;  %1449 = vmatmul.f32.gmra.mxu2 %v4589_v27 }
 0x1e1   : > { %v1165_v12 = vpop.f32.mrf.mxu1 }
 0x1e2   : > { %1611 = vmatmul.f32.gmra.mxu3 %v4564_v60  ;;  %1786 = vmatmul.f32.gmra.mxu0 %v4592_v41 }
 0x1e3   : > { %v1402_v31 = vpop.f32.mrf.mxu2 }
 0x1e4   : > { %v1470_v56 = vadd.f32 %v1402_v31, %v1160_v35  ;;  %1862 = vmatmul.f32.vlgmr.msra.gmra.mxu1 %v4167_v28  ;;  %v1166_v31 = vadd.f32 %v1165_v12, %v4251_v25 }
 0x1e5   : > { %v1564_v21 = vpop.f32.mrf.mxu3 }
 0x1e6   : > { %v1632_v37 = vadd.f32 %v1564_v21, %v1470_v56 }
 0x1e7   : > { %v1742_v32 = vpop.f32.mrf.mxu0 }
 0x1e8   : > { %v4605_v30 = vadd.f32 %v1736_v59, %v1632_v37  ;;  %1452 = vmatmul.f32.gmra.mxu2 %v4603_v50  ;;  %v3268_v59 = vld [vmem:[#allocation2 + $0x30] sm:$0xff] }
 0x1e9   : > { %v1168_v13 = vpop.f32.mrf.mxu1 }
 0x1ea   : > { %1614 = vmatmul.f32.gmra.mxu3 %v4560_v0  ;;  %2365 = vmatmul.f32.vlgmr.msra.gmra.mxu0 %v4188_v58 }
 0x1eb   : > { %v1405_v7 = vpop.f32.mrf.mxu2 }
 0x1ec   : > { %v1471_v10 = vadd.f32 %v1405_v7, %v1163_v53  ;;  %1865 = vmatmul.f32.gmra.mxu1 %v4178_v43  ;;  %v1169_v7 = vadd.f32 %v1168_v13, %v4270_v40 }
 0x1ed   : > { %v1567_v28 = vpop.f32.mrf.mxu3 }
 0x1ee   : > { %v1633_v55 = vadd.f32 %v1567_v28, %v1471_v10 }
 0x1ef   : > { %v1745_v20 = vpop.f32.mrf.mxu0 }
 0x1f0   : > { %v4612_v19 = vadd.f32 %v1739_v4, %v1633_v55  ;;  %2024 = vmatmul.f32.vlgmr.msra.gmra.mxu2 %v3268_v59  ;;  %v3269_v4 = vld [vmem:[#allocation2 + $0x38] sm:$0xff] }
 0x1f1   : > { %v1171_v35 = vpop.f32.mrf.mxu1 }
 0x1f2   : > { %2196 = vmatmul.f32.vlgmr.msra.gmra.mxu3 %v4024_v62  ;;  %2368 = vmatmul.f32.gmra.mxu0 %v4199_v48  ;;  %v1172_v59 = vadd.f32 %v1171_v35, %v4288_v36 }
 0x1f3   : > { %v1408_v9 = vpop.f32.mrf.mxu2 }
 0x1f4   : > { %v1472_v29 = vadd.f32 %v1408_v9, %v1166_v31  ;;  %1868 = vmatmul.f32.gmra.mxu1 %v4188_v58 }
 0x1f5   : > { %v1570_v56 = vpop.f32.mrf.mxu3 }
 0x1f6   : > { %v1634_v43 = vadd.f32 %v1570_v56, %v1472_v29 }
 0x1f7   : > { %v1748_v21 = vpop.f32.mrf.mxu0 }
 0x1f8   : > { %v4618_v37 = vadd.f32 %v1742_v32, %v1634_v43  ;;  %2027 = vmatmul.f32.gmra.mxu2 %v3269_v4  ;;  %v3270_v32 = vld [vmem:[#allocation2 + $0x48] sm:$0xff] }
 0x1f9   : > { %v1174_v53 = vpop.f32.mrf.mxu1 }
 0x1fa   : > { %2199 = vmatmul.f32.gmra.mxu3 %v4065_v22  ;;  %2371 = vmatmul.f32.gmra.mxu0 %v4209_v26  ;;  %v1175_v56 = vadd.f32 %v1174_v53, %v4307_v63  ;;  %v5081_v63 = vld [vmem:[#allocation37_spill] sm:$0xff] }
 0x1fb   : > { %v1411_v25 = vpop.f32.mrf.mxu2 }
 0x1fc   : > { %v1473_v62 = vadd.f32 %v1411_v25, %v1169_v7  ;;  %1871 = vmatmul.f32.gmra.mxu1 %v4199_v48  ;;  %v5079_v25 = vld [vmem:[#allocation44_spill] sm:$0xff] }
 0x1fd   : > { %v1573_v12 = vpop.f32.mrf.mxu3 }
 0x1fe   : > { %v1635_v58 = vadd.f32 %v1573_v12, %v1473_v62  ;;  %v5080_v12 = vld [vmem:[#allocation12_spill] sm:$0xff] }
 0x1ff   : > { %v1751_v10 = vpop.f32.mrf.mxu0 }
 0x200   : > { %v4624_v28 = vadd.f32 %v1745_v20, %v1635_v58  ;;  %2030 = vmatmul.f32.gmra.mxu2 %v3270_v32  ;;  %v3271_v20 = vld [vmem:[#allocation2 + $0x50] sm:$0xff] }
 0x201   : > { %v1177_v55 = vpop.f32.mrf.mxu1 }
 0x202   : > { %2202 = vmatmul.f32.gmra.mxu3 %v4100_v15  ;;  %2374 = vmatmul.f32.gmra.mxu0 %v4226_v2  ;;  %v1178_v62 = vadd.f32 %v1177_v55, %v5079_v25  ;;  %v5085_v55 = vld [vmem:[#allocation39_spill] sm:$0xff] }
 0x203   : > { %v1414_v22 = vpop.f32.mrf.mxu2 }
 0x204   : > { %v1474_v40 = vadd.f32 %v1414_v22, %v1172_v59  ;;  %1874 = vmatmul.f32.gmra.mxu1 %v4209_v26 }
 0x205   : > { %v1576_v13 = vpop.f32.mrf.mxu3 }
 0x206   : > { %v1636_v48 = vadd.f32 %v1576_v13, %v1474_v40  ;;  %v5083_v40 = vld [vmem:[#allocation47_spill] sm:$0xff] }
 0x207   : > { %v1754_v31 = vpop.f32.mrf.mxu0 }
 0x208   : > { %v4630_v9 = vadd.f32 %v1748_v21, %v1636_v48  ;;  %2033 = vmatmul.f32.gmra.mxu2 %v3271_v20  ;;  %v5078_v21 = vld [vmem:[#allocation34_spill] sm:$0xff]  ;;  %v5084_v48 = vld [vmem:[#allocation13_spill] sm:$0xff] }
 0x209   : > { %v1180_v29 = vpop.f32.mrf.mxu1 }
 0x20a   : > { %2205 = vmatmul.f32.gmra.mxu3 %v4130_v46  ;;  %2377 = vmatmul.f32.gmra.mxu0 %v4240_v45  ;;  %v1181_v13 = vadd.f32 %v1180_v29, %v5083_v40  ;;  %v5088_v29 = vld [vmem:[#allocation41_spill] sm:$0xff] }
 0x20b   : > { %v1417_v15 = vpop.f32.mrf.mxu2  ;;  %v5089_v40 = vld [vmem:[#allocation53_spill] sm:$0xff] }
 0x20c   : > { %v1475_v36 = vadd.f32 %v1417_v15, %v1175_v56  ;;  %1877 = vmatmul.f32.gmra.mxu1 %v4226_v2 }
 0x20d   : > { %v1579_v35 = vpop.f32.mrf.mxu3 }
 0x20e   : > { %v1637_v26 = vadd.f32 %v1579_v35, %v1475_v36 }
 0x20f   : > { %v1757_v43 = vpop.f32.mrf.mxu0 }
 0x210   : > { %v4636_v4 = vadd.f32 %v1751_v10, %v1637_v26  ;;  %2036 = vmatmul.f32.gmra.mxu2 %v5078_v21  ;;  %v5082_v10 = vld [vmem:[#allocation35_spill] sm:$0xff]  ;;  %v5086_v21 = vld [vmem:[#allocation50_spill] sm:$0xff] }
 0x211   : > { %v1183_v7 = vpop.f32.mrf.mxu1 }
 0x212   : > { %2208 = vmatmul.f32.gmra.mxu3 %v5080_v12  ;;  %2380 = vmatmul.f32.gmra.mxu0 %v5081_v63  ;;  %v1184_v25 = vadd.f32 %v1183_v7, %v5086_v21  ;;  %v5091_v7 = vld [vmem:[#allocation43_spill] sm:$0xff] }
 0x213   : > { %v1420_v46 = vpop.f32.mrf.mxu2 }
 0x214   : > { %v1476_v53 = vadd.f32 %v1420_v46, %v1178_v62  ;;  %1880 = vmatmul.f32.gmra.mxu1 %v4240_v45  ;;  %v5087_v62 = vld [vmem:[#allocation16_spill] sm:$0xff] }
 0x215   : > { %v1582_v58 = vpop.f32.mrf.mxu3 }
 0x216   : > { %v1638_v2 = vadd.f32 %v1582_v58, %v1476_v53 }
 0x217   : > { %v1760_v32 = vpop.f32.mrf.mxu0 }
 0x218   : > { %v4643_v59 = vadd.f32 %v1754_v31, %v1638_v2  ;;  %2039 = vmatmul.f32.gmra.mxu2 %v5082_v10  ;;  %v3272_v31 = vld [vmem:[#allocation2 + $0x78] sm:$0xff] }
 0x219   : > { %v1186_v22 = vpop.f32.mrf.mxu1 }
 0x21a   : > { %2211 = vmatmul.f32.gmra.mxu3 %v5084_v48  ;;  %2383 = vmatmul.f32.gmra.mxu0 %v5085_v55  ;;  %v5090_v48 = vld [vmem:[#allocation19_spill] sm:$0xff] }
 0x21b   : > { %v1423_v20 = vpop.f32.mrf.mxu2 }
 0x21c   : > { %v1477_v56 = vadd.f32 %v1423_v20, %v1181_v13  ;;  %1883 = vmatmul.f32.gmra.mxu1 %v5081_v63  ;;  %v1187_v13 = vadd.f32 %v1186_v22, %v5089_v40  ;;  %v5094_v22 = vld [vmem:[#allocation46_spill] sm:$0xff] }
 0x21d   : > { %v1585_v15 = vpop.f32.mrf.mxu3 }
 0x21e   : > { %v1639_v45 = vadd.f32 %v1585_v15, %v1477_v56 }
 0x21f   : > { %v1763_v36 = vpop.f32.mrf.mxu0 }
 0x220   : > { %v4650_v35 = vadd.f32 %v1757_v43, %v1639_v45  ;;  %2042 = vmatmul.f32.gmra.mxu2 %v3272_v31  ;;  %v3273_v43 = vld [vmem:[#allocation2 + $0x80] sm:$0xff] }
 0x221   : > { %v1189_v26 = vpop.f32.mrf.mxu1 }
 0x222   : > { %2214 = vmatmul.f32.gmra.mxu3 %v5087_v62  ;;  %2386 = vmatmul.f32.gmra.mxu0 %v5088_v29 }
 0x223   : > { %v1426_v12 = vpop.f32.mrf.mxu2 }
 0x224   : > { %v1478_v46 = vadd.f32 %v1426_v12, %v1184_v25  ;;  %1886 = vmatmul.f32.gmra.mxu1 %v5085_v55  ;;  %v5092_v25 = vld [vmem:[#allocation36_spill] sm:$0xff]  ;;  %v5093_v12 = vld [vmem:[#allocation22_spill] sm:$0xff] }
 0x225   : > { %v1588_v53 = vpop.f32.mrf.mxu3  ;;  %v1190_v62 = vadd.f32 %v1189_v26, %v5092_v25  ;;  %v5097_v26 = vld [vmem:[#allocation49_spill] sm:$0xff] }
 0x226   : > { %v1640_v63 = vadd.f32 %v1588_v53, %v1478_v46 }
 0x227   : > { %v1766_v58 = vpop.f32.mrf.mxu0 }
 0x228   : > { %v4656_v2 = vadd.f32 %v1760_v32, %v1640_v63  ;;  %2045 = vmatmul.f32.gmra.mxu2 %v3273_v43  ;;  %v3274_v32 = vld [vmem:[#allocation2 + $0x90] sm:$0xff] }
 0x229   : > { %v1192_v10 = vpop.f32.mrf.mxu1 }
 0x22a   : > { %2217 = vmatmul.f32.gmra.mxu3 %v5090_v48  ;;  %2389 = vmatmul.f32.gmra.mxu0 %v5091_v7  ;;  %v5095_v48 = vld [vmem:[#allocation38_spill] sm:$0xff] }
 0x22b   : > { %v1429_v20 = vpop.f32.mrf.mxu2 }
 0x22c   : > { %v1479_v56 = vadd.f32 %v1429_v20, %v1187_v13  ;;  %1889 = vmatmul.f32.gmra.mxu1 %v5088_v29  ;;  %v1193_v20 = vadd.f32 %v1192_v10, %v5095_v48  ;;  %v5100_v10 = vld [vmem:[#allocation52_spill] sm:$0xff] }
 0x22d   : > { %v1591_v15 = vpop.f32.mrf.mxu3 }
 0x22e   : > { %v1641_v55 = vadd.f32 %v1591_v15, %v1479_v56  ;;  %v5096_v56 = vld [vmem:[#allocation24_spill] sm:$0xff] }
 0x22f   : > { %v1769_v45 = vpop.f32.mrf.mxu0 }
 0x230   : > { %v4662_v31 = vadd.f32 %v1763_v36, %v1641_v55  ;;  %2048 = vmatmul.f32.gmra.mxu2 %v3274_v32  ;;  %v3275_v36 = vld [vmem:[#allocation2 + $0x98] sm:$0xff] }
 0x231   : > { %v1195_v21 = vpop.f32.mrf.mxu1 }
 0x232   : > { %2220 = vmatmul.f32.gmra.mxu3 %v5093_v12  ;;  %2392 = vmatmul.f32.gmra.mxu0 %v5094_v22 }
 0x233   : > { %v1432_v46 = vpop.f32.mrf.mxu2 }
 0x234   : > { %v1480_v53 = vadd.f32 %v1432_v46, %v1190_v62  ;;  %1892 = vmatmul.f32.gmra.mxu1 %v5091_v7  ;;  %v5098_v46 = vld [vmem:[#allocation40_spill] sm:$0xff] }
 0x235   : > { %v1594_v63 = vpop.f32.mrf.mxu3 }
 0x236   : > { %v1642_v29 = vadd.f32 %v1594_v63, %v1480_v53  ;;  %v1196_v53 = vadd.f32 %v1195_v21, %v5098_v46  ;;  %v5099_v63 = vld [vmem:[#allocation27_spill] sm:$0xff] }
 0x237   : > { %v1772_v43 = vpop.f32.mrf.mxu0  ;;  %v5103_v21 = vld [vmem:[#allocation55_spill] sm:$0xff] }
 0x238   : > { %v4668_v40 = vadd.f32 %v1766_v58, %v1642_v29  ;;  %2051 = vmatmul.f32.gmra.mxu2 %v3275_v36  ;;  %v3276_v58 = vld [vmem:[#allocation2 + $0xa8] sm:$0xff] }
 0x239   : > { %v1198_v13 = vpop.f32.mrf.mxu1 }
 0x23a   : > { %2223 = vmatmul.f32.gmra.mxu3 %v5096_v56  ;;  %2395 = vmatmul.f32.gmra.mxu0 %v5097_v26 }
 0x23b   : > { %v1435_v15 = vpop.f32.mrf.mxu2 }
 0x23c   : > { %v1481_v55 = vadd.f32 %v1435_v15, %v1193_v20  ;;  %1895 = vmatmul.f32.gmra.mxu1 %v5094_v22 }
 0x23d   : > { %v1597_v32 = vpop.f32.mrf.mxu3 }
 0x23e   : > { %v1643_v7 = vadd.f32 %v1597_v32, %v1481_v55  ;;  %v5101_v55 = vld [vmem:[#allocation42_spill] sm:$0xff] }
 0x23f   : > { %v1775_v25 = vpop.f32.mrf.mxu0  ;;  %v1199_v32 = vadd.f32 %v1198_v13, %v5101_v55 }
 0x240   : > { %v4674_v62 = vadd.f32 %v1769_v45, %v1643_v7  ;;  %2054 = vmatmul.f32.gmra.mxu2 %v3276_v58  ;;  %v3277_v45 = vld [vmem:[#allocation2 + $0xb0] sm:$0xff]  ;;  %v5102_v7 = vld [vmem:[#allocation31_spill] sm:$0xff] }
 0x241   : > { %v1201_v12 = vpop.f32.mrf.mxu1 }
 0x242   : > { %2226 = vmatmul.f32.gmra.mxu3 %v5099_v63  ;;  %2398 = vmatmul.f32.gmra.mxu0 %v5100_v10 }
 0x243   : > { %v1438_v29 = vpop.f32.mrf.mxu2 }
 0x244   : > { %v1482_v36 = vadd.f32 %v1438_v29, %v1196_v53  ;;  %1898 = vmatmul.f32.gmra.mxu1 %v5097_v26 }
 0x245   : > { %v1600_v48 = vpop.f32.mrf.mxu3 }
 0x246   : > { %v1644_v22 = vadd.f32 %v1600_v48, %v1482_v36  ;;  %v5104_v48 = vld [vmem:[#allocation45_spill] sm:$0xff] }
 0x247   : > { %v1778_v20 = vpop.f32.mrf.mxu0 }
 0x248   : > { %v4680_v56 = vadd.f32 %v1772_v43, %v1644_v22  ;;  %2057 = vmatmul.f32.gmra.mxu2 %v3277_v45  ;;  %v3278_v43 = vld [vmem:[#allocation2 + $0xc0] sm:$0xff]  ;;  %v1202_v22 = vadd.f32 %v1201_v12, %v5104_v48 }
 0x249   : > { %v1204_v15 = vpop.f32.mrf.mxu1  ;;  %v5105_v45 = vld [vmem:[#allocation14_spill] sm:$0xff] }
 0x24a   : > { %2229 = vmatmul.f32.gmra.mxu3 %v5102_v7  ;;  %2401 = vmatmul.f32.gmra.mxu0 %v5103_v21 }
 0x24b   : > { %v1441_v58 = vpop.f32.mrf.mxu2 }
 0x24c   : > { %v1483_v46 = vadd.f32 %v1441_v58, %v1199_v32  ;;  %1901 = vmatmul.f32.gmra.mxu1 %v5100_v10 }
 0x24d   : > { %v1603_v53 = vpop.f32.mrf.mxu3 }
 0x24e   : > { %v1645_v26 = vadd.f32 %v1603_v53, %v1483_v46  ;;  %v5106_v53 = vld [vmem:[#allocation48_spill] sm:$0xff] }
 0x24f   : > { %v1781_v63 = vpop.f32.mrf.mxu0 }
 0x250   : > { %v4686_v29 = vadd.f32 %v1775_v25, %v1645_v26  ;;  %2060 = vmatmul.f32.gmra.mxu2 %v3278_v43  ;;  %v3279_v25 = vld [vmem:[#allocation2 + $0xc8] sm:$0xff]  ;;  %v1205_v26 = vadd.f32 %v1204_v15, %v5106_v53  ;;  %v5107_v43 = vld [vmem:[#allocation17_spill] sm:$0xff] }
 0x251   : > { %v1207_v36 = vpop.f32.mrf.mxu1 }
 0x252   : > { %2232 = vmatmul.f32.gmra.mxu3 %v5105_v45  ;;  %2404 = vmatmul.f32.gmra.mxu0 %v4393_v3 }
 0x253   : > { %v1444_v13 = vpop.f32.mrf.mxu2 }
 0x254   : > { %v1484_v55 = vadd.f32 %v1444_v13, %v1202_v22  ;;  %1904 = vmatmul.f32.gmra.mxu1 %v5103_v21 }
 0x255   : > { %v1606_v32 = vpop.f32.mrf.mxu3 }
 0x256   : > { %v1646_v10 = vadd.f32 %v1606_v32, %v1484_v55  ;;  %v5108_v32 = vld [vmem:[#allocation51_spill] sm:$0xff] }
 0x257   : > { %v1784_v7 = vpop.f32.mrf.mxu0 }
 0x258   : > { %v4692_v58 = vadd.f32 %v1778_v20, %v1646_v10  ;;  %2063 = vmatmul.f32.gmra.mxu2 %v3279_v25  ;;  %v3280_v20 = vld [vmem:[#allocation2 + $0xd8] sm:$0xff]  ;;  %v1208_v10 = vadd.f32 %v1207_v36, %v5108_v32  ;;  %v5109_v25 = vld [vmem:[#allocation20_spill] sm:$0xff] }
 0x259   : > { %v1210_v46 = vpop.f32.mrf.mxu1 }
 0x25a   : > { %2235 = vmatmul.f32.gmra.mxu3 %v5107_v43  ;;  %2407 = vmatmul.f32.gmra.mxu0 %v4406_v38 }
 0x25b   : > { %v1447_v12 = vpop.f32.mrf.mxu2 }
 0x25c   : > { %v1485_v48 = vadd.f32 %v1447_v12, %v1205_v26  ;;  %1907 = vmatmul.f32.gmra.mxu1 %v4393_v3 }
 0x25d   : > { %v1609_v22 = vpop.f32.mrf.mxu3 }
 0x25e   : > { %v1647_v21 = vadd.f32 %v1609_v22, %v1485_v48  ;;  %v5110_v22 = vld [vmem:[#allocation54_spill] sm:$0xff] }
 0x25f   : > { %v1787_v45 = vpop.f32.mrf.mxu0 }
 0x260   : > { %v4698_v13 = vadd.f32 %v1781_v63, %v1647_v21  ;;  %2066 = vmatmul.f32.gmra.mxu2 %v3280_v20  ;;  %v3281_v63 = vld [vmem:[#allocation2 + $0xe0] sm:$0xff]  ;;  %v1211_v21 = vadd.f32 %v1210_v46, %v5110_v22  ;;  %v5111_v46 = vld [vmem:[#allocation25_spill] sm:$0xff] }
 0x261   : > { %v1863_v55 = vpop.f32.mrf.mxu1 }
 0x262   : > { %2238 = vmatmul.f32.gmra.mxu3 %v5109_v25  ;;  %2410 = vmatmul.f32.gmra.mxu0 %v4420_v57 }
 0x263   : > { %v1450_v15 = vpop.f32.mrf.mxu2 }
 0x264   : > { %v1486_v53 = vadd.f32 %v1450_v15, %v1208_v10  ;;  %1910 = vmatmul.f32.gmra.mxu1 %v4406_v38 }
 0x265   : > { %v1612_v26 = vpop.f32.mrf.mxu3 }
 0x266   : > { %v1648_v3 = vadd.f32 %v1612_v26, %v1486_v53  ;;  %v1959_v53 = vadd.f32 %v1863_v55, %v4395_v1 }
 0x267   : > { %v2366_v43 = vpop.f32.mrf.mxu0 }
 0x268   : > { %v4704_v12 = vadd.f32 %v1784_v7, %v1648_v3  ;;  %2069 = vmatmul.f32.gmra.mxu2 %v3281_v63  ;;  %v3282_v7 = vld [vmem:[#allocation2 + $0xf0] sm:$0xff] }
 0x269   : > { %v1866_v48 = vpop.f32.mrf.mxu1 }
 0x26a   : > { %2241 = vmatmul.f32.gmra.mxu3 %v4009_v42  ;;  %2413 = vmatmul.f32.gmra.mxu0 %v4433_v24 }
 0x26b   : > { %v1453_v36 = vpop.f32.mrf.mxu2 }
 0x26c   : > { %v1487_v20 = vadd.f32 %v1453_v36, %v1211_v21  ;;  %1913 = vmatmul.f32.gmra.mxu1 %v4420_v57  ;;  %v1960_v36 = vadd.f32 %v1866_v48, %v4408_v61 }
 0x26d   : > { %v1615_v32 = vpop.f32.mrf.mxu3 }
 0x26e   : > { %v1649_v38 = vadd.f32 %v1615_v32, %v1487_v20 }
 0x26f   : > { %v2369_v10 = vpop.f32.mrf.mxu0 }
 0x270   : > { %v4710_v25 = vadd.f32 %v1787_v45, %v1649_v38  ;;  %2072 = vmatmul.f32.gmra.mxu2 %v3282_v7  ;;  %v3283_v45 = vld [vmem:[#allocation2 + $0xf8] sm:$0xff] }
 0x271   : > { %v1869_v15 = vpop.f32.mrf.mxu1 }
 0x272   : > { %2244 = vmatmul.f32.gmra.mxu3 %v5111_v46  ;;  %2416 = vmatmul.f32.gmra.mxu0 %v4447_v52  ;;  %v1961_v7 = vadd.f32 %v1869_v15, %v4422_v23  ;;  %v3285_v23 = vld [vmem:[#allocation2 + $0x110] sm:$0xff] }
 0x273   : > { %v2025_v42 = vpop.f32.mrf.mxu2 }
 0x274   : > { %v2121_v26 = vadd.f32 %v2025_v42, %v1959_v53  ;;  %1916 = vmatmul.f32.gmra.mxu1 %v4433_v24 }
 0x275   : > { %v2197_v57 = vpop.f32.mrf.mxu3 }
 0x276   : > { %v2293_v3 = vadd.f32 %v2197_v57, %v2121_v26 }
 0x277   : > { %v2372_v63 = vpop.f32.mrf.mxu0 }
 0x278   : > { %v2462_v22 = vadd.f32 %v2366_v43, %v2293_v3  ;;  %2075 = vmatmul.f32.gmra.mxu2 %v3283_v45  ;;  %v3284_v43 = vld [vmem:[#allocation2 + $0x108] sm:$0xff] }
 0x279   : > { %v1872_v21 = vpop.f32.mrf.mxu1 }
 0x27a   : > { %2494 = vst [vmem:[%s3657_s3] sm:$0xff] %v2462_v22  ;;  %2247 = vmatmul.f32.gmra.mxu3 %v4089_v11  ;;  %2419 = vmatmul.f32.gmra.mxu0 %v4460_v16  ;;  %v2567_v61 = vmul.f32 %v2462_v22, %v2462_v22 }
 0x27b   : > { %v2028_v1 = vpop.f32.mrf.mxu2 }
 0x27c   : > { %v2122_v55 = vadd.f32 %v2028_v1, %v1960_v36  ;;  %1919 = vmatmul.f32.gmra.mxu1 %v4447_v52 }
 0x27d   : > { %v2200_v24 = vpop.f32.mrf.mxu3 }
 0x27e   : > { %v2294_v20 = vadd.f32 %v2200_v24, %v2122_v55 }
 0x27f   : > { %v2375_v32 = vpop.f32.mrf.mxu0 }
 0x280   : > { %v2463_v38 = vadd.f32 %v2369_v10, %v2294_v20  ;;  %2078 = vmatmul.f32.gmra.mxu2 %v3284_v43 }
 0x281   : > { %v1875_v53 = vpop.f32.mrf.mxu1 }
 0x282   : > { %2495 = vst [vmem:[%s3657_s3 + $0x8] sm:$0xff] %v2463_v38  ;;  %v2527_v48 = vadd.f32 %v2463_v38, %v2462_v22  ;;  %v2568_v11 = vmul.f32 %v2463_v38, %v2463_v38  ;;  %2250 = vmatmul.f32.gmra.mxu3 %v4122_v33  ;;  %2422 = vmatmul.f32.gmra.mxu0 %v4476_v17 }
 0x283   : > { %v2031_v46 = vpop.f32.mrf.mxu2  ;;  %v1962_v22 = vadd.f32 %v1872_v21, %v4435_v44  ;;  %v5112_v21 = vld [vmem:[#allocation56_spill] sm:$0xff] }
 0x284   : > { %v2599_v52 = vadd.f32 %v2568_v11, %v2567_v61  ;;  %v2123_v42 = vadd.f32 %v2031_v46, %v1961_v7  ;;  %1922 = vmatmul.f32.gmra.mxu1 %v4460_v16  ;;  %v1963_v38 = vadd.f32 %v1875_v53, %v5112_v21  ;;  %v5113_v7 = vld [vmem:[#allocation15_spill] sm:$0xff]  ;;  %v5118_v21 = vld [vmem:[#allocation21_spill] sm:$0xff] }
 0x285   : > { %v2203_v10 = vpop.f32.mrf.mxu3 }
 0x286   : > { %v2295_v26 = vadd.f32 %v2203_v10, %v2123_v42  ;;  %v5115_v42 = vld [vmem:[#allocation57_spill] sm:$0xff] }
 0x287   : > { %v2378_v57 = vpop.f32.mrf.mxu0 }
 0x288   : > { %v2464_v3 = vadd.f32 %v2372_v63, %v2295_v26  ;;  %2081 = vmatmul.f32.gmra.mxu2 %v3285_v23  ;;  %v5116_v23 = vld [vmem:[#allocation18_spill] sm:$0xff] }
 0x289   : > { %v1878_v15 = vpop.f32.mrf.mxu1 }
 0x28a   : > { %2496 = vst [vmem:[%s3657_s3 + $0x10] sm:$0xff] %v2464_v3  ;;  %v2528_v45 = vadd.f32 %v2527_v48, %v2464_v3  ;;  %v2569_v33 = vmul.f32 %v2464_v3, %v2464_v3  ;;  %2253 = vmatmul.f32.gmra.mxu3 %v4143_v5  ;;  %2425 = vmatmul.f32.gmra.mxu0 %v4491_v6 }
 0x28b   : > { %v2034_v36 = vpop.f32.mrf.mxu2  ;;  %v1964_v10 = vadd.f32 %v1878_v15, %v5115_v42 }
 0x28c   : > { %v2600_v1 = vadd.f32 %v2599_v52, %v2569_v33  ;;  %v2124_v16 = vadd.f32 %v2034_v36, %v1962_v22  ;;  %1925 = vmatmul.f32.gmra.mxu1 %v4476_v17  ;;  %v5114_v52 = vld [vmem:[#allocation59_spill] sm:$0xff] }
 0x28d   : > { %v2206_v55 = vpop.f32.mrf.mxu3 }
 0x28e   : > { %v2296_v63 = vadd.f32 %v2206_v55, %v2124_v16  ;;  %v5117_v16 = vld [vmem:[#allocation58_spill] sm:$0xff] }
 0x28f   : > { %v2381_v24 = vpop.f32.mrf.mxu0 }
 0x290   : > { %v2465_v20 = vadd.f32 %v2375_v32, %v2296_v63  ;;  %2084 = vmatmul.f32.gmra.mxu2 %v4468_v18 }
 0x291   : > { %v1881_v44 = vpop.f32.mrf.mxu1 }
 0x292   : > { %2497 = vst [vmem:[%s3657_s3 + $0x18] sm:$0xff] %v2465_v20  ;;  %v2529_v43 = vadd.f32 %v2528_v45, %v2465_v20  ;;  %v2570_v5 = vmul.f32 %v2465_v20, %v2465_v20  ;;  %2256 = vmatmul.f32.gmra.mxu3 %v5113_v7  ;;  %2428 = vmatmul.f32.gmra.mxu0 %v4508_v34 }
 0x293   : > { %v2037_v61 = vpop.f32.mrf.mxu2  ;;  %v1965_v55 = vadd.f32 %v1881_v44, %v5117_v16 }
 0x294   : > { %v2601_v48 = vadd.f32 %v2600_v1, %v2570_v5  ;;  %v2125_v17 = vadd.f32 %v2037_v61, %v1963_v38  ;;  %1928 = vmatmul.f32.gmra.mxu1 %v4491_v6  ;;  %v5119_v61 = vld [vmem:[#allocation62_spill] sm:$0xff] }
 0x295   : > { %v2209_v11 = vpop.f32.mrf.mxu3 }
 0x296   : > { %v2297_v32 = vadd.f32 %v2209_v11, %v2125_v17 }
 0x297   : > { %v2384_v46 = vpop.f32.mrf.mxu0 }
 0x298   : > { %v2466_v18 = vadd.f32 %v2378_v57, %v2297_v32  ;;  %2087 = vmatmul.f32.gmra.mxu2 %v5114_v52  ;;  %v5122_v52 = vld [vmem:[#allocation67_spill] sm:$0xff] }
 0x299   : > { %v1884_v53 = vpop.f32.mrf.mxu1 }
 0x29a   : > { %2498 = vst [vmem:[%s3657_s3 + $0x20] sm:$0xff] %v2466_v18  ;;  %v2530_v26 = vadd.f32 %v2529_v43, %v2466_v18  ;;  %v2571_v3 = vmul.f32 %v2466_v18, %v2466_v18  ;;  %2259 = vmatmul.f32.gmra.mxu3 %v5116_v23  ;;  %2431 = vmatmul.f32.gmra.mxu0 %v4525_v14  ;;  %v5121_v18 = vld [vmem:[#allocation23_spill] sm:$0xff] }
 0x29b   : > { %v2040_v22 = vpop.f32.mrf.mxu2 }
 0x29c   : > { %v2602_v45 = vadd.f32 %v2601_v48, %v2571_v3  ;;  %v2126_v6 = vadd.f32 %v2040_v22, %v1964_v10  ;;  %1931 = vmatmul.f32.gmra.mxu1 %v4508_v34  ;;  %v5120_v48 = vld [vmem:[#allocation60_spill] sm:$0xff] }
 0x29d   : > { %v2212_v33 = vpop.f32.mrf.mxu3  ;;  %v1966_v17 = vadd.f32 %v1884_v53, %v5120_v48  ;;  %v5123_v22 = vld [vmem:[#allocation64_spill] sm:$0xff] }
 0x29e   : > { %v2298_v57 = vadd.f32 %v2212_v33, %v2126_v6 }
 0x29f   : > { %v2387_v36 = vpop.f32.mrf.mxu0 }
 0x2a0   : > { %v2467_v1 = vadd.f32 %v2381_v24, %v2298_v57  ;;  %2090 = vmatmul.f32.gmra.mxu2 %v4498_v39 }
 0x2a1   : > { %v1887_v15 = vpop.f32.mrf.mxu1 }
 0x2a2   : > { %2499 = vst [vmem:[%s3657_s3 + $0x28] sm:$0xff] %v2467_v1  ;;  %v2531_v63 = vadd.f32 %v2530_v26, %v2467_v1  ;;  %v2572_v20 = vmul.f32 %v2467_v1, %v2467_v1  ;;  %2262 = vmatmul.f32.gmra.mxu3 %v5118_v21  ;;  %2434 = vmatmul.f32.gmra.mxu0 %v4540_v51  ;;  %v5125_v1 = vld [vmem:[#allocation26_spill] sm:$0xff] }
 0x2a3   : > { %v2043_v38 = vpop.f32.mrf.mxu2 }
 0x2a4   : > { %v2603_v43 = vadd.f32 %v2602_v45, %v2572_v20  ;;  %v2127_v34 = vadd.f32 %v2043_v38, %v1965_v55  ;;  %1934 = vmatmul.f32.gmra.mxu1 %v4525_v14  ;;  %v5124_v45 = vld [vmem:[#allocation61_spill] sm:$0xff]  ;;  %v5126_v38 = vld [vmem:[#allocation66_spill] sm:$0xff] }
 0x2a5   : > { %v2215_v5 = vpop.f32.mrf.mxu3  ;;  %v1967_v6 = vadd.f32 %v1887_v15, %v5124_v45 }
 0x2a6   : > { %v2299_v24 = vadd.f32 %v2215_v5, %v2127_v34 }
 0x2a7   : > { %v2390_v7 = vpop.f32.mrf.mxu0 }
 0x2a8   : > { %v2468_v39 = vadd.f32 %v2384_v46, %v2299_v24  ;;  %2093 = vmatmul.f32.gmra.mxu2 %v5119_v61 }
 0x2a9   : > { %v1890_v44 = vpop.f32.mrf.mxu1 }
 0x2aa   : > { %2500 = vst [vmem:[%s3657_s3 + $0x30] sm:$0xff] %v2468_v39  ;;  %v2532_v11 = vadd.f32 %v2531_v63, %v2468_v39  ;;  %v2573_v32 = vmul.f32 %v2468_v39, %v2468_v39  ;;  %2265 = vmatmul.f32.gmra.mxu3 %v5121_v18  ;;  %2437 = vmatmul.f32.gmra.mxu0 %v5122_v52  ;;  %v5128_v39 = vld [vmem:[#allocation28_spill] sm:$0xff] }
 0x2ab   : > { %v2046_v42 = vpop.f32.mrf.mxu2 }
 0x2ac   : > { %v2604_v10 = vadd.f32 %v2603_v43, %v2573_v32  ;;  %v2128_v14 = vadd.f32 %v2046_v42, %v1966_v17  ;;  %1937 = vmatmul.f32.gmra.mxu1 %v4540_v51  ;;  %v5127_v43 = vld [vmem:[#allocation63_spill] sm:$0xff]  ;;  %v5129_v42 = vld [vmem:[#allocation65_spill] sm:$0xff] }
 0x2ad   : > { %v2218_v26 = vpop.f32.mrf.mxu3  ;;  %v1968_v34 = vadd.f32 %v1890_v44, %v5127_v43 }
 0x2ae   : > { %v2300_v46 = vadd.f32 %v2218_v26, %v2128_v14 }
 0x2af   : > { %v2393_v3 = vpop.f32.mrf.mxu0 }
 0x2b0   : > { %v2469_v23 = vadd.f32 %v2387_v36, %v2300_v46  ;;  %2096 = vmatmul.f32.gmra.mxu2 %v5123_v22  ;;  %v5130_v46 = vld [vmem:[#allocation32_spill] sm:$0xff]  ;;  %v1840_v22 = vrot.slane %v4560_v0, 2 }
 0x2b1   : > { %v1893_v53 = vpop.f32.mrf.mxu1 }
 0x2b2   : > { %2501 = vst [vmem:[%s3657_s3 + $0x38] sm:$0xff] %v2469_v23  ;;  %v2533_v33 = vadd.f32 %v2532_v11, %v2469_v23  ;;  %v2574_v57 = vmul.f32 %v2469_v23, %v2469_v23  ;;  %2268 = vmatmul.f32.gmra.mxu3 %v5125_v1  ;;  %2440 = vmatmul.f32.gmra.mxu0 %v4571_v47 }
 0x2b3   : > { %v2049_v16 = vpop.f32.mrf.mxu2 }
 0x2b4   : > { %v2605_v55 = vadd.f32 %v2604_v10, %v2574_v57  ;;  %v2129_v51 = vadd.f32 %v2049_v16, %v1967_v6  ;;  %1940 = vmatmul.f32.gmra.mxu1 %v5122_v52  ;;  %v3286_v52 = vld [vmem:[#allocation2 + $0x168] sm:$0xff]  ;;  %v1969_v10 = vadd.f32 %v1893_v53, %v5129_v42  ;;  %v3287_v16 = vld [vmem:[#allocation2 + $0x170] sm:$0xff] }
 0x2b5   : > { %v2221_v63 = vpop.f32.mrf.mxu3 }
 0x2b6   : > { %v2301_v36 = vadd.f32 %v2221_v63, %v2129_v51  ;;  %v5131_v51 = vld [vmem:[#allocation68_spill] sm:$0xff] }
 0x2b7   : > { %v2396_v20 = vpop.f32.mrf.mxu0 }
 0x2b8   : > { %v2470_v21 = vadd.f32 %v2390_v7, %v2301_v36  ;;  %2099 = vmatmul.f32.gmra.mxu2 %v5126_v38  ;;  %v5132_v38 = vld [vmem:[#allocation33_spill] sm:$0xff] }
 0x2b9   : > { %v1896_v15 = vpop.f32.mrf.mxu1 }
 0x2ba   : > { %2502 = vst [vmem:[%s3657_s3 + $0x40] sm:$0xff] %v2470_v21  ;;  %v2534_v5 = vadd.f32 %v2533_v33, %v2470_v21  ;;  %v2575_v24 = vmul.f32 %v2470_v21, %v2470_v21  ;;  %2271 = vmatmul.f32.gmra.mxu3 %v5128_v39  ;;  %2443 = vmatmul.f32.gmra.mxu0 %v4589_v27 }
 0x2bb   : > { %v2052_v61 = vpop.f32.mrf.mxu2  ;;  %v1970_v63 = vadd.f32 %v1896_v15, %v5131_v51 }
 0x2bc   : > { %v2606_v48 = vadd.f32 %v2605_v55, %v2575_v24  ;;  %v2130_v17 = vadd.f32 %v2052_v61, %v1968_v34  ;;  %1943 = vmatmul.f32.gmra.mxu1 %v4571_v47  ;;  %v1839_v47 = vrot.slane %v4564_v60, 2 }
 0x2bd   : > { %v2224_v11 = vpop.f32.mrf.mxu3 }
 0x2be   : > { %v2302_v7 = vadd.f32 %v2224_v11, %v2130_v17  ;;  %v1841_v57 = vsel %vm1230_vm1, %v1839_v47, %v1840_v22  ;;  %v792_v47 = vld [vmem:[#allocation2 + $0x1a8] sm:$0x3] }
 0x2bf   : > { %v2399_v32 = vpop.f32.mrf.mxu0 }
 0x2c0   : > { %v2471_v18 = vadd.f32 %v2393_v3, %v2302_v7  ;;  %2102 = vmatmul.f32.gmra.mxu2 %v3286_v52 }
 0x2c1   : > { %v1899_v44 = vpop.f32.mrf.mxu1 }
 0x2c2   : > { %2503 = vst [vmem:[%s3657_s3 + $0x48] sm:$0xff] %v2471_v18  ;;  %v2535_v14 = vadd.f32 %v2534_v5, %v2471_v18  ;;  %v2576_v26 = vmul.f32 %v2471_v18, %v2471_v18  ;;  %2274 = vmatmul.f32.gmra.mxu3 %v5130_v46  ;;  %2446 = vmatmul.f32.gmra.mxu0 %v4603_v50  ;;  %v5133_v18 = vld [vmem:[#allocation29_spill] sm:$0xff] }
 0x2c3   : > { %v2055_v23 = vpop.f32.mrf.mxu2  ;;  %v1971_v17 = vadd.f32 %v1899_v44, %v4576_v8 }
 0x2c4   : > { %v2607_v45 = vadd.f32 %v2606_v48, %v2576_v26  ;;  %v2131_v3 = vadd.f32 %v2055_v23, %v1969_v10  ;;  %1946 = vmatmul.f32.gmra.mxu1 %v4589_v27  ;;  %v1842_v27 = vrot.slane %v4579_v49, 2 }
 0x2c5   : > { %v2227_v6 = vpop.f32.mrf.mxu3 }
 0x2c6   : > { %v2303_v33 = vadd.f32 %v2227_v6, %v2131_v3  ;;  %v1843_v61 = vsel %vm1230_vm1, %v1840_v22, %v1842_v27  ;;  %v2345_v3 = vrot.slane %v792_v47, 2 }
 0x2c7   : > { %v2402_v53 = vpop.f32.mrf.mxu0 }
 0x2c8   : > { %v2472_v1 = vadd.f32 %v2396_v20, %v2303_v33  ;;  %2105 = vmatmul.f32.gmra.mxu2 %v3287_v16 }
 0x2c9   : > { %v1902_v55 = vpop.f32.mrf.mxu1 }
 0x2ca   : > { %2504 = vst [vmem:[%s3657_s3 + $0x50] sm:$0xff] %v2472_v1  ;;  %v2536_v36 = vadd.f32 %v2535_v14, %v2472_v1  ;;  %v2577_v21 = vmul.f32 %v2472_v1, %v2472_v1  ;;  %2277 = vmatmul.f32.gmra.mxu3 %v5132_v38  ;;  %2449 = vmatmul.f32.gmra.mxu0 %v1841_v57 }
 0x2cb   : > { %v2058_v43 = vpop.f32.mrf.mxu2  ;;  %v1972_v44 = vadd.f32 %v1902_v55, %v4594_v54 }
 0x2cc   : > { %v2608_v34 = vadd.f32 %v2607_v45, %v2577_v21  ;;  %v2132_v5 = vadd.f32 %v2058_v43, %v1970_v63  ;;  %1949 = vmatmul.f32.gmra.mxu1 %v4603_v50  ;;  %v3288_v50 = vld [vmem:[#allocation2] sm:$0xff] }
 0x2cd   : > { %v2230_v20 = vpop.f32.mrf.mxu3  ;;  %v2342_v52 = vrot.slane %v3288_v50, 2  ;;  %v2173_v45 = vrot.slane %v3288_v50, 1 }
 0x2ce   : > { %v2304_v24 = vadd.f32 %v2230_v20, %v2132_v5 }
 0x2cf   : > { %v2405_v39 = vpop.f32.mrf.mxu0  ;;  %v2346_v1 = vsel %vm1230_vm1, %v2342_v52, %v2345_v3 }
 0x2d0   : > { %v2473_v15 = vadd.f32 %v2399_v32, %v2304_v24  ;;  %2108 = vmatmul.f32.gmra.mxu2 %v4564_v60 }
 0x2d1   : > { %v1905_v48 = vpop.f32.mrf.mxu1 }
 0x2d2   : > { %2505 = vst [vmem:[%s3657_s3 + $0x58] sm:$0xff] %v2473_v15  ;;  %v2537_v11 = vadd.f32 %v2536_v36, %v2473_v15  ;;  %v2578_v7 = vmul.f32 %v2473_v15, %v2473_v15  ;;  %2280 = vmatmul.f32.gmra.mxu3 %v5133_v18  ;;  %2452 = vmatmul.f32.gmra.mxu0 %v1843_v61  ;;  %v2176_v36 = vrot.slane %v792_v47, 1 }
 0x2d3   : > { %v2061_v49 = vpop.f32.mrf.mxu2  ;;  %v1973_v55 = vadd.f32 %v1905_v48, %v4605_v30 }
 0x2d4   : > { %v2609_v42 = vadd.f32 %v2608_v34, %v2578_v7  ;;  %v2133_v10 = vadd.f32 %v2061_v49, %v1971_v17  ;;  %1952 = vmatmul.f32.gmra.mxu1 %v1841_v57  ;;  %v2177_v34 = vsel %vm874_vm0, %v2173_v45, %v2176_v36 }
 0x2d5   : > { %v2233_v14 = vpop.f32.mrf.mxu3 }
 0x2d6   : > { %v2305_v32 = vadd.f32 %v2233_v14, %v2133_v10 }
 0x2d7   : > { %v2408_v26 = vpop.f32.mrf.mxu0 }
 0x2d8   : > { %v2474_v60 = vadd.f32 %v2402_v53, %v2305_v32  ;;  %2111 = vmatmul.f32.gmra.mxu2 %v4560_v0 }
 0x2d9   : > { %v1908_v8 = vpop.f32.mrf.mxu1 }
 0x2da   : > { %2506 = vst [vmem:[%s3657_s3 + $0x60] sm:$0xff] %v2474_v60  ;;  %v2538_v46 = vadd.f32 %v2537_v11, %v2474_v60  ;;  %v2579_v23 = vmul.f32 %v2474_v60, %v2474_v60  ;;  %2283 = vmatmul.f32.gmra.mxu3 %v4592_v41  ;;  %2455 = vmatmul.f32.gmra.mxu0 %v2342_v52 }
 0x2db   : > { %v2064_v22 = vpop.f32.mrf.mxu2  ;;  %v1974_v30 = vadd.f32 %v1908_v8, %v4612_v19 }
 0x2dc   : > { %v2610_v6 = vadd.f32 %v2609_v42, %v2579_v23  ;;  %v2134_v33 = vadd.f32 %v2064_v22, %v1972_v44  ;;  %1955 = vmatmul.f32.gmra.mxu1 %v1843_v61 }
 0x2dd   : > { %v2236_v53 = vpop.f32.mrf.mxu3 }
 0x2de   : > { %v2306_v57 = vadd.f32 %v2236_v53, %v2134_v33 }
 0x2df   : > { %v2411_v0 = vpop.f32.mrf.mxu0 }
 0x2e0   : > { %v2475_v54 = vadd.f32 %v2405_v39, %v2306_v57  ;;  %2114 = vmatmul.f32.gmra.mxu2 %v3288_v50 }
 0x2e1   : > { %v1911_v16 = vpop.f32.mrf.mxu1 }
 0x2e2   : > { %2507 = vst [vmem:[%s3657_s3 + $0x68] sm:$0xff] %v2475_v54  ;;  %v2539_v41 = vadd.f32 %v2538_v46, %v2475_v54  ;;  %v2580_v51 = vmul.f32 %v2475_v54, %v2475_v54  ;;  %2286 = vmatmul.f32.gmra.mxu3 %v2173_v45  ;;  %2458 = vmatmul.f32.gmra.mxu0 %v2346_v1 }
 0x2e3   : > { %v2067_v63 = vpop.f32.mrf.mxu2  ;;  %v1975_v42 = vadd.f32 %v1911_v16, %v4618_v37 }
 0x2e4   : > { %v2611_v21 = vadd.f32 %v2610_v6, %v2580_v51  ;;  %v2135_v38 = vadd.f32 %v2067_v63, %v1973_v55 }
 0x2e5   : > { %v2239_v43 = vpop.f32.mrf.mxu3 }
 0x2e6   : > { %v2307_v27 = vadd.f32 %v2239_v43, %v2135_v38 }
 0x2e7   : > { %v2414_v5 = vpop.f32.mrf.mxu0 }
 0x2e8   : > { %v2476_v20 = vadd.f32 %v2408_v26, %v2307_v27  ;;  %2117 = vmatmul.f32.gmra.mxu2 %v3288_v50 }
 0x2e9   : > { %v1914_v24 = vpop.f32.mrf.mxu1 }
 0x2ea   : > { %2508 = vst [vmem:[%s3657_s3 + $0x70] sm:$0xff] %v2476_v20  ;;  %v2540_v39 = vadd.f32 %v2539_v41, %v2476_v20  ;;  %v2581_v61 = vmul.f32 %v2476_v20, %v2476_v20  ;;  %2289 = vmatmul.f32.gmra.mxu3 %v2177_v34  ;;  %v1976_v23 = vadd.f32 %v1914_v24, %v4624_v28 }
 0x2eb   : > { %v2070_v15 = vpop.f32.mrf.mxu2 }
 0x2ec   : > { %v2612_v48 = vadd.f32 %v2611_v21, %v2581_v61  ;;  %v2136_v17 = vadd.f32 %v2070_v15, %v1974_v30 }
 0x2ed   : > { %v2242_v11 = vpop.f32.mrf.mxu3 }
 0x2ee   : > { %v2308_v7 = vadd.f32 %v2242_v11, %v2136_v17 }
 0x2ef   : > { %v2417_v18 = vpop.f32.mrf.mxu0 }
 0x2f0   : > { %v2477_v49 = vadd.f32 %v2411_v0, %v2308_v7 }
 0x2f1   : > { %v1917_v52 = vpop.f32.mrf.mxu1 }
 0x2f2   : > { %2509 = vst [vmem:[%s3657_s3 + $0x78] sm:$0xff] %v2477_v49  ;;  %v2541_v50 = vadd.f32 %v2540_v39, %v2477_v49  ;;  %v2582_v10 = vmul.f32 %v2477_v49, %v2477_v49  ;;  %v1977_v1 = vadd.f32 %v1917_v52, %v4630_v9 }
 0x2f3   : > { %v2073_v14 = vpop.f32.mrf.mxu2 }
 0x2f4   : > { %v2613_v19 = vadd.f32 %v2612_v48, %v2582_v10  ;;  %v2137_v32 = vadd.f32 %v2073_v14, %v1975_v42 }
 0x2f5   : > { %v2245_v26 = vpop.f32.mrf.mxu3 }
 0x2f6   : > { %v2309_v60 = vadd.f32 %v2245_v26, %v2137_v32 }
 0x2f7   : > { %v2420_v8 = vpop.f32.mrf.mxu0 }
 0x2f8   : > { %v2478_v44 = vadd.f32 %v2414_v5, %v2309_v60 }
 0x2f9   : > { %v1920_v46 = vpop.f32.mrf.mxu1 }
 0x2fa   : > { %2510 = vst [vmem:[%s3657_s3 + $0x80] sm:$0xff] %v2478_v44  ;;  %v2542_v47 = vadd.f32 %v2541_v50, %v2478_v44  ;;  %v2583_v22 = vmul.f32 %v2478_v44, %v2478_v44  ;;  %v1978_v43 = vadd.f32 %v1920_v46, %v4636_v4 }
 0x2fb   : > { %v2076_v45 = vpop.f32.mrf.mxu2 }
 0x2fc   : > { %v2614_v3 = vadd.f32 %v2613_v19, %v2583_v22  ;;  %v2138_v37 = vadd.f32 %v2076_v45, %v1976_v23 }
 0x2fd   : > { %v2248_v6 = vpop.f32.mrf.mxu3 }
 0x2fe   : > { %v2310_v33 = vadd.f32 %v2248_v6, %v2138_v37 }
 0x2ff   : > { %v2423_v53 = vpop.f32.mrf.mxu0 }
 0x300   : > { %v2479_v57 = vadd.f32 %v2417_v18, %v2310_v33 }
 0x301   : > { %v1923_v0 = vpop.f32.mrf.mxu1 }
 0x302   : > { %2511 = vst [vmem:[%s3657_s3 + $0x88] sm:$0xff] %v2479_v57  ;;  %v2543_v54 = vadd.f32 %v2542_v47, %v2479_v57  ;;  %v2584_v16 = vmul.f32 %v2479_v57, %v2479_v57  ;;  %v1979_v48 = vadd.f32 %v1923_v0, %v4643_v59 }
 0x303   : > { %v2079_v55 = vpop.f32.mrf.mxu2 }
 0x304   : > { %v2615_v41 = vadd.f32 %v2614_v3, %v2584_v16  ;;  %v2139_v28 = vadd.f32 %v2079_v55, %v1977_v1 }
 0x305   : > { %v2251_v51 = vpop.f32.mrf.mxu3 }
 0x306   : > { %v2311_v63 = vadd.f32 %v2251_v51, %v2139_v28 }
 0x307   : > { %v2426_v36 = vpop.f32.mrf.mxu0 }
 0x308   : > { %v2480_v21 = vadd.f32 %v2420_v8, %v2311_v63 }
 0x309   : > { %v1926_v38 = vpop.f32.mrf.mxu1 }
 0x30a   : > { %2512 = vst [vmem:[%s3657_s3 + $0x90] sm:$0xff] %v2480_v21  ;;  %v2544_v27 = vadd.f32 %v2543_v54, %v2480_v21  ;;  %v2585_v34 = vmul.f32 %v2480_v21, %v2480_v21  ;;  %v1980_v14 = vadd.f32 %v1926_v38, %v4650_v35 }
 0x30b   : > { %v2082_v5 = vpop.f32.mrf.mxu2 }
 0x30c   : > { %v2616_v20 = vadd.f32 %v2615_v41, %v2585_v34  ;;  %v2140_v9 = vadd.f32 %v2082_v5, %v1978_v43 }
 0x30d   : > { %v2254_v24 = vpop.f32.mrf.mxu3 }
 0x30e   : > { %v2312_v30 = vadd.f32 %v2254_v24, %v2140_v9 }
 0x30f   : > { %v2429_v39 = vpop.f32.mrf.mxu0 }
 0x310   : > { %v2481_v61 = vadd.f32 %v2423_v53, %v2312_v30 }
 0x311   : > { %v1929_v15 = vpop.f32.mrf.mxu1 }
 0x312   : > { %2513 = vst [vmem:[%s3657_s3 + $0x98] sm:$0xff] %v2481_v61  ;;  %v2545_v17 = vadd.f32 %v2544_v27, %v2481_v61  ;;  %v2586_v11 = vmul.f32 %v2481_v61, %v2481_v61  ;;  %v1981_v22 = vadd.f32 %v1929_v15, %v4656_v2 }
 0x313   : > { %v2085_v7 = vpop.f32.mrf.mxu2 }
 0x314   : > { %v2617_v18 = vadd.f32 %v2616_v20, %v2586_v11  ;;  %v2141_v4 = vadd.f32 %v2085_v7, %v1979_v48 }
 0x315   : > { %v2257_v49 = vpop.f32.mrf.mxu3 }
 0x316   : > { %v2313_v52 = vadd.f32 %v2257_v49, %v2141_v4 }
 0x317   : > { %v2432_v42 = vpop.f32.mrf.mxu0 }
 0x318   : > { %v2482_v50 = vadd.f32 %v2426_v36, %v2313_v52 }
 0x319   : > { %v1932_v10 = vpop.f32.mrf.mxu1 }
 0x31a   : > { %2514 = vst [vmem:[%s3657_s3 + $0xa0] sm:$0xff] %v2482_v50  ;;  %v2546_v19 = vadd.f32 %v2545_v17, %v2482_v50  ;;  %v2587_v32 = vmul.f32 %v2482_v50, %v2482_v50  ;;  %v1982_v1 = vadd.f32 %v1932_v10, %v4662_v31 }
 0x31b   : > { %v2088_v26 = vpop.f32.mrf.mxu2 }
 0x31c   : > { %v2618_v60 = vadd.f32 %v2617_v18, %v2587_v32  ;;  %v2142_v59 = vadd.f32 %v2088_v26, %v1980_v14 }
 0x31d   : > { %v2260_v8 = vpop.f32.mrf.mxu3 }
 0x31e   : > { %v2314_v44 = vadd.f32 %v2260_v8, %v2142_v59 }
 0x31f   : > { %v2435_v46 = vpop.f32.mrf.mxu0 }
 0x320   : > { %v2483_v23 = vadd.f32 %v2429_v39, %v2314_v44 }
 0x321   : > { %v1935_v47 = vpop.f32.mrf.mxu1 }
 0x322   : > { %2515 = vst [vmem:[%s3657_s3 + $0xa8] sm:$0xff] %v2483_v23  ;;  %v2547_v45 = vadd.f32 %v2546_v19, %v2483_v23  ;;  %v2588_v3 = vmul.f32 %v2483_v23, %v2483_v23  ;;  %v1983_v38 = vadd.f32 %v1935_v47, %v4668_v40 }
 0x323   : > { %v2091_v37 = vpop.f32.mrf.mxu2 }
 0x324   : > { %v2619_v6 = vadd.f32 %v2618_v60, %v2588_v3  ;;  %v2143_v35 = vadd.f32 %v2091_v37, %v1981_v22 }
 0x325   : > { %v2263_v33 = vpop.f32.mrf.mxu3 }
 0x326   : > { %v2315_v53 = vadd.f32 %v2263_v33, %v2143_v35 }
 0x327   : > { %v2438_v57 = vpop.f32.mrf.mxu0 }
 0x328   : > { %v2484_v0 = vadd.f32 %v2432_v42, %v2315_v53 }
 0x329   : > { %v1938_v41 = vpop.f32.mrf.mxu1 }
 0x32a   : > { %2516 = vst [vmem:[%s3657_s3 + $0xb0] sm:$0xff] %v2484_v0  ;;  %v2548_v54 = vadd.f32 %v2547_v45, %v2484_v0  ;;  %v2589_v16 = vmul.f32 %v2484_v0, %v2484_v0  ;;  %v1984_v39 = vadd.f32 %v1938_v41, %v4674_v62 }
 0x32b   : > { %v2094_v55 = vpop.f32.mrf.mxu2 }
 0x32c   : > { %v2620_v28 = vadd.f32 %v2619_v6, %v2589_v16  ;;  %v2144_v2 = vadd.f32 %v2094_v55, %v1982_v1 }
 0x32d   : > { %v2266_v51 = vpop.f32.mrf.mxu3 }
 0x32e   : > { %v2316_v63 = vadd.f32 %v2266_v51, %v2144_v2 }
 0x32f   : > { %v2441_v21 = vpop.f32.mrf.mxu0 }
 0x330   : > { %v2485_v36 = vadd.f32 %v2435_v46, %v2316_v63 }
 0x331   : > { %v1941_v9 = vpop.f32.mrf.mxu1 }
 0x332   : > { %2517 = vst [vmem:[%s3657_s3 + $0xb8] sm:$0xff] %v2485_v36  ;;  %v2549_v43 = vadd.f32 %v2548_v54, %v2485_v36  ;;  %v2590_v27 = vmul.f32 %v2485_v36, %v2485_v36  ;;  %v1985_v52 = vadd.f32 %v1941_v9, %v4680_v56 }
 0x333   : > { %v2097_v34 = vpop.f32.mrf.mxu2 }
 0x334   : > { %v2621_v5 = vadd.f32 %v2620_v28, %v2590_v27  ;;  %v2145_v31 = vadd.f32 %v2097_v34, %v1983_v38 }
 0x335   : > { %v2269_v20 = vpop.f32.mrf.mxu3 }
 0x336   : > { %v2317_v24 = vadd.f32 %v2269_v20, %v2145_v31 }
 0x337   : > { %v2444_v17 = vpop.f32.mrf.mxu0 }
 0x338   : > { %v2486_v30 = vadd.f32 %v2438_v57, %v2317_v24 }
 0x339   : > { %v1944_v4 = vpop.f32.mrf.mxu1 }
 0x33a   : > { %2518 = vst [vmem:[%s3657_s3 + $0xc0] sm:$0xff] %v2486_v30  ;;  %v2550_v61 = vadd.f32 %v2549_v43, %v2486_v30  ;;  %v2591_v15 = vmul.f32 %v2486_v30, %v2486_v30  ;;  %v1986_v8 = vadd.f32 %v1944_v4, %v4686_v29 }
 0x33b   : > { %v2100_v48 = vpop.f32.mrf.mxu2 }
 0x33c   : > { %v2622_v11 = vadd.f32 %v2621_v5, %v2591_v15  ;;  %v2146_v40 = vadd.f32 %v2100_v48, %v1984_v39 }
 0x33d   : > { %v2272_v7 = vpop.f32.mrf.mxu3 }
 0x33e   : > { %v2318_v18 = vadd.f32 %v2272_v7, %v2146_v40 }
 0x33f   : > { %v2447_v32 = vpop.f32.mrf.mxu0 }
 0x340   : > { %v2487_v49 = vadd.f32 %v2441_v21, %v2318_v18 }
 0x341   : > { %v1947_v59 = vpop.f32.mrf.mxu1 }
 0x342   : > { %2519 = vst [vmem:[%s3657_s3 + $0xc8] sm:$0xff] %v2487_v49  ;;  %v2551_v42 = vadd.f32 %v2550_v61, %v2487_v49  ;;  %v2592_v50 = vmul.f32 %v2487_v49, %v2487_v49  ;;  %v1987_v6 = vadd.f32 %v1947_v59, %v4692_v58 }
 0x343   : > { %v2103_v10 = vpop.f32.mrf.mxu2 }
 0x344   : > { %v2623_v14 = vadd.f32 %v2622_v11, %v2592_v50  ;;  %v2147_v62 = vadd.f32 %v2103_v10, %v1985_v52 }
 0x345   : > { %v2275_v19 = vpop.f32.mrf.mxu3 }
 0x346   : > { %v2319_v26 = vadd.f32 %v2275_v19, %v2147_v62 }
 0x347   : > { %v2450_v3 = vpop.f32.mrf.mxu0 }
 0x348   : > { %v2488_v60 = vadd.f32 %v2444_v17, %v2319_v26 }
 0x349   : > { %v1950_v57 = vpop.f32.mrf.mxu1 }
 0x34a   : > { %2520 = vst [vmem:[%s3657_s3 + $0xd0] sm:$0xff] %v2488_v60  ;;  %v2552_v44 = vadd.f32 %v2551_v42, %v2488_v60  ;;  %v2593_v46 = vmul.f32 %v2488_v60, %v2488_v60  ;;  %v1988_v41 = vadd.f32 %v1950_v57, %v4698_v13  ;;  %v2759_v57 = vld [vmem:[%s3657_s3 + $0x38] sm:$0xff] (%p3535_p13) }
 0x34b   : > { %v2106_v23 = vpop.f32.mrf.mxu2  ;;  %2760 = vst [vmem:[%s4841_s20 + $0x70] sm:$0xff] (%p3535_p13), %v2759_v57 }
 0x34c   : > { %v2624_v47 = vadd.f32 %v2623_v14, %v2593_v46  ;;  %v2148_v56 = vadd.f32 %v2106_v23, %v1986_v8  ;;  %v2526_v8 = vld [vmem:[%s3650_s11] sm:$0x1] }
 0x34d   : > { %v2278_v22 = vpop.f32.mrf.mxu3  ;;  %v2566_v23 = vld [vmem:[%s3655_s21] sm:$0x1] }
 0x34e   : > { %v2320_v45 = vadd.f32 %v2278_v22, %v2148_v56 }
 0x34f   : > { %v2453_v55 = vpop.f32.mrf.mxu0 }
 0x350   : > { %v2489_v37 = vadd.f32 %v2447_v32, %v2320_v45  ;;  %v2745_v45 = vld [vmem:[%s3657_s3] sm:$0xff] (%p3535_p13) }
 0x351   : > { %v1953_v36 = vpop.f32.mrf.mxu1  ;;  %2746 = vst [vmem:[%s4841_s20] sm:$0xff] (%p3535_p13), %v2745_v45 }
 0x352   : > { %2521 = vst [vmem:[%s3657_s3 + $0xd8] sm:$0xff] %v2489_v37  ;;  %v2553_v35 = vadd.f32 %v2552_v44, %v2489_v37  ;;  %v2594_v33 = vmul.f32 %v2489_v37, %v2489_v37  ;;  %v1989_v27 = vadd.f32 %v1953_v36, %v4704_v12  ;;  %v2749_v37 = vld [vmem:[%s3657_s3 + $0x10] sm:$0xff] (%p3535_p13)  ;;  %v2785_v36 = vld [vmem:[%s3657_s3 + $0xa0] sm:$0xff] (%p3535_p13) }
 0x353   : > { %v2109_v53 = vpop.f32.mrf.mxu2  ;;  %2750 = vst [vmem:[%s4841_s20 + $0x20] sm:$0xff] (%p3535_p13), %v2749_v37 }
 0x354   : > { %v2625_v0 = vadd.f32 %v2624_v47, %v2594_v33  ;;  %v2149_v29 = vadd.f32 %v2109_v53, %v1987_v6  ;;  %v2751_v6 = vld [vmem:[%s3657_s3 + $0x18] sm:$0xff] (%p3535_p13)  ;;  %v2755_v33 = vld [vmem:[%s3657_s3 + $0x28] sm:$0xff] (%p3535_p13)  ;;  %v2757_v53 = vld [vmem:[%s3657_s3 + $0x30] sm:$0xff] (%p3535_p13)  ;;  %2786 = vst [vmem:[%s4841_s20 + $0x140] sm:$0xff] (%p3535_p13), %v2785_v36 }
 0x355   : > { %v2281_v1 = vpop.f32.mrf.mxu3  ;;  %2752 = vst [vmem:[%s4841_s20 + $0x30] sm:$0xff] (%p3535_p13), %v2751_v6 }
 0x356   : > { %v2321_v54 = vadd.f32 %v2281_v1, %v2149_v29  ;;  %2756 = vst [vmem:[%s4841_s20 + $0x50] sm:$0xff] (%p3535_p13), %v2755_v33  ;;  %v2763_v29 = vld [vmem:[%s3657_s3 + $0x48] sm:$0xff] (%p3535_p13)  ;;  %v2765_v1 = vld [vmem:[%s3657_s3 + $0x50] sm:$0xff] (%p3535_p13) }
 0x357   : > { %v2456_v20 = vpop.f32.mrf.mxu0  ;;  %2758 = vst [vmem:[%s4841_s20 + $0x60] sm:$0xff] (%p3535_p13), %v2757_v53 }
 0x358   : > { %v2490_v16 = vadd.f32 %v2450_v3, %v2321_v54  ;;  %v2747_v3 = vld [vmem:[%s3657_s3 + $0x8] sm:$0xff] (%p3535_p13)  ;;  %v2767_v54 = vld [vmem:[%s3657_s3 + $0x58] sm:$0xff] (%p3535_p13)  ;;  %2764 = vst [vmem:[%s4841_s20 + $0x90] sm:$0xff] (%p3535_p13), %v2763_v29 }
 0x359   : > { %v1956_v39 = vpop.f32.mrf.mxu1  ;;  %2748 = vst [vmem:[%s4841_s20 + $0x10] sm:$0xff] (%p3535_p13), %v2747_v3 }
 0x35a   : > { %2522 = vst [vmem:[%s3657_s3 + $0xe0] sm:$0xff] %v2490_v16  ;;  %v2554_v28 = vadd.f32 %v2553_v35, %v2490_v16  ;;  %v2595_v2 = vmul.f32 %v2490_v16, %v2490_v16  ;;  %v1990_v15 = vadd.f32 %v1956_v39, %v4710_v25  ;;  %v2753_v35 = vld [vmem:[%s3657_s3 + $0x20] sm:$0xff] (%p3535_p13) }
 0x35b   : > { %v2112_v51 = vpop.f32.mrf.mxu2  ;;  %2754 = vst [vmem:[%s4841_s20 + $0x40] sm:$0xff] (%p3535_p13), %v2753_v35  ;;  %v2769_v16 = vld [vmem:[%s3657_s3 + $0x60] sm:$0xff] (%p3535_p13) }
 0x35c   : > { %v2626_v63 = vadd.f32 %v2625_v0, %v2595_v2  ;;  %v2150_v58 = vadd.f32 %v2112_v51, %v1988_v41  ;;  %v2761_v0 = vld [vmem:[%s3657_s3 + $0x40] sm:$0xff] (%p3535_p13)  ;;  %2766 = vst [vmem:[%s4841_s20 + $0xa0] sm:$0xff] (%p3535_p13), %v2765_v1  ;;  %v2773_v41 = vld [vmem:[%s3657_s3 + $0x70] sm:$0xff] (%p3535_p13)  ;;  %v2779_v51 = vld [vmem:[%s3657_s3 + $0x88] sm:$0xff] (%p3535_p13) }
 0x35d   : > { %v2284_v21 = vpop.f32.mrf.mxu3  ;;  %2762 = vst [vmem:[%s4841_s20 + $0x80] sm:$0xff] (%p3535_p13), %v2761_v0  ;;  %v2777_v2 = vld [vmem:[%s3657_s3 + $0x80] sm:$0xff] (%p3535_p13) }
 0x35e   : > { %v2322_v38 = vadd.f32 %v2284_v21, %v2150_v58  ;;  %2768 = vst [vmem:[%s4841_s20 + $0xb0] sm:$0xff] (%p3535_p13), %v2767_v54  ;;  %v2783_v58 = vld [vmem:[%s3657_s3 + $0x98] sm:$0xff] (%p3535_p13)  ;;  %v2787_v21 = vld [vmem:[%s3657_s3 + $0xa8] sm:$0xff] (%p3535_p13) }
 0x35f   : > { %v2459_v18 = vpop.f32.mrf.mxu0  ;;  %2770 = vst [vmem:[%s4841_s20 + $0xc0] sm:$0xff] (%p3535_p13), %v2769_v16 }
 0x360   : > { %v2491_v43 = vadd.f32 %v2453_v55, %v2322_v38  ;;  %v2771_v55 = vld [vmem:[%s3657_s3 + $0x68] sm:$0xff] (%p3535_p13)  ;;  %2774 = vst [vmem:[%s4841_s20 + $0xe0] sm:$0xff] (%p3535_p13), %v2773_v41  ;;  %v2789_v38 = vld [vmem:[%s3657_s3 + $0xb0] sm:$0xff] (%p3535_p13) }
 0x361   : > { %2772 = vst [vmem:[%s4841_s20 + $0xd0] sm:$0xff] (%p3535_p13), %v2771_v55 }
 0x362   : > { %2523 = vst [vmem:[%s3657_s3 + $0xe8] sm:$0xff] %v2491_v43  ;;  %v2555_v34 = vadd.f32 %v2554_v28, %v2491_v43  ;;  %v2596_v5 = vmul.f32 %v2491_v43, %v2491_v43  ;;  %v2775_v28 = vld [vmem:[%s3657_s3 + $0x78] sm:$0xff] (%p3535_p13) }
 0x363   : > { %v2115_v31 = vpop.f32.mrf.mxu2  ;;  %2776 = vst [vmem:[%s4841_s20 + $0xf0] sm:$0xff] (%p3535_p13), %v2775_v28  ;;  %v2791_v43 = vld [vmem:[%s3657_s3 + $0xb8] sm:$0xff] (%p3535_p13) }
 0x364   : > { %v2627_v9 = vadd.f32 %v2626_v63, %v2596_v5  ;;  %v2151_v13 = vadd.f32 %v2115_v31, %v1989_v27  ;;  %v2781_v63 = vld [vmem:[%s3657_s3 + $0x90] sm:$0xff] (%p3535_p13)  ;;  %2778 = vst [vmem:[%s4841_s20 + $0x100] sm:$0xff] (%p3535_p13), %v2777_v2  ;;  %v2793_v27 = vld [vmem:[%s3657_s3 + $0xc0] sm:$0xff] (%p3535_p13)  ;;  %v2799_v31 = vld [vmem:[%s3657_s3 + $0xd8] sm:$0xff] (%p3535_p13) }
 0x365   : > { %v2287_v24 = vpop.f32.mrf.mxu3  ;;  %2780 = vst [vmem:[%s4841_s20 + $0x110] sm:$0xff] (%p3535_p13), %v2779_v51  ;;  %v2797_v5 = vld [vmem:[%s3657_s3 + $0xd0] sm:$0xff] (%p3535_p13) }
 0x366   : > { %v2323_v30 = vadd.f32 %v2287_v24, %v2151_v13  ;;  %2782 = vst [vmem:[%s4841_s20 + $0x120] sm:$0xff] (%p3535_p13), %v2781_v63 }
 0x367   : > { %2784 = vst [vmem:[%s4841_s20 + $0x130] sm:$0xff] (%p3535_p13), %v2783_v58 }
 0x368   : > { %v2492_v61 = vadd.f32 %v2456_v20, %v2323_v30  ;;  %2788 = vst [vmem:[%s4841_s20 + $0x150] sm:$0xff] (%p3535_p13), %v2787_v21  ;;  %v2801_v20 = vld [vmem:[%s3657_s3 + $0xe0] sm:$0xff] (%p3535_p13) }
 0x369   : > { %2790 = vst [vmem:[%s4841_s20 + $0x160] sm:$0xff] (%p3535_p13), %v2789_v38 }
 0x36a   : > { %2524 = vst [vmem:[%s3657_s3 + $0xf0] sm:$0xff] %v2492_v61  ;;  %v2556_v48 = vadd.f32 %v2555_v34, %v2492_v61  ;;  %v2597_v17 = vmul.f32 %v2492_v61, %v2492_v61  ;;  %v2795_v34 = vld [vmem:[%s3657_s3 + $0xc8] sm:$0xff] (%p3535_p13) }
 0x36b   : > { %v2118_v11 = vpop.f32.mrf.mxu2  ;;  %2792 = vst [vmem:[%s4841_s20 + $0x170] sm:$0xff] (%p3535_p13), %v2791_v43 }
 0x36c   : > { %v2628_v40 = vadd.f32 %v2627_v9, %v2597_v17  ;;  %v2152_v12 = vadd.f32 %v2118_v11, %v1990_v15  ;;  %2794 = vst [vmem:[%s4841_s20 + $0x180] sm:$0xff] (%p3535_p13), %v2793_v27  ;;  %v2803_v9 = vld [vmem:[%s3657_s3 + $0xe8] sm:$0xff] (%p3535_p13) }
 0x36d   : > { %v2290_v7 = vpop.f32.mrf.mxu3  ;;  %2796 = vst [vmem:[%s4841_s20 + $0x190] sm:$0xff] (%p3535_p13), %v2795_v34 }
 0x36e   : > { %v2324_v4 = vadd.f32 %v2290_v7, %v2152_v12  ;;  %2798 = vst [vmem:[%s4841_s20 + $0x1a0] sm:$0xff] (%p3535_p13), %v2797_v5 }
 0x36f   : > { %2800 = vst [vmem:[%s4841_s20 + $0x1b0] sm:$0xff] (%p3535_p13), %v2799_v31 }
 0x370   : > { %v2493_v49 = vadd.f32 %v2459_v18, %v2324_v4  ;;  %2802 = vst [vmem:[%s4841_s20 + $0x1c0] sm:$0xff] (%p3535_p13), %v2801_v20 }
 0x371   : > { %v2805_v13 = vld [vmem:[%s3657_s3 + $0xf0] sm:$0xff] (%p3535_p13)  ;;  %2804 = vst [vmem:[%s4841_s20 + $0x1d0] sm:$0xff] (%p3535_p13), %v2803_v9 }
 0x372   : > { %2525 = vst [vmem:[%s3657_s3 + $0xf8] sm:$0xff] %v2493_v49  ;;  %v2557_v52 = vadd.f32 %v2556_v48, %v2493_v49  ;;  %v2598_v42 = vmul.f32 %v2493_v49, %v2493_v49 }
 0x373   : > { %2806 = vst [vmem:[%s4841_s20 + $0x1e0] sm:$0xff] (%p3535_p13), %v2805_v13 }
 0x374   : > { %v2558_v50 = vrot.slane %v2557_v52, 4  ;;  %v2629_v10 = vadd.f32 %v2628_v40, %v2598_v42 }
 0x376   : > { %v2559_v14 = vadd.f32 %v2558_v50, %v2557_v52  ;;  %v2630_v25 = vrot.slane %v2629_v10, 4 }
 0x378   : > { %v2560_v62 = vrot.slane %v2559_v14, 2  ;;  %v2631_v19 = vadd.f32 %v2630_v25, %v2629_v10 }
 0x379   : > { %v2807_v24 = vld [vmem:[%s3657_s3 + $0xf8] sm:$0xff] (%p3535_p13) }
 0x37a   : > { %v2561_v32 = vadd.f32 %v2560_v62, %v2559_v14  ;;  %v2632_v26 = vrot.slane %v2631_v19, 2  ;;  %2808 = vst [vmem:[%s4841_s20 + $0x1f0] sm:$0xff] (%p3535_p13), %v2807_v24 }
 0x37c   : > { %v2562_v60 = vrot.slane %v2561_v32, 1  ;;  %v2633_v59 = vadd.f32 %v2632_v26, %v2631_v19 }
 0x37e   : > { %v2563_v44 = vadd.f32 %v2562_v60, %v2561_v32  ;;  %v2634_v46 = vrot.slane %v2633_v59, 1 }
 0x380   : > { %v2564_v47 = vadd.f32 %v2563_v44, %v2526_v8  ;;  %v2635_v56 = vadd.f32 %v2634_v46, %v2633_v59  ;;  %2650 = sbr.rel (!%p3535_p13) target bundleno = 901 (0x385), region = 86 }
 0x382   : > { %2565 = vst [vmem:[%s3650_s11] sm:$0x1] %v2564_v47  ;;  %v2636_v22 = vadd.f32 %v2635_v56, %v2566_v23 }
 0x384   : > { %2637 = vst [vmem:[%s3655_s21] sm:$0x1] %v2636_v22 }
 0x385 PF: > { %s20_s30 = sadd.s32 1, %s3399_s30   ;;  %s5134_s26 = sld [smem:[#allocation11_spill]] }
 0x386   : > { %p17_p6 = scmp.ge.s32.totalorder %s20_s30, 6   ;;  %s5135_s27 = sld [smem:[#allocation8_spill]] }
 0x387   : > { %s5136_s28 = sld [smem:[#allocation9_spill]]  ;;  %s5138_s21 = smov %s3367_s22 }
 0x388   : > { %s5137_s14 = sld [smem:[#allocation10_spill]]  ;;  %s5139_s22 = smov %s3371_s23 }
 0x389   : > { %s5140_s23 = smov %s3527_s18  ;;  %s5141_s24 = smov %s3379_s25 }
 0x38a   :  { %19 = sbr.rel (!%p17_p6) target bundleno = 9 (0x9), region = 203 }
 0x38b   : > { %s5142_s25 = smov %s5134_s26 }
 0x38c   : > { %s5143_s26 = smov %s5135_s27  ;;  %s5144_s27 = smov %s3395_s29 }
 0x38e   : > { %s5145_s29 = smov %s5137_s14 }
 0x38f   :  { %2842 = vsyncpa [#allocation5], 1 }
 0x390   :  { %2844 = vsyncpa [#allocation5 + $0x1], 1 }

</bundles_post_ra>
